<compile_context>
chip_gen: v5e
topology: v5e:2x2
jax: 0.10.0
libtpu: 0.0.40
codegen_flags: <defaults>
</compile_context>

<pallas_src>
import jax
import jax.numpy as jnp
from jax import lax
from jax.experimental import pallas as pl
from jax.experimental.pallas import tpu as pltpu


_BN_EPS = 1e-5
_MATS_PER_BLOCK = 11      # up_h, up_w, shift_up, shift_dn, 3x conv1 mix, 3x conv2 mix, pseg


# ------------------------- in-kernel helpers -------------------------

def _mm(a, b):
    """2-D matmul on the MXU with f32 accumulation."""
    return jnp.dot(a, b, preferred_element_type=jnp.float32)


def _conv3x3(a, sh_up_ref, sh_dn_ref, m0_ref, m1_ref, m2_ref):
    """3x3 conv (padding=1) on the packed layout.

    a                : (n*h, cin*w)  packed activations
    sh_up / sh_dn    : (n*h, n*h)    zero-padded row shifts for taps ky=0 / ky=2
    m0 / m1 / m2     : (cin*w, cout*w) channel-mix + column-shift matrix per tap row
    returns          : (n*h, cout*w)
    """
    return (_mm(_mm(sh_up_ref[...], a), m0_ref[...])
            + _mm(a, m1_ref[...])
            + _mm(_mm(sh_dn_ref[...], a), m2_ref[...]))


def _bn_relu(y, pseg_ref):
    """Training-mode BatchNorm (batch stats, gamma=1, beta=0) + ReLU.

    pseg is the per-channel averaging matrix kron(I_cout, ones(w,w)) / (n*h*w),
    so one matmul + one sublane reduction gives the stats for ALL channels.
    Two-pass (centered) variance avoids E[x^2]-E[x]^2 cancellation.
    """
    p = pseg_ref[...]
    mean = jnp.sum(_mm(y, p), axis=0, keepdims=True)          # (1, cout*w)
    d = y - mean
    var = jnp.sum(_mm(d * d, p), axis=0, keepdims=True)       # (1, cout*w)
    return jnp.maximum(d * lax.rsqrt(var + _BN_EPS), 0.0)


# ------------------------- the fused kernel -------------------------

def _decoder_kernel(*refs):
    """refs = [x_packed, (11 matrices per block) * n_blocks, proj_mix, proj_bias, out]."""
    x_ref, o_ref = refs[0], refs[-1]
    mats = refs[1:-1]
    num_blocks = (len(mats) - 2) // _MATS_PER_BLOCK

    a = x_ref[...]                                             # (N*H0, Cin*W0)
    k = 0
    for _ in range(num_blocks):
        (uh, uw, sh_up, sh_dn,
         c10, c11, c12, c20, c21, c22, pseg) = mats[k:k + _MATS_PER_BLOCK]
        k += _MATS_PER_BLOCK
        # nearest x2 upsample: one-hot row/column stretch matmuls
        a = _mm(uh[...], _mm(a, uw[...]))
        # conv3x3 -> BN -> ReLU, twice
        a = _bn_relu(_conv3x3(a, sh_up, sh_dn, c10, c11, c12), pseg)
        a = _bn_relu(_conv3x3(a, sh_up, sh_dn, c20, c21, c22), pseg)

    # 1x1 projection + bias + sigmoid (exp on the EUP slot)
    z = _mm(a, mats[k][...]) + mats[k + 1][...]
    o_ref[...] = 1.0 / (1.0 + jnp.exp(-z))                     # (N*Hf, ncls*Wf)


# ------------------------- wrapper-side operand construction -------------------------

def _build_decoder_operands(x, params):
    """Pack the input and build the small structured matrices the kernel
    multiplies against.  This is tiny wrapper-side XLA (kron products of
    one-hot / weight matrices, ~2.5 MB total); nothing here is on the in-kernel
    hot path."""
    n, cin, h, w = x.shape
    f32 = jnp.float32

    # Channel-packed lane layout: A[n*h + y, c*w + x] = x[n, c, y, x].
    ops = [jnp.transpose(x, (0, 2, 1, 3)).reshape(n * h, cin * w)]

    def stretch2_rows(m):      # (2m, m) one-hot: out row y <- in row y // 2
        return jnp.repeat(jnp.eye(m, dtype=f32), 2, axis=0)

    def stretch2_cols(m):      # (m, 2m) one-hot: out col x <- in col x // 2
        return jnp.repeat(jnp.eye(m, dtype=f32), 2, axis=1)

    eye_n = jnp.eye(n, dtype=f32)
    for blk in params["blocks"]:
        # Conv biases are dropped: they cancel exactly in the beta=0 BatchNorm.
        w1 = blk["conv1"][0]                       # (cout, cin, 3, 3)
        w2 = blk["conv2"][0]                       # (cout, cout, 3, 3)
        cout = w1.shape[0]
        h, w = 2 * h, 2 * w                        # resolution this block runs at

        # x2 nearest upsample as left/right one-hot stretch matmuls.
        up_h = jnp.kron(eye_n, stretch2_rows(h // 2))                        # (n*h, n*h/2)
        up_w = jnp.kron(jnp.eye(cin, dtype=f32), stretch2_cols(w // 2))      # (cin*w/2, cin*w)

        # Zero-padded row shifts for conv tap rows ky=0 and ky=2 (ky=1 is identity).
        sh_up = jnp.kron(eye_n, jnp.eye(h, h, k=-1, dtype=f32))              # row y <- y-1
        sh_dn = jnp.kron(eye_n, jnp.eye(h, h, k=1, dtype=f32))               # row y <- y+1

        def mix(wts, ky, w=w):
            # (cin*w, cout*w): per-tap-row channel mixing fused with the
            # zero-padded column shift (out col x reads in col x + kx - 1).
            return sum(jnp.kron(wts[:, :, ky, kx].T,
                                jnp.eye(w, w, k=1 - kx, dtype=f32))
                       for kx in range(3))

        # Per-channel averaging matrix for BN stats (all channels at once).
        pseg = jnp.kron(jnp.eye(cout, dtype=f32),
                        jnp.ones((w, w), f32)) / float(n * h * w)

        ops += [up_h, up_w, sh_up, sh_dn,
                mix(w1, 0), mix(w1, 1), mix(w1, 2),
                mix(w2, 0), mix(w2, 1), mix(w2, 2), pseg]
        cin = cout

    # 1x1 projection: kron(wp.T, I_w) maps packed channels -> packed classes.
    wp, bp = params["project"]
    ops.append(jnp.kron(wp.T.astype(f32), jnp.eye(w, dtype=f32)))            # (cin*w, ncls*w)
    ops.append(jnp.repeat(bp.astype(f32), w)[None, :])                       # (1, ncls*w)
    return ops, (n, int(bp.shape[0]), h, w)


def decoder_forward(x, params):
    ops, (n, ncls, hf, wf) = _build_decoder_operands(x, params)
    vmem = pl.BlockSpec(memory_space=pltpu.MemorySpace.VMEM)
    out_flat = pl.pallas_call(
        _decoder_kernel,
        out_shape=jax.ShapeDtypeStruct((n * hf, ncls * wf), jnp.float32),
        in_specs=[vmem] * len(ops),
        out_specs=vmem,
    )(*ops)
    # Un-pack the lane-dense (N*H, ncls*W) slab back to NCHW outside the kernel
    # (contiguous reshape + one tiny XLA transpose).
    return out_flat.reshape(n, hf, ncls, wf).transpose(0, 2, 1, 3)


# ------------------------- parameter init -------------------------

def init_params(key, in_channels, num_classes):
    chans = [(in_channels, in_channels),
             (in_channels, in_channels // 2),
             (in_channels // 2, in_channels // 4)]
    blocks = []
    for cin, cout in chans:
        key, k1, k2, k3, k4 = jax.random.split(key, 5)
        blocks.append({
            # Biases are kept in the params (used by the reference); the kernel
            # drops them because they cancel in the beta=0 BatchNorm.
            "conv1": (0.1 * jax.random.normal(k1, (cout, cin, 3, 3), jnp.float32),
                      0.1 * jax.random.normal(k2, (cout,), jnp.float32)),
            "conv2": (0.1 * jax.random.normal(k3, (cout, cout, 3, 3), jnp.float32),
                      0.1 * jax.random.normal(k4, (cout,), jnp.float32)),
        })
    key, k1, k2 = jax.random.split(key, 3)
    project = (0.1 * jax.random.normal(k1, (num_classes, in_channels // 4), jnp.float32),
               0.1 * jax.random.normal(k2, (num_classes,), jnp.float32))
    return {"blocks": blocks, "project": project}


# ------------------------- pure-JAX reference -------------------------
# TODO(synk): eval-mode BatchNorm (running stats + learned affine) is not
# modeled; training-mode batch statistics with gamma=1 / beta=0 (a freshly
# initialized nn.BatchNorm2d) are used, matching this reference.

def _upsample2x_nchw(x):
    return jnp.repeat(jnp.repeat(x, 2, axis=2), 2, axis=3)


def reference_forward(x, params):
    hi = lax.Precision.HIGHEST

    def conv3x3(x, w, b):
        n, c, h, wd = x.shape
        xp = jnp.pad(x, ((0, 0), (0, 0), (1, 1), (1, 1)))
        out = jnp.zeros((n, w.shape[0], h, wd), jnp.float32)
        for dy in range(3):
            for dx in range(3):
                out = out + jnp.einsum("nchw,oc->nohw",
                                       xp[:, :, dy:dy + h, dx:dx + wd],
                                       w[:, :, dy, dx], precision=hi)
        return out + b[None, :, None, None]

    def bn_relu(y):
        mean = jnp.mean(y, axis=(0, 2, 3), keepdims=True)
        var = jnp.mean((y - mean) ** 2, axis=(0, 2, 3), keepdims=True)
        return jnp.maximum((y - mean) / jnp.sqrt(var + _BN_EPS), 0.0)

    for blk in params["blocks"]:
        x = _upsample2x_nchw(x)
        x = bn_relu(conv3x3(x, *blk["conv1"]))
        x = bn_relu(conv3x3(x, *blk["conv2"]))
    wp, bp = params["project"]
    z = jnp.einsum("nchw,kc->nkhw", x, wp, precision=hi) + bp[None, :, None, None]
    return 1.0 / (1.0 + jnp.exp(-z))


# ------------------------- main -------------------------

if __name__ == "__main__":
    key = jax.random.PRNGKey(0)
    kx, kp = jax.random.split(key)

    in_channels, num_classes = 8, 3
    N, H, W = 2, 8, 8
    x = jax.random.normal(kx, (N, in_channels, H, W), jnp.float32)   # NCHW
    params = init_params(kp, in_channels, num_classes)

    fwd = jax.jit(decoder_forward)
    out = jax.block_until_ready(fwd(x, params))

    expected = (N, num_classes, H * 8, W * 8)
    assert out.shape == expected, (out.shape, expected)
    assert bool(jnp.all((out >= 0.0) & (out <= 1.0)))                # sigmoid range

    ref = reference_forward(x, params)
    max_err = float(jnp.max(jnp.abs(out - ref)))
    # 5e-3: allows for MXU multi-pass f32 rounding inside the kernel vs the
    # HIGHEST-precision XLA einsum reference; any structural error would be >0.1.
    assert max_err < 5e-3, max_err

    print("KERNEL_OK")
</pallas_src>

<mosaic_0001>
module attributes {stable_mosaic.version = 11 : i64} {
  func.func @_decoder_kernel(%arg0: memref<16x64xf32, #tpu.memory_space<vmem>>, %arg1: memref<32x16xf32, #tpu.memory_space<vmem>>, %arg2: memref<64x128xf32, #tpu.memory_space<vmem>>, %arg3: memref<32x32xf32, #tpu.memory_space<vmem>>, %arg4: memref<32x32xf32, #tpu.memory_space<vmem>>, %arg5: memref<128x128xf32, #tpu.memory_space<vmem>>, %arg6: memref<128x128xf32, #tpu.memory_space<vmem>>, %arg7: memref<128x128xf32, #tpu.memory_space<vmem>>, %arg8: memref<128x128xf32, #tpu.memory_space<vmem>>, %arg9: memref<128x128xf32, #tpu.memory_space<vmem>>, %arg10: memref<128x128xf32, #tpu.memory_space<vmem>>, %arg11: memref<128x128xf32, #tpu.memory_space<vmem>>, %arg12: memref<64x32xf32, #tpu.memory_space<vmem>>, %arg13: memref<128x256xf32, #tpu.memory_space<vmem>>, %arg14: memref<64x64xf32, #tpu.memory_space<vmem>>, %arg15: memref<64x64xf32, #tpu.memory_space<vmem>>, %arg16: memref<256x128xf32, #tpu.memory_space<vmem>>, %arg17: memref<256x128xf32, #tpu.memory_space<vmem>>, %arg18: memref<256x128xf32, #tpu.memory_space<vmem>>, %arg19: memref<128x128xf32, #tpu.memory_space<vmem>>, %arg20: memref<128x128xf32, #tpu.memory_space<vmem>>, %arg21: memref<128x128xf32, #tpu.memory_space<vmem>>, %arg22: memref<128x128xf32, #tpu.memory_space<vmem>>, %arg23: memref<128x64xf32, #tpu.memory_space<vmem>>, %arg24: memref<128x256xf32, #tpu.memory_space<vmem>>, %arg25: memref<128x128xf32, #tpu.memory_space<vmem>>, %arg26: memref<128x128xf32, #tpu.memory_space<vmem>>, %arg27: memref<256x128xf32, #tpu.memory_space<vmem>>, %arg28: memref<256x128xf32, #tpu.memory_space<vmem>>, %arg29: memref<256x128xf32, #tpu.memory_space<vmem>>, %arg30: memref<128x128xf32, #tpu.memory_space<vmem>>, %arg31: memref<128x128xf32, #tpu.memory_space<vmem>>, %arg32: memref<128x128xf32, #tpu.memory_space<vmem>>, %arg33: memref<128x128xf32, #tpu.memory_space<vmem>>, %arg34: memref<128x192xf32, #tpu.memory_space<vmem>>, %arg35: memref<1x192xf32, #tpu.memory_space<vmem>>, %arg36: memref<128x192xf32, #tpu.memory_space<vmem>>) attributes {dimension_semantics = [], scalar_prefetch = 0 : i64, scratch_operands = 0 : i64, tpu.core_type = #tpu.core_type<tc>} {
    %c0 = arith.constant 0 : index
    %c0_0 = arith.constant 0 : index
    %0 = vector.load %arg0[%c0, %c0_0] : memref<16x64xf32, #tpu.memory_space<vmem>>, vector<16x64xf32>
    %c0_1 = arith.constant 0 : index
    %c0_2 = arith.constant 0 : index
    %1 = vector.load %arg1[%c0_1, %c0_2] : memref<32x16xf32, #tpu.memory_space<vmem>>, vector<32x16xf32>
    %c0_3 = arith.constant 0 : index
    %c0_4 = arith.constant 0 : index
    %2 = vector.load %arg2[%c0_3, %c0_4] : memref<64x128xf32, #tpu.memory_space<vmem>>, vector<64x128xf32>
    %cst = arith.constant dense<0.000000e+00> : vector<16x128xf32>
    %3 = tpu.matmul %0, %2, %cst {dimension_numbers = #tpu.dot_dimension_numbers<[1], [0], [0], [1], [0, 0, 1, 1], [], []>} : vector<16x64xf32>, vector<64x128xf32>, vector<16x128xf32> -> vector<16x128xf32>
    %cst_5 = arith.constant dense<0.000000e+00> : vector<32x128xf32>
    %4 = tpu.matmul %1, %3, %cst_5 {dimension_numbers = #tpu.dot_dimension_numbers<[1], [0], [0], [1], [0, 0, 1, 1], [], []>} : vector<32x16xf32>, vector<16x128xf32>, vector<32x128xf32> -> vector<32x128xf32>
    %c0_6 = arith.constant 0 : index
    %c0_7 = arith.constant 0 : index
    %5 = vector.load %arg3[%c0_6, %c0_7] : memref<32x32xf32, #tpu.memory_space<vmem>>, vector<32x32xf32>
    %cst_8 = arith.constant dense<0.000000e+00> : vector<32x128xf32>
    %6 = tpu.matmul %5, %4, %cst_8 {dimension_numbers = #tpu.dot_dimension_numbers<[1], [0], [0], [1], [0, 0, 1, 1], [], []>} : vector<32x32xf32>, vector<32x128xf32>, vector<32x128xf32> -> vector<32x128xf32>
    %c0_9 = arith.constant 0 : index
    %c0_10 = arith.constant 0 : index
    %7 = vector.load %arg5[%c0_9, %c0_10] : memref<128x128xf32, #tpu.memory_space<vmem>>, vector<128x128xf32>
    %cst_11 = arith.constant dense<0.000000e+00> : vector<32x128xf32>
    %8 = tpu.matmul %6, %7, %cst_11 {dimension_numbers = #tpu.dot_dimension_numbers<[1], [0], [0], [1], [0, 0, 1, 1], [], []>} : vector<32x128xf32>, vector<128x128xf32>, vector<32x128xf32> -> vector<32x128xf32>
    %c0_12 = arith.constant 0 : index
    %c0_13 = arith.constant 0 : index
    %9 = vector.load %arg6[%c0_12, %c0_13] : memref<128x128xf32, #tpu.memory_space<vmem>>, vector<128x128xf32>
    %cst_14 = arith.constant dense<0.000000e+00> : vector<32x128xf32>
    %10 = tpu.matmul %4, %9, %cst_14 {dimension_numbers = #tpu.dot_dimension_numbers<[1], [0], [0], [1], [0, 0, 1, 1], [], []>} : vector<32x128xf32>, vector<128x128xf32>, vector<32x128xf32> -> vector<32x128xf32>
    %11 = arith.addf %8, %10 : vector<32x128xf32>
    %c0_15 = arith.constant 0 : index
    %c0_16 = arith.constant 0 : index
    %12 = vector.load %arg4[%c0_15, %c0_16] : memref<32x32xf32, #tpu.memory_space<vmem>>, vector<32x32xf32>
    %cst_17 = arith.constant dense<0.000000e+00> : vector<32x128xf32>
    %13 = tpu.matmul %12, %4, %cst_17 {dimension_numbers = #tpu.dot_dimension_numbers<[1], [0], [0], [1], [0, 0, 1, 1], [], []>} : vector<32x32xf32>, vector<32x128xf32>, vector<32x128xf32> -> vector<32x128xf32>
    %c0_18 = arith.constant 0 : index
    %c0_19 = arith.constant 0 : index
    %14 = vector.load %arg7[%c0_18, %c0_19] : memref<128x128xf32, #tpu.memory_space<vmem>>, vector<128x128xf32>
    %cst_20 = arith.constant dense<0.000000e+00> : vector<32x128xf32>
    %15 = tpu.matmul %13, %14, %cst_20 {dimension_numbers = #tpu.dot_dimension_numbers<[1], [0], [0], [1], [0, 0, 1, 1], [], []>} : vector<32x128xf32>, vector<128x128xf32>, vector<32x128xf32> -> vector<32x128xf32>
    %16 = arith.addf %11, %15 : vector<32x128xf32>
    %c0_21 = arith.constant 0 : index
    %c0_22 = arith.constant 0 : index
    %17 = vector.load %arg11[%c0_21, %c0_22] : memref<128x128xf32, #tpu.memory_space<vmem>>, vector<128x128xf32>
    %cst_23 = arith.constant dense<0.000000e+00> : vector<32x128xf32>
    %18 = tpu.matmul %16, %17, %cst_23 {dimension_numbers = #tpu.dot_dimension_numbers<[1], [0], [0], [1], [0, 0, 1, 1], [], []>} : vector<32x128xf32>, vector<128x128xf32>, vector<32x128xf32> -> vector<32x128xf32>
    %cst_24 = arith.constant dense<0.000000e+00> : vector<128xf32>
    %19 = vector.multi_reduction <add>, %18, %cst_24 [0] : vector<32x128xf32> to vector<128xf32>
    %20 = vector.shape_cast %19 : vector<128xf32> to vector<1x128xf32>
    %21 = vector.broadcast %20 : vector<1x128xf32> to vector<32x128xf32>
    %22 = arith.subf %16, %21 : vector<32x128xf32>
    %23 = arith.mulf %22, %22 : vector<32x128xf32>
    %cst_25 = arith.constant dense<0.000000e+00> : vector<32x128xf32>
    %24 = tpu.matmul %23, %17, %cst_25 {dimension_numbers = #tpu.dot_dimension_numbers<[1], [0], [0], [1], [0, 0, 1, 1], [], []>} : vector<32x128xf32>, vector<128x128xf32>, vector<32x128xf32> -> vector<32x128xf32>
    %cst_26 = arith.constant dense<0.000000e+00> : vector<128xf32>
    %25 = vector.multi_reduction <add>, %24, %cst_26 [0] : vector<32x128xf32> to vector<128xf32>
    %26 = vector.shape_cast %25 : vector<128xf32> to vector<1x128xf32>
    %cst_27 = arith.constant 9.99999974E-6 : f32
    %27 = vector.broadcast %cst_27 : f32 to vector<1x128xf32>
    %28 = arith.addf %26, %27 : vector<1x128xf32>
    %29 = math.rsqrt %28 : vector<1x128xf32>
    %30 = vector.broadcast %29 : vector<1x128xf32> to vector<32x128xf32>
    %31 = arith.mulf %22, %30 : vector<32x128xf32>
    %cst_28 = arith.constant 0.000000e+00 : f32
    %32 = vector.broadcast %cst_28 : f32 to vector<32x128xf32>
    %33 = arith.maximumf %31, %32 : vector<32x128xf32>
    %c0_29 = arith.constant 0 : index
    %c0_30 = arith.constant 0 : index
    %34 = vector.load %arg3[%c0_29, %c0_30] : memref<32x32xf32, #tpu.memory_space<vmem>>, vector<32x32xf32>
    %cst_31 = arith.constant dense<0.000000e+00> : vector<32x128xf32>
    %35 = tpu.matmul %34, %33, %cst_31 {dimension_numbers = #tpu.dot_dimension_numbers<[1], [0], [0], [1], [0, 0, 1, 1], [], []>} : vector<32x32xf32>, vector<32x128xf32>, vector<32x128xf32> -> vector<32x128xf32>
    %c0_32 = arith.constant 0 : index
    %c0_33 = arith.constant 0 : index
    %36 = vector.load %arg8[%c0_32, %c0_33] : memref<128x128xf32, #tpu.memory_space<vmem>>, vector<128x128xf32>
    %cst_34 = arith.constant dense<0.000000e+00> : vector<32x128xf32>
    %37 = tpu.matmul %35, %36, %cst_34 {dimension_numbers = #tpu.dot_dimension_numbers<[1], [0], [0], [1], [0, 0, 1, 1], [], []>} : vector<32x128xf32>, vector<128x128xf32>, vector<32x128xf32> -> vector<32x128xf32>
    %c0_35 = arith.constant 0 : index
    %c0_36 = arith.constant 0 : index
    %38 = vector.load %arg9[%c0_35, %c0_36] : memref<128x128xf32, #tpu.memory_space<vmem>>, vector<128x128xf32>
    %cst_37 = arith.constant dense<0.000000e+00> : vector<32x128xf32>
    %39 = tpu.matmul %33, %38, %cst_37 {dimension_numbers = #tpu.dot_dimension_numbers<[1], [0], [0], [1], [0, 0, 1, 1], [], []>} : vector<32x128xf32>, vector<128x128xf32>, vector<32x128xf32> -> vector<32x128xf32>
    %40 = arith.addf %37, %39 : vector<32x128xf32>
    %c0_38 = arith.constant 0 : index
    %c0_39 = arith.constant 0 : index
    %41 = vector.load %arg4[%c0_38, %c0_39] : memref<32x32xf32, #tpu.memory_space<vmem>>, vector<32x32xf32>
    %cst_40 = arith.constant dense<0.000000e+00> : vector<32x128xf32>
    %42 = tpu.matmul %41, %33, %cst_40 {dimension_numbers = #tpu.dot_dimension_numbers<[1], [0], [0], [1], [0, 0, 1, 1], [], []>} : vector<32x32xf32>, vector<32x128xf32>, vector<32x128xf32> -> vector<32x128xf32>
    %c0_41 = arith.constant 0 : index
    %c0_42 = arith.constant 0 : index
    %43 = vector.load %arg10[%c0_41, %c0_42] : memref<128x128xf32, #tpu.memory_space<vmem>>, vector<128x128xf32>
    %cst_43 = arith.constant dense<0.000000e+00> : vector<32x128xf32>
    %44 = tpu.matmul %42, %43, %cst_43 {dimension_numbers = #tpu.dot_dimension_numbers<[1], [0], [0], [1], [0, 0, 1, 1], [], []>} : vector<32x128xf32>, vector<128x128xf32>, vector<32x128xf32> -> vector<32x128xf32>
    %45 = arith.addf %40, %44 : vector<32x128xf32>
    %c0_44 = arith.constant 0 : index
    %c0_45 = arith.constant 0 : index
    %46 = vector.load %arg11[%c0_44, %c0_45] : memref<128x128xf32, #tpu.memory_space<vmem>>, vector<128x128xf32>
    %cst_46 = arith.constant dense<0.000000e+00> : vector<32x128xf32>
    %47 = tpu.matmul %45, %46, %cst_46 {dimension_numbers = #tpu.dot_dimension_numbers<[1], [0], [0], [1], [0, 0, 1, 1], [], []>} : vector<32x128xf32>, vector<128x128xf32>, vector<32x128xf32> -> vector<32x128xf32>
    %cst_47 = arith.constant dense<0.000000e+00> : vector<128xf32>
    %48 = vector.multi_reduction <add>, %47, %cst_47 [0] : vector<32x128xf32> to vector<128xf32>
    %49 = vector.shape_cast %48 : vector<128xf32> to vector<1x128xf32>
    %50 = vector.broadcast %49 : vector<1x128xf32> to vector<32x128xf32>
    %51 = arith.subf %45, %50 : vector<32x128xf32>
    %52 = arith.mulf %51, %51 : vector<32x128xf32>
    %cst_48 = arith.constant dense<0.000000e+00> : vector<32x128xf32>
    %53 = tpu.matmul %52, %46, %cst_48 {dimension_numbers = #tpu.dot_dimension_numbers<[1], [0], [0], [1], [0, 0, 1, 1], [], []>} : vector<32x128xf32>, vector<128x128xf32>, vector<32x128xf32> -> vector<32x128xf32>
    %cst_49 = arith.constant dense<0.000000e+00> : vector<128xf32>
    %54 = vector.multi_reduction <add>, %53, %cst_49 [0] : vector<32x128xf32> to vector<128xf32>
    %55 = vector.shape_cast %54 : vector<128xf32> to vector<1x128xf32>
    %cst_50 = arith.constant 9.99999974E-6 : f32
    %56 = vector.broadcast %cst_50 : f32 to vector<1x128xf32>
    %57 = arith.addf %55, %56 : vector<1x128xf32>
    %58 = math.rsqrt %57 : vector<1x128xf32>
    %59 = vector.broadcast %58 : vector<1x128xf32> to vector<32x128xf32>
    %60 = arith.mulf %51, %59 : vector<32x128xf32>
    %cst_51 = arith.constant 0.000000e+00 : f32
    %61 = vector.broadcast %cst_51 : f32 to vector<32x128xf32>
    %62 = arith.maximumf %60, %61 : vector<32x128xf32>
    %c0_52 = arith.constant 0 : index
    %c0_53 = arith.constant 0 : index
    %63 = vector.load %arg12[%c0_52, %c0_53] : memref<64x32xf32, #tpu.memory_space<vmem>>, vector<64x32xf32>
    %c0_54 = arith.constant 0 : index
    %c0_55 = arith.constant 0 : index
    %64 = vector.load %arg13[%c0_54, %c0_55] : memref<128x256xf32, #tpu.memory_space<vmem>>, vector<128x256xf32>
    %cst_56 = arith.constant dense<0.000000e+00> : vector<32x256xf32>
    %65 = tpu.matmul %62, %64, %cst_56 {dimension_numbers = #tpu.dot_dimension_numbers<[1], [0], [0], [1], [0, 0, 1, 1], [], []>} : vector<32x128xf32>, vector<128x256xf32>, vector<32x256xf32> -> vector<32x256xf32>
    %cst_57 = arith.constant dense<0.000000e+00> : vector<64x256xf32>
    %66 = tpu.matmul %63, %65, %cst_57 {dimension_numbers = #tpu.dot_dimension_numbers<[1], [0], [0], [1], [0, 0, 1, 1], [], []>} : vector<64x32xf32>, vector<32x256xf32>, vector<64x256xf32> -> vector<64x256xf32>
    %c0_58 = arith.constant 0 : index
    %c0_59 = arith.constant 0 : index
    %67 = vector.load %arg14[%c0_58, %c0_59] : memref<64x64xf32, #tpu.memory_space<vmem>>, vector<64x64xf32>
    %cst_60 = arith.constant dense<0.000000e+00> : vector<64x256xf32>
    %68 = tpu.matmul %67, %66, %cst_60 {dimension_numbers = #tpu.dot_dimension_numbers<[1], [0], [0], [1], [0, 0, 1, 1], [], []>} : vector<64x64xf32>, vector<64x256xf32>, vector<64x256xf32> -> vector<64x256xf32>
    %c0_61 = arith.constant 0 : index
    %c0_62 = arith.constant 0 : index
    %69 = vector.load %arg16[%c0_61, %c0_62] : memref<256x128xf32, #tpu.memory_space<vmem>>, vector<256x128xf32>
    %cst_63 = arith.constant dense<0.000000e+00> : vector<64x128xf32>
    %70 = tpu.matmul %68, %69, %cst_63 {dimension_numbers = #tpu.dot_dimension_numbers<[1], [0], [0], [1], [0, 0, 1, 1], [], []>} : vector<64x256xf32>, vector<256x128xf32>, vector<64x128xf32> -> vector<64x128xf32>
    %c0_64 = arith.constant 0 : index
    %c0_65 = arith.constant 0 : index
    %71 = vector.load %arg17[%c0_64, %c0_65] : memref<256x128xf32, #tpu.memory_space<vmem>>, vector<256x128xf32>
    %cst_66 = arith.constant dense<0.000000e+00> : vector<64x128xf32>
    %72 = tpu.matmul %66, %71, %cst_66 {dimension_numbers = #tpu.dot_dimension_numbers<[1], [0], [0], [1], [0, 0, 1, 1], [], []>} : vector<64x256xf32>, vector<256x128xf32>, vector<64x128xf32> -> vector<64x128xf32>
    %73 = arith.addf %70, %72 : vector<64x128xf32>
    %c0_67 = arith.constant 0 : index
    %c0_68 = arith.constant 0 : index
    %74 = vector.load %arg15[%c0_67, %c0_68] : memref<64x64xf32, #tpu.memory_space<vmem>>, vector<64x64xf32>
    %cst_69 = arith.constant dense<0.000000e+00> : vector<64x256xf32>
    %75 = tpu.matmul %74, %66, %cst_69 {dimension_numbers = #tpu.dot_dimension_numbers<[1], [0], [0], [1], [0, 0, 1, 1], [], []>} : vector<64x64xf32>, vector<64x256xf32>, vector<64x256xf32> -> vector<64x256xf32>
    %c0_70 = arith.constant 0 : index
    %c0_71 = arith.constant 0 : index
    %76 = vector.load %arg18[%c0_70, %c0_71] : memref<256x128xf32, #tpu.memory_space<vmem>>, vector<256x128xf32>
    %cst_72 = arith.constant dense<0.000000e+00> : vector<64x128xf32>
    %77 = tpu.matmul %75, %76, %cst_72 {dimension_numbers = #tpu.dot_dimension_numbers<[1], [0], [0], [1], [0, 0, 1, 1], [], []>} : vector<64x256xf32>, vector<256x128xf32>, vector<64x128xf32> -> vector<64x128xf32>
    %78 = arith.addf %73, %77 : vector<64x128xf32>
    %c0_73 = arith.constant 0 : index
    %c0_74 = arith.constant 0 : index
    %79 = vector.load %arg22[%c0_73, %c0_74] : memref<128x128xf32, #tpu.memory_space<vmem>>, vector<128x128xf32>
    %cst_75 = arith.constant dense<0.000000e+00> : vector<64x128xf32>
    %80 = tpu.matmul %78, %79, %cst_75 {dimension_numbers = #tpu.dot_dimension_numbers<[1], [0], [0], [1], [0, 0, 1, 1], [], []>} : vector<64x128xf32>, vector<128x128xf32>, vector<64x128xf32> -> vector<64x128xf32>
    %cst_76 = arith.constant dense<0.000000e+00> : vector<128xf32>
    %81 = vector.multi_reduction <add>, %80, %cst_76 [0] : vector<64x128xf32> to vector<128xf32>
    %82 = vector.shape_cast %81 : vector<128xf32> to vector<1x128xf32>
    %83 = vector.broadcast %82 : vector<1x128xf32> to vector<64x128xf32>
    %84 = arith.subf %78, %83 : vector<64x128xf32>
    %85 = arith.mulf %84, %84 : vector<64x128xf32>
    %cst_77 = arith.constant dense<0.000000e+00> : vector<64x128xf32>
    %86 = tpu.matmul %85, %79, %cst_77 {dimension_numbers = #tpu.dot_dimension_numbers<[1], [0], [0], [1], [0, 0, 1, 1], [], []>} : vector<64x128xf32>, vector<128x128xf32>, vector<64x128xf32> -> vector<64x128xf32>
    %cst_78 = arith.constant dense<0.000000e+00> : vector<128xf32>
    %87 = vector.multi_reduction <add>, %86, %cst_78 [0] : vector<64x128xf32> to vector<128xf32>
    %88 = vector.shape_cast %87 : vector<128xf32> to vector<1x128xf32>
    %cst_79 = arith.constant 9.99999974E-6 : f32
    %89 = vector.broadcast %cst_79 : f32 to vector<1x128xf32>
    %90 = arith.addf %88, %89 : vector<1x128xf32>
    %91 = math.rsqrt %90 : vector<1x128xf32>
    %92 = vector.broadcast %91 : vector<1x128xf32> to vector<64x128xf32>
    %93 = arith.mulf %84, %92 : vector<64x128xf32>
    %cst_80 = arith.constant 0.000000e+00 : f32
    %94 = vector.broadcast %cst_80 : f32 to vector<64x128xf32>
    %95 = arith.maximumf %93, %94 : vector<64x128xf32>
    %c0_81 = arith.constant 0 : index
    %c0_82 = arith.constant 0 : index
    %96 = vector.load %arg14[%c0_81, %c0_82] : memref<64x64xf32, #tpu.memory_space<vmem>>, vector<64x64xf32>
    %cst_83 = arith.constant dense<0.000000e+00> : vector<64x128xf32>
    %97 = tpu.matmul %96, %95, %cst_83 {dimension_numbers = #tpu.dot_dimension_numbers<[1], [0], [0], [1], [0, 0, 1, 1], [], []>} : vector<64x64xf32>, vector<64x128xf32>, vector<64x128xf32> -> vector<64x128xf32>
    %c0_84 = arith.constant 0 : index
    %c0_85 = arith.constant 0 : index
    %98 = vector.load %arg19[%c0_84, %c0_85] : memref<128x128xf32, #tpu.memory_space<vmem>>, vector<128x128xf32>
    %cst_86 = arith.constant dense<0.000000e+00> : vector<64x128xf32>
    %99 = tpu.matmul %97, %98, %cst_86 {dimension_numbers = #tpu.dot_dimension_numbers<[1], [0], [0], [1], [0, 0, 1, 1], [], []>} : vector<64x128xf32>, vector<128x128xf32>, vector<64x128xf32> -> vector<64x128xf32>
    %c0_87 = arith.constant 0 : index
    %c0_88 = arith.constant 0 : index
    %100 = vector.load %arg20[%c0_87, %c0_88] : memref<128x128xf32, #tpu.memory_space<vmem>>, vector<128x128xf32>
    %cst_89 = arith.constant dense<0.000000e+00> : vector<64x128xf32>
    %101 = tpu.matmul %95, %100, %cst_89 {dimension_numbers = #tpu.dot_dimension_numbers<[1], [0], [0], [1], [0, 0, 1, 1], [], []>} : vector<64x128xf32>, vector<128x128xf32>, vector<64x128xf32> -> vector<64x128xf32>
    %102 = arith.addf %99, %101 : vector<64x128xf32>
    %c0_90 = arith.constant 0 : index
    %c0_91 = arith.constant 0 : index
    %103 = vector.load %arg15[%c0_90, %c0_91] : memref<64x64xf32, #tpu.memory_space<vmem>>, vector<64x64xf32>
    %cst_92 = arith.constant dense<0.000000e+00> : vector<64x128xf32>
    %104 = tpu.matmul %103, %95, %cst_92 {dimension_numbers = #tpu.dot_dimension_numbers<[1], [0], [0], [1], [0, 0, 1, 1], [], []>} : vector<64x64xf32>, vector<64x128xf32>, vector<64x128xf32> -> vector<64x128xf32>
    %c0_93 = arith.constant 0 : index
    %c0_94 = arith.constant 0 : index
    %105 = vector.load %arg21[%c0_93, %c0_94] : memref<128x128xf32, #tpu.memory_space<vmem>>, vector<128x128xf32>
    %cst_95 = arith.constant dense<0.000000e+00> : vector<64x128xf32>
    %106 = tpu.matmul %104, %105, %cst_95 {dimension_numbers = #tpu.dot_dimension_numbers<[1], [0], [0], [1], [0, 0, 1, 1], [], []>} : vector<64x128xf32>, vector<128x128xf32>, vector<64x128xf32> -> vector<64x128xf32>
    %107 = arith.addf %102, %106 : vector<64x128xf32>
    %c0_96 = arith.constant 0 : index
    %c0_97 = arith.constant 0 : index
    %108 = vector.load %arg22[%c0_96, %c0_97] : memref<128x128xf32, #tpu.memory_space<vmem>>, vector<128x128xf32>
    %cst_98 = arith.constant dense<0.000000e+00> : vector<64x128xf32>
    %109 = tpu.matmul %107, %108, %cst_98 {dimension_numbers = #tpu.dot_dimension_numbers<[1], [0], [0], [1], [0, 0, 1, 1], [], []>} : vector<64x128xf32>, vector<128x128xf32>, vector<64x128xf32> -> vector<64x128xf32>
    %cst_99 = arith.constant dense<0.000000e+00> : vector<128xf32>
    %110 = vector.multi_reduction <add>, %109, %cst_99 [0] : vector<64x128xf32> to vector<128xf32>
    %111 = vector.shape_cast %110 : vector<128xf32> to vector<1x128xf32>
    %112 = vector.broadcast %111 : vector<1x128xf32> to vector<64x128xf32>
    %113 = arith.subf %107, %112 : vector<64x128xf32>
    %114 = arith.mulf %113, %113 : vector<64x128xf32>
    %cst_100 = arith.constant dense<0.000000e+00> : vector<64x128xf32>
    %115 = tpu.matmul %114, %108, %cst_100 {dimension_numbers = #tpu.dot_dimension_numbers<[1], [0], [0], [1], [0, 0, 1, 1], [], []>} : vector<64x128xf32>, vector<128x128xf32>, vector<64x128xf32> -> vector<64x128xf32>
    %cst_101 = arith.constant dense<0.000000e+00> : vector<128xf32>
    %116 = vector.multi_reduction <add>, %115, %cst_101 [0] : vector<64x128xf32> to vector<128xf32>
    %117 = vector.shape_cast %116 : vector<128xf32> to vector<1x128xf32>
    %cst_102 = arith.constant 9.99999974E-6 : f32
    %118 = vector.broadcast %cst_102 : f32 to vector<1x128xf32>
    %119 = arith.addf %117, %118 : vector<1x128xf32>
    %120 = math.rsqrt %119 : vector<1x128xf32>
    %121 = vector.broadcast %120 : vector<1x128xf32> to vector<64x128xf32>
    %122 = arith.mulf %113, %121 : vector<64x128xf32>
    %cst_103 = arith.constant 0.000000e+00 : f32
    %123 = vector.broadcast %cst_103 : f32 to vector<64x128xf32>
    %124 = arith.maximumf %122, %123 : vector<64x128xf32>
    %c0_104 = arith.constant 0 : index
    %c0_105 = arith.constant 0 : index
    %125 = vector.load %arg23[%c0_104, %c0_105] : memref<128x64xf32, #tpu.memory_space<vmem>>, vector<128x64xf32>
    %c0_106 = arith.constant 0 : index
    %c0_107 = arith.constant 0 : index
    %126 = vector.load %arg24[%c0_106, %c0_107] : memref<128x256xf32, #tpu.memory_space<vmem>>, vector<128x256xf32>
    %cst_108 = arith.constant dense<0.000000e+00> : vector<64x256xf32>
    %127 = tpu.matmul %124, %126, %cst_108 {dimension_numbers = #tpu.dot_dimension_numbers<[1], [0], [0], [1], [0, 0, 1, 1], [], []>} : vector<64x128xf32>, vector<128x256xf32>, vector<64x256xf32> -> vector<64x256xf32>
    %cst_109 = arith.constant dense<0.000000e+00> : vector<128x256xf32>
    %128 = tpu.matmul %125, %127, %cst_109 {dimension_numbers = #tpu.dot_dimension_numbers<[1], [0], [0], [1], [0, 0, 1, 1], [], []>} : vector<128x64xf32>, vector<64x256xf32>, vector<128x256xf32> -> vector<128x256xf32>
    %c0_110 = arith.constant 0 : index
    %c0_111 = arith.constant 0 : index
    %129 = vector.load %arg25[%c0_110, %c0_111] : memref<128x128xf32, #tpu.memory_space<vmem>>, vector<128x128xf32>
    %cst_112 = arith.constant dense<0.000000e+00> : vector<128x256xf32>
    %130 = tpu.matmul %129, %128, %cst_112 {dimension_numbers = #tpu.dot_dimension_numbers<[1], [0], [0], [1], [0, 0, 1, 1], [], []>} : vector<128x128xf32>, vector<128x256xf32>, vector<128x256xf32> -> vector<128x256xf32>
    %c0_113 = arith.constant 0 : index
    %c0_114 = arith.constant 0 : index
    %131 = vector.load %arg27[%c0_113, %c0_114] : memref<256x128xf32, #tpu.memory_space<vmem>>, vector<256x128xf32>
    %cst_115 = arith.constant dense<0.000000e+00> : vector<128x128xf32>
    %132 = tpu.matmul %130, %131, %cst_115 {dimension_numbers = #tpu.dot_dimension_numbers<[1], [0], [0], [1], [0, 0, 1, 1], [], []>} : vector<128x256xf32>, vector<256x128xf32>, vector<128x128xf32> -> vector<128x128xf32>
    %c0_116 = arith.constant 0 : index
    %c0_117 = arith.constant 0 : index
    %133 = vector.load %arg28[%c0_116, %c0_117] : memref<256x128xf32, #tpu.memory_space<vmem>>, vector<256x128xf32>
    %cst_118 = arith.constant dense<0.000000e+00> : vector<128x128xf32>
    %134 = tpu.matmul %128, %133, %cst_118 {dimension_numbers = #tpu.dot_dimension_numbers<[1], [0], [0], [1], [0, 0, 1, 1], [], []>} : vector<128x256xf32>, vector<256x128xf32>, vector<128x128xf32> -> vector<128x128xf32>
    %135 = arith.addf %132, %134 : vector<128x128xf32>
    %c0_119 = arith.constant 0 : index
    %c0_120 = arith.constant 0 : index
    %136 = vector.load %arg26[%c0_119, %c0_120] : memref<128x128xf32, #tpu.memory_space<vmem>>, vector<128x128xf32>
    %cst_121 = arith.constant dense<0.000000e+00> : vector<128x256xf32>
    %137 = tpu.matmul %136, %128, %cst_121 {dimension_numbers = #tpu.dot_dimension_numbers<[1], [0], [0], [1], [0, 0, 1, 1], [], []>} : vector<128x128xf32>, vector<128x256xf32>, vector<128x256xf32> -> vector<128x256xf32>
    %c0_122 = arith.constant 0 : index
    %c0_123 = arith.constant 0 : index
    %138 = vector.load %arg29[%c0_122, %c0_123] : memref<256x128xf32, #tpu.memory_space<vmem>>, vector<256x128xf32>
    %cst_124 = arith.constant dense<0.000000e+00> : vector<128x128xf32>
    %139 = tpu.matmul %137, %138, %cst_124 {dimension_numbers = #tpu.dot_dimension_numbers<[1], [0], [0], [1], [0, 0, 1, 1], [], []>} : vector<128x256xf32>, vector<256x128xf32>, vector<128x128xf32> -> vector<128x128xf32>
    %140 = arith.addf %135, %139 : vector<128x128xf32>
    %c0_125 = arith.constant 0 : index
    %c0_126 = arith.constant 0 : index
    %141 = vector.load %arg33[%c0_125, %c0_126] : memref<128x128xf32, #tpu.memory_space<vmem>>, vector<128x128xf32>
    %cst_127 = arith.constant dense<0.000000e+00> : vector<128x128xf32>
    %142 = tpu.matmul %140, %141, %cst_127 {dimension_numbers = #tpu.dot_dimension_numbers<[1], [0], [0], [1], [0, 0, 1, 1], [], []>} : vector<128x128xf32>, vector<128x128xf32>, vector<128x128xf32> -> vector<128x128xf32>
    %cst_128 = arith.constant dense<0.000000e+00> : vector<128xf32>
    %143 = vector.multi_reduction <add>, %142, %cst_128 [0] : vector<128x128xf32> to vector<128xf32>
    %144 = vector.shape_cast %143 : vector<128xf32> to vector<1x128xf32>
    %145 = vector.broadcast %144 : vector<1x128xf32> to vector<128x128xf32>
    %146 = arith.subf %140, %145 : vector<128x128xf32>
    %147 = arith.mulf %146, %146 : vector<128x128xf32>
    %cst_129 = arith.constant dense<0.000000e+00> : vector<128x128xf32>
    %148 = tpu.matmul %147, %141, %cst_129 {dimension_numbers = #tpu.dot_dimension_numbers<[1], [0], [0], [1], [0, 0, 1, 1], [], []>} : vector<128x128xf32>, vector<128x128xf32>, vector<128x128xf32> -> vector<128x128xf32>
    %cst_130 = arith.constant dense<0.000000e+00> : vector<128xf32>
    %149 = vector.multi_reduction <add>, %148, %cst_130 [0] : vector<128x128xf32> to vector<128xf32>
    %150 = vector.shape_cast %149 : vector<128xf32> to vector<1x128xf32>
    %cst_131 = arith.constant 9.99999974E-6 : f32
    %151 = vector.broadcast %cst_131 : f32 to vector<1x128xf32>
    %152 = arith.addf %150, %151 : vector<1x128xf32>
    %153 = math.rsqrt %152 : vector<1x128xf32>
    %154 = vector.broadcast %153 : vector<1x128xf32> to vector<128x128xf32>
    %155 = arith.mulf %146, %154 : vector<128x128xf32>
    %cst_132 = arith.constant 0.000000e+00 : f32
    %156 = vector.broadcast %cst_132 : f32 to vector<128x128xf32>
    %157 = arith.maximumf %155, %156 : vector<128x128xf32>
    %c0_133 = arith.constant 0 : index
    %c0_134 = arith.constant 0 : index
    %158 = vector.load %arg25[%c0_133, %c0_134] : memref<128x128xf32, #tpu.memory_space<vmem>>, vector<128x128xf32>
    %cst_135 = arith.constant dense<0.000000e+00> : vector<128x128xf32>
    %159 = tpu.matmul %158, %157, %cst_135 {dimension_numbers = #tpu.dot_dimension_numbers<[1], [0], [0], [1], [0, 0, 1, 1], [], []>} : vector<128x128xf32>, vector<128x128xf32>, vector<128x128xf32> -> vector<128x128xf32>
    %c0_136 = arith.constant 0 : index
    %c0_137 = arith.constant 0 : index
    %160 = vector.load %arg30[%c0_136, %c0_137] : memref<128x128xf32, #tpu.memory_space<vmem>>, vector<128x128xf32>
    %cst_138 = arith.constant dense<0.000000e+00> : vector<128x128xf32>
    %161 = tpu.matmul %159, %160, %cst_138 {dimension_numbers = #tpu.dot_dimension_numbers<[1], [0], [0], [1], [0, 0, 1, 1], [], []>} : vector<128x128xf32>, vector<128x128xf32>, vector<128x128xf32> -> vector<128x128xf32>
    %c0_139 = arith.constant 0 : index
    %c0_140 = arith.constant 0 : index
    %162 = vector.load %arg31[%c0_139, %c0_140] : memref<128x128xf32, #tpu.memory_space<vmem>>, vector<128x128xf32>
    %cst_141 = arith.constant dense<0.000000e+00> : vector<128x128xf32>
    %163 = tpu.matmul %157, %162, %cst_141 {dimension_numbers = #tpu.dot_dimension_numbers<[1], [0], [0], [1], [0, 0, 1, 1], [], []>} : vector<128x128xf32>, vector<128x128xf32>, vector<128x128xf32> -> vector<128x128xf32>
    %164 = arith.addf %161, %163 : vector<128x128xf32>
    %c0_142 = arith.constant 0 : index
    %c0_143 = arith.constant 0 : index
    %165 = vector.load %arg26[%c0_142, %c0_143] : memref<128x128xf32, #tpu.memory_space<vmem>>, vector<128x128xf32>
    %cst_144 = arith.constant dense<0.000000e+00> : vector<128x128xf32>
    %166 = tpu.matmul %165, %157, %cst_144 {dimension_numbers = #tpu.dot_dimension_numbers<[1], [0], [0], [1], [0, 0, 1, 1], [], []>} : vector<128x128xf32>, vector<128x128xf32>, vector<128x128xf32> -> vector<128x128xf32>
    %c0_145 = arith.constant 0 : index
    %c0_146 = arith.constant 0 : index
    %167 = vector.load %arg32[%c0_145, %c0_146] : memref<128x128xf32, #tpu.memory_space<vmem>>, vector<128x128xf32>
    %cst_147 = arith.constant dense<0.000000e+00> : vector<128x128xf32>
    %168 = tpu.matmul %166, %167, %cst_147 {dimension_numbers = #tpu.dot_dimension_numbers<[1], [0], [0], [1], [0, 0, 1, 1], [], []>} : vector<128x128xf32>, vector<128x128xf32>, vector<128x128xf32> -> vector<128x128xf32>
    %169 = arith.addf %164, %168 : vector<128x128xf32>
    %c0_148 = arith.constant 0 : index
    %c0_149 = arith.constant 0 : index
    %170 = vector.load %arg33[%c0_148, %c0_149] : memref<128x128xf32, #tpu.memory_space<vmem>>, vector<128x128xf32>
    %cst_150 = arith.constant dense<0.000000e+00> : vector<128x128xf32>
    %171 = tpu.matmul %169, %170, %cst_150 {dimension_numbers = #tpu.dot_dimension_numbers<[1], [0], [0], [1], [0, 0, 1, 1], [], []>} : vector<128x128xf32>, vector<128x128xf32>, vector<128x128xf32> -> vector<128x128xf32>
    %cst_151 = arith.constant dense<0.000000e+00> : vector<128xf32>
    %172 = vector.multi_reduction <add>, %171, %cst_151 [0] : vector<128x128xf32> to vector<128xf32>
    %173 = vector.shape_cast %172 : vector<128xf32> to vector<1x128xf32>
    %174 = vector.broadcast %173 : vector<1x128xf32> to vector<128x128xf32>
    %175 = arith.subf %169, %174 : vector<128x128xf32>
    %176 = arith.mulf %175, %175 : vector<128x128xf32>
    %cst_152 = arith.constant dense<0.000000e+00> : vector<128x128xf32>
    %177 = tpu.matmul %176, %170, %cst_152 {dimension_numbers = #tpu.dot_dimension_numbers<[1], [0], [0], [1], [0, 0, 1, 1], [], []>} : vector<128x128xf32>, vector<128x128xf32>, vector<128x128xf32> -> vector<128x128xf32>
    %cst_153 = arith.constant dense<0.000000e+00> : vector<128xf32>
    %178 = vector.multi_reduction <add>, %177, %cst_153 [0] : vector<128x128xf32> to vector<128xf32>
    %179 = vector.shape_cast %178 : vector<128xf32> to vector<1x128xf32>
    %cst_154 = arith.constant 9.99999974E-6 : f32
    %180 = vector.broadcast %cst_154 : f32 to vector<1x128xf32>
    %181 = arith.addf %179, %180 : vector<1x128xf32>
    %182 = math.rsqrt %181 : vector<1x128xf32>
    %183 = vector.broadcast %182 : vector<1x128xf32> to vector<128x128xf32>
    %184 = arith.mulf %175, %183 : vector<128x128xf32>
    %cst_155 = arith.constant 0.000000e+00 : f32
    %185 = vector.broadcast %cst_155 : f32 to vector<128x128xf32>
    %186 = arith.maximumf %184, %185 : vector<128x128xf32>
    %c0_156 = arith.constant 0 : index
    %c0_157 = arith.constant 0 : index
    %187 = vector.load %arg34[%c0_156, %c0_157] : memref<128x192xf32, #tpu.memory_space<vmem>>, vector<128x192xf32>
    %cst_158 = arith.constant dense<0.000000e+00> : vector<128x192xf32>
    %188 = tpu.matmul %186, %187, %cst_158 {dimension_numbers = #tpu.dot_dimension_numbers<[1], [0], [0], [1], [0, 0, 1, 1], [], []>} : vector<128x128xf32>, vector<128x192xf32>, vector<128x192xf32> -> vector<128x192xf32>
    %c0_159 = arith.constant 0 : index
    %c0_160 = arith.constant 0 : index
    %189 = vector.load %arg35[%c0_159, %c0_160] : memref<1x192xf32, #tpu.memory_space<vmem>>, vector<1x192xf32>
    %190 = vector.broadcast %189 : vector<1x192xf32> to vector<128x192xf32>
    %191 = arith.addf %188, %190 : vector<128x192xf32>
    %cst_161 = arith.constant 0.000000e+00 : f32
    %192 = vector.broadcast %cst_161 : f32 to vector<128x192xf32>
    %193 = arith.subf %192, %191 : vector<128x192xf32>
    %194 = math.exp %193 : vector<128x192xf32>
    %cst_162 = arith.constant 1.000000e+00 : f32
    %195 = vector.broadcast %cst_162 : f32 to vector<128x192xf32>
    %196 = arith.addf %195, %194 : vector<128x192xf32>
    %cst_163 = arith.constant 1.000000e+00 : f32
    %197 = vector.broadcast %cst_163 : f32 to vector<128x192xf32>
    %198 = arith.divf %197, %196 : vector<128x192xf32>
    %c0_164 = arith.constant 0 : index
    %c0_165 = arith.constant 0 : index
    %199 = vector.load %arg36[%c0_164, %c0_165] : memref<128x192xf32, #tpu.memory_space<vmem>>, vector<128x192xf32>
    tpu.vector_store %arg36[%c0_164, %c0_165], %198 {strides = array<i32>} : memref<128x192xf32, #tpu.memory_space<vmem>>, vector<128x192xf32>,
    return
  }
}

</mosaic_0001>

<bundles_post_ra>
// kernel: decoder_forward.1
= control target key start
LH: loop header
LB: loop body
LE: loop exit
PB: predicated region body
PF: predicated region fallthrough
CT: control target
= control target key end

     0   :  { %s5461_s3 = smov 2   ;;  %vm164_vm0 = vcmask 523264   ;;  %s5462_s10 = smov 6   ;;  %vm194_vm1 = vcmask 130048   ;;  %vm240_vm2 = vcmask 261120   ;;  %s8094_s0 = inlined_call_operand.smem [shape: u32[37], index: -1, kind: input, shape index: {}] }
   0x1   :  { %s5060_s6 = sld [smem:[%s8094_s0 + %s5461_s3]]   ;;  %s5463_s14 = smov 1  }
   0x2   :  { %s1_s9 = sld [smem:[%s8094_s0]]   ;;  %s5464_s18 = smov 3  }
   0x3   :  { %s5513_s13 = sld [smem:[%s8094_s0 + %s5462_s10]]   ;;  %s5465_s22 = smov 4  }
   0x4   :  { %s5518_s17 = sld [smem:[%s8094_s0 + %s5463_s14]]   ;;  %s5466_s26 = smov 7  }
   0x5   :  { %s5547_s21 = sld [smem:[%s8094_s0 + %s5464_s18]]   ;;  %s5467_s30 = smov 5  }
   0x6   :  { %s5552_s25 = sld [smem:[%s8094_s0 + %s5465_s22]]   ;;  %s5468_s4 = smov 11  }
   0x7   :  { %v163_v0 = vld [vmem:[%s5060_s6 + $0x38] sm:$0xff]  ;;  %v162_v1 = vld [vmem:[%s5060_s6 + $0x30] sm:$0xff]  ;;  %v161_v2 = vld [vmem:[%s5060_s6 + $0x28] sm:$0xff]  ;;  %s5557_s29 = sld [smem:[%s8094_s0 + %s5466_s26]]   ;;  %s5469_s8 = smov 9  }
   0x8   :  { %179 = vmatpush.msra.mxu3 %v163_v0  ;;  %v160_v3 = vld [vmem:[%s5060_s6 + $0x20] sm:$0xff]  ;;  %v159_v4 = vld [vmem:[%s5060_s6 + $0x18] sm:$0xff]  ;;  %v158_v5 = vld [vmem:[%s5060_s6 + $0x10] sm:$0xff]  ;;  %s5604_s3 = sld [smem:[%s8094_s0 + %s5467_s30]]   ;;  %s5470_s12 = smov 8  }
   0x9   :  { %v157_v6 = vld [vmem:[%s5060_s6 + $0x8] sm:$0xff]  ;;  %v156_v7 = vld [vmem:[%s5060_s6] sm:$0xff]  ;;  %v313_v11 = vld [vmem:[%s5513_s13 + $0x78] sm:$0xff]  ;;  %s5639_s7 = sld [smem:[%s8094_s0 + %s5468_s4]]   ;;  %s5471_s16 = smov 10  }
   0xa   :  { %180 = vmatpush.msra.mxu3 %v162_v1  ;;  %v150_v8 = vld [vmem:[%s1_s9] sm:$0xff]  ;;  %v151_v9 = vld [vmem:[%s1_s9 + $0x8] sm:$0xff]  ;;  %v312_v12 = vld [vmem:[%s5513_s13 + $0x70] sm:$0xff]  ;;  %s5740_s11 = sld [smem:[%s8094_s0 + %s5469_s8]]   ;;  %s5472_s20 = smov 13  }
   0xb   :  { %v311_v13 = vld [vmem:[%s5513_s13 + $0x68] sm:$0xff]  ;;  %v310_v15 = vld [vmem:[%s5513_s13 + $0x60] sm:$0xff]  ;;  %v309_v17 = vld [vmem:[%s5513_s13 + $0x58] sm:$0xff]  ;;  %s5773_s15 = sld [smem:[%s8094_s0 + %s5470_s12]]   ;;  %s5473_s24 = smov 12  }
   0xc   :  { %181 = vmatpush.msra.mxu3 %v161_v2  ;;  %v152_v16 = vld [vmem:[%s5518_s17] sm:$0xff]  ;;  %v308_v18 = vld [vmem:[%s5513_s13 + $0x50] sm:$0xff]  ;;  %v307_v19 = vld [vmem:[%s5513_s13 + $0x48] sm:$0xff]  ;;  %s5785_s19 = sld [smem:[%s8094_s0 + %s5471_s16]]   ;;  %s5474_s28 = smov 17  }
   0xd   :  { %v306_v20 = vld [vmem:[%s5513_s13 + $0x40] sm:$0xff]  ;;  %v153_v21 = vld [vmem:[%s5518_s17 + $0x8] sm:$0xff]  ;;  %v305_v22 = vld [vmem:[%s5513_s13 + $0x38] sm:$0xff]  ;;  %s5871_s23 = sld [smem:[%s8094_s0 + %s5472_s20]]   ;;  %s5475_s2 = smov 14  }
   0xe   :  { %182 = vmatpush.msra.mxu3 %v160_v3  ;;  %v304_v23 = vld [vmem:[%s5513_s13 + $0x30] sm:$0xff]  ;;  %v303_v24 = vld [vmem:[%s5513_s13 + $0x28] sm:$0xff]  ;;  %v302_v25 = vld [vmem:[%s5513_s13 + $0x20] sm:$0xff]  ;;  %s5912_s27 = sld [smem:[%s8094_s0 + %s5473_s24]]   ;;  %s5476_s6 = smov 15  }
   0xf   :  { %v154_v26 = vld [vmem:[%s5518_s17 + $0x10] sm:$0xff]  ;;  %v301_v27 = vld [vmem:[%s5513_s13 + $0x18] sm:$0xff]  ;;  %v299_v29 = vld [vmem:[%s5513_s13 + $0x8] sm:$0xff]  ;;  %s5927_s1 = sld [smem:[%s8094_s0 + %s5474_s28]]   ;;  %s5477_s10 = smov 16  }
  0x10   :  { %183 = vmatpush.msra.mxu3 %v159_v4  ;;  %v300_v28 = vld [vmem:[%s5513_s13 + $0x10] sm:$0xff]  ;;  %v155_v30 = vld [vmem:[%s5518_s17 + $0x18] sm:$0xff]  ;;  %v298_v31 = vld [vmem:[%s5513_s13] sm:$0xff]  ;;  %s5993_s5 = sld [smem:[%s8094_s0 + %s5475_s2]]   ;;  %s5478_s14 = smov 18  }
  0x11   :  { %v5560_v36 = vld [vmem:[%s5547_s21] sm:$0xff]  ;;  %v432_v38 = vld [vmem:[%s5557_s29 + $0x78] sm:$0xff]  ;;  %v431_v39 = vld [vmem:[%s5557_s29 + $0x70] sm:$0xff]  ;;  %s6011_s9 = sld [smem:[%s8094_s0 + %s5476_s6]]   ;;  %s5479_s18 = smov 22  }
  0x12   :  { %184 = vmatpush.msra.mxu3 %v158_v5  ;;  %v5563_v37 = vld [vmem:[%s5552_s25] sm:$0xff]  ;;  %v5572_v40 = vld [vmem:[%s5547_s21 + $0x8] sm:$0xff]  ;;  %v5582_v42 = vld [vmem:[%s5547_s21 + $0x10] sm:$0xff]  ;;  %s6049_s13 = sld [smem:[%s8094_s0 + %s5477_s10]]   ;;  %s5480_s22 = smov 20  }
  0x13   :  { %v5575_v41 = vld [vmem:[%s5552_s25 + $0x8] sm:$0xff]  ;;  %v5585_v43 = vld [vmem:[%s5552_s25 + $0x10] sm:$0xff]  ;;  %v5592_v44 = vld [vmem:[%s5547_s21 + $0x18] sm:$0xff]  ;;  %s6111_s17 = sld [smem:[%s8094_s0 + %s5478_s14]]   ;;  %s5481_s26 = smov 19  }
  0x14   :  { %185 = vmatpush.msra.mxu3 %v157_v6  ;;  %v5595_v45 = vld [vmem:[%s5552_s25 + $0x18] sm:$0xff]  ;;  %v430_v47 = vld [vmem:[%s5557_s29 + $0x68] sm:$0xff]  ;;  %v296_v48 = vld [vmem:[%s5604_s3 + $0x70] sm:$0xff]  ;;  %s6175_s21 = sld [smem:[%s8094_s0 + %s5479_s18]]   ;;  %s5482_s30 = smov 21  }
  0x15   :  { %v297_v46 = vld [vmem:[%s5604_s3 + $0x78] sm:$0xff]  ;;  %v429_v49 = vld [vmem:[%s5557_s29 + $0x60] sm:$0xff]  ;;  %v295_v50 = vld [vmem:[%s5604_s3 + $0x68] sm:$0xff]  ;;  %s6346_s25 = sld [smem:[%s8094_s0 + %s5480_s22]]   ;;  %s5483_s4 = smov 24  }
  0x16   :  { %186 = vmatpush.msra.mxu3 %v156_v7  ;;  %v428_v51 = vld [vmem:[%s5557_s29 + $0x58] sm:$0xff]  ;;  %v294_v52 = vld [vmem:[%s5604_s3 + $0x60] sm:$0xff]  ;;  %v427_v53 = vld [vmem:[%s5557_s29 + $0x50] sm:$0xff]  ;;  %s5484_s8 = smov 23   ;;  %s5485_s12 = smov 28  }
  0x17   :  { %5095 = vmatmul.msk.f32.vlgmr.msra.gmra.mxu3 %vm164_vm0, %v150_v8  ;;  %v293_v54 = vld [vmem:[%s5604_s3 + $0x58] sm:$0xff]  ;;  %v426_v55 = vld [vmem:[%s5557_s29 + $0x48] sm:$0xff]  ;;  %v292_v56 = vld [vmem:[%s5604_s3 + $0x50] sm:$0xff]  ;;  %s5486_s16 = smov 25   ;;  %s5487_s20 = smov 27  }
  0x18   :  { %314 = vmatpush.msrb.mxu3 %v313_v11  ;;  %v425_v57 = vld [vmem:[%s5557_s29 + $0x40] sm:$0xff]  ;;  %v291_v58 = vld [vmem:[%s5604_s3 + $0x48] sm:$0xff]  ;;  %v424_v59 = vld [vmem:[%s5557_s29 + $0x38] sm:$0xff]  ;;  %s5488_s24 = smov 26   ;;  %s5489_s28 = smov 29  }
  0x19   :  { %v290_v60 = vld [vmem:[%s5604_s3 + $0x40] sm:$0xff]  ;;  %v423_v61 = vld [vmem:[%s5557_s29 + $0x30] sm:$0xff]  ;;  %v289_v62 = vld [vmem:[%s5604_s3 + $0x38] sm:$0xff]  ;;  %s5490_s2 = smov 33   ;;  %s5491_s6 = smov 31  }
  0x1a   :  { %315 = vmatpush.msrb.mxu3 %v312_v12  ;;  %v422_v63 = vld [vmem:[%s5557_s29 + $0x28] sm:$0xff]  ;;  %v288_v0 = vld [vmem:[%s5604_s3 + $0x30] sm:$0xff]  ;;  %v421_v1 = vld [vmem:[%s5557_s29 + $0x20] sm:$0xff]  ;;  %s5492_s10 = smov 30   ;;  %s5493_s14 = smov 32  }
  0x1b   :  { %v287_v2 = vld [vmem:[%s5604_s3 + $0x28] sm:$0xff]  ;;  %v420_v3 = vld [vmem:[%s5557_s29 + $0x18] sm:$0xff]  ;;  %v286_v4 = vld [vmem:[%s5604_s3 + $0x20] sm:$0xff]  ;;  %s5494_s18 = smov 34   ;;  %s5495_s22 = smov 35  }
  0x1c   :  { %316 = vmatpush.msrb.mxu3 %v311_v13  ;;  %v419_v5 = vld [vmem:[%s5557_s29 + $0x10] sm:$0xff]  ;;  %v285_v6 = vld [vmem:[%s5604_s3 + $0x18] sm:$0xff]  ;;  %v418_v7 = vld [vmem:[%s5557_s29 + $0x8] sm:$0xff] }
  0x1d   :  { %v284_v8 = vld [vmem:[%s5604_s3 + $0x10] sm:$0xff]  ;;  %v282_v11 = vld [vmem:[%s5604_s3] sm:$0xff]  ;;  %v5642_v12 = vld [vmem:[%s5639_s7 + $0x78] sm:$0xff] }
  0x1e   :  { %317 = vmatpush.msrb.mxu3 %v310_v15  ;;  %v5645_v13 = vld [vmem:[%s5639_s7 + $0x70] sm:$0xff]  ;;  %v5650_v15 = vld [vmem:[%s5639_s7 + $0x68] sm:$0xff] }
  0x1f   :  { %5096 = vmatmul.msk.f32.gmra.mxu3 %vm164_vm0, %v151_v9  ;;  %v417_v9 = vld [vmem:[%s5557_s29] sm:$0xff]  ;;  %s6409_s29 = sld [smem:[%s8094_s0 + %s5481_s26]]   ;;  %s5496_s26 = smov 36  }
  0x20   :  { %318 = vmatpush.msrb.mxu3 %v309_v17  ;;  %v5659_v17 = vld [vmem:[%s5639_s7 + $0x58] sm:$0xff] }
  0x22   :  { %319 = vmatpush.msrb.mxu3 %v308_v18 }
  0x24   :  { %320 = vmatpush.msrb.mxu3 %v307_v19  ;;  %v5664_v19 = vld [vmem:[%s5639_s7 + $0x50] sm:$0xff] }
  0x26   :  { %321 = vmatpush.msrb.mxu3 %v306_v20 }
  0x28   :  { %322 = vmatpush.msrb.mxu3 %v305_v22  ;;  %v5674_v22 = vld [vmem:[%s5639_s7 + $0x40] sm:$0xff] }
  0x2a   :  { %323 = vmatpush.msrb.mxu3 %v304_v23  ;;  %v5679_v23 = vld [vmem:[%s5639_s7 + $0x38] sm:$0xff] }
  0x2c   :  { %324 = vmatpush.msrb.mxu3 %v303_v24 }
  0x2e   :  { %325 = vmatpush.msrb.mxu3 %v302_v25  ;;  %v5684_v25 = vld [vmem:[%s5639_s7 + $0x30] sm:$0xff] }
  0x30   :  { %326 = vmatpush.msrb.mxu3 %v301_v27  ;;  %v5689_v27 = vld [vmem:[%s5639_s7 + $0x28] sm:$0xff] }
  0x32   :  { %327 = vmatpush.msrb.mxu3 %v300_v28  ;;  %v5694_v28 = vld [vmem:[%s5639_s7 + $0x20] sm:$0xff] }
  0x34   :  { %328 = vmatpush.msrb.mxu3 %v299_v29  ;;  %v5699_v29 = vld [vmem:[%s5639_s7 + $0x18] sm:$0xff] }
  0x36   :  { %329 = vmatpush.msrb.mxu3 %v298_v31 }
  0x38   :  { %528 = vmatpush.msra.mxu3 %v5642_v12 }
  0x3a   :  { %529 = vmatpush.msra.mxu3 %v5645_v13 }
  0x3c   :  { %530 = vmatpush.msra.mxu3 %v5650_v15 }
  0x9a   :  { %v188_v10 = vpop.f32.mrf.mxu3 }
  0xa2   :  { %v191_v14 = vpop.f32.mrf.mxu3 }
  0xa3   :  { %221 = vmatpush.msra.mxu1 %v191_v14 }
  0xa5   :  { %222 = vmatpush.msra.mxu1 %v188_v10  ;;  %v283_v10 = vld [vmem:[%s5604_s3 + $0x8] sm:$0xff]  ;;  %s6416_s3 = sld [smem:[%s8094_s0 + %s5482_s30]]  }
  0xa6   :  { %5097 = vmatmul.msk.f32.vlgmr.msra.gmra.mxu1 %vm194_vm1, %v152_v16  ;;  %v5654_v16 = vld [vmem:[%s5639_s7 + $0x60] sm:$0xff] }
  0xa7   :  { %343 = vmatpush.msrb.mxu1 %v297_v46  ;;  %531 = vmatpush.msra.mxu3 %v5654_v16 }
  0xa9   :  { %344 = vmatpush.msrb.mxu1 %v296_v48  ;;  %532 = vmatpush.msra.mxu3 %v5659_v17 }
  0xab   :  { %345 = vmatpush.msrb.mxu1 %v295_v50  ;;  %533 = vmatpush.msra.mxu3 %v5664_v19 }
  0xad   :  { %346 = vmatpush.msrb.mxu1 %v294_v52 }
  0xae   :  { %5098 = vmatmul.msk.f32.gmra.mxu1 %vm194_vm1, %v153_v21  ;;  %v5669_v21 = vld [vmem:[%s5639_s7 + $0x48] sm:$0xff] }
  0xaf   :  { %347 = vmatpush.msrb.mxu1 %v293_v54  ;;  %534 = vmatpush.msra.mxu3 %v5669_v21 }
  0xb1   :  { %348 = vmatpush.msrb.mxu1 %v292_v56  ;;  %535 = vmatpush.msra.mxu3 %v5674_v22 }
  0xb3   :  { %349 = vmatpush.msrb.mxu1 %v291_v58  ;;  %536 = vmatpush.msra.mxu3 %v5679_v23 }
  0xb5   :  { %350 = vmatpush.msrb.mxu1 %v290_v60  ;;  %537 = vmatpush.msra.mxu3 %v5684_v25 }
  0xb6   :  { %5099 = vmatmul.msk.f32.gmra.mxu1 %vm194_vm1, %v154_v26 }
  0xb7   :  { %351 = vmatpush.msrb.mxu1 %v289_v62  ;;  %538 = vmatpush.msra.mxu3 %v5689_v27 }
  0xb9   :  { %352 = vmatpush.msrb.mxu1 %v288_v0  ;;  %539 = vmatpush.msra.mxu3 %v5694_v28 }
  0xbb   :  { %353 = vmatpush.msrb.mxu1 %v287_v2  ;;  %540 = vmatpush.msra.mxu3 %v5699_v29 }
  0xbd   :  { %354 = vmatpush.msrb.mxu1 %v286_v4 }
  0xbe   :  { %5100 = vmatmul.msk.f32.gmra.mxu1 %vm194_vm1, %v155_v30 }
  0xbf   :  { %355 = vmatpush.msrb.mxu1 %v285_v6 }
  0xc1   :  { %356 = vmatpush.msrb.mxu1 %v284_v8 }
  0xc3   :  { %357 = vmatpush.msrb.mxu1 %v283_v10 }
  0xc5   :  { %358 = vmatpush.msrb.mxu1 %v282_v11 }
 0x123   :  { %v224_v32 = vpop.f32.mrf.mxu1 }
 0x124   :  { %330 = vmatmul.f32.vlgmr.msrb.gmra.mxu3 %v224_v32 }
 0x12b   :  { %v227_v33 = vpop.f32.mrf.mxu1 }
 0x12c   :  { %333 = vmatmul.f32.gmra.mxu3 %v227_v33 }
 0x133   :  { %v230_v34 = vpop.f32.mrf.mxu1 }
 0x134   :  { %336 = vmatmul.f32.gmra.mxu3 %v230_v34 }
 0x13b   :  { %v233_v35 = vpop.f32.mrf.mxu1 }
 0x13c   :  { %265 = vmatpush.msra.mxu2 %v233_v35  ;;  %339 = vmatmul.f32.gmra.mxu3 %v233_v35 }
 0x13d   :  { %400 = vmatpush.msra.mxu0 %v233_v35  ;;  %v5716_v35 = vld [vmem:[%s5639_s7] sm:$0xff] }
 0x13e   :  { %266 = vmatpush.msra.mxu2 %v230_v34 }
 0x13f   :  { %401 = vmatpush.msra.mxu0 %v230_v34  ;;  %v5712_v34 = vld [vmem:[%s5639_s7 + $0x8] sm:$0xff] }
 0x140   :  { %267 = vmatpush.msra.mxu2 %v227_v33 }
 0x141   :  { %402 = vmatpush.msra.mxu0 %v227_v33  ;;  %v5707_v33 = vld [vmem:[%s5639_s7 + $0x10] sm:$0xff]  ;;  %s6527_s7 = sld [smem:[%s8094_s0 + %s5483_s4]]  }
 0x142   :  { %268 = vmatpush.msra.mxu2 %v224_v32  ;;  %541 = vmatpush.msra.mxu3 %v5707_v33 }
 0x143   :  { %403 = vmatpush.msra.mxu0 %v224_v32  ;;  %5101 = vmatmul.msk.f32.vlgmr.msra.gmra.mxu2 %vm240_vm2, %v5560_v36 }
 0x144   :  { %5105 = vmatmul.msk.f32.vlgmr.msra.gmra.mxu0 %vm240_vm2, %v5563_v37  ;;  %433 = vmatpush.msrb.mxu2 %v432_v38 }
 0x145   :  { %482 = vmatpush.msrb.mxu0 %v5642_v12  ;;  %542 = vmatpush.msra.mxu3 %v5712_v34 }
 0x146   :  { %434 = vmatpush.msrb.mxu2 %v431_v39 }
 0x147   :  { %483 = vmatpush.msrb.mxu0 %v5645_v13  ;;  %543 = vmatpush.msra.mxu3 %v5716_v35 }
 0x148   :  { %435 = vmatpush.msrb.mxu2 %v430_v47 }
 0x149   :  { %484 = vmatpush.msrb.mxu0 %v5650_v15 }
 0x14a   :  { %436 = vmatpush.msrb.mxu2 %v429_v49 }
 0x14b   :  { %5102 = vmatmul.msk.f32.gmra.mxu2 %vm240_vm2, %v5572_v40  ;;  %485 = vmatpush.msrb.mxu0 %v5654_v16 }
 0x14c   :  { %5106 = vmatmul.msk.f32.gmra.mxu0 %vm240_vm2, %v5575_v41  ;;  %437 = vmatpush.msrb.mxu2 %v428_v51 }
 0x14d   :  { %486 = vmatpush.msrb.mxu0 %v5659_v17 }
 0x14e   :  { %438 = vmatpush.msrb.mxu2 %v427_v53 }
 0x14f   :  { %487 = vmatpush.msrb.mxu0 %v5664_v19 }
 0x150   :  { %439 = vmatpush.msrb.mxu2 %v426_v55 }
 0x151   :  { %488 = vmatpush.msrb.mxu0 %v5669_v21 }
 0x152   :  { %440 = vmatpush.msrb.mxu2 %v425_v57 }
 0x153   :  { %5103 = vmatmul.msk.f32.gmra.mxu2 %vm240_vm2, %v5582_v42  ;;  %489 = vmatpush.msrb.mxu0 %v5674_v22 }
 0x154   :  { %5107 = vmatmul.msk.f32.gmra.mxu0 %vm240_vm2, %v5585_v43  ;;  %441 = vmatpush.msrb.mxu2 %v424_v59 }
 0x155   :  { %490 = vmatpush.msrb.mxu0 %v5679_v23 }
 0x156   :  { %442 = vmatpush.msrb.mxu2 %v423_v61 }
 0x157   :  { %491 = vmatpush.msrb.mxu0 %v5684_v25 }
 0x158   :  { %443 = vmatpush.msrb.mxu2 %v422_v63 }
 0x159   :  { %492 = vmatpush.msrb.mxu0 %v5689_v27 }
 0x15a   :  { %444 = vmatpush.msrb.mxu2 %v421_v1 }
 0x15b   :  { %5104 = vmatmul.msk.f32.gmra.mxu2 %vm240_vm2, %v5592_v44  ;;  %493 = vmatpush.msrb.mxu0 %v5694_v28 }
 0x15c   :  { %5108 = vmatmul.msk.f32.gmra.mxu0 %vm240_vm2, %v5595_v45  ;;  %445 = vmatpush.msrb.mxu2 %v420_v3 }
 0x15d   :  { %494 = vmatpush.msrb.mxu0 %v5699_v29 }
 0x15e   :  { %446 = vmatpush.msrb.mxu2 %v419_v5 }
 0x15f   :  { %495 = vmatpush.msrb.mxu0 %v5707_v33 }
 0x160   :  { %447 = vmatpush.msrb.mxu2 %v418_v7 }
 0x161   :  { %496 = vmatpush.msrb.mxu0 %v5712_v34 }
 0x162   :  { %448 = vmatpush.msrb.mxu2 %v417_v9 }
 0x163   :  { %497 = vmatpush.msrb.mxu0 %v5716_v35 }
 0x1a7   :  { %v331_v38 = vpop.f32.mrf.mxu3 }
 0x1af   :  { %v334_v49 = vpop.f32.mrf.mxu3 }
 0x1b7   :  { %v337_v54 = vpop.f32.mrf.mxu3 }
 0x1bf   :  { %v340_v59 = vpop.f32.mrf.mxu3 }
 0x1c1   :  { %v405_v14 = vpop.f32.mrf.mxu0 }
 0x1c2   :  { %449 = vmatmul.f32.vlgmr.msrb.gmra.mxu2 %v405_v14 }
 0x1c6   :  { %v270_v18 = vpop.f32.mrf.mxu2 }
 0x1c7   :  { %359 = vmatmul.f32.vlgmr.msrb.gmra.mxu1 %v270_v18 }
 0x1c9   :  { %v408_v20 = vpop.f32.mrf.mxu0 }
 0x1ca   :  { %452 = vmatmul.f32.gmra.mxu2 %v408_v20 }
 0x1ce   :  { %v273_v24 = vpop.f32.mrf.mxu2 }
 0x1cf   :  { %362 = vmatmul.f32.gmra.mxu1 %v273_v24 }
 0x1d1   :  { %v411_v26 = vpop.f32.mrf.mxu0 }
 0x1d2   :  { %455 = vmatmul.f32.gmra.mxu2 %v411_v26 }
 0x1d6   :  { %v276_v30 = vpop.f32.mrf.mxu2 }
 0x1d7   :  { %365 = vmatmul.f32.gmra.mxu1 %v276_v30 }
 0x1d9   :  { %v414_v31 = vpop.f32.mrf.mxu0 }
 0x1da   :  { %458 = vmatmul.f32.gmra.mxu2 %v414_v31 }
 0x1de   :  { %v279_v32 = vpop.f32.mrf.mxu2 }
 0x1df   :  { %368 = vmatmul.f32.gmra.mxu1 %v279_v32 }
 0x244   :  { %v360_v39 = vpop.f32.mrf.mxu1 }
 0x245   :  { %v361_v46 = vadd.f32 %v360_v39, %v331_v38  ;;  %v450_v47 = vpop.f32.mrf.mxu2 }
 0x247   :  { %v462_v48 = vadd.f32 %v450_v47, %v361_v46  ;;  %v645_v46 = vld [vmem:[%s5740_s11 + $0x78] sm:$0xff]  ;;  %v644_v47 = vld [vmem:[%s5740_s11 + $0x70] sm:$0xff] }
 0x248   :  { %646 = vmatpush.msra.mxu2 %v645_v46 }
 0x249   :  { %498 = vmatmul.f32.vlgmr.msrb.gmra.mxu0 %v462_v48 }
 0x24a   :  { %647 = vmatpush.msra.mxu2 %v644_v47 }
 0x24c   :  { %v363_v50 = vpop.f32.mrf.mxu1 }
 0x24d   :  { %v364_v51 = vadd.f32 %v363_v50, %v334_v49  ;;  %v453_v52 = vpop.f32.mrf.mxu2  ;;  %v642_v49 = vld [vmem:[%s5740_s11 + $0x60] sm:$0xff] }
 0x24f   :  { %v463_v53 = vadd.f32 %v453_v52, %v364_v51  ;;  %v641_v51 = vld [vmem:[%s5740_s11 + $0x58] sm:$0xff]  ;;  %v640_v52 = vld [vmem:[%s5740_s11 + $0x50] sm:$0xff] }
 0x251   :  { %501 = vmatmul.f32.gmra.mxu0 %v463_v53 }
 0x254   :  { %v366_v55 = vpop.f32.mrf.mxu1 }
 0x255   :  { %v367_v56 = vadd.f32 %v366_v55, %v337_v54  ;;  %v456_v57 = vpop.f32.mrf.mxu2  ;;  %v638_v54 = vld [vmem:[%s5740_s11 + $0x40] sm:$0xff] }
 0x257   :  { %v464_v58 = vadd.f32 %v456_v57, %v367_v56  ;;  %v637_v56 = vld [vmem:[%s5740_s11 + $0x38] sm:$0xff]  ;;  %v636_v57 = vld [vmem:[%s5740_s11 + $0x30] sm:$0xff] }
 0x259   :  { %504 = vmatmul.f32.gmra.mxu0 %v464_v58 }
 0x25c   :  { %v369_v60 = vpop.f32.mrf.mxu1 }
 0x25d   :  { %v370_v61 = vadd.f32 %v369_v60, %v340_v59  ;;  %v459_v62 = vpop.f32.mrf.mxu2  ;;  %v634_v60 = vld [vmem:[%s5740_s11 + $0x20] sm:$0xff] }
 0x25f   :  { %v465_v63 = vadd.f32 %v459_v62, %v370_v61  ;;  %v633_v61 = vld [vmem:[%s5740_s11 + $0x18] sm:$0xff] }
 0x261   :  { %507 = vmatmul.f32.gmra.mxu0 %v465_v63 }
 0x2c6   :  { %v499_v0 = vpop.f32.mrf.mxu0 }
 0x2ce   :  { %v502_v1 = vpop.f32.mrf.mxu0 }
 0x2cf   :  { %v511_v3 = vadd.f32 %v502_v1, %v499_v0  ;;  %v632_v0 = vld [vmem:[%s5740_s11 + $0x10] sm:$0xff] }
 0x2d6   :  { %v505_v2 = vpop.f32.mrf.mxu0 }
 0x2d7   :  { %v512_v4 = vadd.f32 %v511_v3, %v505_v2  ;;  %v631_v2 = vld [vmem:[%s5740_s11 + $0x8] sm:$0xff] }
 0x2de   :  { %v508_v5 = vpop.f32.mrf.mxu0 }
 0x2df   :  { %v513_v6 = vadd.f32 %v512_v4, %v508_v5  ;;  %v630_v4 = vld [vmem:[%s5740_s11] sm:$0xff] }
 0x2e1   :  { %v514_v7 = vrot.slane %v513_v6, 4 }
 0x2e3   :  { %v515_v8 = vadd.f32 %v514_v7, %v513_v6 }
 0x2e5   :  { %v516_v9 = vrot.slane %v515_v8, 2 }
 0x2e7   :  { %v517_v10 = vadd.f32 %v516_v9, %v515_v8 }
 0x2e9   :  { %v518_v11 = vrot.slane %v517_v10, 1 }
 0x2eb   :  { %v519_v14 = vadd.f32 %v518_v11, %v517_v10 }
 0x2ed   :  { %v5721_v18 = vsub.f32 %v462_v48, %v519_v14  ;;  %v5725_v24 = vsub.f32 %v463_v53, %v519_v14  ;;  %v5729_v30 = vsub.f32 %v464_v58, %v519_v14  ;;  %v5733_v32 = vsub.f32 %v465_v63, %v519_v14  ;;  %v643_v48 = vld [vmem:[%s5740_s11 + $0x68] sm:$0xff] }
 0x2ee   :  { %648 = vmatpush.msra.mxu2 %v643_v48  ;;  %v639_v53 = vld [vmem:[%s5740_s11 + $0x48] sm:$0xff] }
 0x2ef   :  { %v524_v20 = vmul.f32 %v5721_v18, %v5721_v18  ;;  %v525_v26 = vmul.f32 %v5725_v24, %v5725_v24  ;;  %v526_v31 = vmul.f32 %v5729_v30, %v5729_v30  ;;  %v527_v38 = vmul.f32 %v5733_v32, %v5733_v32  ;;  %v635_v58 = vld [vmem:[%s5740_s11 + $0x28] sm:$0xff]  ;;  %s6572_s11 = sld [smem:[%s8094_s0 + %s5484_s8]]  }
 0x2f0   :  { %649 = vmatpush.msra.mxu2 %v642_v49 }
 0x2f1   :  { %544 = vmatmul.f32.vlgmr.msra.gmra.mxu3 %v524_v20 }
 0x2f2   :  { %650 = vmatpush.msra.mxu2 %v641_v51 }
 0x2f4   :  { %651 = vmatpush.msra.mxu2 %v640_v52  ;;  %v627_v52 = vld [vmem:[%s5773_s15 + $0x68] sm:$0xff] }
 0x2f6   :  { %652 = vmatpush.msra.mxu2 %v639_v53  ;;  %v626_v53 = vld [vmem:[%s5773_s15 + $0x60] sm:$0xff] }
 0x2f8   :  { %653 = vmatpush.msra.mxu2 %v638_v54  ;;  %v748_v54 = vld [vmem:[%s5785_s19 + $0x78] sm:$0xff] }
 0x2f9   :  { %547 = vmatmul.f32.gmra.mxu3 %v525_v26 }
 0x2fa   :  { %654 = vmatpush.msra.mxu2 %v637_v56  ;;  %v747_v56 = vld [vmem:[%s5785_s19 + $0x70] sm:$0xff] }
 0x2fc   :  { %655 = vmatpush.msra.mxu2 %v636_v57  ;;  %v624_v57 = vld [vmem:[%s5773_s15 + $0x50] sm:$0xff] }
 0x2fe   :  { %656 = vmatpush.msra.mxu2 %v635_v58  ;;  %v746_v58 = vld [vmem:[%s5785_s19 + $0x68] sm:$0xff] }
 0x300   :  { %657 = vmatpush.msra.mxu2 %v634_v60  ;;  %v622_v60 = vld [vmem:[%s5773_s15 + $0x40] sm:$0xff] }
 0x301   :  { %550 = vmatmul.f32.gmra.mxu3 %v526_v31 }
 0x302   :  { %658 = vmatpush.msra.mxu2 %v633_v61  ;;  %v621_v61 = vld [vmem:[%s5773_s15 + $0x38] sm:$0xff] }
 0x304   :  { %659 = vmatpush.msra.mxu2 %v632_v0  ;;  %v619_v0 = vld [vmem:[%s5773_s15 + $0x28] sm:$0xff] }
 0x306   :  { %660 = vmatpush.msra.mxu2 %v631_v2  ;;  %v617_v2 = vld [vmem:[%s5773_s15 + $0x18] sm:$0xff] }
 0x308   :  { %661 = vmatpush.msra.mxu2 %v630_v4  ;;  %v616_v4 = vld [vmem:[%s5773_s15 + $0x10] sm:$0xff] }
 0x309   :  { %553 = vmatmul.f32.gmra.mxu3 %v527_v38 }
 0x30a   :  { %782 = vmatpush.msrb.mxu2 %v5642_v12 }
 0x30c   :  { %783 = vmatpush.msrb.mxu2 %v5645_v13 }
 0x30e   :  { %784 = vmatpush.msrb.mxu2 %v5650_v15 }
 0x310   :  { %785 = vmatpush.msrb.mxu2 %v5654_v16 }
 0x312   :  { %786 = vmatpush.msrb.mxu2 %v5659_v17 }
 0x314   :  { %787 = vmatpush.msrb.mxu2 %v5664_v19 }
 0x316   :  { %788 = vmatpush.msrb.mxu2 %v5669_v21 }
 0x318   :  { %789 = vmatpush.msrb.mxu2 %v5674_v22 }
 0x31a   :  { %790 = vmatpush.msrb.mxu2 %v5679_v23 }
 0x31c   :  { %791 = vmatpush.msrb.mxu2 %v5684_v25 }
 0x31e   :  { %792 = vmatpush.msrb.mxu2 %v5689_v27 }
 0x320   :  { %793 = vmatpush.msrb.mxu2 %v5694_v28 }
 0x322   :  { %794 = vmatpush.msrb.mxu2 %v5699_v29 }
 0x324   :  { %795 = vmatpush.msrb.mxu2 %v5707_v33 }
 0x326   :  { %796 = vmatpush.msrb.mxu2 %v5712_v34 }
 0x328   :  { %797 = vmatpush.msrb.mxu2 %v5716_v35 }
 0x374   :  { %v545_v39 = vpop.f32.mrf.mxu3 }
 0x37c   :  { %v548_v50 = vpop.f32.mrf.mxu3 }
 0x37d   :  { %v557_v59 = vadd.f32 %v548_v50, %v545_v39 }
 0x384   :  { %v551_v55 = vpop.f32.mrf.mxu3 }
 0x385   :  { %v558_v62 = vadd.f32 %v557_v59, %v551_v55  ;;  %v625_v55 = vld [vmem:[%s5773_s15 + $0x58] sm:$0xff]  ;;  %v623_v59 = vld [vmem:[%s5773_s15 + $0x48] sm:$0xff] }
 0x38c   :  { %v554_v63 = vpop.f32.mrf.mxu3 }
 0x38d   :  { %v559_v1 = vadd.f32 %v558_v62, %v554_v63  ;;  %v743_v62 = vld [vmem:[%s5785_s19 + $0x50] sm:$0xff] }
 0x38e   :  { %v620_v63 = vld [vmem:[%s5773_s15 + $0x30] sm:$0xff] }
 0x38f   :  { %v560_v3 = vrot.slane %v559_v1, 4 }
 0x391   :  { %v561_v5 = vadd.f32 %v560_v3, %v559_v1  ;;  %v741_v1 = vld [vmem:[%s5785_s19 + $0x40] sm:$0xff]  ;;  %v740_v3 = vld [vmem:[%s5785_s19 + $0x38] sm:$0xff] }
 0x393   :  { %v562_v6 = vrot.slane %v561_v5, 2 }
 0x395   :  { %v563_v7 = vadd.f32 %v562_v6, %v561_v5  ;;  %v615_v5 = vld [vmem:[%s5773_s15 + $0x8] sm:$0xff]  ;;  %v737_v6 = vld [vmem:[%s5785_s19 + $0x20] sm:$0xff] }
 0x397   :  { %v564_v8 = vrot.slane %v563_v7, 1 }
 0x399   :  { %v565_v9 = vadd.f32 %v564_v8, %v563_v7  ;;  %v614_v7 = vld [vmem:[%s5773_s15] sm:$0xff]  ;;  %v736_v8 = vld [vmem:[%s5785_s19 + $0x18] sm:$0xff] }
 0x39b   :  { %v566_v10 = vadd.f32 1e-05, %v565_v9  ;;  %v735_v9 = vld [vmem:[%s5785_s19 + $0x10] sm:$0xff] }
 0x39d   :  { %5257 = vrsqrt.f32 %v566_v10  ;;  %vm573_vm4 = vweird.f32 %v566_v10 }
 0x3a3   :  { %v5258_v11 = vpop.eup %5257 }
 0x3a4   :  { %v568_v14 = vmul.f32 %v5258_v11, %v566_v10  ;;  %vm574_vm3 = vweird.f32 %v5258_v11  ;;  %v734_v10 = vld [vmem:[%s5785_s19 + $0x8] sm:$0xff] }
 0x3a5   :  { %vm575_vm5 = vmor %vm573_vm4, %vm574_vm3 }
 0x3a6   :  { %v569_v20 = vmul.f32 %v5258_v11, %v568_v14 }
 0x3a8   :  { %v570_v26 = vmul.f32 0.5, %v569_v20 }
 0x3aa   :  { %v571_v31 = vsub.f32 1.5, %v570_v26 }
 0x3ac   :  { %v572_v38 = vmul.f32 %v5258_v11, %v571_v31 }
 0x3ae   :  { %v576_v39 = vsel %vm575_vm5, %v5258_v11, %v572_v38 }
 0x3af   :  { %v580_v46 = vmul.f32 %v576_v39, %v5733_v32  ;;  %v577_v47 = vmul.f32 %v576_v39, %v5721_v18  ;;  %v579_v48 = vmul.f32 %v576_v39, %v5729_v30  ;;  %v578_v51 = vmul.f32 %v576_v39, %v5725_v24  ;;  %v629_v30 = vld [vmem:[%s5773_s15 + $0x78] sm:$0xff]  ;;  %v628_v32 = vld [vmem:[%s5773_s15 + $0x70] sm:$0xff] }
 0x3b0   :  { %675 = vmatpush.msra.mxu0 %v629_v30 }
 0x3b1   :  { %v584_v49 = vmax.f32 %v580_v46, 0.0  ;;  %v581_v50 = vmax.f32 %v577_v47, 0.0  ;;  %v583_v18 = vmax.f32 %v579_v48, 0.0  ;;  %v582_v24 = vmax.f32 %v578_v51, 0.0 }
 0x3b2   :  { %676 = vmatpush.msra.mxu0 %v628_v32 }
 0x3b3   :  { %597 = vmatpush.msra.mxu1 %v584_v49  ;;  %662 = vmatmul.f32.vlgmr.msra.gmra.mxu2 %v581_v50 }
 0x3b4   :  { %716 = vmatpush.msrb.mxu3 %v584_v49  ;;  %677 = vmatpush.msra.mxu0 %v627_v52 }
 0x3b5   :  { %598 = vmatpush.msra.mxu1 %v583_v18 }
 0x3b6   :  { %717 = vmatpush.msrb.mxu3 %v583_v18  ;;  %678 = vmatpush.msra.mxu0 %v626_v53 }
 0x3b7   :  { %599 = vmatpush.msra.mxu1 %v582_v24 }
 0x3b8   :  { %718 = vmatpush.msrb.mxu3 %v582_v24  ;;  %679 = vmatpush.msra.mxu0 %v625_v55 }
 0x3b9   :  { %600 = vmatpush.msra.mxu1 %v581_v50 }
 0x3ba   :  { %719 = vmatpush.msrb.mxu3 %v581_v50  ;;  %5109 = vmatmul.msk.f32.vlgmr.msra.gmra.mxu1 %vm240_vm2, %v5560_v36  ;;  %v745_v36 = vld [vmem:[%s5785_s19 + $0x60] sm:$0xff] }
 0x3bb   :  { %5113 = vmatmul.msk.f32.vlgmr.msrb.gmra.mxu3 %vm240_vm2, %v5563_v37  ;;  %665 = vmatmul.f32.gmra.mxu2 %v582_v24  ;;  %v744_v37 = vld [vmem:[%s5785_s19 + $0x58] sm:$0xff] }
 0x3bc   :  { %749 = vmatpush.msrb.mxu1 %v748_v54  ;;  %680 = vmatpush.msra.mxu0 %v624_v57 }
 0x3be   :  { %750 = vmatpush.msrb.mxu1 %v747_v56  ;;  %681 = vmatpush.msra.mxu0 %v623_v59 }
 0x3c0   :  { %751 = vmatpush.msrb.mxu1 %v746_v58  ;;  %682 = vmatpush.msra.mxu0 %v622_v60 }
 0x3c2   :  { %5110 = vmatmul.msk.f32.gmra.mxu1 %vm240_vm2, %v5572_v40  ;;  %683 = vmatpush.msra.mxu0 %v621_v61  ;;  %v742_v40 = vld [vmem:[%s5785_s19 + $0x48] sm:$0xff] }
 0x3c3   :  { %5114 = vmatmul.msk.f32.gmra.mxu3 %vm240_vm2, %v5575_v41  ;;  %668 = vmatmul.f32.gmra.mxu2 %v583_v18  ;;  %v618_v41 = vld [vmem:[%s5773_s15 + $0x20] sm:$0xff]  ;;  %s6603_s15 = sld [smem:[%s8094_s0 + %s5485_s12]]  }
 0x3c4   :  { %752 = vmatpush.msrb.mxu1 %v745_v36  ;;  %684 = vmatpush.msra.mxu0 %v620_v63 }
 0x3c6   :  { %753 = vmatpush.msrb.mxu1 %v744_v37  ;;  %685 = vmatpush.msra.mxu0 %v619_v0 }
 0x3c8   :  { %754 = vmatpush.msrb.mxu1 %v743_v62  ;;  %686 = vmatpush.msra.mxu0 %v618_v41  ;;  %v924_v41 = vld [vmem:[%s5871_s23 + $0xf8] sm:$0xff] }
 0x3ca   :  { %5111 = vmatmul.msk.f32.gmra.mxu1 %vm240_vm2, %v5582_v42  ;;  %687 = vmatpush.msra.mxu0 %v617_v2  ;;  %v739_v42 = vld [vmem:[%s5785_s19 + $0x30] sm:$0xff]  ;;  %v921_v2 = vld [vmem:[%s5871_s23 + $0xe0] sm:$0xff] }
 0x3cb   :  { %5115 = vmatmul.msk.f32.gmra.mxu3 %vm240_vm2, %v5585_v43  ;;  %671 = vmatmul.f32.gmra.mxu2 %v584_v49  ;;  %v738_v43 = vld [vmem:[%s5785_s19 + $0x28] sm:$0xff] }
 0x3cc   :  { %755 = vmatpush.msrb.mxu1 %v742_v40  ;;  %688 = vmatpush.msra.mxu0 %v616_v4  ;;  %v923_v40 = vld [vmem:[%s5871_s23 + $0xf0] sm:$0xff] }
 0x3cd   :  { %925 = vmatpush.msra.mxu3 %v923_v40  ;;  %v919_v4 = vld [vmem:[%s5871_s23 + $0xd0] sm:$0xff] }
 0x3ce   :  { %756 = vmatpush.msrb.mxu1 %v741_v1  ;;  %689 = vmatpush.msra.mxu0 %v615_v5  ;;  %v920_v5 = vld [vmem:[%s5871_s23 + $0xd8] sm:$0xff] }
 0x3cf   :  { %926 = vmatpush.msra.mxu3 %v921_v2 }
 0x3d0   :  { %757 = vmatpush.msrb.mxu1 %v740_v3  ;;  %690 = vmatpush.msra.mxu0 %v614_v7  ;;  %v922_v3 = vld [vmem:[%s5871_s23 + $0xe8] sm:$0xff]  ;;  %v916_v7 = vld [vmem:[%s5871_s23 + $0xb8] sm:$0xff] }
 0x3d1   :  { %927 = vmatpush.msra.mxu3 %v919_v4 }
 0x3d2   :  { %5112 = vmatmul.msk.f32.gmra.mxu1 %vm240_vm2, %v5592_v44  ;;  %828 = vmatpush.msrb.mxu0 %v5642_v12  ;;  %v733_v44 = vld [vmem:[%s5785_s19] sm:$0xff]  ;;  %s6717_s19 = sld [smem:[%s8094_s0 + %s5486_s16]]  }
 0x3d3   :  { %5116 = vmatmul.msk.f32.gmra.mxu3 %vm240_vm2, %v5595_v45  ;;  %758 = vmatpush.msrb.mxu1 %v739_v42  ;;  %v917_v42 = vld [vmem:[%s5871_s23 + $0xc0] sm:$0xff] }
 0x3d4   :  { %829 = vmatpush.msrb.mxu0 %v5645_v13  ;;  %928 = vmatpush.msra.mxu3 %v917_v42  ;;  %v887_v42 = vld [vmem:[%s5912_s27 + $0x10] sm:$0xff] }
 0x3d5   :  { %759 = vmatpush.msrb.mxu1 %v738_v43  ;;  %v918_v43 = vld [vmem:[%s5871_s23 + $0xc8] sm:$0xff] }
 0x3d6   :  { %830 = vmatpush.msrb.mxu0 %v5650_v15 }
 0x3d7   :  { %760 = vmatpush.msrb.mxu1 %v737_v6  ;;  %v915_v6 = vld [vmem:[%s5871_s23 + $0xb0] sm:$0xff] }
 0x3d8   :  { %831 = vmatpush.msrb.mxu0 %v5654_v16  ;;  %929 = vmatpush.msra.mxu3 %v915_v6  ;;  %v889_v6 = vld [vmem:[%s5912_s27 + $0x20] sm:$0xff] }
 0x3d9   :  { %761 = vmatpush.msrb.mxu1 %v736_v8 }
 0x3da   :  { %832 = vmatpush.msrb.mxu0 %v5659_v17 }
 0x3db   :  { %762 = vmatpush.msrb.mxu1 %v735_v9  ;;  %v913_v9 = vld [vmem:[%s5871_s23 + $0xa0] sm:$0xff] }
 0x3dc   :  { %833 = vmatpush.msrb.mxu0 %v5664_v19  ;;  %930 = vmatpush.msra.mxu3 %v913_v9  ;;  %v1266_v9 = vld [vmem:[%s5927_s1 + $0xf8] sm:$0xff] }
 0x3dd   :  { %763 = vmatpush.msrb.mxu1 %v734_v10  ;;  %v914_v10 = vld [vmem:[%s5871_s23 + $0xa8] sm:$0xff] }
 0x3de   :  { %834 = vmatpush.msrb.mxu0 %v5669_v21 }
 0x3df   :  { %764 = vmatpush.msrb.mxu1 %v733_v44  ;;  %v911_v44 = vld [vmem:[%s5871_s23 + $0x90] sm:$0xff] }
 0x3e0   :  { %835 = vmatpush.msrb.mxu0 %v5674_v22  ;;  %931 = vmatpush.msra.mxu3 %v911_v44  ;;  %v1265_v44 = vld [vmem:[%s5927_s1 + $0xf0] sm:$0xff] }
 0x3e1   :  { %954 = vmatpush.msra.mxu1 %v924_v41 }
 0x3e2   :  { %836 = vmatpush.msrb.mxu0 %v5679_v23 }
 0x3e3   :  { %955 = vmatpush.msra.mxu1 %v922_v3 }
 0x3e4   :  { %837 = vmatpush.msrb.mxu0 %v5684_v25 }
 0x3e5   :  { %956 = vmatpush.msra.mxu1 %v920_v5  ;;  %v886_v5 = vld [vmem:[%s5912_s27 + $0x8] sm:$0xff] }
 0x3e6   :  { %838 = vmatpush.msrb.mxu0 %v5689_v27 }
 0x3e7   :  { %957 = vmatpush.msra.mxu1 %v918_v43  ;;  %v888_v43 = vld [vmem:[%s5912_s27 + $0x18] sm:$0xff] }
 0x3e8   :  { %839 = vmatpush.msrb.mxu0 %v5694_v28 }
 0x3e9   :  { %958 = vmatpush.msra.mxu1 %v916_v7  ;;  %v1250_v7 = vld [vmem:[%s5927_s1 + $0x78] sm:$0xff] }
 0x3ea   :  { %840 = vmatpush.msrb.mxu0 %v5699_v29 }
 0x3eb   :  { %959 = vmatpush.msra.mxu1 %v914_v10  ;;  %v1248_v10 = vld [vmem:[%s5927_s1 + $0x68] sm:$0xff] }
 0x3ec   :  { %841 = vmatpush.msrb.mxu0 %v5707_v33 }
 0x3ee   :  { %842 = vmatpush.msrb.mxu0 %v5712_v34 }
 0x3f0   :  { %843 = vmatpush.msrb.mxu0 %v5716_v35 }
 0x436   :  { %v663_v22 = vpop.f32.mrf.mxu2 }
 0x437   :  { %v602_v45 = vpop.f32.mrf.mxu1 }
 0x438   :  { %691 = vmatmul.f32.vlgmr.msra.gmra.mxu0 %v602_v45  ;;  %v912_v45 = vld [vmem:[%s5871_s23 + $0x98] sm:$0xff] }
 0x439   :  { %960 = vmatpush.msra.mxu1 %v912_v45  ;;  %1308 = vmatpush.msra.mxu0 %v1266_v9  ;;  %v1264_v45 = vld [vmem:[%s5927_s1 + $0xe8] sm:$0xff]  ;;  %v1217_v9 = vld [vmem:[%s6049_s13 + $0x70] sm:$0xff] }
 0x43b   :  { %1309 = vmatpush.msra.mxu0 %v1265_v44  ;;  %v1234_v44 = vld [vmem:[%s6049_s13 + $0xf8] sm:$0xff] }
 0x43d   :  { %1310 = vmatpush.msra.mxu0 %v1264_v45  ;;  %v1216_v45 = vld [vmem:[%s6049_s13 + $0x68] sm:$0xff] }
 0x43e   :  { %v721_v12 = vpop.f32.mrf.mxu3  ;;  %v666_v33 = vpop.f32.mrf.mxu2 }
 0x43f   :  { %765 = vmatmul.f32.vlgmr.msrb.gmra.mxu1 %v721_v12  ;;  %v605_v13 = vpop.f32.mrf.mxu1  ;;  %v909_v12 = vld [vmem:[%s5871_s23 + $0x80] sm:$0xff] }
 0x440   :  { %694 = vmatmul.f32.gmra.mxu0 %v605_v13  ;;  %v910_v13 = vld [vmem:[%s5871_s23 + $0x88] sm:$0xff]  ;;  %932 = vmatpush.msra.mxu3 %v909_v12  ;;  %v1247_v12 = vld [vmem:[%s5927_s1 + $0x60] sm:$0xff] }
 0x441   :  { %961 = vmatpush.msra.mxu1 %v910_v13  ;;  %v1263_v13 = vld [vmem:[%s5927_s1 + $0xe0] sm:$0xff] }
 0x442   :  { %1311 = vmatpush.msra.mxu0 %v1263_v13 }
 0x446   :  { %v724_v15 = vpop.f32.mrf.mxu3  ;;  %v669_v20 = vpop.f32.mrf.mxu2 }
 0x447   :  { %768 = vmatmul.f32.gmra.mxu1 %v724_v15  ;;  %v608_v16 = vpop.f32.mrf.mxu1  ;;  %v907_v15 = vld [vmem:[%s5871_s23 + $0x70] sm:$0xff] }
 0x448   :  { %697 = vmatmul.f32.gmra.mxu0 %v608_v16  ;;  %v908_v16 = vld [vmem:[%s5871_s23 + $0x78] sm:$0xff]  ;;  %933 = vmatpush.msra.mxu3 %v907_v15 }
 0x449   :  { %962 = vmatpush.msra.mxu1 %v908_v16  ;;  %v1246_v15 = vld [vmem:[%s5927_s1 + $0x58] sm:$0xff]  ;;  %v890_v16 = vld [vmem:[%s5912_s27 + $0x28] sm:$0xff] }
 0x44e   :  { %v727_v17 = vpop.f32.mrf.mxu3  ;;  %v672_v46 = vpop.f32.mrf.mxu2 }
 0x44f   :  { %771 = vmatmul.f32.gmra.mxu1 %v727_v17  ;;  %v611_v19 = vpop.f32.mrf.mxu1 }
 0x450   :  { %700 = vmatmul.f32.gmra.mxu0 %v611_v19  ;;  %v905_v19 = vld [vmem:[%s5871_s23 + $0x60] sm:$0xff] }
 0x451   :  { %934 = vmatpush.msra.mxu3 %v905_v19  ;;  %v1245_v19 = vld [vmem:[%s5927_s1 + $0x50] sm:$0xff] }
 0x456   :  { %v730_v21 = vpop.f32.mrf.mxu3 }
 0x457   :  { %774 = vmatmul.f32.gmra.mxu1 %v730_v21  ;;  %v906_v21 = vld [vmem:[%s5871_s23 + $0x68] sm:$0xff] }
 0x458   :  { %963 = vmatpush.msra.mxu1 %v906_v21  ;;  %v1261_v21 = vld [vmem:[%s5927_s1 + $0xd0] sm:$0xff] }
 0x4b5   :  { %v692_v23 = vpop.f32.mrf.mxu0 }
 0x4b6   :  { %v693_v25 = vadd.f32 %v692_v23, %v663_v22  ;;  %v903_v22 = vld [vmem:[%s5871_s23 + $0x50] sm:$0xff]  ;;  %v904_v23 = vld [vmem:[%s5871_s23 + $0x58] sm:$0xff] }
 0x4b7   :  { %935 = vmatpush.msra.mxu3 %v903_v22  ;;  %964 = vmatpush.msra.mxu1 %v904_v23  ;;  %v1244_v22 = vld [vmem:[%s5927_s1 + $0x48] sm:$0xff] }
 0x4b8   :  { %v1260_v23 = vld [vmem:[%s5927_s1 + $0xc8] sm:$0xff] }
 0x4bc   :  { %v766_v27 = vpop.f32.mrf.mxu1 }
 0x4bd   :  { %v778_v28 = vadd.f32 %v766_v27, %v693_v25  ;;  %v695_v29 = vpop.f32.mrf.mxu0  ;;  %v901_v27 = vld [vmem:[%s5871_s23 + $0x40] sm:$0xff] }
 0x4be   :  { %v696_v34 = vadd.f32 %v695_v29, %v666_v33  ;;  %936 = vmatpush.msra.mxu3 %v901_v27  ;;  %v899_v29 = vld [vmem:[%s5871_s23 + $0x30] sm:$0xff]  ;;  %v900_v33 = vld [vmem:[%s5871_s23 + $0x38] sm:$0xff]  ;;  %v1259_v27 = vld [vmem:[%s5927_s1 + $0xc0] sm:$0xff] }
 0x4bf   :  { %798 = vmatmul.f32.vlgmr.msrb.gmra.mxu2 %v778_v28 }
 0x4c0   :  { %937 = vmatpush.msra.mxu3 %v899_v29  ;;  %v891_v29 = vld [vmem:[%s5912_s27 + $0x30] sm:$0xff] }
 0x4c4   :  { %v769_v35 = vpop.f32.mrf.mxu1 }
 0x4c5   :  { %v779_v11 = vadd.f32 %v769_v35, %v696_v34  ;;  %v698_v14 = vpop.f32.mrf.mxu0  ;;  %v897_v35 = vld [vmem:[%s5871_s23 + $0x20] sm:$0xff] }
 0x4c6   :  { %v699_v26 = vadd.f32 %v698_v14, %v669_v20  ;;  %938 = vmatpush.msra.mxu3 %v897_v35  ;;  %v1240_v35 = vld [vmem:[%s5927_s1 + $0x28] sm:$0xff] }
 0x4c7   :  { %801 = vmatmul.f32.gmra.mxu2 %v779_v11 }
 0x4cc   :  { %v772_v31 = vpop.f32.mrf.mxu1 }
 0x4cd   :  { %v780_v38 = vadd.f32 %v772_v31, %v699_v26  ;;  %v701_v39 = vpop.f32.mrf.mxu0  ;;  %v895_v26 = vld [vmem:[%s5871_s23 + $0x10] sm:$0xff]  ;;  %v896_v31 = vld [vmem:[%s5871_s23 + $0x18] sm:$0xff] }
 0x4ce   :  { %v702_v47 = vadd.f32 %v701_v39, %v672_v46  ;;  %v893_v39 = vld [vmem:[%s5871_s23] sm:$0xff]  ;;  %v894_v46 = vld [vmem:[%s5871_s23 + $0x8] sm:$0xff]  ;;  %939 = vmatpush.msra.mxu3 %v895_v26  ;;  %v1257_v26 = vld [vmem:[%s5927_s1 + $0xb0] sm:$0xff] }
 0x4cf   :  { %804 = vmatmul.f32.gmra.mxu2 %v780_v38 }
 0x4d0   :  { %940 = vmatpush.msra.mxu3 %v893_v39  ;;  %v1236_v39 = vld [vmem:[%s5927_s1 + $0x8] sm:$0xff] }
 0x4d4   :  { %v775_v48 = vpop.f32.mrf.mxu1 }
 0x4d5   :  { %v781_v49 = vadd.f32 %v775_v48, %v702_v47 }
 0x4d7   :  { %807 = vmatmul.f32.gmra.mxu2 %v781_v49 }
 0x542   :  { %v799_v50 = vpop.f32.mrf.mxu2 }
 0x54a   :  { %v802_v51 = vpop.f32.mrf.mxu2 }
 0x54b   :  { %v811_v30 = vadd.f32 %v802_v51, %v799_v50 }
 0x552   :  { %v805_v18 = vpop.f32.mrf.mxu2 }
 0x553   :  { %v812_v32 = vadd.f32 %v811_v30, %v805_v18 }
 0x55a   :  { %v808_v24 = vpop.f32.mrf.mxu2 }
 0x55b   :  { %v813_v52 = vadd.f32 %v812_v32, %v808_v24 }
 0x55d   :  { %v814_v53 = vrot.slane %v813_v52, 4 }
 0x55f   :  { %v815_v54 = vadd.f32 %v814_v53, %v813_v52 }
 0x561   :  { %v816_v55 = vrot.slane %v815_v54, 2 }
 0x563   :  { %v817_v56 = vadd.f32 %v816_v55, %v815_v54 }
 0x565   :  { %v818_v57 = vrot.slane %v817_v56, 1 }
 0x567   :  { %v819_v58 = vadd.f32 %v818_v57, %v817_v56 }
 0x569   :  { %v5852_v59 = vsub.f32 %v778_v28, %v819_v58  ;;  %v5856_v60 = vsub.f32 %v779_v11, %v819_v58  ;;  %v5860_v61 = vsub.f32 %v780_v38, %v819_v58  ;;  %v5864_v63 = vsub.f32 %v781_v49, %v819_v58  ;;  %v902_v28 = vld [vmem:[%s5871_s23 + $0x48] sm:$0xff] }
 0x56a   :  { %965 = vmatpush.msra.mxu1 %v902_v28  ;;  %v898_v11 = vld [vmem:[%s5871_s23 + $0x28] sm:$0xff]  ;;  %v1242_v28 = vld [vmem:[%s5927_s1 + $0x38] sm:$0xff]  ;;  %s6760_s23 = sld [smem:[%s8094_s0 + %s5487_s20]]  }
 0x56b   :  { %v824_v36 = vmul.f32 %v5852_v59, %v5852_v59  ;;  %v825_v37 = vmul.f32 %v5856_v60, %v5856_v60  ;;  %v826_v62 = vmul.f32 %v5860_v61, %v5860_v61  ;;  %v827_v0 = vmul.f32 %v5864_v63, %v5864_v63 }
 0x56c   :  { %966 = vmatpush.msra.mxu1 %v900_v33  ;;  %v1258_v33 = vld [vmem:[%s5927_s1 + $0xb8] sm:$0xff] }
 0x56d   :  { %844 = vmatmul.f32.vlgmr.msrb.gmra.mxu0 %v824_v36 }
 0x56e   :  { %967 = vmatpush.msra.mxu1 %v898_v11  ;;  %v1239_v11 = vld [vmem:[%s5927_s1 + $0x20] sm:$0xff] }
 0x570   :  { %968 = vmatpush.msra.mxu1 %v896_v31  ;;  %v1237_v31 = vld [vmem:[%s5927_s1 + $0x10] sm:$0xff] }
 0x572   :  { %969 = vmatpush.msra.mxu1 %v894_v46  ;;  %v1255_v46 = vld [vmem:[%s5927_s1 + $0xa0] sm:$0xff] }
 0x575   :  { %847 = vmatmul.f32.gmra.mxu0 %v825_v37 }
 0x57d   :  { %850 = vmatmul.f32.gmra.mxu0 %v826_v62 }
 0x585   :  { %853 = vmatmul.f32.gmra.mxu0 %v827_v0 }
 0x5ea   :  { %v845_v1 = vpop.f32.mrf.mxu0 }
 0x5f2   :  { %v848_v8 = vpop.f32.mrf.mxu0 }
 0x5f3   :  { %v857_v25 = vadd.f32 %v848_v8, %v845_v1  ;;  %v1249_v8 = vld [vmem:[%s5927_s1 + $0x70] sm:$0xff] }
 0x5fa   :  { %v851_v17 = vpop.f32.mrf.mxu0 }
 0x5fb   :  { %v858_v34 = vadd.f32 %v857_v25, %v851_v17  ;;  %v1262_v17 = vld [vmem:[%s5927_s1 + $0xd8] sm:$0xff]  ;;  %v1243_v25 = vld [vmem:[%s5927_s1 + $0x40] sm:$0xff] }
 0x5fc   :  { %1312 = vmatpush.msra.mxu0 %v1262_v17  ;;  %v1213_v17 = vld [vmem:[%s6049_s13 + $0x50] sm:$0xff] }
 0x5fe   :  { %1313 = vmatpush.msra.mxu0 %v1261_v21  ;;  %v1437_v21 = vld [vmem:[%s6011_s9 + $0x30] sm:$0xff] }
 0x600   :  { %1314 = vmatpush.msra.mxu0 %v1260_v23  ;;  %v1231_v23 = vld [vmem:[%s6049_s13 + $0xe0] sm:$0xff] }
 0x602   :  { %v854_v14 = vpop.f32.mrf.mxu0  ;;  %1315 = vmatpush.msra.mxu0 %v1259_v27  ;;  %v1230_v27 = vld [vmem:[%s6049_s13 + $0xd8] sm:$0xff] }
 0x603   :  { %v859_v20 = vadd.f32 %v858_v34, %v854_v14  ;;  %v1241_v34 = vld [vmem:[%s5927_s1 + $0x30] sm:$0xff]  ;;  %v892_v14 = vld [vmem:[%s5912_s27 + $0x38] sm:$0xff] }
 0x604   :  { %1316 = vmatpush.msra.mxu0 %v1258_v33  ;;  %v1209_v33 = vld [vmem:[%s6049_s13 + $0x30] sm:$0xff] }
 0x605   :  { %v860_v38 = vrot.slane %v859_v20, 4 }
 0x606   :  { %1317 = vmatpush.msra.mxu0 %v1257_v26  ;;  %v1207_v26 = vld [vmem:[%s6049_s13 + $0x20] sm:$0xff] }
 0x607   :  { %v861_v47 = vadd.f32 %v860_v38, %v859_v20  ;;  %v1238_v20 = vld [vmem:[%s5927_s1 + $0x18] sm:$0xff]  ;;  %v1256_v38 = vld [vmem:[%s5927_s1 + $0xa8] sm:$0xff] }
 0x608   :  { %1318 = vmatpush.msra.mxu0 %v1256_v38  ;;  %v1206_v38 = vld [vmem:[%s6049_s13 + $0x18] sm:$0xff] }
 0x609   :  { %v862_v48 = vrot.slane %v861_v47, 2 }
 0x60a   :  { %1319 = vmatpush.msra.mxu0 %v1255_v46  ;;  %v1205_v46 = vld [vmem:[%s6049_s13 + $0x10] sm:$0xff] }
 0x60b   :  { %v863_v49 = vadd.f32 %v862_v48, %v861_v47  ;;  %v1235_v47 = vld [vmem:[%s5927_s1] sm:$0xff]  ;;  %v1254_v48 = vld [vmem:[%s5927_s1 + $0x98] sm:$0xff] }
 0x60c   :  { %1320 = vmatpush.msra.mxu0 %v1254_v48  ;;  %v1204_v48 = vld [vmem:[%s6049_s13 + $0x8] sm:$0xff] }
 0x60d   :  { %v864_v50 = vrot.slane %v863_v49, 1 }
 0x60f   :  { %v865_v51 = vadd.f32 %v864_v50, %v863_v49  ;;  %v1253_v49 = vld [vmem:[%s5927_s1 + $0x90] sm:$0xff]  ;;  %v1252_v50 = vld [vmem:[%s5927_s1 + $0x88] sm:$0xff] }
 0x610   :  { %1321 = vmatpush.msra.mxu0 %v1253_v49  ;;  %v1223_v49 = vld [vmem:[%s6049_s13 + $0xa0] sm:$0xff] }
 0x611   :  { %v866_v18 = vadd.f32 1e-05, %v865_v51  ;;  %v1251_v51 = vld [vmem:[%s5927_s1 + $0x80] sm:$0xff]  ;;  %s6871_s1 = sld [smem:[%s8094_s0 + %s5489_s28]]  }
 0x612   :  { %1322 = vmatpush.msra.mxu0 %v1252_v50 }
 0x613   :  { %5259 = vrsqrt.f32 %v866_v18  ;;  %vm873_vm7 = vweird.f32 %v866_v18 }
 0x614   :  { %1323 = vmatpush.msra.mxu0 %v1251_v51  ;;  %v1203_v51 = vld [vmem:[%s6049_s13] sm:$0xff] }
 0x619   :  { %v5260_v30 = vpop.eup %5259 }
 0x61a   :  { %v868_v32 = vmul.f32 %v5260_v30, %v866_v18  ;;  %vm874_vm6 = vweird.f32 %v5260_v30 }
 0x61b   :  { %vm875_vm8 = vmor %vm873_vm7, %vm874_vm6 }
 0x61c   :  { %v869_v24 = vmul.f32 %v5260_v30, %v868_v32 }
 0x61e   :  { %v870_v52 = vmul.f32 0.5, %v869_v24 }
 0x620   :  { %v871_v53 = vsub.f32 1.5, %v870_v52 }
 0x622   :  { %v872_v54 = vmul.f32 %v5260_v30, %v871_v53 }
 0x624   :  { %v876_v55 = vsel %vm875_vm8, %v5260_v30, %v872_v54 }
 0x625   :  { %v877_v56 = vmul.f32 %v876_v55, %v5852_v59  ;;  %v878_v58 = vmul.f32 %v876_v55, %v5856_v60  ;;  %v879_v37 = vmul.f32 %v876_v55, %v5860_v61  ;;  %v880_v0 = vmul.f32 %v876_v55, %v5864_v63  ;;  %v885_v63 = vld [vmem:[%s5912_s27] sm:$0xff]  ;;  %s6801_s27 = sld [smem:[%s8094_s0 + %s5488_s24]]  }
 0x627   :  { %v881_v57 = vmax.f32 %v877_v56, 0.0  ;;  %v882_v36 = vmax.f32 %v878_v58, 0.0  ;;  %v883_v62 = vmax.f32 %v879_v37, 0.0  ;;  %v884_v40 = vmax.f32 %v880_v0, 0.0 }
 0x629   :  { %941 = vmatmul.f32.vlgmr.msra.gmra.mxu3 %v881_v57  ;;  %970 = vmatmul.f32.vlgmr.msra.gmra.mxu1 %v881_v57 }
 0x631   :  { %944 = vmatmul.f32.gmra.mxu3 %v882_v36  ;;  %973 = vmatmul.f32.gmra.mxu1 %v882_v36 }
 0x639   :  { %947 = vmatmul.f32.gmra.mxu3 %v883_v62  ;;  %976 = vmatmul.f32.gmra.mxu1 %v883_v62 }
 0x641   :  { %950 = vmatmul.f32.gmra.mxu3 %v884_v40  ;;  %979 = vmatmul.f32.gmra.mxu1 %v884_v40 }
 0x6a6   :  { %v971_v41 = vpop.f32.mrf.mxu1 }
 0x6ac   :  { %v942_v59 = vpop.f32.mrf.mxu3 }
 0x6ae   :  { %v974_v1 = vpop.f32.mrf.mxu1 }
 0x6b4   :  { %v945_v2 = vpop.f32.mrf.mxu3 }
 0x6b6   :  { %v977_v3 = vpop.f32.mrf.mxu1 }
 0x6bc   :  { %v948_v60 = vpop.f32.mrf.mxu3 }
 0x6be   :  { %v980_v61 = vpop.f32.mrf.mxu1 }
 0x6bf   :  { %1060 = vmatpush.msrb.mxu3 %v980_v61  ;;  %v1432_v61 = vld [vmem:[%s6011_s9 + $0x8] sm:$0xff] }
 0x6c1   :  { %1061 = vmatpush.msrb.mxu3 %v977_v3  ;;  %v1092_v3 = vld [vmem:[%s5993_s5 + $0x18] sm:$0xff] }
 0x6c3   :  { %1062 = vmatpush.msrb.mxu3 %v974_v1  ;;  %v1091_v1 = vld [vmem:[%s5993_s5 + $0x10] sm:$0xff] }
 0x6c4   :  { %v951_v4 = vpop.f32.mrf.mxu3 }
 0x6c5   :  { %1019 = vmatpush.msra.mxu2 %v951_v4  ;;  %1063 = vmatpush.msrb.mxu3 %v971_v41  ;;  %v1089_v41 = vld [vmem:[%s5993_s5] sm:$0xff]  ;;  %v1433_v4 = vld [vmem:[%s6011_s9 + $0x10] sm:$0xff] }
 0x6c6   :  { %5125 = vmatmul.msk.f32.vlgmr.msrb.gmra.mxu3 %vm240_vm2, %v885_v63 }
 0x6c7   :  { %1020 = vmatpush.msra.mxu2 %v948_v60  ;;  %v1093_v60 = vld [vmem:[%s5993_s5 + $0x20] sm:$0xff] }
 0x6c9   :  { %1021 = vmatpush.msra.mxu2 %v945_v2  ;;  %v1431_v2 = vld [vmem:[%s6011_s9] sm:$0xff] }
 0x6cb   :  { %1022 = vmatpush.msra.mxu2 %v942_v59  ;;  %v1090_v59 = vld [vmem:[%s5993_s5 + $0x8] sm:$0xff] }
 0x6cc   :  { %5117 = vmatmul.msk.f32.vlgmr.msra.gmra.mxu2 %vm240_vm2, %v885_v63  ;;  %v1094_v63 = vld [vmem:[%s5993_s5 + $0x28] sm:$0xff] }
 0x6cd   :  { %1267 = vmatpush.msrb.mxu2 %v1250_v7 }
 0x6ce   :  { %5126 = vmatmul.msk.f32.gmra.mxu3 %vm240_vm2, %v886_v5 }
 0x6cf   :  { %1268 = vmatpush.msrb.mxu2 %v1249_v8  ;;  %v1218_v8 = vld [vmem:[%s6049_s13 + $0x78] sm:$0xff] }
 0x6d1   :  { %1269 = vmatpush.msrb.mxu2 %v1248_v10  ;;  %v1436_v10 = vld [vmem:[%s6011_s9 + $0x28] sm:$0xff] }
 0x6d3   :  { %1270 = vmatpush.msrb.mxu2 %v1247_v12  ;;  %v1215_v12 = vld [vmem:[%s6049_s13 + $0x60] sm:$0xff] }
 0x6d4   :  { %5118 = vmatmul.msk.f32.gmra.mxu2 %vm240_vm2, %v886_v5  ;;  %v1095_v5 = vld [vmem:[%s5993_s5 + $0x30] sm:$0xff] }
 0x6d5   :  { %1271 = vmatpush.msrb.mxu2 %v1246_v15  ;;  %v1214_v15 = vld [vmem:[%s6049_s13 + $0x58] sm:$0xff] }
 0x6d6   :  { %5127 = vmatmul.msk.f32.gmra.mxu3 %vm240_vm2, %v887_v42 }
 0x6d7   :  { %1272 = vmatpush.msrb.mxu2 %v1245_v19  ;;  %v1232_v19 = vld [vmem:[%s6049_s13 + $0xe8] sm:$0xff] }
 0x6d9   :  { %1273 = vmatpush.msrb.mxu2 %v1244_v22  ;;  %v1212_v22 = vld [vmem:[%s6049_s13 + $0x48] sm:$0xff] }
 0x6db   :  { %1274 = vmatpush.msrb.mxu2 %v1243_v25  ;;  %v1211_v25 = vld [vmem:[%s6049_s13 + $0x40] sm:$0xff] }
 0x6dc   :  { %5119 = vmatmul.msk.f32.gmra.mxu2 %vm240_vm2, %v887_v42  ;;  %v1096_v42 = vld [vmem:[%s5993_s5 + $0x38] sm:$0xff] }
 0x6dd   :  { %1275 = vmatpush.msrb.mxu2 %v1242_v28  ;;  %v1210_v28 = vld [vmem:[%s6049_s13 + $0x38] sm:$0xff] }
 0x6de   :  { %5128 = vmatmul.msk.f32.gmra.mxu3 %vm240_vm2, %v888_v43 }
 0x6df   :  { %1276 = vmatpush.msrb.mxu2 %v1241_v34 }
 0x6e1   :  { %1277 = vmatpush.msrb.mxu2 %v1240_v35  ;;  %v1228_v35 = vld [vmem:[%s6049_s13 + $0xc8] sm:$0xff] }
 0x6e3   :  { %1278 = vmatpush.msrb.mxu2 %v1239_v11  ;;  %v1438_v11 = vld [vmem:[%s6011_s9 + $0x38] sm:$0xff] }
 0x6e4   :  { %5120 = vmatmul.msk.f32.gmra.mxu2 %vm240_vm2, %v888_v43  ;;  %v1434_v43 = vld [vmem:[%s6011_s9 + $0x18] sm:$0xff] }
 0x6e5   :  { %1279 = vmatpush.msrb.mxu2 %v1238_v20  ;;  %v1227_v20 = vld [vmem:[%s6049_s13 + $0xc0] sm:$0xff] }
 0x6e6   :  { %5129 = vmatmul.msk.f32.gmra.mxu3 %vm240_vm2, %v889_v6 }
 0x6e7   :  { %1280 = vmatpush.msrb.mxu2 %v1237_v31  ;;  %v1226_v31 = vld [vmem:[%s6049_s13 + $0xb8] sm:$0xff] }
 0x6e9   :  { %1281 = vmatpush.msrb.mxu2 %v1236_v39  ;;  %v1225_v39 = vld [vmem:[%s6049_s13 + $0xb0] sm:$0xff] }
 0x6eb   :  { %1282 = vmatpush.msrb.mxu2 %v1235_v47  ;;  %v1224_v47 = vld [vmem:[%s6049_s13 + $0xa8] sm:$0xff] }
 0x6ec   :  { %5121 = vmatmul.msk.f32.gmra.mxu2 %vm240_vm2, %v889_v6  ;;  %v1435_v6 = vld [vmem:[%s6011_s9 + $0x20] sm:$0xff] }
 0x6ee   :  { %5130 = vmatmul.msk.f32.gmra.mxu3 %vm240_vm2, %v890_v16 }
 0x6f4   :  { %5122 = vmatmul.msk.f32.gmra.mxu2 %vm240_vm2, %v890_v16  ;;  %v1233_v16 = vld [vmem:[%s6049_s13 + $0xf0] sm:$0xff] }
 0x6f6   :  { %5131 = vmatmul.msk.f32.gmra.mxu3 %vm240_vm2, %v891_v29 }
 0x6fc   :  { %5123 = vmatmul.msk.f32.gmra.mxu2 %vm240_vm2, %v891_v29  ;;  %v1229_v29 = vld [vmem:[%s6049_s13 + $0xd0] sm:$0xff] }
 0x6fe   :  { %5132 = vmatmul.msk.f32.gmra.mxu3 %vm240_vm2, %v892_v14 }
 0x704   :  { %5124 = vmatmul.msk.f32.gmra.mxu2 %vm240_vm2, %v892_v14  ;;  %v1208_v14 = vld [vmem:[%s6049_s13 + $0x28] sm:$0xff] }
 0x749   :  { %v5975_v18 = vpop.f32.mrf.mxu3 }
 0x74a   :  { %1324 = vmatmul.f32.vlgmr.msra.gmra.mxu0 %v5975_v18 }
 0x74f   :  { %v5978_v30 = vpop.f32.mrf.mxu2 }
 0x750   :  { %1283 = vmatmul.f32.vlgmr.msrb.gmra.mxu2 %v5978_v30 }
 0x751   :  { %v5981_v32 = vpop.f32.mrf.mxu3 }
 0x752   :  { %1327 = vmatmul.f32.gmra.mxu0 %v5981_v32 }
 0x757   :  { %v1027_v24 = vpop.f32.mrf.mxu2 }
 0x758   :  { %1286 = vmatmul.f32.gmra.mxu2 %v1027_v24 }
 0x759   :  { %v5984_v52 = vpop.f32.mrf.mxu3 }
 0x75a   :  { %1330 = vmatmul.f32.gmra.mxu0 %v5984_v52 }
 0x75f   :  { %v1030_v53 = vpop.f32.mrf.mxu2 }
 0x760   :  { %1289 = vmatmul.f32.gmra.mxu2 %v1030_v53 }
 0x761   :  { %v5987_v54 = vpop.f32.mrf.mxu3 }
 0x762   :  { %1333 = vmatmul.f32.gmra.mxu0 %v5987_v54 }
 0x767   :  { %v1033_v55 = vpop.f32.mrf.mxu2 }
 0x768   :  { %1292 = vmatmul.f32.gmra.mxu2 %v1033_v55 }
 0x769   :  { %v1077_v56 = vpop.f32.mrf.mxu3 }
 0x76a   :  { %1336 = vmatmul.f32.gmra.mxu0 %v1077_v56 }
 0x76f   :  { %v1036_v57 = vpop.f32.mrf.mxu2 }
 0x770   :  { %1295 = vmatmul.f32.gmra.mxu2 %v1036_v57 }
 0x771   :  { %v1080_v58 = vpop.f32.mrf.mxu3 }
 0x772   :  { %1339 = vmatmul.f32.gmra.mxu0 %v1080_v58 }
 0x777   :  { %v1039_v36 = vpop.f32.mrf.mxu2 }
 0x778   :  { %1298 = vmatmul.f32.gmra.mxu2 %v1039_v36 }
 0x779   :  { %v1083_v37 = vpop.f32.mrf.mxu3 }
 0x77a   :  { %1342 = vmatmul.f32.gmra.mxu0 %v1083_v37 }
 0x77f   :  { %v1042_v62 = vpop.f32.mrf.mxu2 }
 0x780   :  { %1301 = vmatmul.f32.gmra.mxu2 %v1042_v62 }
 0x781   :  { %v1086_v0 = vpop.f32.mrf.mxu3 }
 0x782   :  { %1170 = vmatpush.msrb.mxu1 %v1086_v0  ;;  %1345 = vmatmul.f32.gmra.mxu0 %v1086_v0 }
 0x784   :  { %1171 = vmatpush.msrb.mxu1 %v1083_v37 }
 0x786   :  { %1172 = vmatpush.msrb.mxu1 %v1080_v58 }
 0x787   :  { %v1045_v40 = vpop.f32.mrf.mxu2 }
 0x788   :  { %1129 = vmatpush.msra.mxu3 %v1045_v40  ;;  %1173 = vmatpush.msrb.mxu1 %v1077_v56 }
 0x789   :  { %1304 = vmatmul.f32.gmra.mxu2 %v1045_v40  ;;  %1471 = vmatpush.msrb.mxu0 %v1045_v40 }
 0x78a   :  { %5213 = vmatpush.msra.mxu2 %v1045_v40  ;;  %1130 = vmatpush.msra.mxu3 %v1042_v62 }
 0x78b   :  { %1174 = vmatpush.msrb.mxu1 %v5987_v54  ;;  %1472 = vmatpush.msrb.mxu0 %v1042_v62 }
 0x78c   :  { %5214 = vmatpush.msra.mxu2 %v1042_v62  ;;  %1131 = vmatpush.msra.mxu3 %v1039_v36  ;;  %v1558_v62 = vld [vmem:[%s6111_s17 + $0x68] sm:$0xff] }
 0x78d   :  { %1175 = vmatpush.msrb.mxu1 %v5984_v52  ;;  %1473 = vmatpush.msrb.mxu0 %v1039_v36 }
 0x78e   :  { %5215 = vmatpush.msra.mxu2 %v1039_v36  ;;  %1132 = vmatpush.msra.mxu3 %v1036_v57  ;;  %v1560_v36 = vld [vmem:[%s6111_s17 + $0x78] sm:$0xff] }
 0x78f   :  { %1176 = vmatpush.msrb.mxu1 %v5981_v32  ;;  %1474 = vmatpush.msrb.mxu0 %v1036_v57 }
 0x790   :  { %5216 = vmatpush.msra.mxu2 %v1036_v57  ;;  %1133 = vmatpush.msra.mxu3 %v1033_v55 }
 0x791   :  { %1177 = vmatpush.msrb.mxu1 %v5975_v18  ;;  %1475 = vmatpush.msrb.mxu0 %v1033_v55 }
 0x792   :  { %5217 = vmatpush.msra.mxu2 %v1033_v55  ;;  %1134 = vmatpush.msra.mxu3 %v1030_v53 }
 0x793   :  { %1476 = vmatpush.msrb.mxu0 %v1030_v53  ;;  %5141 = vmatmul.msk.f32.vlgmr.msrb.gmra.mxu1 %vm164_vm0, %v1089_v41 }
 0x794   :  { %5218 = vmatpush.msra.mxu2 %v1030_v53  ;;  %1135 = vmatpush.msra.mxu3 %v1027_v24 }
 0x795   :  { %1477 = vmatpush.msrb.mxu0 %v1027_v24  ;;  %1390 = vmatpush.msra.mxu1 %v1234_v44  ;;  %v1571_v44 = vld [vmem:[%s6111_s17 + $0xd0] sm:$0xff] }
 0x796   :  { %5219 = vmatpush.msra.mxu2 %v1027_v24  ;;  %1136 = vmatpush.msra.mxu3 %v5978_v30  ;;  %v1219_v24 = vld [vmem:[%s6049_s13 + $0x80] sm:$0xff] }
 0x797   :  { %1478 = vmatpush.msrb.mxu0 %v5978_v30  ;;  %5133 = vmatmul.msk.f32.vlgmr.msra.gmra.mxu3 %vm164_vm0, %v1089_v41 }
 0x798   :  { %5220 = vmatpush.msra.mxu2 %v5978_v30  ;;  %5149 = vmatmul.msk.f32.vlgmr.msrb.gmra.mxu0 %vm164_vm0, %v1431_v2  ;;  %v1221_v30 = vld [vmem:[%s6049_s13 + $0x90] sm:$0xff] }
 0x799   :  { %1512 = vmatpush.msra.mxu0 %v1086_v0  ;;  %5152 = vmatmul.msk.f32.vlgmr.msra.gmra.mxu2 %vm164_vm0, %v1434_v43 }
 0x79a   :  { %1349 = vmatpush.msrb.mxu3 %v1218_v8  ;;  %1391 = vmatpush.msra.mxu1 %v1233_v16  ;;  %v1553_v8 = vld [vmem:[%s6111_s17 + $0x40] sm:$0xff]  ;;  %v1550_v16 = vld [vmem:[%s6111_s17 + $0x28] sm:$0xff] }
 0x79b   :  { %1513 = vmatpush.msra.mxu0 %v1083_v37  ;;  %5142 = vmatmul.msk.f32.gmra.mxu1 %vm164_vm0, %v1090_v59  ;;  %v1559_v37 = vld [vmem:[%s6111_s17 + $0x70] sm:$0xff] }
 0x79c   :  { %1350 = vmatpush.msrb.mxu3 %v1217_v9  ;;  %1392 = vmatpush.msra.mxu1 %v1232_v19  ;;  %v1572_v9 = vld [vmem:[%s6111_s17 + $0xd8] sm:$0xff] }
 0x79d   :  { %1514 = vmatpush.msra.mxu0 %v1080_v58 }
 0x79e   :  { %1351 = vmatpush.msrb.mxu3 %v1216_v45  ;;  %1393 = vmatpush.msra.mxu1 %v1231_v23  ;;  %v1549_v23 = vld [vmem:[%s6111_s17 + $0x20] sm:$0xff] }
 0x79f   :  { %1515 = vmatpush.msra.mxu0 %v1077_v56  ;;  %5134 = vmatmul.msk.f32.gmra.mxu3 %vm164_vm0, %v1090_v59  ;;  %v1557_v59 = vld [vmem:[%s6111_s17 + $0x60] sm:$0xff] }
 0x7a0   :  { %5150 = vmatmul.msk.f32.gmra.mxu0 %vm164_vm0, %v1432_v61  ;;  %1352 = vmatpush.msrb.mxu3 %v1215_v12  ;;  %v1551_v12 = vld [vmem:[%s6111_s17 + $0x30] sm:$0xff] }
 0x7a1   :  { %1516 = vmatpush.msra.mxu0 %v5987_v54  ;;  %5153 = vmatmul.msk.f32.gmra.mxu2 %vm164_vm0, %v1435_v6 }
 0x7a2   :  { %1353 = vmatpush.msrb.mxu3 %v1214_v15  ;;  %1394 = vmatpush.msra.mxu1 %v1230_v27  ;;  %v1570_v15 = vld [vmem:[%s6111_s17 + $0xc8] sm:$0xff]  ;;  %v1548_v27 = vld [vmem:[%s6111_s17 + $0x18] sm:$0xff] }
 0x7a3   :  { %1517 = vmatpush.msra.mxu0 %v5984_v52  ;;  %5143 = vmatmul.msk.f32.gmra.mxu1 %vm164_vm0, %v1091_v1 }
 0x7a4   :  { %1354 = vmatpush.msrb.mxu3 %v1213_v17  ;;  %1395 = vmatpush.msra.mxu1 %v1229_v29  ;;  %v1569_v17 = vld [vmem:[%s6111_s17 + $0xc0] sm:$0xff]  ;;  %v1547_v29 = vld [vmem:[%s6111_s17 + $0x10] sm:$0xff] }
 0x7a5   :  { %1518 = vmatpush.msra.mxu0 %v5981_v32  ;;  %v1220_v32 = vld [vmem:[%s6049_s13 + $0x88] sm:$0xff] }
 0x7a6   :  { %1355 = vmatpush.msrb.mxu3 %v1212_v22  ;;  %1396 = vmatpush.msra.mxu1 %v1228_v35 }
 0x7a7   :  { %1519 = vmatpush.msra.mxu0 %v5975_v18  ;;  %5135 = vmatmul.msk.f32.gmra.mxu3 %vm164_vm0, %v1091_v1  ;;  %v1222_v18 = vld [vmem:[%s6049_s13 + $0x98] sm:$0xff]  ;;  %s7370_s13 = sld [smem:[%s8094_s0 + %s5492_s10]]  }
 0x7a8   :  { %5151 = vmatmul.msk.f32.gmra.mxu0 %vm164_vm0, %v1433_v4  ;;  %1356 = vmatpush.msrb.mxu3 %v1211_v25  ;;  %v1576_v1 = vld [vmem:[%s6111_s17 + $0xf8] sm:$0xff] }
 0x7a9   :  { %5154 = vmatmul.msk.f32.gmra.mxu2 %vm164_vm0, %v1436_v10  ;;  %1397 = vmatpush.msra.mxu1 %v1227_v20  ;;  %v1568_v25 = vld [vmem:[%s6111_s17 + $0xb8] sm:$0xff] }
 0x7aa   :  { %1357 = vmatpush.msrb.mxu3 %v1210_v28  ;;  %v1567_v28 = vld [vmem:[%s6111_s17 + $0xb0] sm:$0xff] }
 0x7ab   :  { %5144 = vmatmul.msk.f32.gmra.mxu1 %vm164_vm0, %v1092_v3 }
 0x7ac   :  { %1358 = vmatpush.msrb.mxu3 %v1209_v33  ;;  %1398 = vmatpush.msra.mxu1 %v1226_v31  ;;  %v1566_v33 = vld [vmem:[%s6111_s17 + $0xa8] sm:$0xff]  ;;  %v1564_v31 = vld [vmem:[%s6111_s17 + $0x98] sm:$0xff] }
 0x7ae   :  { %1359 = vmatpush.msrb.mxu3 %v1208_v14  ;;  %1399 = vmatpush.msra.mxu1 %v1225_v39  ;;  %v1565_v14 = vld [vmem:[%s6111_s17 + $0xa0] sm:$0xff] }
 0x7af   :  { %5136 = vmatmul.msk.f32.gmra.mxu3 %vm164_vm0, %v1092_v3  ;;  %v1556_v3 = vld [vmem:[%s6111_s17 + $0x58] sm:$0xff] }
 0x7b0   :  { %5157 = vmatmul.msk.f32.vlgmr.msra.gmra.mxu0 %vm164_vm0, %v1431_v2  ;;  %1360 = vmatpush.msrb.mxu3 %v1207_v26  ;;  %v1545_v26 = vld [vmem:[%s6111_s17] sm:$0xff] }
 0x7b1   :  { %5155 = vmatmul.msk.f32.gmra.mxu2 %vm164_vm0, %v1437_v21  ;;  %1400 = vmatpush.msra.mxu1 %v1224_v47  ;;  %v1562_v47 = vld [vmem:[%s6111_s17 + $0x88] sm:$0xff] }
 0x7b2   :  { %1361 = vmatpush.msrb.mxu3 %v1206_v38 }
 0x7b3   :  { %5145 = vmatmul.msk.f32.gmra.mxu1 %vm164_vm0, %v1093_v60 }
 0x7b4   :  { %1362 = vmatpush.msrb.mxu3 %v1205_v46  ;;  %1401 = vmatpush.msra.mxu1 %v1223_v49  ;;  %v1563_v46 = vld [vmem:[%s6111_s17 + $0x90] sm:$0xff] }
 0x7b6   :  { %1363 = vmatpush.msrb.mxu3 %v1204_v48  ;;  %1402 = vmatpush.msra.mxu1 %v1222_v18  ;;  %v1561_v48 = vld [vmem:[%s6111_s17 + $0x80] sm:$0xff] }
 0x7b7   :  { %5137 = vmatmul.msk.f32.gmra.mxu3 %vm164_vm0, %v1093_v60  ;;  %v1575_v60 = vld [vmem:[%s6111_s17 + $0xf0] sm:$0xff] }
 0x7b8   :  { %5158 = vmatmul.msk.f32.gmra.mxu0 %vm164_vm0, %v1432_v61  ;;  %1364 = vmatpush.msrb.mxu3 %v1203_v51  ;;  %v1574_v61 = vld [vmem:[%s6111_s17 + $0xe8] sm:$0xff] }
 0x7b9   :  { %5156 = vmatmul.msk.f32.gmra.mxu2 %vm164_vm0, %v1438_v11  ;;  %1403 = vmatpush.msra.mxu1 %v1221_v30 }
 0x7ba   :  { %1577 = vmatpush.msra.mxu3 %v1560_v36 }
 0x7bb   :  { %5146 = vmatmul.msk.f32.gmra.mxu1 %vm164_vm0, %v1094_v63 }
 0x7bc   :  { %1404 = vmatpush.msra.mxu1 %v1220_v32  ;;  %1578 = vmatpush.msra.mxu3 %v1559_v37 }
 0x7be   :  { %1405 = vmatpush.msra.mxu1 %v1219_v24  ;;  %1579 = vmatpush.msra.mxu3 %v1558_v62 }
 0x7bf   :  { %5138 = vmatmul.msk.f32.gmra.mxu3 %vm164_vm0, %v1094_v63  ;;  %v1555_v63 = vld [vmem:[%s6111_s17 + $0x50] sm:$0xff] }
 0x7c0   :  { %5159 = vmatmul.msk.f32.gmra.mxu0 %vm164_vm0, %v1433_v4  ;;  %1618 = vmatpush.msrb.mxu1 %v1576_v1  ;;  %v1554_v4 = vld [vmem:[%s6111_s17 + $0x48] sm:$0xff] }
 0x7c1   :  { %1580 = vmatpush.msra.mxu3 %v1557_v59 }
 0x7c2   :  { %1619 = vmatpush.msrb.mxu1 %v1575_v60 }
 0x7c3   :  { %5147 = vmatmul.msk.f32.gmra.mxu1 %vm164_vm0, %v1095_v5  ;;  %1581 = vmatpush.msra.mxu3 %v1556_v3 }
 0x7c4   :  { %1620 = vmatpush.msrb.mxu1 %v1574_v61 }
 0x7c5   :  { %1582 = vmatpush.msra.mxu3 %v1555_v63 }
 0x7c7   :  { %5139 = vmatmul.msk.f32.gmra.mxu3 %vm164_vm0, %v1095_v5  ;;  %v6053_v7 = vpop.f32.mrf.mxu0  ;;  %v1573_v5 = vld [vmem:[%s6111_s17 + $0xe0] sm:$0xff] }
 0x7c8   :  { %5160 = vmatmul.msk.f32.gmra.mxu0 %vm164_vm0, %v1434_v43  ;;  %1583 = vmatpush.msra.mxu3 %v1554_v4 }
 0x7c9   :  { %1621 = vmatpush.msrb.mxu1 %v1573_v5 }
 0x7ca   :  { %1584 = vmatpush.msra.mxu3 %v1553_v8 }
 0x7cb   :  { %5148 = vmatmul.msk.f32.gmra.mxu1 %vm164_vm0, %v1096_v42 }
 0x7cc   :  { %1622 = vmatpush.msrb.mxu1 %v1572_v9  ;;  %v6182_v9 = vld [vmem:[%s6175_s21 + $0x78] sm:$0xff] }
 0x7cd   :  { %1683 = vmatpush.msrb.mxu2 %v6182_v9  ;;  %1753 = vmatpush.msrb.mxu0 %v6182_v9 }
 0x7ce   :  { %1623 = vmatpush.msrb.mxu1 %v1571_v44 }
 0x7cf   :  { %5140 = vmatmul.msk.f32.gmra.mxu3 %vm164_vm0, %v1096_v42  ;;  %v6063_v13 = vpop.f32.mrf.mxu0 }
 0x7d0   :  { %5161 = vmatmul.msk.f32.gmra.mxu0 %vm164_vm0, %v1435_v6  ;;  %1624 = vmatpush.msrb.mxu1 %v1570_v15  ;;  %v6196_v15 = vld [vmem:[%s6175_s21 + $0x68] sm:$0xff] }
 0x7d2   :  { %1625 = vmatpush.msrb.mxu1 %v1569_v17  ;;  %v6204_v17 = vld [vmem:[%s6175_s21 + $0x58] sm:$0xff] }
 0x7d3   :  { %v6115_v57 = vpop.f32.mrf.mxu2 }
 0x7d4   :  { %1626 = vmatpush.msrb.mxu1 %v1568_v25  ;;  %v6221_v25 = vld [vmem:[%s6175_s21 + $0x40] sm:$0xff] }
 0x7d6   :  { %1627 = vmatpush.msrb.mxu1 %v1567_v28 }
 0x7d7   :  { %v6080_v34 = vpop.f32.mrf.mxu0 }
 0x7d8   :  { %5162 = vmatmul.msk.f32.gmra.mxu0 %vm164_vm0, %v1436_v10  ;;  %v1552_v10 = vld [vmem:[%s6111_s17 + $0x38] sm:$0xff]  ;;  %1628 = vmatpush.msrb.mxu1 %v1566_v33  ;;  %v6235_v33 = vld [vmem:[%s6175_s21 + $0x30] sm:$0xff] }
 0x7d9   :  { %1585 = vmatpush.msra.mxu3 %v1552_v10 }
 0x7da   :  { %1629 = vmatpush.msrb.mxu1 %v1565_v14  ;;  %v6243_v14 = vld [vmem:[%s6175_s21 + $0x20] sm:$0xff] }
 0x7db   :  { %v6124_v2 = vpop.f32.mrf.mxu2  ;;  %1586 = vmatpush.msra.mxu3 %v1551_v12  ;;  %v6191_v12 = vld [vmem:[%s6175_s21 + $0x70] sm:$0xff] }
 0x7dc   :  { %1630 = vmatpush.msrb.mxu1 %v1564_v31  ;;  %1684 = vmatpush.msrb.mxu2 %v6191_v12 }
 0x7dd   :  { %1587 = vmatpush.msra.mxu3 %v1550_v16  ;;  %1754 = vmatpush.msrb.mxu0 %v6191_v12  ;;  %v6199_v16 = vld [vmem:[%s6175_s21 + $0x60] sm:$0xff] }
 0x7de   :  { %1631 = vmatpush.msrb.mxu1 %v1563_v46  ;;  %1685 = vmatpush.msrb.mxu2 %v6196_v15  ;;  %v6265_v46 = vld [vmem:[%s6175_s21] sm:$0xff] }
 0x7df   :  { %v6096_v50 = vpop.f32.mrf.mxu0  ;;  %1588 = vmatpush.msra.mxu3 %v1549_v23  ;;  %1755 = vmatpush.msrb.mxu0 %v6196_v15  ;;  %v6218_v23 = vld [vmem:[%s6175_s21 + $0x48] sm:$0xff] }
 0x7e0   :  { %5163 = vmatmul.msk.f32.gmra.mxu0 %vm164_vm0, %v1437_v21  ;;  %1632 = vmatpush.msrb.mxu1 %v1562_v47 }
 0x7e1   :  { %1589 = vmatpush.msra.mxu3 %v1548_v27  ;;  %1686 = vmatpush.msrb.mxu2 %v6199_v16  ;;  %v6226_v27 = vld [vmem:[%s6175_s21 + $0x38] sm:$0xff] }
 0x7e2   :  { %1633 = vmatpush.msrb.mxu1 %v1561_v48  ;;  %1756 = vmatpush.msrb.mxu0 %v6199_v16 }
 0x7e3   :  { %v6138_v45 = vpop.f32.mrf.mxu2  ;;  %1590 = vmatpush.msra.mxu3 %v1547_v29  ;;  %1687 = vmatpush.msrb.mxu2 %v6204_v17 }
 0x7e4   :  { %1757 = vmatpush.msrb.mxu0 %v6204_v17 }
 0x7e7   :  { %v6104_v52 = vpop.f32.mrf.mxu0 }
 0x7e8   :  { %5164 = vmatmul.msk.f32.gmra.mxu0 %vm164_vm0, %v1438_v11  ;;  %v1546_v11 = vld [vmem:[%s6111_s17 + $0x8] sm:$0xff]  ;;  %s7379_s17 = sld [smem:[%s8094_s0 + %s5493_s14]]  }
 0x7e9   :  { %1591 = vmatpush.msra.mxu3 %v1546_v11  ;;  %v6240_v11 = vld [vmem:[%s6175_s21 + $0x28] sm:$0xff] }
 0x7eb   :  { %v6150_v35 = vpop.f32.mrf.mxu2  ;;  %1592 = vmatpush.msra.mxu3 %v1545_v26 }
 0x7ef   :  { %v6106_v53 = vpop.f32.mrf.mxu0 }
 0x7f3   :  { %v6159_v51 = vpop.f32.mrf.mxu2 }
 0x7f7   :  { %v6113_v55 = vpop.f32.mrf.mxu0 }
 0x7ff   :  { %v6120_v0 = vpop.f32.mrf.mxu0 }
 0x810   :  { %v1179_v54 = vpop.f32.mrf.mxu1 }
 0x811   :  { %1406 = vmatmul.f32.vlgmr.msra.gmra.mxu1 %v1179_v54 }
 0x815   :  { %v6132_v43 = vpop.f32.mrf.mxu0 }
 0x818   :  { %v1182_v56 = vpop.f32.mrf.mxu1 }
 0x819   :  { %1409 = vmatmul.f32.gmra.mxu1 %v1182_v56  ;;  %v6161_v56 = vpop.f32.mrf.mxu2 }
 0x81a   :  { %v1138_v58 = vpop.f32.mrf.mxu3 }
 0x81b   :  { %1365 = vmatmul.f32.vlgmr.msrb.gmra.mxu3 %v1138_v58 }
 0x81d   :  { %v1483_v22 = vpop.f32.mrf.mxu0 }
 0x820   :  { %v1185_v40 = vpop.f32.mrf.mxu1 }
 0x821   :  { %1412 = vmatmul.f32.gmra.mxu1 %v1185_v40  ;;  %v6163_v37 = vpop.f32.mrf.mxu2 }
 0x822   :  { %v1141_v41 = vpop.f32.mrf.mxu3 }
 0x823   :  { %1368 = vmatmul.f32.gmra.mxu3 %v1141_v41 }
 0x825   :  { %v1486_v39 = vpop.f32.mrf.mxu0 }
 0x828   :  { %v1188_v42 = vpop.f32.mrf.mxu1 }
 0x829   :  { %1415 = vmatmul.f32.gmra.mxu1 %v1188_v42  ;;  %v6166_v40 = vpop.f32.mrf.mxu2 }
 0x82a   :  { %v1144_v6 = vpop.f32.mrf.mxu3 }
 0x82b   :  { %1371 = vmatmul.f32.gmra.mxu3 %v1144_v6 }
 0x82d   :  { %v1521_v30 = vpop.f32.mrf.mxu0 }
 0x830   :  { %v1191_v19 = vpop.f32.mrf.mxu1 }
 0x831   :  { %1418 = vmatmul.f32.gmra.mxu1 %v1191_v19  ;;  %v1489_v41 = vpop.f32.mrf.mxu2 }
 0x832   :  { %v1147_v21 = vpop.f32.mrf.mxu3 }
 0x833   :  { %1374 = vmatmul.f32.gmra.mxu3 %v1147_v21 }
 0x835   :  { %v1524_v54 = vpop.f32.mrf.mxu0 }
 0x838   :  { %v1194_v20 = vpop.f32.mrf.mxu1 }
 0x839   :  { %1421 = vmatmul.f32.gmra.mxu1 %v1194_v20  ;;  %v1492_v1 = vpop.f32.mrf.mxu2  ;;  %v6248_v20 = vld [vmem:[%s6175_s21 + $0x18] sm:$0xff] }
 0x83a   :  { %v1150_v38 = vpop.f32.mrf.mxu3 }
 0x83b   :  { %1377 = vmatmul.f32.gmra.mxu3 %v1150_v38  ;;  %v6257_v38 = vld [vmem:[%s6175_s21 + $0x10] sm:$0xff] }
 0x83d   :  { %v1527_v36 = vpop.f32.mrf.mxu0 }
 0x840   :  { %v1197_v49 = vpop.f32.mrf.mxu1 }
 0x841   :  { %1424 = vmatmul.f32.gmra.mxu1 %v1197_v49  ;;  %v1495_v60 = vpop.f32.mrf.mxu2 }
 0x842   :  { %v1153_v18 = vpop.f32.mrf.mxu3 }
 0x843   :  { %1380 = vmatmul.f32.gmra.mxu3 %v1153_v18 }
 0x845   :  { %v1530_v62 = vpop.f32.mrf.mxu0 }
 0x848   :  { %v1200_v32 = vpop.f32.mrf.mxu1 }
 0x849   :  { %1427 = vmatmul.f32.gmra.mxu1 %v1200_v32  ;;  %v1498_v63 = vpop.f32.mrf.mxu2 }
 0x84a   :  { %v1156_v24 = vpop.f32.mrf.mxu3 }
 0x84b   :  { %1383 = vmatmul.f32.gmra.mxu3 %v1156_v24  ;;  %v1326_v24 = vadd.f32 %v6053_v7, %v6115_v57  ;;  %v1332_v57 = vadd.f32 %v6080_v34, %v6138_v45 }
 0x84d   :  { %v1533_v59 = vpop.f32.mrf.mxu0 }
 0x851   :  { %1634 = vmatmul.f32.vlgmr.msrb.gmra.mxu1 %v1521_v30  ;;  %v1501_v42 = vpop.f32.mrf.mxu2 }
 0x852   :  { %v1159_v58 = vpop.f32.mrf.mxu3 }
 0x853   :  { %1386 = vmatmul.f32.gmra.mxu3 %v1159_v58 }
 0x855   :  { %v1536_v3 = vpop.f32.mrf.mxu0 }
 0x859   :  { %1637 = vmatmul.f32.gmra.mxu1 %v1524_v54 }
 0x85b   :  { %1593 = vmatmul.f32.vlgmr.msra.gmra.mxu3 %v6132_v43 }
 0x85d   :  { %v1539_v61 = vpop.f32.mrf.mxu0 }
 0x861   :  { %1640 = vmatmul.f32.gmra.mxu1 %v1527_v36 }
 0x863   :  { %1596 = vmatmul.f32.gmra.mxu3 %v1483_v22  ;;  %v6213_v22 = vld [vmem:[%s6175_s21 + $0x50] sm:$0xff] }
 0x864   :  { %1688 = vmatpush.msrb.mxu2 %v6213_v22  ;;  %1758 = vmatpush.msrb.mxu0 %v6213_v22 }
 0x865   :  { %v1542_v4 = vpop.f32.mrf.mxu0 }
 0x866   :  { %1689 = vmatpush.msrb.mxu2 %v6218_v23  ;;  %1759 = vmatpush.msrb.mxu0 %v6218_v23 }
 0x868   :  { %1690 = vmatpush.msrb.mxu2 %v6221_v25  ;;  %1760 = vmatpush.msrb.mxu0 %v6221_v25 }
 0x869   :  { %1643 = vmatmul.f32.gmra.mxu1 %v1530_v62 }
 0x86a   :  { %1691 = vmatpush.msrb.mxu2 %v6226_v27  ;;  %1761 = vmatpush.msrb.mxu0 %v6226_v27 }
 0x86b   :  { %1599 = vmatmul.f32.gmra.mxu3 %v1486_v39  ;;  %v6262_v39 = vld [vmem:[%s6175_s21 + $0x8] sm:$0xff]  ;;  %s7579_s21 = sld [smem:[%s8094_s0 + %s5494_s18]]  }
 0x86c   :  { %1692 = vmatpush.msrb.mxu2 %v6235_v33  ;;  %1762 = vmatpush.msrb.mxu0 %v6235_v33 }
 0x86e   :  { %1693 = vmatpush.msrb.mxu2 %v6240_v11  ;;  %1763 = vmatpush.msrb.mxu0 %v6240_v11 }
 0x870   :  { %1694 = vmatpush.msrb.mxu2 %v6243_v14  ;;  %1764 = vmatpush.msrb.mxu0 %v6243_v14 }
 0x871   :  { %1646 = vmatmul.f32.gmra.mxu1 %v1533_v59 }
 0x872   :  { %1695 = vmatpush.msrb.mxu2 %v6248_v20  ;;  %1765 = vmatpush.msrb.mxu0 %v6248_v20 }
 0x873   :  { %1602 = vmatmul.f32.gmra.mxu3 %v1489_v41  ;;  %v1329_v41 = vadd.f32 %v6063_v13, %v6124_v2 }
 0x874   :  { %1696 = vmatpush.msrb.mxu2 %v6257_v38  ;;  %1766 = vmatpush.msrb.mxu0 %v6257_v38 }
 0x876   :  { %1697 = vmatpush.msrb.mxu2 %v6262_v39  ;;  %1767 = vmatpush.msrb.mxu0 %v6262_v39 }
 0x878   :  { %1698 = vmatpush.msrb.mxu2 %v6265_v46  ;;  %1768 = vmatpush.msrb.mxu0 %v6265_v46 }
 0x879   :  { %1649 = vmatmul.f32.gmra.mxu1 %v1536_v3 }
 0x87b   :  { %1605 = vmatmul.f32.gmra.mxu3 %v1492_v1 }
 0x881   :  { %1652 = vmatmul.f32.gmra.mxu1 %v1539_v61 }
 0x883   :  { %1608 = vmatmul.f32.gmra.mxu3 %v1495_v60 }
 0x889   :  { %1655 = vmatmul.f32.gmra.mxu1 %v1542_v4 }
 0x88b   :  { %1611 = vmatmul.f32.gmra.mxu3 %v1498_v63 }
 0x88e   :  { %v6168_v5 = vpop.f32.mrf.mxu1 }
 0x893   :  { %1614 = vmatmul.f32.gmra.mxu3 %v1501_v42 }
 0x896   :  { %v6170_v43 = vpop.f32.mrf.mxu1 }
 0x89e   :  { %v6177_v6 = vpop.f32.mrf.mxu3  ;;  %v6179_v8 = vpop.f32.mrf.mxu1 }
 0x89f   :  { %v1367_v54 = vadd.f32 %v6177_v6, %v1326_v24  ;;  %v1335_v6 = vadd.f32 %v6096_v50, %v6150_v35 }
 0x8a1   :  { %v1408_v36 = vadd.f32 %v6168_v5, %v1367_v54 }
 0x8a6   :  { %v6186_v10 = vpop.f32.mrf.mxu3  ;;  %v6188_v44 = vpop.f32.mrf.mxu1 }
 0x8a7   :  { %v1370_v3 = vadd.f32 %v6186_v10, %v1329_v41 }
 0x8a9   :  { %v1411_v61 = vadd.f32 %v6170_v43, %v1370_v3 }
 0x8ae   :  { %v1372_v19 = vpop.f32.mrf.mxu3  ;;  %v6208_v21 = vpop.f32.mrf.mxu1 }
 0x8af   :  { %v1373_v4 = vadd.f32 %v1372_v19, %v1332_v57 }
 0x8b1   :  { %v1414_v5 = vadd.f32 %v6179_v8, %v1373_v4 }
 0x8b6   :  { %v1375_v28 = vpop.f32.mrf.mxu3  ;;  %v6230_v29 = vpop.f32.mrf.mxu1 }
 0x8b7   :  { %v1376_v43 = vadd.f32 %v1375_v28, %v1335_v6  ;;  %v1341_v28 = vadd.f32 %v6106_v53, %v6161_v56  ;;  %v1347_v53 = vadd.f32 %v6120_v0, %v6166_v40 }
 0x8b9   :  { %v1417_v45 = vadd.f32 %v6188_v44, %v1376_v43 }
 0x8be   :  { %v1378_v26 = vpop.f32.mrf.mxu3  ;;  %v6252_v31 = vpop.f32.mrf.mxu1 }
 0x8c6   :  { %v1381_v47 = vpop.f32.mrf.mxu3  ;;  %v6271_v48 = vpop.f32.mrf.mxu1 }
 0x8ce   :  { %v1384_v49 = vpop.f32.mrf.mxu3  ;;  %v1635_v18 = vpop.f32.mrf.mxu1 }
 0x8d6   :  { %v1387_v30 = vpop.f32.mrf.mxu3  ;;  %v1638_v32 = vpop.f32.mrf.mxu1 }
 0x8de   :  { %v1594_v58 = vpop.f32.mrf.mxu3  ;;  %v1641_v1 = vpop.f32.mrf.mxu1 }
 0x8df   :  { %v1636_v62 = vadd.f32 %v1635_v18, %v1594_v58 }
 0x8e1   :  { %v6279_v59 = vadd.f32 %v1636_v62, %v1408_v36  ;;  %v1382_v62 = vadd.f32 %v1381_v47, %v1341_v28  ;;  %v1388_v47 = vadd.f32 %v1387_v30, %v1347_v53 }
 0x8e3   :  { %1699 = vmatmul.f32.vlgmr.msrb.gmra.mxu2 %v6279_v59  ;;  %v1423_v44 = vadd.f32 %v6230_v29, %v1382_v62  ;;  %v1429_v57 = vadd.f32 %v6271_v48, %v1388_v47  ;;  %v1906_v47 = vld [vmem:[%s6346_s25 + $0x78] sm:$0xff] }
 0x8e4   :  { %1907 = vmatpush.msra.mxu1 %v1906_v47 }
 0x8e6   :  { %v1597_v60 = vpop.f32.mrf.mxu3  ;;  %v1644_v13 = vpop.f32.mrf.mxu1 }
 0x8e7   :  { %v1639_v7 = vadd.f32 %v1638_v32, %v1597_v60  ;;  %v1338_v32 = vadd.f32 %v6104_v52, %v6159_v51  ;;  %v1344_v52 = vadd.f32 %v6113_v55, %v6163_v37 }
 0x8e9   :  { %v6286_v63 = vadd.f32 %v1639_v7, %v1411_v61  ;;  %v1379_v54 = vadd.f32 %v1378_v26, %v1338_v32  ;;  %v1385_v3 = vadd.f32 %v1384_v49, %v1344_v52 }
 0x8eb   :  { %1702 = vmatmul.f32.gmra.mxu2 %v6286_v63  ;;  %v1420_v58 = vadd.f32 %v6208_v21, %v1379_v54  ;;  %v1426_v60 = vadd.f32 %v6252_v31, %v1385_v3 }
 0x8ee   :  { %v1600_v2 = vpop.f32.mrf.mxu3  ;;  %v1647_v34 = vpop.f32.mrf.mxu1 }
 0x8ef   :  { %v1642_v42 = vadd.f32 %v1641_v1, %v1600_v2 }
 0x8f1   :  { %v6292_v10 = vadd.f32 %v1642_v42, %v1414_v5 }
 0x8f3   :  { %1705 = vmatmul.f32.gmra.mxu2 %v6292_v10 }
 0x8f6   :  { %v1603_v18 = vpop.f32.mrf.mxu3  ;;  %v1650_v35 = vpop.f32.mrf.mxu1 }
 0x8f7   :  { %v1645_v19 = vadd.f32 %v1644_v13, %v1603_v18 }
 0x8f9   :  { %v1662_v24 = vadd.f32 %v1645_v19, %v1417_v45 }
 0x8fb   :  { %1708 = vmatmul.f32.gmra.mxu2 %v1662_v24 }
 0x8fe   :  { %v1606_v8 = vpop.f32.mrf.mxu3  ;;  %v1653_v26 = vpop.f32.mrf.mxu1 }
 0x8ff   :  { %v1648_v50 = vadd.f32 %v1647_v34, %v1606_v8 }
 0x901   :  { %v1663_v36 = vadd.f32 %v1648_v50, %v1420_v58 }
 0x903   :  { %1711 = vmatmul.f32.gmra.mxu2 %v1663_v36 }
 0x906   :  { %v1609_v41 = vpop.f32.mrf.mxu3  ;;  %v1656_v7 = vpop.f32.mrf.mxu1 }
 0x907   :  { %v1651_v1 = vadd.f32 %v1650_v35, %v1609_v41 }
 0x909   :  { %v1664_v51 = vadd.f32 %v1651_v1, %v1423_v44 }
 0x90b   :  { %1714 = vmatmul.f32.gmra.mxu2 %v1664_v51 }
 0x90e   :  { %v1612_v21 = vpop.f32.mrf.mxu3 }
 0x90f   :  { %v1654_v61 = vadd.f32 %v1653_v26, %v1612_v21 }
 0x911   :  { %v1665_v56 = vadd.f32 %v1654_v61, %v1426_v60 }
 0x913   :  { %1717 = vmatmul.f32.gmra.mxu2 %v1665_v56 }
 0x916   :  { %v1615_v29 = vpop.f32.mrf.mxu3 }
 0x917   :  { %v1657_v4 = vadd.f32 %v1656_v7, %v1615_v29  ;;  %v1905_v7 = vld [vmem:[%s6346_s25 + $0x70] sm:$0xff]  ;;  %v1904_v29 = vld [vmem:[%s6346_s25 + $0x68] sm:$0xff] }
 0x918   :  { %1908 = vmatpush.msra.mxu1 %v1905_v7 }
 0x919   :  { %v1666_v55 = vadd.f32 %v1657_v4, %v1429_v57  ;;  %v1903_v57 = vld [vmem:[%s6346_s25 + $0x60] sm:$0xff] }
 0x91a   :  { %1909 = vmatpush.msra.mxu1 %v1904_v29 }
 0x91b   :  { %1720 = vmatmul.f32.gmra.mxu2 %v1666_v55 }
 0x91c   :  { %1910 = vmatpush.msra.mxu1 %v1903_v57 }
 0x966   :  { %v1700_v37 = vpop.f32.mrf.mxu2 }
 0x96e   :  { %v1703_v49 = vpop.f32.mrf.mxu2 }
 0x96f   :  { %v1724_v42 = vadd.f32 %v1703_v49, %v1700_v37  ;;  %v1901_v37 = vld [vmem:[%s6346_s25 + $0x50] sm:$0xff] }
 0x976   :  { %v1706_v13 = vpop.f32.mrf.mxu2 }
 0x977   :  { %v1725_v6 = vadd.f32 %v1724_v42, %v1706_v13  ;;  %v1900_v13 = vld [vmem:[%s6346_s25 + $0x48] sm:$0xff] }
 0x97e   :  { %v1709_v2 = vpop.f32.mrf.mxu2 }
 0x97f   :  { %v1726_v0 = vadd.f32 %v1725_v6, %v1709_v2  ;;  %v1898_v6 = vld [vmem:[%s6346_s25 + $0x38] sm:$0xff] }
 0x986   :  { %v1712_v5 = vpop.f32.mrf.mxu2 }
 0x987   :  { %v1727_v40 = vadd.f32 %v1726_v0, %v1712_v5  ;;  %v1899_v5 = vld [vmem:[%s6346_s25 + $0x40] sm:$0xff]  ;;  %v1897_v0 = vld [vmem:[%s6346_s25 + $0x30] sm:$0xff] }
 0x98e   :  { %v1715_v31 = vpop.f32.mrf.mxu2 }
 0x98f   :  { %v1728_v30 = vadd.f32 %v1727_v40, %v1715_v31 }
 0x996   :  { %v1718_v43 = vpop.f32.mrf.mxu2 }
 0x997   :  { %v1729_v18 = vadd.f32 %v1728_v30, %v1718_v43  ;;  %v1896_v30 = vld [vmem:[%s6346_s25 + $0x28] sm:$0xff] }
 0x99e   :  { %v1721_v34 = vpop.f32.mrf.mxu2 }
 0x99f   :  { %v1730_v45 = vadd.f32 %v1729_v18, %v1721_v34  ;;  %v1895_v34 = vld [vmem:[%s6346_s25 + $0x20] sm:$0xff] }
 0x9a1   :  { %v1731_v19 = vrot.slane %v1730_v45, 4 }
 0x9a3   :  { %v1732_v48 = vadd.f32 %v1731_v19, %v1730_v45 }
 0x9a5   :  { %v1733_v32 = vrot.slane %v1732_v48, 2 }
 0x9a7   :  { %v1734_v54 = vadd.f32 %v1733_v32, %v1732_v48  ;;  %v1894_v48 = vld [vmem:[%s6346_s25 + $0x18] sm:$0xff]  ;;  %v1893_v32 = vld [vmem:[%s6346_s25 + $0x10] sm:$0xff] }
 0x9a9   :  { %v1735_v8 = vrot.slane %v1734_v54, 1 }
 0x9ab   :  { %v1736_v58 = vadd.f32 %v1735_v8, %v1734_v54  ;;  %v1892_v8 = vld [vmem:[%s6346_s25 + $0x8] sm:$0xff] }
 0x9ad   :  { %v6309_v50 = vsub.f32 %v6279_v59, %v1736_v58  ;;  %v6314_v28 = vsub.f32 %v6286_v63, %v1736_v58  ;;  %v6319_v41 = vsub.f32 %v6292_v10, %v1736_v58  ;;  %v6323_v59 = vsub.f32 %v1662_v24, %v1736_v58 }
 0x9ae   :  { %v6327_v52 = vsub.f32 %v1663_v36, %v1736_v58  ;;  %v6331_v26 = vsub.f32 %v1664_v51, %v1736_v58  ;;  %v6335_v3 = vsub.f32 %v1665_v56, %v1736_v58  ;;  %v6339_v21 = vsub.f32 %v1666_v55, %v1736_v58  ;;  %v1902_v55 = vld [vmem:[%s6346_s25 + $0x58] sm:$0xff] }
 0x9af   :  { %v1745_v35 = vmul.f32 %v6309_v50, %v6309_v50  ;;  %v1746_v62 = vmul.f32 %v6314_v28, %v6314_v28  ;;  %v1747_v44 = vmul.f32 %v6319_v41, %v6319_v41  ;;  %v1748_v1 = vmul.f32 %v6323_v59, %v6323_v59  ;;  %1911 = vmatpush.msra.mxu1 %v1902_v55 }
 0x9b0   :  { %v1749_v63 = vmul.f32 %v6327_v52, %v6327_v52  ;;  %v1750_v10 = vmul.f32 %v6331_v26, %v6331_v26  ;;  %v1751_v24 = vmul.f32 %v6335_v3, %v6335_v3  ;;  %v1752_v36 = vmul.f32 %v6339_v21, %v6339_v21 }
 0x9b1   :  { %1769 = vmatmul.f32.vlgmr.msrb.gmra.mxu0 %v1745_v35  ;;  %1912 = vmatpush.msra.mxu1 %v1901_v37  ;;  %v1891_v35 = vld [vmem:[%s6346_s25] sm:$0xff]  ;;  %s5093_s25 = sld [smem:[%s8094_s0 + %s5495_s22]]  }
 0x9b3   :  { %1913 = vmatpush.msra.mxu1 %v1900_v13 }
 0x9b5   :  { %1914 = vmatpush.msra.mxu1 %v1899_v5 }
 0x9b7   :  { %1915 = vmatpush.msra.mxu1 %v1898_v6  ;;  %v5402_v6 = vld [vmem:[%s6011_s9 + $0x10] sm:$0xff] }
 0x9b9   :  { %1772 = vmatmul.f32.gmra.mxu0 %v1746_v62  ;;  %1916 = vmatpush.msra.mxu1 %v1897_v0  ;;  %v5404_v0 = vld [vmem:[%s6011_s9 + $0x18] sm:$0xff] }
 0x9bb   :  { %1917 = vmatpush.msra.mxu1 %v1896_v30  ;;  %v1889_v30 = vld [vmem:[%s6409_s29 + $0x70] sm:$0xff] }
 0x9bd   :  { %1918 = vmatpush.msra.mxu1 %v1895_v34  ;;  %v2044_v34 = vld [vmem:[%s6416_s3 + $0x70] sm:$0xff] }
 0x9bf   :  { %1919 = vmatpush.msra.mxu1 %v1894_v48  ;;  %v1887_v48 = vld [vmem:[%s6409_s29 + $0x60] sm:$0xff] }
 0x9c1   :  { %1775 = vmatmul.f32.gmra.mxu0 %v1747_v44  ;;  %1920 = vmatpush.msra.mxu1 %v1893_v32  ;;  %v1886_v32 = vld [vmem:[%s6409_s29 + $0x58] sm:$0xff] }
 0x9c3   :  { %1921 = vmatpush.msra.mxu1 %v1892_v8  ;;  %v5405_v8 = vld [vmem:[%s5993_s5 + $0x20] sm:$0xff] }
 0x9c5   :  { %1922 = vmatpush.msra.mxu1 %v1891_v35  ;;  %v5407_v35 = vld [vmem:[%s5993_s5 + $0x28] sm:$0xff] }
 0x9c7   :  { %2095 = vmatpush.msrb.mxu1 %v6182_v9 }
 0x9c9   :  { %1778 = vmatmul.f32.gmra.mxu0 %v1748_v1  ;;  %2096 = vmatpush.msrb.mxu1 %v6191_v12 }
 0x9cb   :  { %2097 = vmatpush.msrb.mxu1 %v6196_v15 }
 0x9cd   :  { %2098 = vmatpush.msrb.mxu1 %v6199_v16 }
 0x9cf   :  { %2099 = vmatpush.msrb.mxu1 %v6204_v17 }
 0x9d1   :  { %1781 = vmatmul.f32.gmra.mxu0 %v1749_v63  ;;  %2100 = vmatpush.msrb.mxu1 %v6213_v22 }
 0x9d3   :  { %2101 = vmatpush.msrb.mxu1 %v6218_v23 }
 0x9d5   :  { %2102 = vmatpush.msrb.mxu1 %v6221_v25 }
 0x9d7   :  { %2103 = vmatpush.msrb.mxu1 %v6226_v27 }
 0x9d9   :  { %1784 = vmatmul.f32.gmra.mxu0 %v1750_v10  ;;  %2104 = vmatpush.msrb.mxu1 %v6235_v33 }
 0x9db   :  { %2105 = vmatpush.msrb.mxu1 %v6240_v11 }
 0x9dd   :  { %2106 = vmatpush.msrb.mxu1 %v6243_v14 }
 0x9df   :  { %2107 = vmatpush.msrb.mxu1 %v6248_v20 }
 0x9e1   :  { %1787 = vmatmul.f32.gmra.mxu0 %v1751_v24  ;;  %2108 = vmatpush.msrb.mxu1 %v6257_v38 }
 0x9e3   :  { %2109 = vmatpush.msrb.mxu1 %v6262_v39 }
 0x9e5   :  { %2110 = vmatpush.msrb.mxu1 %v6265_v46 }
 0x9e9   :  { %1790 = vmatmul.f32.gmra.mxu0 %v1752_v36 }
 0xa2e   :  { %v1770_v60 = vpop.f32.mrf.mxu0 }
 0xa36   :  { %v1773_v61 = vpop.f32.mrf.mxu0 }
 0xa37   :  { %v1794_v49 = vadd.f32 %v1773_v61, %v1770_v60 }
 0xa3e   :  { %v1776_v51 = vpop.f32.mrf.mxu0 }
 0xa3f   :  { %v1795_v2 = vadd.f32 %v1794_v49, %v1776_v51 }
 0xa46   :  { %v1779_v53 = vpop.f32.mrf.mxu0 }
 0xa47   :  { %v1796_v42 = vadd.f32 %v1795_v2, %v1779_v53 }
 0xa4e   :  { %v1782_v56 = vpop.f32.mrf.mxu0 }
 0xa4f   :  { %v1797_v43 = vadd.f32 %v1796_v42, %v1782_v56  ;;  %v5401_v42 = vld [vmem:[%s5993_s5 + $0x10] sm:$0xff] }
 0xa56   :  { %v1785_v4 = vpop.f32.mrf.mxu0 }
 0xa57   :  { %v1798_v40 = vadd.f32 %v1797_v43, %v1785_v4  ;;  %v5403_v43 = vld [vmem:[%s5993_s5 + $0x18] sm:$0xff] }
 0xa5e   :  { %v1788_v31 = vpop.f32.mrf.mxu0 }
 0xa5f   :  { %v1799_v18 = vadd.f32 %v1798_v40, %v1788_v31  ;;  %v5400_v31 = vld [vmem:[%s6011_s9 + $0x8] sm:$0xff]  ;;  %v1890_v40 = vld [vmem:[%s6409_s29 + $0x78] sm:$0xff] }
 0xa60   :  { %1948 = vmatpush.msra.mxu2 %v1890_v40 }
 0xa62   :  { %1949 = vmatpush.msra.mxu2 %v1889_v30 }
 0xa66   :  { %v1791_v45 = vpop.f32.mrf.mxu0 }
 0xa67   :  { %v1800_v19 = vadd.f32 %v1799_v18, %v1791_v45  ;;  %v2045_v18 = vld [vmem:[%s6416_s3 + $0x78] sm:$0xff]  ;;  %v1888_v45 = vld [vmem:[%s6409_s29 + $0x68] sm:$0xff] }
 0xa68   :  { %1950 = vmatpush.msra.mxu2 %v1888_v45 }
 0xa69   :  { %v1801_v54 = vrot.slane %v1800_v19, 4 }
 0xa6a   :  { %1951 = vmatpush.msra.mxu2 %v1887_v48 }
 0xa6b   :  { %v1802_v58 = vadd.f32 %v1801_v54, %v1800_v19  ;;  %v2043_v19 = vld [vmem:[%s6416_s3 + $0x68] sm:$0xff]  ;;  %v2042_v54 = vld [vmem:[%s6416_s3 + $0x60] sm:$0xff] }
 0xa6c   :  { %1952 = vmatpush.msra.mxu2 %v1886_v32 }
 0xa6d   :  { %v1803_v62 = vrot.slane %v1802_v58, 2 }
 0xa6f   :  { %v1804_v44 = vadd.f32 %v1803_v62, %v1802_v58  ;;  %v5406_v58 = vld [vmem:[%s6011_s9 + $0x20] sm:$0xff]  ;;  %v5408_v62 = vld [vmem:[%s6011_s9 + $0x28] sm:$0xff] }
 0xa71   :  { %v1805_v1 = vrot.slane %v1804_v44, 1 }
 0xa73   :  { %v1806_v63 = vadd.f32 %v1805_v1, %v1804_v44  ;;  %v5409_v44 = vld [vmem:[%s5993_s5 + $0x30] sm:$0xff] }
 0xa74   :  { %v5410_v1 = vld [vmem:[%s6011_s9 + $0x30] sm:$0xff] }
 0xa75   :  { %v1807_v10 = vadd.f32 1e-05, %v1806_v63  ;;  %v5411_v63 = vld [vmem:[%s5993_s5 + $0x38] sm:$0xff] }
 0xa77   :  { %5261 = vrsqrt.f32 %v1807_v10  ;;  %vm1814_vm10 = vweird.f32 %v1807_v10 }
 0xa7d   :  { %v5262_v24 = vpop.eup %5261 }
 0xa7e   :  { %v1809_v36 = vmul.f32 %v5262_v24, %v1807_v10  ;;  %vm1815_vm9 = vweird.f32 %v5262_v24  ;;  %v5412_v10 = vld [vmem:[%s6011_s9 + $0x38] sm:$0xff] }
 0xa7f   :  { %vm1816_vm11 = vmor %vm1814_vm10, %vm1815_vm9 }
 0xa80   :  { %v1810_v60 = vmul.f32 %v5262_v24, %v1809_v36  ;;  %v2041_v36 = vld [vmem:[%s6416_s3 + $0x58] sm:$0xff] }
 0xa82   :  { %v1811_v61 = vmul.f32 0.5, %v1810_v60  ;;  %v1884_v60 = vld [vmem:[%s6409_s29 + $0x48] sm:$0xff] }
 0xa84   :  { %v1812_v51 = vsub.f32 1.5, %v1811_v61  ;;  %v2040_v61 = vld [vmem:[%s6416_s3 + $0x50] sm:$0xff] }
 0xa86   :  { %v1813_v53 = vmul.f32 %v5262_v24, %v1812_v51  ;;  %v1883_v51 = vld [vmem:[%s6409_s29 + $0x40] sm:$0xff] }
 0xa88   :  { %v1817_v56 = vsel %vm1816_vm11, %v5262_v24, %v1813_v53  ;;  %v1885_v24 = vld [vmem:[%s6409_s29 + $0x50] sm:$0xff]  ;;  %v2039_v53 = vld [vmem:[%s6416_s3 + $0x48] sm:$0xff] }
 0xa89   :  { %v1825_v47 = vmul.f32 %v1817_v56, %v6339_v21  ;;  %v1818_v7 = vmul.f32 %v1817_v56, %v6309_v50  ;;  %v1824_v29 = vmul.f32 %v1817_v56, %v6335_v3  ;;  %v1823_v55 = vmul.f32 %v1817_v56, %v6331_v26  ;;  %1953 = vmatpush.msra.mxu2 %v1885_v24 }
 0xa8a   :  { %v1822_v21 = vmul.f32 %v1817_v56, %v6327_v52  ;;  %v1821_v3 = vmul.f32 %v1817_v56, %v6323_v59  ;;  %v1819_v26 = vmul.f32 %v1817_v56, %v6314_v28  ;;  %v1820_v13 = vmul.f32 %v1817_v56, %v6319_v41  ;;  %v5397_v28 = vld [vmem:[%s5993_s5] sm:$0xff]  ;;  %v5399_v59 = vld [vmem:[%s5993_s5 + $0x8] sm:$0xff]  ;;  %v1882_v56 = vld [vmem:[%s6409_s29 + $0x38] sm:$0xff]  ;;  %s6965_s5 = sld [smem:[%s8094_s0 + %s5490_s2]]  }
 0xa8b   :  { %v6381_v57 = vmax.f32 %v1825_v47, 0.0  ;;  %v1826_v4 = vmax.f32 %v1818_v7, 0.0  ;;  %v6386_v37 = vmax.f32 %v1824_v29, 0.0  ;;  %v1831_v50 = vmax.f32 %v1823_v55, 0.0  ;;  %v5398_v41 = vld [vmem:[%s6011_s9] sm:$0xff]  ;;  %1954 = vmatpush.msra.mxu2 %v1884_v60  ;;  %v1881_v7 = vld [vmem:[%s6409_s29 + $0x30] sm:$0xff]  ;;  %s7268_s9 = sld [smem:[%s8094_s0 + %s5491_s6]]  }
 0xa8c   :  { %v1830_v49 = vmax.f32 %v1822_v21, 0.0  ;;  %v1829_v52 = vmax.f32 %v1821_v3, 0.0  ;;  %v1827_v2 = vmax.f32 %v1819_v26, 0.0  ;;  %v1828_v5 = vmax.f32 %v1820_v13, 0.0  ;;  %v2038_v47 = vld [vmem:[%s6416_s3 + $0x40] sm:$0xff]  ;;  %v2037_v29 = vld [vmem:[%s6416_s3 + $0x38] sm:$0xff] }
 0xa8d   :  { %1842 = vmatpush.msrb.mxu3 %v6381_v57  ;;  %1923 = vmatmul.f32.vlgmr.msra.gmra.mxu1 %v1826_v4  ;;  %v1879_v55 = vld [vmem:[%s6409_s29 + $0x20] sm:$0xff]  ;;  %v1878_v21 = vld [vmem:[%s6409_s29 + $0x18] sm:$0xff]  ;;  %v1877_v3 = vld [vmem:[%s6409_s29 + $0x10] sm:$0xff] }
 0xa8e   :  { %1997 = vmatpush.msra.mxu0 %v6381_v57  ;;  %1955 = vmatpush.msra.mxu2 %v1883_v51  ;;  %v2033_v26 = vld [vmem:[%s6416_s3 + $0x18] sm:$0xff]  ;;  %v2032_v13 = vld [vmem:[%s6416_s3 + $0x10] sm:$0xff] }
 0xa8f   :  { %1843 = vmatpush.msrb.mxu3 %v6386_v37 }
 0xa90   :  { %1998 = vmatpush.msra.mxu0 %v6386_v37  ;;  %1956 = vmatpush.msra.mxu2 %v1882_v56 }
 0xa91   :  { %1844 = vmatpush.msrb.mxu3 %v1831_v50 }
 0xa92   :  { %1999 = vmatpush.msra.mxu0 %v1831_v50  ;;  %1957 = vmatpush.msra.mxu2 %v1881_v7 }
 0xa93   :  { %1845 = vmatpush.msrb.mxu3 %v1830_v49 }
 0xa94   :  { %2000 = vmatpush.msra.mxu0 %v1830_v49 }
 0xa95   :  { %1846 = vmatpush.msrb.mxu3 %v1829_v52  ;;  %1926 = vmatmul.f32.gmra.mxu1 %v1827_v2 }
 0xa96   :  { %2001 = vmatpush.msra.mxu0 %v1829_v52 }
 0xa97   :  { %1847 = vmatpush.msrb.mxu3 %v1828_v5 }
 0xa98   :  { %2002 = vmatpush.msra.mxu0 %v1828_v5 }
 0xa99   :  { %1848 = vmatpush.msrb.mxu3 %v1827_v2 }
 0xa9a   :  { %2003 = vmatpush.msra.mxu0 %v1827_v2  ;;  %v2031_v2 = vld [vmem:[%s6416_s3 + $0x8] sm:$0xff] }
 0xa9b   :  { %1849 = vmatpush.msrb.mxu3 %v1826_v4 }
 0xa9c   :  { %2004 = vmatpush.msra.mxu0 %v1826_v4  ;;  %5165 = vmatmul.msk.f32.vlgmr.msrb.gmra.mxu3 %vm164_vm0, %v5397_v28  ;;  %v2036_v4 = vld [vmem:[%s6416_s3 + $0x30] sm:$0xff] }
 0xa9d   :  { %1929 = vmatmul.f32.gmra.mxu1 %v1828_v5  ;;  %5173 = vmatmul.msk.f32.vlgmr.msra.gmra.mxu0 %vm164_vm0, %v5398_v41  ;;  %v2030_v5 = vld [vmem:[%s6416_s3] sm:$0xff] }
 0xa9e   :  { %2046 = vmatpush.msra.mxu3 %v2045_v18 }
 0xaa0   :  { %2047 = vmatpush.msra.mxu3 %v2044_v34 }
 0xaa2   :  { %2048 = vmatpush.msra.mxu3 %v2043_v19 }
 0xaa4   :  { %5166 = vmatmul.msk.f32.gmra.mxu3 %vm164_vm0, %v5399_v59 }
 0xaa5   :  { %1932 = vmatmul.f32.gmra.mxu1 %v1829_v52  ;;  %5174 = vmatmul.msk.f32.gmra.mxu0 %vm164_vm0, %v5400_v31  ;;  %v1875_v52 = vld [vmem:[%s6409_s29] sm:$0xff] }
 0xaa6   :  { %2049 = vmatpush.msra.mxu3 %v2042_v54 }
 0xaa8   :  { %2050 = vmatpush.msra.mxu3 %v2041_v36 }
 0xaaa   :  { %2051 = vmatpush.msra.mxu3 %v2040_v61 }
 0xaac   :  { %5167 = vmatmul.msk.f32.gmra.mxu3 %vm164_vm0, %v5401_v42 }
 0xaad   :  { %1935 = vmatmul.f32.gmra.mxu1 %v1830_v49  ;;  %5175 = vmatmul.msk.f32.gmra.mxu0 %vm164_vm0, %v5402_v6  ;;  %v1876_v49 = vld [vmem:[%s6409_s29 + $0x8] sm:$0xff] }
 0xaae   :  { %2052 = vmatpush.msra.mxu3 %v2039_v53 }
 0xab0   :  { %2053 = vmatpush.msra.mxu3 %v2038_v47 }
 0xab2   :  { %2054 = vmatpush.msra.mxu3 %v2037_v29 }
 0xab4   :  { %5168 = vmatmul.msk.f32.gmra.mxu3 %vm164_vm0, %v5403_v43 }
 0xab5   :  { %1938 = vmatmul.f32.gmra.mxu1 %v1831_v50  ;;  %5176 = vmatmul.msk.f32.gmra.mxu0 %vm164_vm0, %v5404_v0  ;;  %v2034_v50 = vld [vmem:[%s6416_s3 + $0x20] sm:$0xff] }
 0xab6   :  { %2055 = vmatpush.msra.mxu3 %v2036_v4 }
 0xabc   :  { %5169 = vmatmul.msk.f32.gmra.mxu3 %vm164_vm0, %v5405_v8 }
 0xabd   :  { %1941 = vmatmul.f32.gmra.mxu1 %v6386_v37  ;;  %5177 = vmatmul.msk.f32.gmra.mxu0 %vm164_vm0, %v5406_v58  ;;  %v2035_v37 = vld [vmem:[%s6416_s3 + $0x28] sm:$0xff] }
 0xabe   :  { %2056 = vmatpush.msra.mxu3 %v2035_v37 }
 0xac0   :  { %2057 = vmatpush.msra.mxu3 %v2034_v50 }
 0xac2   :  { %2058 = vmatpush.msra.mxu3 %v2033_v26 }
 0xac4   :  { %5170 = vmatmul.msk.f32.gmra.mxu3 %vm164_vm0, %v5407_v35 }
 0xac5   :  { %1944 = vmatmul.f32.gmra.mxu1 %v6381_v57  ;;  %5178 = vmatmul.msk.f32.gmra.mxu0 %vm164_vm0, %v5408_v62  ;;  %v1880_v57 = vld [vmem:[%s6409_s29 + $0x28] sm:$0xff]  ;;  %s7668_s29 = sld [smem:[%s8094_s0 + %s5496_s26]]  }
 0xac6   :  { %1958 = vmatpush.msra.mxu2 %v1880_v57  ;;  %2059 = vmatpush.msra.mxu3 %v2032_v13 }
 0xac8   :  { %1959 = vmatpush.msra.mxu2 %v1879_v55  ;;  %2060 = vmatpush.msra.mxu3 %v2031_v2 }
 0xaca   :  { %1960 = vmatpush.msra.mxu2 %v1878_v21  ;;  %2061 = vmatpush.msra.mxu3 %v2030_v5 }
 0xacc   :  { %5171 = vmatmul.msk.f32.gmra.mxu3 %vm164_vm0, %v5409_v44  ;;  %1961 = vmatpush.msra.mxu2 %v1877_v3 }
 0xacd   :  { %5179 = vmatmul.msk.f32.gmra.mxu0 %vm164_vm0, %v5410_v1 }
 0xace   :  { %1962 = vmatpush.msra.mxu2 %v1876_v49 }
 0xad0   :  { %1963 = vmatpush.msra.mxu2 %v1875_v52 }
 0xad2   :  { %2165 = vmatpush.msrb.mxu2 %v6182_v9 }
 0xad4   :  { %5172 = vmatmul.msk.f32.gmra.mxu3 %vm164_vm0, %v5411_v63  ;;  %2166 = vmatpush.msrb.mxu2 %v6191_v12 }
 0xad5   :  { %5180 = vmatmul.msk.f32.gmra.mxu0 %vm164_vm0, %v5412_v10 }
 0xad6   :  { %2167 = vmatpush.msrb.mxu2 %v6196_v15 }
 0xad8   :  { %2168 = vmatpush.msrb.mxu2 %v6199_v16 }
 0xada   :  { %2169 = vmatpush.msrb.mxu2 %v6204_v17 }
 0xadc   :  { %2170 = vmatpush.msrb.mxu2 %v6213_v22 }
 0xade   :  { %2171 = vmatpush.msrb.mxu2 %v6218_v23 }
 0xae0   :  { %2172 = vmatpush.msrb.mxu2 %v6221_v25 }
 0xae2   :  { %2173 = vmatpush.msrb.mxu2 %v6226_v27 }
 0xae4   :  { %2174 = vmatpush.msrb.mxu2 %v6235_v33 }
 0xae6   :  { %2175 = vmatpush.msrb.mxu2 %v6240_v11 }
 0xae8   :  { %2176 = vmatpush.msrb.mxu2 %v6243_v14 }
 0xaea   :  { %2177 = vmatpush.msrb.mxu2 %v6248_v20 }
 0xaec   :  { %2178 = vmatpush.msrb.mxu2 %v6257_v38 }
 0xaee   :  { %2179 = vmatpush.msrb.mxu2 %v6262_v39 }
 0xaf0   :  { %2180 = vmatpush.msrb.mxu2 %v6265_v46 }
 0xb0a   :  { %v1924_v28 = vpop.f32.mrf.mxu1 }
 0xb12   :  { %v1927_v41 = vpop.f32.mrf.mxu1 }
 0xb1a   :  { %v2006_v9 = vpop.f32.mrf.mxu0  ;;  %v1930_v0 = vpop.f32.mrf.mxu1 }
 0xb1b   :  { %2062 = vmatmul.f32.vlgmr.msra.gmra.mxu3 %v2006_v9 }
 0xb1f   :  { %v1851_v12 = vpop.f32.mrf.mxu3 }
 0xb20   :  { %1964 = vmatmul.f32.vlgmr.msra.gmra.mxu2 %v1851_v12 }
 0xb22   :  { %v2009_v15 = vpop.f32.mrf.mxu0  ;;  %v1933_v45 = vpop.f32.mrf.mxu1 }
 0xb23   :  { %2065 = vmatmul.f32.gmra.mxu3 %v2009_v15 }
 0xb27   :  { %v1854_v16 = vpop.f32.mrf.mxu3 }
 0xb28   :  { %1967 = vmatmul.f32.gmra.mxu2 %v1854_v16 }
 0xb2a   :  { %v2012_v17 = vpop.f32.mrf.mxu0  ;;  %v1936_v58 = vpop.f32.mrf.mxu1 }
 0xb2b   :  { %2068 = vmatmul.f32.gmra.mxu3 %v2012_v17 }
 0xb2f   :  { %v1857_v22 = vpop.f32.mrf.mxu3 }
 0xb30   :  { %1970 = vmatmul.f32.gmra.mxu2 %v1857_v22 }
 0xb32   :  { %v2015_v23 = vpop.f32.mrf.mxu0  ;;  %v1939_v10 = vpop.f32.mrf.mxu1 }
 0xb33   :  { %2071 = vmatmul.f32.gmra.mxu3 %v2015_v23 }
 0xb37   :  { %v1860_v25 = vpop.f32.mrf.mxu3 }
 0xb38   :  { %1973 = vmatmul.f32.gmra.mxu2 %v1860_v25 }
 0xb3a   :  { %v2018_v27 = vpop.f32.mrf.mxu0  ;;  %v1942_v53 = vpop.f32.mrf.mxu1 }
 0xb3b   :  { %2074 = vmatmul.f32.gmra.mxu3 %v2018_v27 }
 0xb3f   :  { %v1863_v33 = vpop.f32.mrf.mxu3 }
 0xb40   :  { %1976 = vmatmul.f32.gmra.mxu2 %v1863_v33 }
 0xb42   :  { %v2021_v11 = vpop.f32.mrf.mxu0  ;;  %v1945_v57 = vpop.f32.mrf.mxu1 }
 0xb43   :  { %2077 = vmatmul.f32.gmra.mxu3 %v2021_v11 }
 0xb47   :  { %v1866_v14 = vpop.f32.mrf.mxu3 }
 0xb48   :  { %1979 = vmatmul.f32.gmra.mxu2 %v1866_v14 }
 0xb4a   :  { %v2024_v20 = vpop.f32.mrf.mxu0 }
 0xb4b   :  { %2080 = vmatmul.f32.gmra.mxu3 %v2024_v20 }
 0xb4f   :  { %v1869_v38 = vpop.f32.mrf.mxu3 }
 0xb50   :  { %1982 = vmatmul.f32.gmra.mxu2 %v1869_v38 }
 0xb52   :  { %v2027_v39 = vpop.f32.mrf.mxu0 }
 0xb53   :  { %2083 = vmatmul.f32.gmra.mxu3 %v2027_v39 }
 0xb57   :  { %v1872_v46 = vpop.f32.mrf.mxu3 }
 0xb58   :  { %1985 = vmatmul.f32.gmra.mxu2 %v1872_v46 }
 0xb9e   :  { %v2063_v59 = vpop.f32.mrf.mxu3 }
 0xba3   :  { %v1965_v31 = vpop.f32.mrf.mxu2 }
 0xba4   :  { %v1966_v42 = vadd.f32 %v1965_v31, %v1924_v28 }
 0xba6   :  { %v6488_v6 = vadd.f32 %v2063_v59, %v1966_v42  ;;  %v2066_v43 = vpop.f32.mrf.mxu3 }
 0xba8   :  { %2111 = vmatmul.f32.vlgmr.msrb.gmra.mxu1 %v6488_v6 }
 0xbab   :  { %v1968_v40 = vpop.f32.mrf.mxu2 }
 0xbac   :  { %v1969_v30 = vadd.f32 %v1968_v40, %v1927_v41 }
 0xbae   :  { %v2088_v18 = vadd.f32 %v2066_v43, %v1969_v30  ;;  %v2069_v34 = vpop.f32.mrf.mxu3 }
 0xbb0   :  { %2114 = vmatmul.f32.gmra.mxu1 %v2088_v18 }
 0xbb3   :  { %v1971_v19 = vpop.f32.mrf.mxu2 }
 0xbb4   :  { %v1972_v48 = vadd.f32 %v1971_v19, %v1930_v0 }
 0xbb6   :  { %v2089_v32 = vadd.f32 %v2069_v34, %v1972_v48  ;;  %v2072_v54 = vpop.f32.mrf.mxu3 }
 0xbb8   :  { %2117 = vmatmul.f32.gmra.mxu1 %v2089_v32 }
 0xbbb   :  { %v1974_v8 = vpop.f32.mrf.mxu2 }
 0xbbc   :  { %v1975_v35 = vadd.f32 %v1974_v8, %v1933_v45 }
 0xbbe   :  { %v2090_v62 = vadd.f32 %v2072_v54, %v1975_v35  ;;  %v2075_v44 = vpop.f32.mrf.mxu3  ;;  %v2293_v35 = vld [vmem:[%s6527_s7 + $0xf8] sm:$0xff] }
 0xbbf   :  { %2335 = vmatpush.msrb.mxu3 %v2293_v35 }
 0xbc0   :  { %2120 = vmatmul.f32.gmra.mxu1 %v2090_v62 }
 0xbc3   :  { %v1977_v1 = vpop.f32.mrf.mxu2 }
 0xbc4   :  { %v1978_v63 = vadd.f32 %v1977_v1, %v1936_v58  ;;  %v2292_v58 = vld [vmem:[%s6527_s7 + $0xf0] sm:$0xff] }
 0xbc5   :  { %2294 = vmatpush.msrb.mxu0 %v2292_v58  ;;  %v2288_v1 = vld [vmem:[%s6527_s7 + $0xd0] sm:$0xff] }
 0xbc6   :  { %v2091_v24 = vadd.f32 %v2075_v44, %v1978_v63  ;;  %v2078_v36 = vpop.f32.mrf.mxu3  ;;  %v2291_v44 = vld [vmem:[%s6527_s7 + $0xe8] sm:$0xff]  ;;  %v2289_v63 = vld [vmem:[%s6527_s7 + $0xd8] sm:$0xff] }
 0xbc7   :  { %2336 = vmatpush.msrb.mxu3 %v2291_v44 }
 0xbc8   :  { %2123 = vmatmul.f32.gmra.mxu1 %v2091_v24 }
 0xbc9   :  { %2337 = vmatpush.msrb.mxu3 %v2289_v63 }
 0xbcb   :  { %v1980_v60 = vpop.f32.mrf.mxu2 }
 0xbcc   :  { %v1981_v61 = vadd.f32 %v1980_v60, %v1939_v10  ;;  %v2286_v10 = vld [vmem:[%s6527_s7 + $0xc0] sm:$0xff]  ;;  %v2284_v60 = vld [vmem:[%s6527_s7 + $0xb0] sm:$0xff] }
 0xbce   :  { %v2092_v51 = vadd.f32 %v2078_v36, %v1981_v61  ;;  %v2081_v56 = vpop.f32.mrf.mxu3  ;;  %v2285_v61 = vld [vmem:[%s6527_s7 + $0xb8] sm:$0xff] }
 0xbd0   :  { %2126 = vmatmul.f32.gmra.mxu1 %v2092_v51 }
 0xbd3   :  { %v1983_v47 = vpop.f32.mrf.mxu2 }
 0xbd4   :  { %v1984_v7 = vadd.f32 %v1983_v47, %v1942_v53  ;;  %v2283_v53 = vld [vmem:[%s6527_s7 + $0xa8] sm:$0xff]  ;;  %v2280_v47 = vld [vmem:[%s6527_s7 + $0x90] sm:$0xff] }
 0xbd6   :  { %v2093_v29 = vadd.f32 %v2081_v56, %v1984_v7  ;;  %v2084_v55 = vpop.f32.mrf.mxu3  ;;  %v2281_v7 = vld [vmem:[%s6527_s7 + $0x98] sm:$0xff] }
 0xbd8   :  { %2129 = vmatmul.f32.gmra.mxu1 %v2093_v29 }
 0xbdb   :  { %v1986_v4 = vpop.f32.mrf.mxu2 }
 0xbdc   :  { %v1987_v37 = vadd.f32 %v1986_v4, %v1945_v57  ;;  %v2278_v57 = vld [vmem:[%s6527_s7 + $0x80] sm:$0xff]  ;;  %v2279_v4 = vld [vmem:[%s6527_s7 + $0x88] sm:$0xff] }
 0xbde   :  { %v2094_v21 = vadd.f32 %v2084_v55, %v1987_v37 }
 0xbe0   :  { %2132 = vmatmul.f32.gmra.mxu1 %v2094_v21 }
 0xc25   :  { %v2112_v50 = vpop.f32.mrf.mxu1 }
 0xc2d   :  { %v2115_v3 = vpop.f32.mrf.mxu1 }
 0xc2e   :  { %v2136_v2 = vadd.f32 %v2115_v3, %v2112_v50  ;;  %v2277_v50 = vld [vmem:[%s6527_s7 + $0x78] sm:$0xff] }
 0xc35   :  { %v2118_v26 = vpop.f32.mrf.mxu1 }
 0xc36   :  { %v2137_v5 = vadd.f32 %v2136_v2, %v2118_v26  ;;  %v2274_v26 = vld [vmem:[%s6527_s7 + $0x60] sm:$0xff]  ;;  %v2273_v2 = vld [vmem:[%s6527_s7 + $0x58] sm:$0xff] }
 0xc3d   :  { %v2121_v49 = vpop.f32.mrf.mxu1 }
 0xc3e   :  { %v2138_v12 = vadd.f32 %v2137_v5, %v2121_v49  ;;  %v2275_v49 = vld [vmem:[%s6527_s7 + $0x68] sm:$0xff] }
 0xc45   :  { %v2124_v13 = vpop.f32.mrf.mxu1 }
 0xc46   :  { %v2139_v15 = vadd.f32 %v2138_v12, %v2124_v13  ;;  %v2271_v12 = vld [vmem:[%s6527_s7 + $0x48] sm:$0xff] }
 0xc4d   :  { %v2127_v52 = vpop.f32.mrf.mxu1 }
 0xc4e   :  { %v2140_v16 = vadd.f32 %v2139_v15, %v2127_v52  ;;  %v2272_v52 = vld [vmem:[%s6527_s7 + $0x50] sm:$0xff] }
 0xc55   :  { %v2130_v9 = vpop.f32.mrf.mxu1 }
 0xc56   :  { %v2141_v17 = vadd.f32 %v2140_v16, %v2130_v9  ;;  %v2270_v9 = vld [vmem:[%s6527_s7 + $0x40] sm:$0xff] }
 0xc5d   :  { %v2133_v22 = vpop.f32.mrf.mxu1 }
 0xc5e   :  { %v2142_v23 = vadd.f32 %v2141_v17, %v2133_v22  ;;  %v2268_v17 = vld [vmem:[%s6527_s7 + $0x30] sm:$0xff]  ;;  %v2269_v22 = vld [vmem:[%s6527_s7 + $0x38] sm:$0xff] }
 0xc60   :  { %v2143_v25 = vrot.slane %v2142_v23, 4 }
 0xc62   :  { %v2144_v27 = vadd.f32 %v2143_v25, %v2142_v23  ;;  %v2266_v23 = vld [vmem:[%s6527_s7 + $0x20] sm:$0xff]  ;;  %v2267_v25 = vld [vmem:[%s6527_s7 + $0x28] sm:$0xff] }
 0xc64   :  { %v2145_v33 = vrot.slane %v2144_v27, 2 }
 0xc66   :  { %v2146_v11 = vadd.f32 %v2145_v33, %v2144_v27  ;;  %v2264_v33 = vld [vmem:[%s6527_s7 + $0x10] sm:$0xff] }
 0xc68   :  { %v2147_v14 = vrot.slane %v2146_v11, 1 }
 0xc6a   :  { %v2148_v20 = vadd.f32 %v2147_v14, %v2146_v11  ;;  %v2265_v11 = vld [vmem:[%s6527_s7 + $0x18] sm:$0xff] }
 0xc6c   :  { %v6492_v38 = vsub.f32 %v6488_v6, %v2148_v20  ;;  %v6496_v46 = vsub.f32 %v2088_v18, %v2148_v20  ;;  %v6500_v41 = vsub.f32 %v2089_v32, %v2148_v20  ;;  %v6504_v31 = vsub.f32 %v2090_v62, %v2148_v20  ;;  %v2290_v62 = vld [vmem:[%s6527_s7 + $0xe0] sm:$0xff] }
 0xc6d   :  { %v6508_v6 = vsub.f32 %v2091_v24, %v2148_v20  ;;  %v6512_v0 = vsub.f32 %v2092_v51, %v2148_v20  ;;  %v6516_v30 = vsub.f32 %v2093_v29, %v2148_v20  ;;  %v6520_v34 = vsub.f32 %v2094_v21, %v2148_v20  ;;  %2295 = vmatpush.msrb.mxu0 %v2290_v62  ;;  %v2287_v24 = vld [vmem:[%s6527_s7 + $0xc8] sm:$0xff]  ;;  %v2282_v51 = vld [vmem:[%s6527_s7 + $0xa0] sm:$0xff]  ;;  %v2276_v21 = vld [vmem:[%s6527_s7 + $0x70] sm:$0xff] }
 0xc6e   :  { %v2157_v39 = vmul.f32 %v6492_v38, %v6492_v38  ;;  %v2158_v28 = vmul.f32 %v6496_v46, %v6496_v46  ;;  %v2159_v59 = vmul.f32 %v6500_v41, %v6500_v41  ;;  %v2160_v42 = vmul.f32 %v6504_v31, %v6504_v31  ;;  %2338 = vmatpush.msrb.mxu3 %v2287_v24  ;;  %v2262_v20 = vld [vmem:[%s6527_s7] sm:$0xff] }
 0xc6f   :  { %v2161_v43 = vmul.f32 %v6508_v6, %v6508_v6  ;;  %v2162_v40 = vmul.f32 %v6512_v0, %v6512_v0  ;;  %v2163_v18 = vmul.f32 %v6516_v30, %v6516_v30  ;;  %v2164_v45 = vmul.f32 %v6520_v34, %v6520_v34  ;;  %2296 = vmatpush.msrb.mxu0 %v2288_v1 }
 0xc70   :  { %2181 = vmatmul.f32.vlgmr.msrb.gmra.mxu2 %v2157_v39  ;;  %2339 = vmatpush.msrb.mxu3 %v2285_v61  ;;  %v2263_v39 = vld [vmem:[%s6527_s7 + $0x8] sm:$0xff] }
 0xc71   :  { %2297 = vmatpush.msrb.mxu0 %v2286_v10 }
 0xc72   :  { %2340 = vmatpush.msrb.mxu3 %v2283_v53 }
 0xc73   :  { %2298 = vmatpush.msrb.mxu0 %v2284_v60 }
 0xc74   :  { %2341 = vmatpush.msrb.mxu3 %v2281_v7 }
 0xc75   :  { %2299 = vmatpush.msrb.mxu0 %v2282_v51 }
 0xc76   :  { %2342 = vmatpush.msrb.mxu3 %v2279_v4 }
 0xc77   :  { %2300 = vmatpush.msrb.mxu0 %v2280_v47 }
 0xc78   :  { %2184 = vmatmul.f32.gmra.mxu2 %v2158_v28  ;;  %2343 = vmatpush.msrb.mxu3 %v2277_v50 }
 0xc79   :  { %2301 = vmatpush.msrb.mxu0 %v2278_v57 }
 0xc7a   :  { %2344 = vmatpush.msrb.mxu3 %v2275_v49  ;;  %v2247_v49 = vld [vmem:[%s6572_s11 + $0x8] sm:$0xff] }
 0xc7b   :  { %2302 = vmatpush.msrb.mxu0 %v2276_v21 }
 0xc7c   :  { %2345 = vmatpush.msrb.mxu3 %v2273_v2  ;;  %v2250_v2 = vld [vmem:[%s6572_s11 + $0x20] sm:$0xff] }
 0xc7d   :  { %2303 = vmatpush.msrb.mxu0 %v2274_v26  ;;  %v2246_v26 = vld [vmem:[%s6572_s11] sm:$0xff] }
 0xc7e   :  { %2346 = vmatpush.msrb.mxu3 %v2271_v12  ;;  %v2253_v12 = vld [vmem:[%s6572_s11 + $0x38] sm:$0xff] }
 0xc7f   :  { %2304 = vmatpush.msrb.mxu0 %v2272_v52  ;;  %v2249_v52 = vld [vmem:[%s6572_s11 + $0x18] sm:$0xff] }
 0xc80   :  { %2187 = vmatmul.f32.gmra.mxu2 %v2159_v59  ;;  %2347 = vmatpush.msrb.mxu3 %v2269_v22  ;;  %v2762_v22 = vld [vmem:[%s6603_s15 + $0xf0] sm:$0xff] }
 0xc81   :  { %2305 = vmatpush.msrb.mxu0 %v2270_v9  ;;  %v2252_v9 = vld [vmem:[%s6572_s11 + $0x30] sm:$0xff] }
 0xc82   :  { %2348 = vmatpush.msrb.mxu3 %v2267_v25  ;;  %v2761_v25 = vld [vmem:[%s6603_s15 + $0xe8] sm:$0xff] }
 0xc83   :  { %2306 = vmatpush.msrb.mxu0 %v2268_v17  ;;  %v2763_v17 = vld [vmem:[%s6603_s15 + $0xf8] sm:$0xff] }
 0xc84   :  { %2349 = vmatpush.msrb.mxu3 %v2265_v11  ;;  %v2746_v11 = vld [vmem:[%s6603_s15 + $0x70] sm:$0xff] }
 0xc85   :  { %2307 = vmatpush.msrb.mxu0 %v2266_v23  ;;  %v2256_v23 = vld [vmem:[%s6572_s11 + $0x50] sm:$0xff] }
 0xc86   :  { %2350 = vmatpush.msrb.mxu3 %v2263_v39  ;;  %v2758_v39 = vld [vmem:[%s6603_s15 + $0xd0] sm:$0xff] }
 0xc87   :  { %2308 = vmatpush.msrb.mxu0 %v2264_v33  ;;  %v2760_v33 = vld [vmem:[%s6603_s15 + $0xe0] sm:$0xff] }
 0xc88   :  { %2190 = vmatmul.f32.gmra.mxu2 %v2160_v42 }
 0xc89   :  { %2309 = vmatpush.msrb.mxu0 %v2262_v20  ;;  %v2745_v20 = vld [vmem:[%s6603_s15 + $0x68] sm:$0xff] }
 0xc90   :  { %2193 = vmatmul.f32.gmra.mxu2 %v2161_v43 }
 0xc98   :  { %2196 = vmatmul.f32.gmra.mxu2 %v2162_v40 }
 0xca0   :  { %2199 = vmatmul.f32.gmra.mxu2 %v2163_v18 }
 0xca8   :  { %2202 = vmatmul.f32.gmra.mxu2 %v2164_v45 }
 0xcf3   :  { %v2182_v19 = vpop.f32.mrf.mxu2 }
 0xcfb   :  { %v2185_v48 = vpop.f32.mrf.mxu2 }
 0xcfc   :  { %v2206_v56 = vadd.f32 %v2185_v48, %v2182_v19 }
 0xd03   :  { %v2188_v32 = vpop.f32.mrf.mxu2 }
 0xd04   :  { %v2207_v29 = vadd.f32 %v2206_v56, %v2188_v32 }
 0xd0b   :  { %v2191_v54 = vpop.f32.mrf.mxu2 }
 0xd0c   :  { %v2208_v37 = vadd.f32 %v2207_v29, %v2191_v54 }
 0xd13   :  { %v2194_v8 = vpop.f32.mrf.mxu2 }
 0xd14   :  { %v2209_v3 = vadd.f32 %v2208_v37, %v2194_v8 }
 0xd1b   :  { %v2197_v36 = vpop.f32.mrf.mxu2 }
 0xd1c   :  { %v2210_v13 = vadd.f32 %v2209_v3, %v2197_v36 }
 0xd23   :  { %v2200_v55 = vpop.f32.mrf.mxu2 }
 0xd24   :  { %v2211_v5 = vadd.f32 %v2210_v13, %v2200_v55  ;;  %v2248_v13 = vld [vmem:[%s6572_s11 + $0x10] sm:$0xff] }
 0xd2b   :  { %v2203_v15 = vpop.f32.mrf.mxu2 }
 0xd2c   :  { %v2212_v16 = vadd.f32 %v2211_v5, %v2203_v15  ;;  %v2251_v5 = vld [vmem:[%s6572_s11 + $0x28] sm:$0xff]  ;;  %v2254_v15 = vld [vmem:[%s6572_s11 + $0x40] sm:$0xff] }
 0xd2e   :  { %v2213_v27 = vrot.slane %v2212_v16, 4 }
 0xd30   :  { %v2214_v14 = vadd.f32 %v2213_v27, %v2212_v16  ;;  %v2255_v16 = vld [vmem:[%s6572_s11 + $0x48] sm:$0xff]  ;;  %v2747_v27 = vld [vmem:[%s6603_s15 + $0x78] sm:$0xff] }
 0xd32   :  { %v2215_v28 = vrot.slane %v2214_v14, 2 }
 0xd34   :  { %v2216_v59 = vadd.f32 %v2215_v28, %v2214_v14  ;;  %v2759_v14 = vld [vmem:[%s6603_s15 + $0xd8] sm:$0xff] }
 0xd35   :  { %v2257_v28 = vld [vmem:[%s6572_s11 + $0x58] sm:$0xff] }
 0xd36   :  { %v2217_v42 = vrot.slane %v2216_v59, 1 }
 0xd38   :  { %v2218_v43 = vadd.f32 %v2217_v42, %v2216_v59  ;;  %v2744_v59 = vld [vmem:[%s6603_s15 + $0x60] sm:$0xff]  ;;  %v2757_v42 = vld [vmem:[%s6603_s15 + $0xc8] sm:$0xff] }
 0xd3a   :  { %v2219_v40 = vadd.f32 1e-05, %v2218_v43  ;;  %v2743_v43 = vld [vmem:[%s6603_s15 + $0x58] sm:$0xff] }
 0xd3c   :  { %5263 = vrsqrt.f32 %v2219_v40  ;;  %vm2226_vm13 = vweird.f32 %v2219_v40 }
 0xd42   :  { %v5264_v18 = vpop.eup %5263 }
 0xd43   :  { %v2221_v45 = vmul.f32 %v5264_v18, %v2219_v40  ;;  %vm2227_vm12 = vweird.f32 %v5264_v18  ;;  %v2756_v40 = vld [vmem:[%s6603_s15 + $0xc0] sm:$0xff] }
 0xd44   :  { %vm2228_vm14 = vmor %vm2226_vm13, %vm2227_vm12 }
 0xd45   :  { %v2222_v19 = vmul.f32 %v5264_v18, %v2221_v45  ;;  %v2755_v45 = vld [vmem:[%s6603_s15 + $0xb8] sm:$0xff] }
 0xd47   :  { %v2223_v48 = vmul.f32 0.5, %v2222_v19  ;;  %v2258_v19 = vld [vmem:[%s6572_s11 + $0x60] sm:$0xff] }
 0xd49   :  { %v2224_v32 = vsub.f32 1.5, %v2223_v48  ;;  %v2741_v48 = vld [vmem:[%s6603_s15 + $0x48] sm:$0xff] }
 0xd4b   :  { %v2225_v54 = vmul.f32 %v5264_v18, %v2224_v32  ;;  %v2754_v32 = vld [vmem:[%s6603_s15 + $0xb0] sm:$0xff] }
 0xd4d   :  { %v2229_v8 = vsel %vm2228_vm14, %v5264_v18, %v2225_v54  ;;  %v2742_v18 = vld [vmem:[%s6603_s15 + $0x50] sm:$0xff]  ;;  %v2740_v54 = vld [vmem:[%s6603_s15 + $0x40] sm:$0xff] }
 0xd4e   :  { %v2230_v58 = vmul.f32 %v2229_v8, %v6492_v38  ;;  %v2231_v62 = vmul.f32 %v2229_v8, %v6496_v46  ;;  %v2232_v1 = vmul.f32 %v2229_v8, %v6500_v41  ;;  %v2233_v10 = vmul.f32 %v2229_v8, %v6504_v31 }
 0xd4f   :  { %v2234_v38 = vmul.f32 %v2229_v8, %v6508_v6  ;;  %v2235_v46 = vmul.f32 %v2229_v8, %v6512_v0  ;;  %v2236_v41 = vmul.f32 %v2229_v8, %v6516_v30  ;;  %v2237_v31 = vmul.f32 %v2229_v8, %v6520_v34  ;;  %v2753_v8 = vld [vmem:[%s6603_s15 + $0xa8] sm:$0xff] }
 0xd50   :  { %v2238_v35 = vmax.f32 %v2230_v58, 0.0  ;;  %v2239_v44 = vmax.f32 %v2231_v62, 0.0  ;;  %v2240_v63 = vmax.f32 %v2232_v1, 0.0  ;;  %v2241_v24 = vmax.f32 %v2233_v10, 0.0  ;;  %v2739_v58 = vld [vmem:[%s6603_s15 + $0x38] sm:$0xff]  ;;  %v2738_v62 = vld [vmem:[%s6603_s15 + $0x30] sm:$0xff] }
 0xd51   :  { %v2242_v36 = vmax.f32 %v2234_v38, 0.0  ;;  %v2243_v60 = vmax.f32 %v2235_v46, 0.0  ;;  %v2244_v61 = vmax.f32 %v2236_v41, 0.0  ;;  %v2245_v51 = vmax.f32 %v2237_v31, 0.0  ;;  %v2259_v1 = vld [vmem:[%s6572_s11 + $0x68] sm:$0xff]  ;;  %v2750_v10 = vld [vmem:[%s6603_s15 + $0x90] sm:$0xff] }
 0xd52   :  { %2310 = vmatmul.f32.vlgmr.msrb.gmra.mxu0 %v2238_v35  ;;  %2351 = vmatmul.f32.vlgmr.msrb.gmra.mxu3 %v2238_v35  ;;  %v2752_v35 = vld [vmem:[%s6603_s15 + $0xa0] sm:$0xff]  ;;  %v2749_v38 = vld [vmem:[%s6603_s15 + $0x88] sm:$0xff]  ;;  %v2260_v41 = vld [vmem:[%s6572_s11 + $0x70] sm:$0xff] }
 0xd53   :  { %v2748_v46 = vld [vmem:[%s6603_s15 + $0x80] sm:$0xff] }
 0xd54   :  { %v2732_v31 = vld [vmem:[%s6603_s15] sm:$0xff] }
 0xd5a   :  { %2313 = vmatmul.f32.gmra.mxu0 %v2239_v44  ;;  %2354 = vmatmul.f32.gmra.mxu3 %v2239_v44  ;;  %v2751_v44 = vld [vmem:[%s6603_s15 + $0x98] sm:$0xff] }
 0xd62   :  { %2316 = vmatmul.f32.gmra.mxu0 %v2240_v63  ;;  %2357 = vmatmul.f32.gmra.mxu3 %v2240_v63  ;;  %v2737_v63 = vld [vmem:[%s6603_s15 + $0x28] sm:$0xff] }
 0xd6a   :  { %2319 = vmatmul.f32.gmra.mxu0 %v2241_v24  ;;  %2360 = vmatmul.f32.gmra.mxu3 %v2241_v24  ;;  %v2736_v24 = vld [vmem:[%s6603_s15 + $0x20] sm:$0xff] }
 0xd72   :  { %2322 = vmatmul.f32.gmra.mxu0 %v2242_v36  ;;  %2363 = vmatmul.f32.gmra.mxu3 %v2242_v36  ;;  %v2735_v36 = vld [vmem:[%s6603_s15 + $0x18] sm:$0xff] }
 0xd7a   :  { %2325 = vmatmul.f32.gmra.mxu0 %v2243_v60  ;;  %2366 = vmatmul.f32.gmra.mxu3 %v2243_v60  ;;  %v2734_v60 = vld [vmem:[%s6603_s15 + $0x10] sm:$0xff] }
 0xd82   :  { %2328 = vmatmul.f32.gmra.mxu0 %v2244_v61  ;;  %2369 = vmatmul.f32.gmra.mxu3 %v2244_v61  ;;  %v2733_v61 = vld [vmem:[%s6603_s15 + $0x8] sm:$0xff] }
 0xd8a   :  { %2331 = vmatmul.f32.gmra.mxu0 %v2245_v51  ;;  %2372 = vmatmul.f32.gmra.mxu3 %v2245_v51  ;;  %v2261_v51 = vld [vmem:[%s6572_s11 + $0x78] sm:$0xff] }
 0xdcf   :  { %v2311_v53 = vpop.f32.mrf.mxu0 }
 0xdd5   :  { %v2352_v6 = vpop.f32.mrf.mxu3 }
 0xdd7   :  { %v2314_v56 = vpop.f32.mrf.mxu0 }
 0xddd   :  { %v2355_v47 = vpop.f32.mrf.mxu3 }
 0xddf   :  { %v2317_v7 = vpop.f32.mrf.mxu0 }
 0xde5   :  { %v2358_v29 = vpop.f32.mrf.mxu3 }
 0xde7   :  { %v2320_v0 = vpop.f32.mrf.mxu0 }
 0xded   :  { %v2361_v57 = vpop.f32.mrf.mxu3 }
 0xdef   :  { %v2323_v4 = vpop.f32.mrf.mxu0 }
 0xdf5   :  { %v2364_v55 = vpop.f32.mrf.mxu3 }
 0xdf7   :  { %v2326_v37 = vpop.f32.mrf.mxu0 }
 0xdfd   :  { %v2367_v30 = vpop.f32.mrf.mxu3 }
 0xdff   :  { %v2329_v21 = vpop.f32.mrf.mxu0 }
 0xe05   :  { %v2370_v50 = vpop.f32.mrf.mxu3 }
 0xe07   :  { %v2332_v3 = vpop.f32.mrf.mxu0 }
 0xe08   :  { %2432 = vmatpush.msra.mxu1 %v2332_v3 }
 0xe0a   :  { %2433 = vmatpush.msra.mxu1 %v2329_v21 }
 0xe0c   :  { %2434 = vmatpush.msra.mxu1 %v2326_v37 }
 0xe0d   :  { %v2373_v34 = vpop.f32.mrf.mxu3 }
 0xe0e   :  { %2435 = vmatpush.msra.mxu1 %v2323_v4  ;;  %2497 = vmatpush.msra.mxu2 %v2373_v34 }
 0xe10   :  { %2436 = vmatpush.msra.mxu1 %v2320_v0  ;;  %2498 = vmatpush.msra.mxu2 %v2370_v50 }
 0xe12   :  { %2437 = vmatpush.msra.mxu1 %v2317_v7  ;;  %2499 = vmatpush.msra.mxu2 %v2367_v30 }
 0xe14   :  { %2438 = vmatpush.msra.mxu1 %v2314_v56  ;;  %2500 = vmatpush.msra.mxu2 %v2364_v55 }
 0xe16   :  { %2439 = vmatpush.msra.mxu1 %v2311_v53  ;;  %2501 = vmatpush.msra.mxu2 %v2361_v57 }
 0xe17   :  { %5181 = vmatmul.msk.f32.vlgmr.msra.gmra.mxu1 %vm164_vm0, %v2246_v26 }
 0xe18   :  { %2502 = vmatpush.msra.mxu2 %v2358_v29  ;;  %2764 = vmatpush.msrb.mxu1 %v2747_v27 }
 0xe1a   :  { %2503 = vmatpush.msra.mxu2 %v2355_v47  ;;  %2765 = vmatpush.msrb.mxu1 %v2746_v11  ;;  %v2554_v11 = vld [vmem:[%s6717_s19] sm:$0xff] }
 0xe1c   :  { %2504 = vmatpush.msra.mxu2 %v2352_v6  ;;  %2766 = vmatpush.msrb.mxu1 %v2745_v20  ;;  %v2556_v20 = vld [vmem:[%s6717_s19 + $0x10] sm:$0xff] }
 0xe1d   :  { %5197 = vmatmul.msk.f32.vlgmr.msra.gmra.mxu2 %vm164_vm0, %v2246_v26 }
 0xe1e   :  { %2829 = vmatpush.msrb.mxu2 %v2763_v17  ;;  %2767 = vmatpush.msrb.mxu1 %v2744_v59  ;;  %v2559_v59 = vld [vmem:[%s6717_s19 + $0x28] sm:$0xff] }
 0xe1f   :  { %5182 = vmatmul.msk.f32.gmra.mxu1 %vm164_vm0, %v2247_v49 }
 0xe20   :  { %2830 = vmatpush.msrb.mxu2 %v2762_v22  ;;  %2768 = vmatpush.msrb.mxu1 %v2743_v43  ;;  %v2561_v43 = vld [vmem:[%s6717_s19 + $0x38] sm:$0xff] }
 0xe22   :  { %2831 = vmatpush.msrb.mxu2 %v2761_v25  ;;  %2769 = vmatpush.msrb.mxu1 %v2742_v18  ;;  %v2715_v18 = vld [vmem:[%s6760_s23 + $0x78] sm:$0xff] }
 0xe24   :  { %2832 = vmatpush.msrb.mxu2 %v2760_v33  ;;  %2770 = vmatpush.msrb.mxu1 %v2741_v48  ;;  %v2712_v48 = vld [vmem:[%s6760_s23 + $0x60] sm:$0xff] }
 0xe25   :  { %5198 = vmatmul.msk.f32.gmra.mxu2 %vm164_vm0, %v2247_v49 }
 0xe26   :  { %2833 = vmatpush.msrb.mxu2 %v2759_v14  ;;  %2771 = vmatpush.msrb.mxu1 %v2740_v54  ;;  %v2555_v14 = vld [vmem:[%s6717_s19 + $0x8] sm:$0xff]  ;;  %v2711_v54 = vld [vmem:[%s6760_s23 + $0x58] sm:$0xff] }
 0xe27   :  { %5183 = vmatmul.msk.f32.gmra.mxu1 %vm164_vm0, %v2248_v13 }
 0xe28   :  { %2834 = vmatpush.msrb.mxu2 %v2758_v39  ;;  %2772 = vmatpush.msrb.mxu1 %v2739_v58  ;;  %v2557_v39 = vld [vmem:[%s6717_s19 + $0x18] sm:$0xff]  ;;  %v2709_v58 = vld [vmem:[%s6760_s23 + $0x48] sm:$0xff] }
 0xe2a   :  { %2835 = vmatpush.msrb.mxu2 %v2757_v42  ;;  %2773 = vmatpush.msrb.mxu1 %v2738_v62  ;;  %v2560_v42 = vld [vmem:[%s6717_s19 + $0x30] sm:$0xff] }
 0xe2b   :  { %v2564_v62 = vld [vmem:[%s6717_s19 + $0x50] sm:$0xff] }
 0xe2c   :  { %2836 = vmatpush.msrb.mxu2 %v2756_v40  ;;  %2774 = vmatpush.msrb.mxu1 %v2737_v63  ;;  %v2562_v40 = vld [vmem:[%s6717_s19 + $0x40] sm:$0xff]  ;;  %v2731_v63 = vld [vmem:[%s6760_s23 + $0xf8] sm:$0xff] }
 0xe2d   :  { %5199 = vmatmul.msk.f32.gmra.mxu2 %vm164_vm0, %v2248_v13 }
 0xe2e   :  { %2837 = vmatpush.msrb.mxu2 %v2755_v45  ;;  %2775 = vmatpush.msrb.mxu1 %v2736_v24  ;;  %v2714_v45 = vld [vmem:[%s6760_s23 + $0x70] sm:$0xff] }
 0xe2f   :  { %5184 = vmatmul.msk.f32.gmra.mxu1 %vm164_vm0, %v2249_v52  ;;  %v2730_v24 = vld [vmem:[%s6760_s23 + $0xf0] sm:$0xff] }
 0xe30   :  { %2838 = vmatpush.msrb.mxu2 %v2754_v32  ;;  %2776 = vmatpush.msrb.mxu1 %v2735_v36  ;;  %v2563_v32 = vld [vmem:[%s6717_s19 + $0x48] sm:$0xff] }
 0xe31   :  { %v2729_v36 = vld [vmem:[%s6760_s23 + $0xe8] sm:$0xff] }
 0xe32   :  { %2839 = vmatpush.msrb.mxu2 %v2753_v8  ;;  %2777 = vmatpush.msrb.mxu1 %v2734_v60  ;;  %v2710_v8 = vld [vmem:[%s6760_s23 + $0x50] sm:$0xff]  ;;  %v2704_v60 = vld [vmem:[%s6760_s23 + $0x20] sm:$0xff] }
 0xe34   :  { %2840 = vmatpush.msrb.mxu2 %v2752_v35  ;;  %2778 = vmatpush.msrb.mxu1 %v2733_v61  ;;  %v2708_v35 = vld [vmem:[%s6760_s23 + $0x40] sm:$0xff] }
 0xe35   :  { %5200 = vmatmul.msk.f32.gmra.mxu2 %vm164_vm0, %v2249_v52 }
 0xe36   :  { %2841 = vmatpush.msrb.mxu2 %v2751_v44  ;;  %2779 = vmatpush.msrb.mxu1 %v2732_v31  ;;  %v2703_v31 = vld [vmem:[%s6760_s23 + $0x18] sm:$0xff] }
 0xe37   :  { %5185 = vmatmul.msk.f32.gmra.mxu1 %vm164_vm0, %v2250_v2 }
 0xe38   :  { %2842 = vmatpush.msrb.mxu2 %v2750_v10  ;;  %v2706_v10 = vld [vmem:[%s6760_s23 + $0x30] sm:$0xff] }
 0xe3a   :  { %2843 = vmatpush.msrb.mxu2 %v2749_v38  ;;  %v2705_v38 = vld [vmem:[%s6760_s23 + $0x28] sm:$0xff] }
 0xe3c   :  { %2844 = vmatpush.msrb.mxu2 %v2748_v46  ;;  %v2565_v46 = vld [vmem:[%s6717_s19 + $0x58] sm:$0xff] }
 0xe3d   :  { %5201 = vmatmul.msk.f32.gmra.mxu2 %vm164_vm0, %v2250_v2 }
 0xe3f   :  { %5186 = vmatmul.msk.f32.gmra.mxu1 %vm164_vm0, %v2251_v5 }
 0xe45   :  { %5202 = vmatmul.msk.f32.gmra.mxu2 %vm164_vm0, %v2251_v5 }
 0xe47   :  { %5187 = vmatmul.msk.f32.gmra.mxu1 %vm164_vm0, %v2252_v9 }
 0xe4d   :  { %5203 = vmatmul.msk.f32.gmra.mxu2 %vm164_vm0, %v2252_v9 }
 0xe4f   :  { %5188 = vmatmul.msk.f32.gmra.mxu1 %vm164_vm0, %v2253_v12 }
 0xe55   :  { %5204 = vmatmul.msk.f32.gmra.mxu2 %vm164_vm0, %v2253_v12 }
 0xe57   :  { %5189 = vmatmul.msk.f32.gmra.mxu1 %vm164_vm0, %v2254_v15 }
 0xe5d   :  { %5205 = vmatmul.msk.f32.gmra.mxu2 %vm164_vm0, %v2254_v15 }
 0xe5f   :  { %5190 = vmatmul.msk.f32.gmra.mxu1 %vm164_vm0, %v2255_v16 }
 0xe65   :  { %5206 = vmatmul.msk.f32.gmra.mxu2 %vm164_vm0, %v2255_v16 }
 0xe67   :  { %5191 = vmatmul.msk.f32.gmra.mxu1 %vm164_vm0, %v2256_v23 }
 0xe6d   :  { %5207 = vmatmul.msk.f32.gmra.mxu2 %vm164_vm0, %v2256_v23 }
 0xe6f   :  { %5192 = vmatmul.msk.f32.gmra.mxu1 %vm164_vm0, %v2257_v28 }
 0xe75   :  { %5208 = vmatmul.msk.f32.gmra.mxu2 %vm164_vm0, %v2257_v28  ;;  %v2558_v28 = vld [vmem:[%s6717_s19 + $0x20] sm:$0xff] }
 0xe77   :  { %5193 = vmatmul.msk.f32.gmra.mxu1 %vm164_vm0, %v2258_v19 }
 0xe7d   :  { %5209 = vmatmul.msk.f32.gmra.mxu2 %vm164_vm0, %v2258_v19  ;;  %v2713_v19 = vld [vmem:[%s6760_s23 + $0x68] sm:$0xff] }
 0xe7f   :  { %5194 = vmatmul.msk.f32.gmra.mxu1 %vm164_vm0, %v2259_v1 }
 0xe85   :  { %5210 = vmatmul.msk.f32.gmra.mxu2 %vm164_vm0, %v2259_v1  ;;  %v2707_v1 = vld [vmem:[%s6760_s23 + $0x38] sm:$0xff] }
 0xe87   :  { %5195 = vmatmul.msk.f32.gmra.mxu1 %vm164_vm0, %v2260_v41 }
 0xe8d   :  { %5211 = vmatmul.msk.f32.gmra.mxu2 %vm164_vm0, %v2260_v41  ;;  %v2728_v41 = vld [vmem:[%s6760_s23 + $0xe0] sm:$0xff] }
 0xe8f   :  { %5196 = vmatmul.msk.f32.gmra.mxu1 %vm164_vm0, %v2261_v51 }
 0xe94   :  { %v6658_v53 = vpop.f32.mrf.mxu1 }
 0xe95   :  { %5212 = vmatmul.msk.f32.gmra.mxu2 %vm164_vm0, %v2261_v51  ;;  %v2727_v51 = vld [vmem:[%s6760_s23 + $0xd8] sm:$0xff] }
 0xe97   :  { %2780 = vmatmul.f32.vlgmr.msrb.gmra.mxu1 %v6658_v53 }
 0xe9c   :  { %v6662_v6 = vpop.f32.mrf.mxu1 }
 0xe9f   :  { %2783 = vmatmul.f32.gmra.mxu1 %v6662_v6 }
 0xea0   :  { %v6665_v56 = vpop.f32.mrf.mxu2 }
 0xea1   :  { %2845 = vmatmul.f32.vlgmr.msrb.gmra.mxu2 %v6665_v56 }
 0xea4   :  { %v6668_v47 = vpop.f32.mrf.mxu1 }
 0xea7   :  { %2786 = vmatmul.f32.gmra.mxu1 %v6668_v47 }
 0xea8   :  { %v6671_v7 = vpop.f32.mrf.mxu2 }
 0xea9   :  { %2848 = vmatmul.f32.gmra.mxu2 %v6671_v7 }
 0xeac   :  { %v6674_v29 = vpop.f32.mrf.mxu1 }
 0xeaf   :  { %2789 = vmatmul.f32.gmra.mxu1 %v6674_v29 }
 0xeb0   :  { %v6677_v0 = vpop.f32.mrf.mxu2 }
 0xeb1   :  { %2851 = vmatmul.f32.gmra.mxu2 %v6677_v0 }
 0xeb4   :  { %v6680_v57 = vpop.f32.mrf.mxu1 }
 0xeb7   :  { %2792 = vmatmul.f32.gmra.mxu1 %v6680_v57 }
 0xeb8   :  { %v6683_v4 = vpop.f32.mrf.mxu2 }
 0xeb9   :  { %2854 = vmatmul.f32.gmra.mxu2 %v6683_v4 }
 0xebc   :  { %v6686_v55 = vpop.f32.mrf.mxu1 }
 0xebf   :  { %2795 = vmatmul.f32.gmra.mxu1 %v6686_v55 }
 0xec0   :  { %v6689_v37 = vpop.f32.mrf.mxu2 }
 0xec1   :  { %2857 = vmatmul.f32.gmra.mxu2 %v6689_v37 }
 0xec4   :  { %v6692_v30 = vpop.f32.mrf.mxu1 }
 0xec7   :  { %2798 = vmatmul.f32.gmra.mxu1 %v6692_v30 }
 0xec8   :  { %v6695_v21 = vpop.f32.mrf.mxu2 }
 0xec9   :  { %2860 = vmatmul.f32.gmra.mxu2 %v6695_v21 }
 0xecc   :  { %v2462_v50 = vpop.f32.mrf.mxu1 }
 0xecf   :  { %2801 = vmatmul.f32.gmra.mxu1 %v2462_v50 }
 0xed0   :  { %v6698_v3 = vpop.f32.mrf.mxu2 }
 0xed1   :  { %2863 = vmatmul.f32.gmra.mxu2 %v6698_v3 }
 0xed4   :  { %v2465_v34 = vpop.f32.mrf.mxu1 }
 0xed7   :  { %2804 = vmatmul.f32.gmra.mxu1 %v2465_v34 }
 0xed8   :  { %v6701_v26 = vpop.f32.mrf.mxu2 }
 0xed9   :  { %2866 = vmatmul.f32.gmra.mxu2 %v6701_v26 }
 0xedc   :  { %v2468_v49 = vpop.f32.mrf.mxu1 }
 0xedf   :  { %2807 = vmatmul.f32.gmra.mxu1 %v2468_v49 }
 0xee0   :  { %v6704_v13 = vpop.f32.mrf.mxu2 }
 0xee1   :  { %2869 = vmatmul.f32.gmra.mxu2 %v6704_v13 }
 0xee4   :  { %v2471_v52 = vpop.f32.mrf.mxu1 }
 0xee7   :  { %2810 = vmatmul.f32.gmra.mxu1 %v2471_v52 }
 0xee8   :  { %v6707_v2 = vpop.f32.mrf.mxu2 }
 0xee9   :  { %2872 = vmatmul.f32.gmra.mxu2 %v6707_v2 }
 0xeec   :  { %v2474_v5 = vpop.f32.mrf.mxu1 }
 0xeef   :  { %2813 = vmatmul.f32.gmra.mxu1 %v2474_v5 }
 0xef0   :  { %v2536_v9 = vpop.f32.mrf.mxu2 }
 0xef1   :  { %2875 = vmatmul.f32.gmra.mxu2 %v2536_v9 }
 0xef4   :  { %v2477_v12 = vpop.f32.mrf.mxu1 }
 0xef7   :  { %2816 = vmatmul.f32.gmra.mxu1 %v2477_v12 }
 0xef8   :  { %v2539_v15 = vpop.f32.mrf.mxu2 }
 0xef9   :  { %2878 = vmatmul.f32.gmra.mxu2 %v2539_v15 }
 0xefc   :  { %v2480_v16 = vpop.f32.mrf.mxu1 }
 0xeff   :  { %2819 = vmatmul.f32.gmra.mxu1 %v2480_v16 }
 0xf00   :  { %v2542_v17 = vpop.f32.mrf.mxu2 }
 0xf01   :  { %2881 = vmatmul.f32.gmra.mxu2 %v2542_v17 }
 0xf04   :  { %v2483_v22 = vpop.f32.mrf.mxu1 }
 0xf07   :  { %2822 = vmatmul.f32.gmra.mxu1 %v2483_v22 }
 0xf08   :  { %v2545_v23 = vpop.f32.mrf.mxu2 }
 0xf09   :  { %2884 = vmatmul.f32.gmra.mxu2 %v2545_v23 }
 0xf0c   :  { %v2486_v25 = vpop.f32.mrf.mxu1 }
 0xf0d   :  { %2570 = vmatpush.msra.mxu0 %v2486_v25  ;;  %3040 = vmatpush.msra.mxu1 %v2486_v25 }
 0xf0f   :  { %2571 = vmatpush.msra.mxu0 %v2483_v22  ;;  %3041 = vmatpush.msra.mxu1 %v2483_v22 }
 0xf10   :  { %v2548_v27 = vpop.f32.mrf.mxu2  ;;  %2825 = vmatmul.f32.gmra.mxu1 %v2486_v25 }
 0xf11   :  { %2572 = vmatpush.msra.mxu0 %v2480_v16  ;;  %2887 = vmatmul.f32.gmra.mxu2 %v2548_v27 }
 0xf12   :  { %3042 = vmatpush.msra.mxu1 %v2480_v16 }
 0xf13   :  { %2573 = vmatpush.msra.mxu0 %v2477_v12 }
 0xf14   :  { %3043 = vmatpush.msra.mxu1 %v2477_v12  ;;  %v6784_v61 = vpop.f32.mrf.mxu1  ;;  %v3025_v12 = vld [vmem:[%s6801_s27 + $0x8] sm:$0xff] }
 0xf15   :  { %2574 = vmatpush.msra.mxu0 %v2474_v5 }
 0xf16   :  { %3044 = vmatpush.msra.mxu1 %v2474_v5 }
 0xf17   :  { %2575 = vmatpush.msra.mxu0 %v2471_v52 }
 0xf18   :  { %3045 = vmatpush.msra.mxu1 %v2471_v52  ;;  %v2551_v33 = vpop.f32.mrf.mxu2  ;;  %v2568_v52 = vld [vmem:[%s6717_s19 + $0x70] sm:$0xff] }
 0xf19   :  { %2576 = vmatpush.msra.mxu0 %v2468_v49  ;;  %2635 = vmatpush.msra.mxu3 %v2551_v33 }
 0xf1a   :  { %2890 = vmatmul.f32.gmra.mxu2 %v2551_v33  ;;  %3046 = vmatpush.msra.mxu1 %v2468_v49  ;;  %v2718_v49 = vld [vmem:[%s6760_s23 + $0x90] sm:$0xff] }
 0xf1b   :  { %3105 = vmatpush.msra.mxu2 %v2551_v33  ;;  %2577 = vmatpush.msra.mxu0 %v2465_v34 }
 0xf1c   :  { %2636 = vmatpush.msra.mxu3 %v2548_v27  ;;  %3047 = vmatpush.msra.mxu1 %v2465_v34  ;;  %v2719_v34 = vld [vmem:[%s6760_s23 + $0x98] sm:$0xff] }
 0xf1d   :  { %3106 = vmatpush.msra.mxu2 %v2548_v27  ;;  %2578 = vmatpush.msra.mxu0 %v2462_v50  ;;  %v3027_v27 = vld [vmem:[%s6801_s27 + $0x18] sm:$0xff] }
 0xf1e   :  { %2637 = vmatpush.msra.mxu3 %v2545_v23  ;;  %3048 = vmatpush.msra.mxu1 %v2462_v50  ;;  %v2721_v50 = vld [vmem:[%s6760_s23 + $0xa8] sm:$0xff] }
 0xf1f   :  { %3107 = vmatpush.msra.mxu2 %v2545_v23  ;;  %2579 = vmatpush.msra.mxu0 %v6692_v30 }
 0xf20   :  { %2638 = vmatpush.msra.mxu3 %v2542_v17  ;;  %3049 = vmatpush.msra.mxu1 %v6692_v30 }
 0xf21   :  { %3108 = vmatpush.msra.mxu2 %v2542_v17  ;;  %2580 = vmatpush.msra.mxu0 %v6686_v55  ;;  %v3026_v17 = vld [vmem:[%s6801_s27 + $0x10] sm:$0xff] }
 0xf22   :  { %2639 = vmatpush.msra.mxu3 %v2539_v15  ;;  %3050 = vmatpush.msra.mxu1 %v6686_v55  ;;  %v6803_v55 = vpop.f32.mrf.mxu1 }
 0xf23   :  { %3109 = vmatpush.msra.mxu2 %v2539_v15  ;;  %2581 = vmatpush.msra.mxu0 %v6680_v57  ;;  %v2569_v15 = vld [vmem:[%s6717_s19 + $0x78] sm:$0xff] }
 0xf24   :  { %2640 = vmatpush.msra.mxu3 %v2536_v9  ;;  %3051 = vmatpush.msra.mxu1 %v6680_v57  ;;  %v6773_v44 = vpop.f32.mrf.mxu2  ;;  %v2724_v57 = vld [vmem:[%s6760_s23 + $0xc0] sm:$0xff] }
 0xf25   :  { %3110 = vmatpush.msra.mxu2 %v2536_v9  ;;  %2582 = vmatpush.msra.mxu0 %v6674_v29  ;;  %v2716_v9 = vld [vmem:[%s6760_s23 + $0x80] sm:$0xff] }
 0xf26   :  { %2641 = vmatpush.msra.mxu3 %v6707_v2  ;;  %3052 = vmatpush.msra.mxu1 %v6674_v29  ;;  %v2725_v29 = vld [vmem:[%s6760_s23 + $0xc8] sm:$0xff] }
 0xf27   :  { %3111 = vmatpush.msra.mxu2 %v6707_v2  ;;  %2583 = vmatpush.msra.mxu0 %v6668_v47  ;;  %v2717_v2 = vld [vmem:[%s6760_s23 + $0x88] sm:$0xff] }
 0xf28   :  { %2642 = vmatpush.msra.mxu3 %v6704_v13  ;;  %3053 = vmatpush.msra.mxu1 %v6668_v47  ;;  %v2566_v47 = vld [vmem:[%s6717_s19 + $0x60] sm:$0xff] }
 0xf29   :  { %3112 = vmatpush.msra.mxu2 %v6704_v13  ;;  %2584 = vmatpush.msra.mxu0 %v6662_v6 }
 0xf2a   :  { %2643 = vmatpush.msra.mxu3 %v6701_v26  ;;  %3054 = vmatpush.msra.mxu1 %v6662_v6  ;;  %v2726_v6 = vld [vmem:[%s6760_s23 + $0xd0] sm:$0xff]  ;;  %v6814_v13 = vpop.f32.mrf.mxu1 }
 0xf2b   :  { %3113 = vmatpush.msra.mxu2 %v6701_v26  ;;  %2585 = vmatpush.msra.mxu0 %v6658_v53  ;;  %v3024_v26 = vld [vmem:[%s6801_s27] sm:$0xff] }
 0xf2c   :  { %2644 = vmatpush.msra.mxu3 %v6698_v3  ;;  %3055 = vmatpush.msra.mxu1 %v6658_v53  ;;  %v2702_v53 = vld [vmem:[%s6760_s23 + $0x10] sm:$0xff] }
 0xf2d   :  { %3114 = vmatpush.msra.mxu2 %v6698_v3  ;;  %2586 = vmatmul.f32.vlgmr.msra.gmra.mxu0 %v2554_v11  ;;  %v2720_v3 = vld [vmem:[%s6760_s23 + $0xa0] sm:$0xff] }
 0xf2e   :  { %2645 = vmatpush.msra.mxu3 %v6695_v21  ;;  %2894 = vmatpush.msrb.mxu0 %v2715_v18 }
 0xf2f   :  { %3115 = vmatpush.msra.mxu2 %v6695_v21  ;;  %v2567_v21 = vld [vmem:[%s6717_s19 + $0x68] sm:$0xff]  ;;  %3056 = vmatmul.f32.vlgmr.msra.gmra.mxu1 %v3024_v26 }
 0xf30   :  { %2646 = vmatpush.msra.mxu3 %v6689_v37  ;;  %2895 = vmatpush.msrb.mxu0 %v2714_v45 }
 0xf31   :  { %3116 = vmatpush.msra.mxu2 %v6689_v37  ;;  %v2722_v37 = vld [vmem:[%s6760_s23 + $0xb0] sm:$0xff] }
 0xf32   :  { %2647 = vmatpush.msra.mxu3 %v6683_v4  ;;  %2896 = vmatpush.msrb.mxu0 %v2713_v19  ;;  %v6823_v16 = vpop.f32.mrf.mxu1  ;;  %v3030_v19 = vld [vmem:[%s6801_s27 + $0x30] sm:$0xff] }
 0xf33   :  { %3117 = vmatpush.msra.mxu2 %v6683_v4  ;;  %v2723_v4 = vld [vmem:[%s6760_s23 + $0xb8] sm:$0xff] }
 0xf34   :  { %2648 = vmatpush.msra.mxu3 %v6677_v0  ;;  %2897 = vmatpush.msrb.mxu0 %v2712_v48 }
 0xf35   :  { %3118 = vmatpush.msra.mxu2 %v6677_v0  ;;  %2589 = vmatmul.f32.gmra.mxu0 %v2555_v14  ;;  %v2700_v0 = vld [vmem:[%s6760_s23] sm:$0xff] }
 0xf36   :  { %2649 = vmatpush.msra.mxu3 %v6671_v7  ;;  %2898 = vmatpush.msrb.mxu0 %v2711_v54 }
 0xf37   :  { %3119 = vmatpush.msra.mxu2 %v6671_v7  ;;  %v2701_v7 = vld [vmem:[%s6760_s23 + $0x8] sm:$0xff]  ;;  %3059 = vmatmul.f32.gmra.mxu1 %v3025_v12 }
 0xf38   :  { %2650 = vmatpush.msra.mxu3 %v6665_v56  ;;  %2899 = vmatpush.msrb.mxu0 %v2710_v8  ;;  %v3031_v8 = vld [vmem:[%s6801_s27 + $0x38] sm:$0xff] }
 0xf39   :  { %3120 = vmatpush.msra.mxu2 %v6665_v56  ;;  %2651 = vmatmul.f32.vlgmr.msra.gmra.mxu3 %v2554_v11  ;;  %v6790_v56 = vpop.f32.mrf.mxu2 }
 0xf3a   :  { %2900 = vmatpush.msrb.mxu0 %v2709_v58  ;;  %2959 = vmatpush.msrb.mxu3 %v2731_v63  ;;  %v6828_v25 = vpop.f32.mrf.mxu1  ;;  %v3032_v63 = vld [vmem:[%s6801_s27 + $0x40] sm:$0xff] }
 0xf3b   :  { %3121 = vmatmul.f32.vlgmr.msra.gmra.mxu2 %v3024_v26  ;;  %v3201_v26 = vld [vmem:[%s6871_s1 + $0xf8] sm:$0xff] }
 0xf3c   :  { %2901 = vmatpush.msrb.mxu0 %v2708_v35  ;;  %2960 = vmatpush.msrb.mxu3 %v2730_v24 }
 0xf3d   :  { %2592 = vmatmul.f32.gmra.mxu0 %v2556_v20 }
 0xf3e   :  { %2902 = vmatpush.msrb.mxu0 %v2707_v1  ;;  %2961 = vmatpush.msrb.mxu3 %v2729_v36  ;;  %v3033_v36 = vld [vmem:[%s6801_s27 + $0x48] sm:$0xff] }
 0xf3f   :  { %3062 = vmatmul.f32.gmra.mxu1 %v3026_v17 }
 0xf40   :  { %2903 = vmatpush.msrb.mxu0 %v2706_v10  ;;  %2962 = vmatpush.msrb.mxu3 %v2728_v41 }
 0xf41   :  { %2654 = vmatmul.f32.gmra.mxu3 %v2555_v14  ;;  %v6806_v30 = vpop.f32.mrf.mxu2  ;;  %v3028_v14 = vld [vmem:[%s6801_s27 + $0x20] sm:$0xff] }
 0xf42   :  { %2904 = vmatpush.msrb.mxu0 %v2705_v38  ;;  %2963 = vmatpush.msrb.mxu3 %v2727_v51  ;;  %v3034_v51 = vld [vmem:[%s6801_s27 + $0x50] sm:$0xff] }
 0xf43   :  { %3124 = vmatmul.f32.gmra.mxu2 %v3025_v12  ;;  %v3199_v12 = vld [vmem:[%s6871_s1 + $0xe8] sm:$0xff] }
 0xf44   :  { %2905 = vmatpush.msrb.mxu0 %v2704_v60  ;;  %2964 = vmatpush.msrb.mxu3 %v2726_v6 }
 0xf45   :  { %2595 = vmatmul.f32.gmra.mxu0 %v2557_v39 }
 0xf46   :  { %2906 = vmatpush.msrb.mxu0 %v2703_v31  ;;  %2965 = vmatpush.msrb.mxu3 %v2725_v29  ;;  %v3035_v29 = vld [vmem:[%s6801_s27 + $0x58] sm:$0xff] }
 0xf47   :  { %3065 = vmatmul.f32.gmra.mxu1 %v3027_v27 }
 0xf48   :  { %2907 = vmatpush.msrb.mxu0 %v2702_v53  ;;  %2966 = vmatpush.msrb.mxu3 %v2724_v57 }
 0xf49   :  { %2657 = vmatmul.f32.gmra.mxu3 %v2556_v20  ;;  %v6818_v5 = vpop.f32.mrf.mxu2  ;;  %v6834_v20 = vpop.f32.mrf.mxu1 }
 0xf4a   :  { %2908 = vmatpush.msrb.mxu0 %v2701_v7  ;;  %2967 = vmatpush.msrb.mxu3 %v2723_v4 }
 0xf4b   :  { %3127 = vmatmul.f32.gmra.mxu2 %v3026_v17  ;;  %v3185_v17 = vld [vmem:[%s6871_s1 + $0x78] sm:$0xff] }
 0xf4c   :  { %2909 = vmatpush.msrb.mxu0 %v2700_v0  ;;  %2968 = vmatpush.msrb.mxu3 %v2722_v37  ;;  %v3036_v37 = vld [vmem:[%s6801_s27 + $0x60] sm:$0xff] }
 0xf4d   :  { %2598 = vmatmul.f32.gmra.mxu0 %v2558_v28 }
 0xf4e   :  { %2969 = vmatpush.msrb.mxu3 %v2721_v50  ;;  %3202 = vmatpush.msra.mxu0 %v3185_v17  ;;  %v3186_v17 = vld [vmem:[%s6871_s1 + $0x80] sm:$0xff] }
 0xf4f   :  { %3068 = vmatmul.f32.gmra.mxu1 %v3028_v14 }
 0xf50   :  { %2970 = vmatpush.msrb.mxu3 %v2720_v3 }
 0xf51   :  { %2660 = vmatmul.f32.gmra.mxu3 %v2557_v39  ;;  %v6826_v22 = vpop.f32.mrf.mxu2 }
 0xf52   :  { %2971 = vmatpush.msrb.mxu3 %v2719_v34 }
 0xf53   :  { %3130 = vmatmul.f32.gmra.mxu2 %v3027_v27  ;;  %v3184_v27 = vld [vmem:[%s6871_s1 + $0x70] sm:$0xff] }
 0xf54   :  { %2972 = vmatpush.msrb.mxu3 %v2718_v49  ;;  %v3200_v49 = vld [vmem:[%s6871_s1 + $0xf0] sm:$0xff]  ;;  %3203 = vmatpush.msra.mxu0 %v3184_v27 }
 0xf55   :  { %2601 = vmatmul.f32.gmra.mxu0 %v2559_v59 }
 0xf56   :  { %2973 = vmatpush.msrb.mxu3 %v2717_v2 }
 0xf58   :  { %2974 = vmatpush.msrb.mxu3 %v2716_v9 }
 0xf59   :  { %2663 = vmatmul.f32.gmra.mxu3 %v2558_v28  ;;  %v6831_v33 = vpop.f32.mrf.mxu2 }
 0xf5a   :  { %3267 = vmatpush.msra.mxu3 %v3201_v26  ;;  %v3188_v26 = vld [vmem:[%s6871_s1 + $0x90] sm:$0xff] }
 0xf5b   :  { %3133 = vmatmul.f32.gmra.mxu2 %v3028_v14  ;;  %v3038_v14 = vld [vmem:[%s6801_s27 + $0x70] sm:$0xff] }
 0xf5c   :  { %3268 = vmatpush.msra.mxu3 %v3200_v49 }
 0xf5d   :  { %2604 = vmatmul.f32.gmra.mxu0 %v2560_v42 }
 0xf5e   :  { %3269 = vmatpush.msra.mxu3 %v3199_v12 }
 0xf61   :  { %2666 = vmatmul.f32.gmra.mxu3 %v2559_v59  ;;  %v6836_v39 = vpop.f32.mrf.mxu2 }
 0xf65   :  { %2607 = vmatmul.f32.gmra.mxu0 %v2561_v43 }
 0xf69   :  { %2669 = vmatmul.f32.gmra.mxu3 %v2560_v42  ;;  %v3029_v42 = vld [vmem:[%s6801_s27 + $0x28] sm:$0xff]  ;;  %v6841_v18 = vpop.f32.mrf.mxu2 }
 0xf6a   :  { %3136 = vmatmul.f32.gmra.mxu2 %v3029_v42  ;;  %3071 = vmatmul.f32.gmra.mxu1 %v3029_v42  ;;  %v3196_v42 = vld [vmem:[%s6871_s1 + $0xd0] sm:$0xff] }
 0xf6d   :  { %2610 = vmatmul.f32.gmra.mxu0 %v2562_v40 }
 0xf71   :  { %2672 = vmatmul.f32.gmra.mxu3 %v2561_v43  ;;  %v6839_v43 = vpop.f32.mrf.mxu1  ;;  %v6847_v58 = vpop.f32.mrf.mxu2 }
 0xf72   :  { %3139 = vmatmul.f32.gmra.mxu2 %v3030_v19  ;;  %3074 = vmatmul.f32.gmra.mxu1 %v3030_v19  ;;  %v3182_v19 = vld [vmem:[%s6871_s1 + $0x60] sm:$0xff] }
 0xf75   :  { %2613 = vmatmul.f32.gmra.mxu0 %v2563_v32 }
 0xf79   :  { %2675 = vmatmul.f32.gmra.mxu3 %v2562_v40  ;;  %v6852_v10 = vpop.f32.mrf.mxu2 }
 0xf7a   :  { %3142 = vmatmul.f32.gmra.mxu2 %v3031_v8  ;;  %3077 = vmatmul.f32.gmra.mxu1 %v3031_v8  ;;  %v3181_v8 = vld [vmem:[%s6871_s1 + $0x58] sm:$0xff] }
 0xf7d   :  { %2616 = vmatmul.f32.gmra.mxu0 %v2564_v62 }
 0xf81   :  { %2678 = vmatmul.f32.gmra.mxu3 %v2563_v32  ;;  %v6844_v32 = vpop.f32.mrf.mxu1  ;;  %v6857_v60 = vpop.f32.mrf.mxu2 }
 0xf82   :  { %3145 = vmatmul.f32.gmra.mxu2 %v3032_v63  ;;  %3080 = vmatmul.f32.gmra.mxu1 %v3032_v63  ;;  %v3193_v63 = vld [vmem:[%s6871_s1 + $0xb8] sm:$0xff] }
 0xf85   :  { %2619 = vmatmul.f32.gmra.mxu0 %v2565_v46 }
 0xf89   :  { %2681 = vmatmul.f32.gmra.mxu3 %v2564_v62  ;;  %v6849_v1 = vpop.f32.mrf.mxu1 }
 0xf8a   :  { %3148 = vmatmul.f32.gmra.mxu2 %v3033_v36  ;;  %3083 = vmatmul.f32.gmra.mxu1 %v3033_v36  ;;  %v3192_v36 = vld [vmem:[%s6871_s1 + $0xb0] sm:$0xff] }
 0xf8d   :  { %2622 = vmatmul.f32.gmra.mxu0 %v2566_v47 }
 0xf91   :  { %2684 = vmatmul.f32.gmra.mxu3 %v2565_v46  ;;  %v6855_v46 = vpop.f32.mrf.mxu1 }
 0xf92   :  { %3151 = vmatmul.f32.gmra.mxu2 %v3034_v51  ;;  %3086 = vmatmul.f32.gmra.mxu1 %v3034_v51  ;;  %v3178_v51 = vld [vmem:[%s6871_s1 + $0x40] sm:$0xff] }
 0xf95   :  { %2625 = vmatmul.f32.gmra.mxu0 %v2567_v21 }
 0xf99   :  { %2687 = vmatmul.f32.gmra.mxu3 %v2566_v47  ;;  %v6860_v53 = vpop.f32.mrf.mxu1  ;;  %v6862_v47 = vpop.f32.mrf.mxu2 }
 0xf9a   :  { %3154 = vmatmul.f32.gmra.mxu2 %v3035_v29  ;;  %3089 = vmatmul.f32.gmra.mxu1 %v3035_v29 }
 0xf9d   :  { %2628 = vmatmul.f32.gmra.mxu0 %v2568_v52 }
 0xfa1   :  { %2690 = vmatmul.f32.gmra.mxu3 %v2567_v21  ;;  %v6865_v57 = vpop.f32.mrf.mxu1  ;;  %v6873_v21 = vpop.f32.mrf.mxu2 }
 0xfa2   :  { %3157 = vmatmul.f32.gmra.mxu2 %v3036_v37  ;;  %3092 = vmatmul.f32.gmra.mxu1 %v3036_v37  ;;  %v3176_v37 = vld [vmem:[%s6871_s1 + $0x30] sm:$0xff] }
 0xfa5   :  { %2631 = vmatmul.f32.gmra.mxu0 %v2569_v15 }
 0xfa9   :  { %2693 = vmatmul.f32.gmra.mxu3 %v2568_v52  ;;  %v6875_v34 = vpop.f32.mrf.mxu1  ;;  %v3037_v52 = vld [vmem:[%s6801_s27 + $0x68] sm:$0xff]  ;;  %v6880_v2 = vpop.f32.mrf.mxu2 }
 0xfaa   :  { %v2587_v23 = vpop.f32.mrf.mxu0  ;;  %3160 = vmatmul.f32.gmra.mxu2 %v3037_v52  ;;  %3095 = vmatmul.f32.gmra.mxu1 %v3037_v52  ;;  %8111 = vst [vmem:[#allocation2_spill] sm:$0xff] %v6880_v2  ;;  %v3174_v52 = vld [vmem:[%s6871_s1 + $0x20] sm:$0xff] }
 0xfad   :  { %2910 = vmatmul.f32.vlgmr.msrb.gmra.mxu0 %v2587_v23  ;;  %v3198_v23 = vld [vmem:[%s6871_s1 + $0xe0] sm:$0xff] }
 0xfae   :  { %3270 = vmatpush.msra.mxu3 %v3198_v23 }
 0xfb1   :  { %2696 = vmatmul.f32.gmra.mxu3 %v2569_v15 }
 0xfb2   :  { %v2590_v11 = vpop.f32.mrf.mxu0  ;;  %3163 = vmatmul.f32.gmra.mxu2 %v3038_v14  ;;  %3098 = vmatmul.f32.gmra.mxu1 %v3038_v14  ;;  %v3171_v14 = vld [vmem:[%s6871_s1 + $0x8] sm:$0xff] }
 0xfb5   :  { %2913 = vmatmul.f32.gmra.mxu0 %v2590_v11  ;;  %v3197_v11 = vld [vmem:[%s6871_s1 + $0xd8] sm:$0xff] }
 0xfb6   :  { %3271 = vmatpush.msra.mxu3 %v3197_v11  ;;  %v3172_v11 = vld [vmem:[%s6871_s1 + $0x10] sm:$0xff] }
 0xfb8   :  { %3272 = vmatpush.msra.mxu3 %v3196_v42  ;;  %v3170_v42 = vld [vmem:[%s6871_s1] sm:$0xff] }
 0xfba   :  { %v2593_v28 = vpop.f32.mrf.mxu0 }
 0xfbc   :  { %v2652_v59 = vpop.f32.mrf.mxu3 }
 0xfbd   :  { %2916 = vmatmul.f32.gmra.mxu0 %v2593_v28  ;;  %2975 = vmatmul.f32.vlgmr.msrb.gmra.mxu3 %v2652_v59  ;;  %v6888_v28 = vpop.f32.mrf.mxu1  ;;  %v3183_v59 = vld [vmem:[%s6871_s1 + $0x68] sm:$0xff] }
 0xfbe   :  { %8112 = vst [vmem:[#allocation3_spill] sm:$0xff] %v6888_v28  ;;  %3204 = vmatpush.msra.mxu0 %v3183_v59 }
 0xfc0   :  { %3205 = vmatpush.msra.mxu0 %v3182_v19 }
 0xfc2   :  { %v2596_v40 = vpop.f32.mrf.mxu0  ;;  %3206 = vmatpush.msra.mxu0 %v3181_v8 }
 0xfc4   :  { %v2655_v45 = vpop.f32.mrf.mxu3 }
 0xfc5   :  { %2919 = vmatmul.f32.gmra.mxu0 %v2596_v40  ;;  %2978 = vmatmul.f32.gmra.mxu3 %v2655_v45  ;;  %v6892_v40 = vpop.f32.mrf.mxu2 }
 0xfc6   :  { %8113 = vst [vmem:[#allocation4_spill] sm:$0xff] %v6892_v40 }
 0xfca   :  { %v2599_v48 = vpop.f32.mrf.mxu0 }
 0xfcc   :  { %v2658_v54 = vpop.f32.mrf.mxu3 }
 0xfcd   :  { %2922 = vmatmul.f32.gmra.mxu0 %v2599_v48  ;;  %2981 = vmatmul.f32.gmra.mxu3 %v2658_v54  ;;  %v3195_v48 = vld [vmem:[%s6871_s1 + $0xc8] sm:$0xff] }
 0xfce   :  { %3273 = vmatpush.msra.mxu3 %v3195_v48 }
 0xfd2   :  { %v2602_v35 = vpop.f32.mrf.mxu0 }
 0xfd4   :  { %v2661_v62 = vpop.f32.mrf.mxu3 }
 0xfd5   :  { %2925 = vmatmul.f32.gmra.mxu0 %v2602_v35  ;;  %2984 = vmatmul.f32.gmra.mxu3 %v2661_v62  ;;  %v3194_v35 = vld [vmem:[%s6871_s1 + $0xc0] sm:$0xff]  ;;  %v3180_v62 = vld [vmem:[%s6871_s1 + $0x50] sm:$0xff] }
 0xfd6   :  { %3274 = vmatpush.msra.mxu3 %v3194_v35  ;;  %3207 = vmatpush.msra.mxu0 %v3180_v62 }
 0xfd8   :  { %3275 = vmatpush.msra.mxu3 %v3193_v63 }
 0xfda   :  { %v2605_v24 = vpop.f32.mrf.mxu0  ;;  %3276 = vmatpush.msra.mxu3 %v3192_v36 }
 0xfdc   :  { %v2664_v38 = vpop.f32.mrf.mxu3 }
 0xfdd   :  { %2928 = vmatmul.f32.gmra.mxu0 %v2605_v24  ;;  %2987 = vmatmul.f32.gmra.mxu3 %v2664_v38  ;;  %v3039_v24 = vld [vmem:[%s6801_s27 + $0x78] sm:$0xff]  ;;  %v3179_v38 = vld [vmem:[%s6871_s1 + $0x48] sm:$0xff] }
 0xfde   :  { %3166 = vmatmul.f32.gmra.mxu2 %v3039_v24  ;;  %3101 = vmatmul.f32.gmra.mxu1 %v3039_v24 }
 0xfdf   :  { %3208 = vmatpush.msra.mxu0 %v3179_v38 }
 0xfe1   :  { %3209 = vmatpush.msra.mxu0 %v3178_v51 }
 0xfe2   :  { %v2608_v41 = vpop.f32.mrf.mxu0 }
 0xfe4   :  { %v2667_v31 = vpop.f32.mrf.mxu3 }
 0xfe5   :  { %2931 = vmatmul.f32.gmra.mxu0 %v2608_v41  ;;  %2990 = vmatmul.f32.gmra.mxu3 %v2667_v31  ;;  %v6903_v41 = vpop.f32.mrf.mxu1 }
 0xfe6   :  { %8114 = vst [vmem:[#allocation5_spill] sm:$0xff] %v6903_v41 }
 0xfea   :  { %v2611_v6 = vpop.f32.mrf.mxu0 }
 0xfec   :  { %v2670_v7 = vpop.f32.mrf.mxu3 }
 0xfed   :  { %2934 = vmatmul.f32.gmra.mxu0 %v2611_v6  ;;  %2993 = vmatmul.f32.gmra.mxu3 %v2670_v7  ;;  %v3191_v6 = vld [vmem:[%s6871_s1 + $0xa8] sm:$0xff]  ;;  %v6907_v7 = vpop.f32.mrf.mxu2  ;;  %v6917_v12 = vpop.f32.mrf.mxu1 }
 0xfee   :  { %8115 = vst [vmem:[#allocation6_spill] sm:$0xff] %v6907_v7  ;;  %3277 = vmatpush.msra.mxu3 %v3191_v6  ;;  %v7006_v7 = vld [vmem:[%s6965_s5 + $0x48] sm:$0xff] }
 0xfef   :  { %8116 = vst [vmem:[#allocation7_spill] sm:$0xff] %v6917_v12  ;;  %v7026_v12 = vld [vmem:[%s6965_s5 + $0x30] sm:$0xff] }
 0xff0   :  { %8124 = vst [vmem:[#allocation15_spill] sm:$0xff] %v7006_v7 }
 0xff1   :  { %8128 = vst [vmem:[#allocation19_spill] sm:$0xff] %v7026_v12 }
 0xff2   :  { %v2614_v0 = vpop.f32.mrf.mxu0 }
 0xff4   :  { %v2673_v4 = vpop.f32.mrf.mxu3 }
 0xff5   :  { %2937 = vmatmul.f32.gmra.mxu0 %v2614_v0  ;;  %2996 = vmatmul.f32.gmra.mxu3 %v2673_v4  ;;  %v3177_v0 = vld [vmem:[%s6871_s1 + $0x38] sm:$0xff]  ;;  %v3190_v4 = vld [vmem:[%s6871_s1 + $0xa0] sm:$0xff]  ;;  %v3122_v27 = vpop.f32.mrf.mxu2 }
 0xff6   :  { %3210 = vmatpush.msra.mxu0 %v3177_v0  ;;  %3278 = vmatpush.msra.mxu3 %v3190_v4 }
 0xff8   :  { %3211 = vmatpush.msra.mxu0 %v3176_v37 }
 0xffa   :  { %v2617_v50 = vpop.f32.mrf.mxu0 }
 0xffc   :  { %v2676_v3 = vpop.f32.mrf.mxu3 }
 0xffd   :  { %2940 = vmatmul.f32.gmra.mxu0 %v2617_v50  ;;  %2999 = vmatmul.f32.gmra.mxu3 %v2676_v3  ;;  %v3189_v50 = vld [vmem:[%s6871_s1 + $0x98] sm:$0xff]  ;;  %v3175_v3 = vld [vmem:[%s6871_s1 + $0x28] sm:$0xff]  ;;  %v3125_v48 = vpop.f32.mrf.mxu2 }
 0xffe   :  { %3279 = vmatpush.msra.mxu3 %v3189_v50  ;;  %3212 = vmatpush.msra.mxu0 %v3175_v3 }
0x1000   :  { %3280 = vmatpush.msra.mxu3 %v3188_v26  ;;  %3213 = vmatpush.msra.mxu0 %v3174_v52 }
0x1002   :  { %v2620_v9 = vpop.f32.mrf.mxu0 }
0x1004   :  { %v2679_v15 = vpop.f32.mrf.mxu3 }
0x1005   :  { %2943 = vmatmul.f32.gmra.mxu0 %v2620_v9  ;;  %3002 = vmatmul.f32.gmra.mxu3 %v2679_v15  ;;  %v3187_v9 = vld [vmem:[%s6871_s1 + $0x88] sm:$0xff]  ;;  %v3173_v15 = vld [vmem:[%s6871_s1 + $0x18] sm:$0xff]  ;;  %v3128_v62 = vpop.f32.mrf.mxu2 }
0x1006   :  { %3281 = vmatpush.msra.mxu3 %v3187_v9  ;;  %3214 = vmatpush.msra.mxu0 %v3173_v15 }
0x1008   :  { %3282 = vmatpush.msra.mxu3 %v3186_v17  ;;  %3215 = vmatpush.msra.mxu0 %v3172_v11 }
0x100a   :  { %v2623_v45 = vpop.f32.mrf.mxu0  ;;  %3216 = vmatpush.msra.mxu0 %v3171_v14 }
0x100c   :  { %v2682_v54 = vpop.f32.mrf.mxu3  ;;  %3217 = vmatpush.msra.mxu0 %v3170_v42 }
0x100d   :  { %2946 = vmatmul.f32.gmra.mxu0 %v2623_v45  ;;  %3005 = vmatmul.f32.gmra.mxu3 %v2682_v54  ;;  %v3057_v45 = vpop.f32.mrf.mxu1 }
0x1012   :  { %v2626_v31 = vpop.f32.mrf.mxu0 }
0x1014   :  { %v2685_v29 = vpop.f32.mrf.mxu3 }
0x1015   :  { %2949 = vmatmul.f32.gmra.mxu0 %v2626_v31  ;;  %3008 = vmatmul.f32.gmra.mxu3 %v2685_v29  ;;  %v3060_v8 = vpop.f32.mrf.mxu1  ;;  %v3131_v31 = vpop.f32.mrf.mxu2 }
0x101a   :  { %v2629_v49 = vpop.f32.mrf.mxu0 }
0x101c   :  { %v2688_v23 = vpop.f32.mrf.mxu3 }
0x101d   :  { %2952 = vmatmul.f32.gmra.mxu0 %v2629_v49  ;;  %3011 = vmatmul.f32.gmra.mxu3 %v2688_v23  ;;  %v3063_v24 = vpop.f32.mrf.mxu1  ;;  %v3134_v4 = vpop.f32.mrf.mxu2 }
0x1022   :  { %v2632_v59 = vpop.f32.mrf.mxu0 }
0x1024   :  { %v2691_v19 = vpop.f32.mrf.mxu3 }
0x1025   :  { %2955 = vmatmul.f32.gmra.mxu0 %v2632_v59  ;;  %3014 = vmatmul.f32.gmra.mxu3 %v2691_v19  ;;  %v3066_v51 = vpop.f32.mrf.mxu1  ;;  %v3137_v26 = vpop.f32.mrf.mxu2 }
0x102a   :  { %v6924_v54 = vpop.f32.mrf.mxu0 }
0x102c   :  { %v2694_v35 = vpop.f32.mrf.mxu3 }
0x102d   :  { %3017 = vmatmul.f32.gmra.mxu3 %v2694_v35  ;;  %3218 = vmatmul.f32.vlgmr.msra.gmra.mxu0 %v3057_v45  ;;  %v3069_v0 = vpop.f32.mrf.mxu1  ;;  %v3140_v17 = vpop.f32.mrf.mxu2 }
0x1032   :  { %v6926_v63 = vpop.f32.mrf.mxu0 }
0x1034   :  { %v2697_v38 = vpop.f32.mrf.mxu3 }
0x1035   :  { %3020 = vmatmul.f32.gmra.mxu3 %v2697_v38  ;;  %3221 = vmatmul.f32.gmra.mxu0 %v3060_v8  ;;  %v3072_v3 = vpop.f32.mrf.mxu1  ;;  %v3143_v59 = vpop.f32.mrf.mxu2 }
0x103a   :  { %v6928_v36 = vpop.f32.mrf.mxu0 }
0x103d   :  { %3283 = vmatmul.f32.vlgmr.msra.gmra.mxu3 %v3122_v27  ;;  %3224 = vmatmul.f32.gmra.mxu0 %v3063_v24  ;;  %v3075_v9 = vpop.f32.mrf.mxu1  ;;  %v3146_v8 = vpop.f32.mrf.mxu2 }
0x1040   :  { %v6930_v6 = vpop.f32.mrf.mxu3 }
0x1042   :  { %v6932_v29 = vpop.f32.mrf.mxu0 }
0x1045   :  { %3286 = vmatmul.f32.gmra.mxu3 %v3125_v48  ;;  %3227 = vmatmul.f32.gmra.mxu0 %v3066_v51  ;;  %v3078_v27 = vpop.f32.mrf.mxu1  ;;  %v3149_v38 = vpop.f32.mrf.mxu2 }
0x1048   :  { %v6934_v37 = vpop.f32.mrf.mxu3 }
0x104a   :  { %v6936_v50 = vpop.f32.mrf.mxu0 }
0x104d   :  { %3289 = vmatmul.f32.gmra.mxu3 %v3128_v62  ;;  %3230 = vmatmul.f32.gmra.mxu0 %v3069_v0  ;;  %v3081_v42 = vpop.f32.mrf.mxu1 }
0x1050   :  { %v6938_v49 = vpop.f32.mrf.mxu3 }
0x1052   :  { %v6940_v52 = vpop.f32.mrf.mxu0 }
0x1055   :  { %3292 = vmatmul.f32.gmra.mxu3 %v3131_v31  ;;  %3233 = vmatmul.f32.gmra.mxu0 %v3072_v3  ;;  %v3084_v48 = vpop.f32.mrf.mxu1  ;;  %v3152_v3 = vpop.f32.mrf.mxu2 }
0x1058   :  { %v6942_v15 = vpop.f32.mrf.mxu3 }
0x105a   :  { %v6944_v23 = vpop.f32.mrf.mxu0 }
0x105d   :  { %3295 = vmatmul.f32.gmra.mxu3 %v3134_v4  ;;  %3236 = vmatmul.f32.gmra.mxu0 %v3075_v9  ;;  %v3087_v24 = vpop.f32.mrf.mxu1 }
0x1060   :  { %v6946_v11 = vpop.f32.mrf.mxu3 }
0x1062   :  { %v6948_v14 = vpop.f32.mrf.mxu0 }
0x1065   :  { %3298 = vmatmul.f32.gmra.mxu3 %v3137_v26  ;;  %3239 = vmatmul.f32.gmra.mxu0 %v3078_v27  ;;  %v3090_v0 = vpop.f32.mrf.mxu1 }
0x1068   :  { %v6950_v45 = vpop.f32.mrf.mxu3 }
0x106a   :  { %v6952_v19 = vpop.f32.mrf.mxu0 }
0x106d   :  { %3301 = vmatmul.f32.gmra.mxu3 %v3140_v17  ;;  %3242 = vmatmul.f32.gmra.mxu0 %v3081_v42  ;;  %v3093_v9 = vpop.f32.mrf.mxu1  ;;  %v6972_v17 = vld [vmem:[%s6965_s5 + $0x78] sm:$0xff]  ;;  %v6983_v42 = vld [vmem:[%s6965_s5 + $0x68] sm:$0xff] }
0x106e   :  { %8117 = vst [vmem:[#allocation8_spill] sm:$0xff] %v6972_v17  ;;  %3364 = vmatpush.msrb.mxu1 %v6972_v17  ;;  %3482 = vmatpush.msrb.mxu2 %v6972_v17  ;;  %v7002_v17 = vld [vmem:[%s6965_s5 + $0x50] sm:$0xff] }
0x106f   :  { %8119 = vst [vmem:[#allocation10_spill] sm:$0xff] %v6983_v42 }
0x1070   :  { %v6954_v35 = vpop.f32.mrf.mxu3  ;;  %8123 = vst [vmem:[#allocation14_spill] sm:$0xff] %v7002_v17 }
0x1072   :  { %v6956_v62 = vpop.f32.mrf.mxu0 }
0x1075   :  { %3304 = vmatmul.f32.gmra.mxu3 %v3143_v59  ;;  %3245 = vmatmul.f32.gmra.mxu0 %v3084_v48  ;;  %v6979_v59 = vld [vmem:[%s6965_s5 + $0x70] sm:$0xff] }
0x1076   :  { %8118 = vst [vmem:[#allocation9_spill] sm:$0xff] %v6979_v59  ;;  %3365 = vmatpush.msrb.mxu1 %v6979_v59  ;;  %3483 = vmatpush.msrb.mxu2 %v6979_v59 }
0x1078   :  { %v6958_v31 = vpop.f32.mrf.mxu3  ;;  %3366 = vmatpush.msrb.mxu1 %v6983_v42  ;;  %3484 = vmatpush.msrb.mxu2 %v6983_v42 }
0x107a   :  { %v6960_v51 = vpop.f32.mrf.mxu0 }
0x107d   :  { %3307 = vmatmul.f32.gmra.mxu3 %v3146_v8  ;;  %3248 = vmatmul.f32.gmra.mxu0 %v3087_v24  ;;  %v3155_v8 = vpop.f32.mrf.mxu2  ;;  %v6990_v24 = vld [vmem:[%s6965_s5 + $0x60] sm:$0xff] }
0x107e   :  { %8121 = vst [vmem:[#allocation12_spill] sm:$0xff] %v6990_v24  ;;  %3367 = vmatpush.msrb.mxu1 %v6990_v24  ;;  %3485 = vmatpush.msrb.mxu2 %v6990_v24 }
0x1080   :  { %v6967_v4 = vpop.f32.mrf.mxu3 }
0x1082   :  { %v6969_v26 = vpop.f32.mrf.mxu0 }
0x1085   :  { %3310 = vmatmul.f32.gmra.mxu3 %v3149_v38  ;;  %3251 = vmatmul.f32.gmra.mxu0 %v3090_v0  ;;  %v6994_v38 = vld [vmem:[%s6965_s5 + $0x58] sm:$0xff]  ;;  %v3096_v0 = vpop.f32.mrf.mxu1  ;;  %v3158_v24 = vpop.f32.mrf.mxu2 }
0x1086   :  { %8122 = vst [vmem:[#allocation13_spill] sm:$0xff] %v6994_v38  ;;  %3368 = vmatpush.msrb.mxu1 %v6994_v38  ;;  %3486 = vmatpush.msrb.mxu2 %v6994_v38  ;;  %v7018_v38 = vld [vmem:[%s6965_s5 + $0x38] sm:$0xff] }
0x1087   :  { %8127 = vst [vmem:[#allocation18_spill] sm:$0xff] %v7018_v38 }
0x1088   :  { %v6976_v27 = vpop.f32.mrf.mxu3  ;;  %3369 = vmatpush.msrb.mxu1 %v7002_v17  ;;  %3487 = vmatpush.msrb.mxu2 %v7002_v17 }
0x108a   :  { %v6986_v48 = vpop.f32.mrf.mxu0  ;;  %3370 = vmatpush.msrb.mxu1 %v7006_v7  ;;  %3488 = vmatpush.msrb.mxu2 %v7006_v7  ;;  %v7030_v7 = vld [vmem:[%s6965_s5 + $0x28] sm:$0xff] }
0x108b   :  { %8120 = vst [vmem:[#allocation11_spill] sm:$0xff] %v6986_v48 }
0x108c   :  { %8129 = vst [vmem:[#allocation20_spill] sm:$0xff] %v7030_v7 }
0x108d   :  { %3313 = vmatmul.f32.gmra.mxu3 %v3152_v3  ;;  %3254 = vmatmul.f32.gmra.mxu0 %v3093_v9  ;;  %v7013_v9 = vld [vmem:[%s6965_s5 + $0x40] sm:$0xff]  ;;  %v3099_v17 = vpop.f32.mrf.mxu1 }
0x108e   :  { %8126 = vst [vmem:[#allocation17_spill] sm:$0xff] %v7013_v9  ;;  %3371 = vmatpush.msrb.mxu1 %v7013_v9  ;;  %3489 = vmatpush.msrb.mxu2 %v7013_v9  ;;  %v3161_v9 = vpop.f32.mrf.mxu2 }
0x1090   :  { %v6998_v59 = vpop.f32.mrf.mxu3  ;;  %3372 = vmatpush.msrb.mxu1 %v7018_v38  ;;  %3490 = vmatpush.msrb.mxu2 %v7018_v38  ;;  %v7042_v38 = vld [vmem:[%s6965_s5 + $0x18] sm:$0xff] }
0x1091   :  { %8132 = vst [vmem:[#allocation23_spill] sm:$0xff] %v7042_v38 }
0x1092   :  { %v7008_v3 = vpop.f32.mrf.mxu0  ;;  %3373 = vmatpush.msrb.mxu1 %v7026_v12  ;;  %3491 = vmatpush.msrb.mxu2 %v7026_v12  ;;  %v7050_v12 = vld [vmem:[%s6965_s5 + $0x10] sm:$0xff] }
0x1093   :  { %8125 = vst [vmem:[#allocation16_spill] sm:$0xff] %v7008_v3 }
0x1094   :  { %3374 = vmatpush.msrb.mxu1 %v7030_v7  ;;  %3492 = vmatpush.msrb.mxu2 %v7030_v7  ;;  %8134 = vst [vmem:[#allocation25_spill] sm:$0xff] %v7050_v12 }
0x1095   :  { %3316 = vmatmul.f32.gmra.mxu3 %v3155_v8  ;;  %3257 = vmatmul.f32.gmra.mxu0 %v3096_v0  ;;  %v7037_v0 = vld [vmem:[%s6965_s5 + $0x20] sm:$0xff]  ;;  %v3102_v7 = vpop.f32.mrf.mxu1 }
0x1096   :  { %8131 = vst [vmem:[#allocation22_spill] sm:$0xff] %v7037_v0  ;;  %3375 = vmatpush.msrb.mxu1 %v7037_v0  ;;  %3493 = vmatpush.msrb.mxu2 %v7037_v0  ;;  %v3164_v0 = vpop.f32.mrf.mxu2 }
0x1098   :  { %v7022_v42 = vpop.f32.mrf.mxu3  ;;  %3376 = vmatpush.msrb.mxu1 %v7042_v38  ;;  %3494 = vmatpush.msrb.mxu2 %v7042_v38 }
0x109a   :  { %v7032_v8 = vpop.f32.mrf.mxu0  ;;  %3377 = vmatpush.msrb.mxu1 %v7050_v12  ;;  %3495 = vmatpush.msrb.mxu2 %v7050_v12 }
0x109b   :  { %8130 = vst [vmem:[#allocation21_spill] sm:$0xff] %v7032_v8 }
0x109d   :  { %3319 = vmatmul.f32.gmra.mxu3 %v3158_v24  ;;  %3260 = vmatmul.f32.gmra.mxu0 %v3099_v17  ;;  %v7057_v17 = vld [vmem:[%s6965_s5 + $0x8] sm:$0xff]  ;;  %v7061_v24 = vld [vmem:[%s6965_s5] sm:$0xff] }
0x109e   :  { %8136 = vst [vmem:[#allocation27_spill] sm:$0xff] %v7057_v17  ;;  %3378 = vmatpush.msrb.mxu1 %v7057_v17  ;;  %3496 = vmatpush.msrb.mxu2 %v7057_v17  ;;  %v3167_v12 = vpop.f32.mrf.mxu2 }
0x109f   :  { %8137 = vst [vmem:[#allocation28_spill] sm:$0xff] %v7061_v24 }
0x10a0   :  { %v7046_v8 = vpop.f32.mrf.mxu3  ;;  %3379 = vmatpush.msrb.mxu1 %v7061_v24  ;;  %3497 = vmatpush.msrb.mxu2 %v7061_v24 }
0x10a1   :  { %8133 = vst [vmem:[#allocation24_spill] sm:$0xff] %v7046_v8 }
0x10a2   :  { %v7053_v40 = vpop.f32.mrf.mxu0 }
0x10a3   :  { %8135 = vst [vmem:[#allocation26_spill] sm:$0xff] %v7053_v40 }
0x10a5   :  { %3322 = vmatmul.f32.gmra.mxu3 %v3161_v9  ;;  %3263 = vmatmul.f32.gmra.mxu0 %v3102_v7  ;;  %v2847_v7 = vadd.f32 %v6773_v44, %v6784_v61 }
0x10a7   :  { %v2912_v9 = vadd.f32 %v6924_v54, %v2847_v7 }
0x10a8   :  { %v7067_v38 = vpop.f32.mrf.mxu3 }
0x10a9   :  { %8138 = vst [vmem:[#allocation29_spill] sm:$0xff] %v7067_v38  ;;  %v2977_v24 = vadd.f32 %v6930_v6, %v2912_v9 }
0x10aa   :  { %v3219_v40 = vpop.f32.mrf.mxu0 }
0x10ad   :  { %3325 = vmatmul.f32.gmra.mxu3 %v3164_v0  ;;  %v2850_v0 = vadd.f32 %v6790_v56, %v6803_v55 }
0x10b0   :  { %v7069_v41 = vpop.f32.mrf.mxu3 }
0x10b1   :  { %8139 = vst [vmem:[#allocation30_spill] sm:$0xff] %v7069_v41 }
0x10b2   :  { %v3222_v3 = vpop.f32.mrf.mxu0 }
0x10b5   :  { %3328 = vmatmul.f32.gmra.mxu3 %v3167_v12  ;;  %v2915_v12 = vadd.f32 %v6926_v63, %v2850_v0 }
0x10b7   :  { %v2980_v41 = vadd.f32 %v6934_v37, %v2915_v12 }
0x10b8   :  { %v7071_v2 = vpop.f32.mrf.mxu3 }
0x10b9   :  { %8140 = vst [vmem:[#allocation31_spill] sm:$0xff] %v7071_v2 }
0x10ba   :  { %v3225_v28 = vpop.f32.mrf.mxu0 }
0x10c0   :  { %v3284_v17 = vpop.f32.mrf.mxu3 }
0x10c1   :  { %v3285_v38 = vadd.f32 %v3284_v17, %v3219_v40  ;;  %v2853_v40 = vadd.f32 %v6806_v30, %v6814_v13 }
0x10c2   :  { %v3228_v8 = vpop.f32.mrf.mxu0 }
0x10c3   :  { %v7077_v48 = vadd.f32 %v3285_v38, %v2977_v24  ;;  %v2918_v6 = vadd.f32 %v6928_v36, %v2853_v40 }
0x10c5   :  { %3380 = vmatmul.f32.vlgmr.msrb.gmra.mxu1 %v7077_v48  ;;  %v2983_v56 = vadd.f32 %v6938_v49, %v2918_v6 }
0x10c8   :  { %v3287_v2 = vpop.f32.mrf.mxu3 }
0x10c9   :  { %v3288_v44 = vadd.f32 %v3287_v2, %v3222_v3  ;;  %v2856_v2 = vadd.f32 %v6818_v5, %v6823_v16 }
0x10ca   :  { %v3231_v61 = vpop.f32.mrf.mxu0 }
0x10cb   :  { %v7084_v54 = vadd.f32 %v3288_v44, %v2980_v41  ;;  %v2921_v41 = vadd.f32 %v6932_v29, %v2856_v2  ;;  %v2862_v29 = vadd.f32 %v6831_v33, %v6834_v20 }
0x10cd   :  { %3383 = vmatmul.f32.gmra.mxu1 %v7084_v54  ;;  %v2986_v30 = vadd.f32 %v6942_v15, %v2921_v41 }
0x10d0   :  { %v3290_v38 = vpop.f32.mrf.mxu3 }
0x10d1   :  { %v3291_v55 = vadd.f32 %v3290_v38, %v3225_v28  ;;  %v2859_v28 = vadd.f32 %v6826_v22, %v6828_v25 }
0x10d2   :  { %v3234_v17 = vpop.f32.mrf.mxu0 }
0x10d3   :  { %v7091_v63 = vadd.f32 %v3291_v55, %v2983_v56  ;;  %v2924_v49 = vadd.f32 %v6936_v50, %v2859_v28  ;;  %v2865_v50 = vadd.f32 %v6836_v39, %v6839_v43 }
0x10d5   :  { %3386 = vmatmul.f32.gmra.mxu1 %v7091_v63  ;;  %v2989_v5 = vadd.f32 %v6946_v11, %v2924_v49  ;;  %v2930_v11 = vadd.f32 %v6944_v23, %v2865_v50 }
0x10d7   :  { %v2995_v20 = vadd.f32 %v6954_v35, %v2930_v11  ;;  %v2871_v35 = vadd.f32 %v6847_v58, %v6849_v1 }
0x10d8   :  { %v3293_v37 = vpop.f32.mrf.mxu3 }
0x10d9   :  { %v3294_v13 = vadd.f32 %v3293_v37, %v3228_v8  ;;  %v2927_v8 = vadd.f32 %v6940_v52, %v2862_v29  ;;  %v2868_v52 = vadd.f32 %v6841_v18, %v6844_v32  ;;  %v2936_v38 = vadd.f32 %v6952_v19, %v2871_v35 }
0x10da   :  { %v3237_v36 = vpop.f32.mrf.mxu0  ;;  %v2877_v19 = vadd.f32 %v6857_v60, %v6860_v53 }
0x10db   :  { %v7098_v3 = vadd.f32 %v3294_v13, %v2986_v30  ;;  %v2992_v22 = vadd.f32 %v6950_v45, %v2927_v8  ;;  %v2933_v45 = vadd.f32 %v6948_v14, %v2868_v52  ;;  %v3001_v18 = vadd.f32 %v6967_v4, %v2936_v38  ;;  %v8144_v8 = vld [vmem:[#allocation2_spill] sm:$0xff]  ;;  %v8149_v52 = vld [vmem:[#allocation21_spill] sm:$0xff]  ;;  %v8151_v38 = vld [vmem:[#allocation7_spill] sm:$0xff] }
0x10dc   :  { %v2942_v37 = vadd.f32 %v6960_v51, %v2877_v19  ;;  %v2883_v51 = vadd.f32 %v6873_v21, %v6875_v34  ;;  %v8146_v21 = vld [vmem:[#allocation29_spill] sm:$0xff] }
0x10dd   :  { %3389 = vmatmul.f32.gmra.mxu1 %v7098_v3  ;;  %v2998_v39 = vadd.f32 %v6958_v31, %v2933_v45  ;;  %v2874_v31 = vadd.f32 %v6852_v10, %v6855_v46 }
0x10de   :  { %v3007_v10 = vadd.f32 %v6998_v59, %v2942_v37  ;;  %v8141_v59 = vld [vmem:[#allocation11_spill] sm:$0xff] }
0x10e0   :  { %v3296_v24 = vpop.f32.mrf.mxu3 }
0x10e1   :  { %v3297_v16 = vadd.f32 %v3296_v24, %v3231_v61  ;;  %v2948_v24 = vadd.f32 %v8141_v59, %v2883_v51 }
0x10e2   :  { %v3240_v15 = vpop.f32.mrf.mxu0 }
0x10e3   :  { %v7105_v7 = vadd.f32 %v3297_v16, %v2989_v5 }
0x10e5   :  { %3392 = vmatmul.f32.gmra.mxu1 %v7105_v7 }
0x10e8   :  { %v3299_v9 = vpop.f32.mrf.mxu3 }
0x10e9   :  { %v3300_v25 = vadd.f32 %v3299_v9, %v3234_v17  ;;  %v2939_v17 = vadd.f32 %v6956_v62, %v2874_v31  ;;  %v2880_v62 = vadd.f32 %v6862_v47, %v6865_v57  ;;  %v8142_v47 = vld [vmem:[#allocation24_spill] sm:$0xff] }
0x10ea   :  { %v3243_v33 = vpop.f32.mrf.mxu0  ;;  %v3013_v57 = vadd.f32 %v8142_v47, %v2948_v24  ;;  %v8145_v9 = vld [vmem:[#allocation16_spill] sm:$0xff] }
0x10eb   :  { %v7112_v0 = vadd.f32 %v3300_v25, %v2992_v22  ;;  %v3004_v58 = vadd.f32 %v6976_v27, %v2939_v17  ;;  %v2945_v27 = vadd.f32 %v6969_v26, %v2880_v62 }
0x10ed   :  { %3395 = vmatmul.f32.gmra.mxu1 %v7112_v0  ;;  %v3010_v53 = vadd.f32 %v7022_v42, %v2945_v27 }
0x10f0   :  { %v3302_v12 = vpop.f32.mrf.mxu3 }
0x10f1   :  { %v3303_v44 = vadd.f32 %v3302_v12, %v3237_v36 }
0x10f2   :  { %v3246_v6 = vpop.f32.mrf.mxu0 }
0x10f3   :  { %v7119_v61 = vadd.f32 %v3303_v44, %v2995_v20  ;;  %v8148_v20 = vld [vmem:[#allocation4_spill] sm:$0xff] }
0x10f5   :  { %3398 = vmatmul.f32.gmra.mxu1 %v7119_v61 }
0x10f8   :  { %v3305_v40 = vpop.f32.mrf.mxu3 }
0x10f9   :  { %v3306_v43 = vadd.f32 %v3305_v40, %v3240_v15  ;;  %v8143_v15 = vld [vmem:[#allocation3_spill] sm:$0xff] }
0x10fa   :  { %v3249_v14 = vpop.f32.mrf.mxu0  ;;  %v2886_v42 = vadd.f32 %v8144_v8, %v8143_v15 }
0x10fb   :  { %v7126_v23 = vadd.f32 %v3306_v43, %v2998_v39  ;;  %v8150_v39 = vld [vmem:[#allocation30_spill] sm:$0xff] }
0x10fc   :  { %v2951_v22 = vadd.f32 %v8145_v9, %v2886_v42 }
0x10fd   :  { %3401 = vmatmul.f32.gmra.mxu1 %v7126_v23 }
0x10fe   :  { %v3016_v34 = vadd.f32 %v8146_v21, %v2951_v22 }
0x1100   :  { %v3308_v56 = vpop.f32.mrf.mxu3 }
0x1101   :  { %v3309_v32 = vadd.f32 %v3308_v56, %v3243_v33  ;;  %v8147_v33 = vld [vmem:[#allocation5_spill] sm:$0xff]  ;;  %v8152_v56 = vld [vmem:[#allocation6_spill] sm:$0xff] }
0x1102   :  { %v3252_v4 = vpop.f32.mrf.mxu0  ;;  %v2889_v44 = vadd.f32 %v8148_v20, %v8147_v33 }
0x1103   :  { %v7133_v55 = vadd.f32 %v3309_v32, %v3001_v18  ;;  %v2892_v18 = vadd.f32 %v8152_v56, %v8151_v38 }
0x1104   :  { %v2954_v45 = vadd.f32 %v8149_v52, %v2889_v44 }
0x1105   :  { %3404 = vmatmul.f32.gmra.mxu1 %v7133_v55 }
0x1106   :  { %v3019_v43 = vadd.f32 %v8150_v39, %v2954_v45 }
0x1108   :  { %v3311_v2 = vpop.f32.mrf.mxu3 }
0x1109   :  { %v3312_v1 = vadd.f32 %v3311_v2, %v3246_v6  ;;  %v8154_v2 = vld [vmem:[#allocation31_spill] sm:$0xff] }
0x110a   :  { %v3255_v60 = vpop.f32.mrf.mxu0 }
0x110b   :  { %v7140_v41 = vadd.f32 %v3312_v1, %v3004_v58 }
0x110d   :  { %3407 = vmatmul.f32.gmra.mxu1 %v7140_v41 }
0x1110   :  { %v3314_v30 = vpop.f32.mrf.mxu3 }
0x1111   :  { %v3315_v46 = vadd.f32 %v3314_v30, %v3249_v14  ;;  %v8153_v14 = vld [vmem:[#allocation26_spill] sm:$0xff] }
0x1112   :  { %v3258_v29 = vpop.f32.mrf.mxu0  ;;  %v2957_v31 = vadd.f32 %v8153_v14, %v2892_v18 }
0x1113   :  { %v7147_v13 = vadd.f32 %v3315_v46, %v3007_v10 }
0x1114   :  { %v3022_v58 = vadd.f32 %v8154_v2, %v2957_v31 }
0x1115   :  { %3410 = vmatmul.f32.gmra.mxu1 %v7147_v13 }
0x1118   :  { %v3317_v36 = vpop.f32.mrf.mxu3 }
0x1119   :  { %v3318_v28 = vadd.f32 %v3317_v36, %v3252_v4 }
0x111a   :  { %v3261_v12 = vpop.f32.mrf.mxu0 }
0x111b   :  { %v7154_v49 = vadd.f32 %v3318_v28, %v3010_v53 }
0x111d   :  { %3413 = vmatmul.f32.gmra.mxu1 %v7154_v49 }
0x1120   :  { %v3320_v5 = vpop.f32.mrf.mxu3 }
0x1121   :  { %v3321_v16 = vadd.f32 %v3320_v5, %v3255_v60 }
0x1122   :  { %v3264_v32 = vpop.f32.mrf.mxu0 }
0x1123   :  { %v7161_v26 = vadd.f32 %v3321_v16, %v3013_v57 }
0x1125   :  { %3416 = vmatmul.f32.gmra.mxu1 %v7161_v26 }
0x1128   :  { %v3323_v25 = vpop.f32.mrf.mxu3 }
0x1129   :  { %v3324_v50 = vadd.f32 %v3323_v25, %v3258_v29 }
0x112b   :  { %v7168_v11 = vadd.f32 %v3324_v50, %v3016_v34 }
0x112d   :  { %3419 = vmatmul.f32.gmra.mxu1 %v7168_v11 }
0x1130   :  { %v3326_v40 = vpop.f32.mrf.mxu3 }
0x1131   :  { %v3327_v6 = vadd.f32 %v3326_v40, %v3261_v12 }
0x1133   :  { %v7175_v35 = vadd.f32 %v3327_v6, %v3019_v43 }
0x1135   :  { %3422 = vmatmul.f32.gmra.mxu1 %v7175_v35 }
0x1138   :  { %v3329_v17 = vpop.f32.mrf.mxu3 }
0x1139   :  { %v3330_v1 = vadd.f32 %v3329_v17, %v3264_v32 }
0x113b   :  { %v7182_v19 = vadd.f32 %v3330_v1, %v3022_v58 }
0x113d   :  { %3425 = vmatmul.f32.gmra.mxu1 %v7182_v19 }
0x1142   :  { %v3381_v4 = vpop.f32.mrf.mxu1 }
0x114a   :  { %v3384_v37 = vpop.f32.mrf.mxu1 }
0x114b   :  { %v3429_v59 = vadd.f32 %v3384_v37, %v3381_v4 }
0x1152   :  { %v3387_v30 = vpop.f32.mrf.mxu1 }
0x1153   :  { %v3430_v24 = vadd.f32 %v3429_v59, %v3387_v30 }
0x115a   :  { %v3390_v10 = vpop.f32.mrf.mxu1 }
0x115b   :  { %v3431_v47 = vadd.f32 %v3430_v24, %v3390_v10 }
0x1162   :  { %v3393_v46 = vpop.f32.mrf.mxu1 }
0x1163   :  { %v3432_v57 = vadd.f32 %v3431_v47, %v3393_v46 }
0x116a   :  { %v3396_v62 = vpop.f32.mrf.mxu1 }
0x116b   :  { %v3433_v16 = vadd.f32 %v3432_v57, %v3396_v62 }
0x1172   :  { %v3399_v27 = vpop.f32.mrf.mxu1 }
0x1173   :  { %v3434_v29 = vadd.f32 %v3433_v16, %v3399_v27 }
0x117a   :  { %v3402_v36 = vpop.f32.mrf.mxu1 }
0x117b   :  { %v3435_v8 = vadd.f32 %v3434_v29, %v3402_v36 }
0x1182   :  { %v3405_v60 = vpop.f32.mrf.mxu1 }
0x1183   :  { %v3436_v42 = vadd.f32 %v3435_v8, %v3405_v60 }
0x118a   :  { %v3408_v53 = vpop.f32.mrf.mxu1 }
0x118b   :  { %v3437_v9 = vadd.f32 %v3436_v42, %v3408_v53 }
0x1192   :  { %v3411_v28 = vpop.f32.mrf.mxu1 }
0x1193   :  { %v3438_v22 = vadd.f32 %v3437_v9, %v3411_v28  ;;  %v3707_v9 = vld [vmem:[%s7268_s9 + $0x78] sm:$0xff] }
0x1194   :  { %3708 = vmatpush.msrb.mxu3 %v3707_v9 }
0x119a   :  { %v3414_v51 = vpop.f32.mrf.mxu1 }
0x119b   :  { %v3439_v21 = vadd.f32 %v3438_v22, %v3414_v51 }
0x11a2   :  { %v3417_v5 = vpop.f32.mrf.mxu1 }
0x11a3   :  { %v3440_v34 = vadd.f32 %v3439_v21, %v3417_v5 }
0x11aa   :  { %v3420_v15 = vpop.f32.mrf.mxu1 }
0x11ab   :  { %v3441_v50 = vadd.f32 %v3440_v34, %v3420_v15 }
0x11b2   :  { %v3423_v25 = vpop.f32.mrf.mxu1 }
0x11b3   :  { %v3442_v12 = vadd.f32 %v3441_v50, %v3423_v25  ;;  %v3706_v25 = vld [vmem:[%s7268_s9 + $0x70] sm:$0xff]  ;;  %v3705_v50 = vld [vmem:[%s7268_s9 + $0x68] sm:$0xff] }
0x11b4   :  { %3709 = vmatpush.msrb.mxu3 %v3706_v25 }
0x11b6   :  { %3710 = vmatpush.msrb.mxu3 %v3705_v50  ;;  %v8165_v50 = vld [vmem:[#allocation20_spill] sm:$0xff] }
0x11ba   :  { %v3426_v33 = vpop.f32.mrf.mxu1 }
0x11bb   :  { %v3443_v20 = vadd.f32 %v3442_v12, %v3426_v33  ;;  %v3704_v33 = vld [vmem:[%s7268_s9 + $0x60] sm:$0xff] }
0x11bc   :  { %3711 = vmatpush.msrb.mxu3 %v3704_v33  ;;  %v8166_v33 = vld [vmem:[#allocation22_spill] sm:$0xff] }
0x11bd   :  { %v3444_v44 = vrot.slane %v3443_v20, 4 }
0x11bf   :  { %v3445_v52 = vadd.f32 %v3444_v44, %v3443_v20  ;;  %v3703_v44 = vld [vmem:[%s7268_s9 + $0x58] sm:$0xff] }
0x11c0   :  { %3712 = vmatpush.msrb.mxu3 %v3703_v44 }
0x11c1   :  { %v3446_v45 = vrot.slane %v3445_v52, 2 }
0x11c3   :  { %v3447_v40 = vadd.f32 %v3446_v45, %v3445_v52  ;;  %v3702_v45 = vld [vmem:[%s7268_s9 + $0x50] sm:$0xff] }
0x11c4   :  { %3713 = vmatpush.msrb.mxu3 %v3702_v45  ;;  %v8167_v45 = vld [vmem:[#allocation23_spill] sm:$0xff] }
0x11c5   :  { %v3448_v39 = vrot.slane %v3447_v40, 1 }
0x11c7   :  { %v3449_v43 = vadd.f32 %v3448_v39, %v3447_v40 }
0x11c9   :  { %v7186_v6 = vsub.f32 %v7077_v48, %v3449_v43  ;;  %v7191_v56 = vsub.f32 %v7084_v54, %v3449_v43  ;;  %v7196_v32 = vsub.f32 %v7091_v63, %v3449_v43  ;;  %v7201_v48 = vsub.f32 %v7098_v3, %v3449_v43 }
0x11ca   :  { %v7206_v54 = vsub.f32 %v7105_v7, %v3449_v43  ;;  %v7211_v63 = vsub.f32 %v7112_v0, %v3449_v43  ;;  %v7216_v3 = vsub.f32 %v7119_v61, %v3449_v43  ;;  %v7221_v7 = vsub.f32 %v7126_v23, %v3449_v43 }
0x11cb   :  { %v3466_v38 = vmul.f32 %v7186_v6, %v7186_v6  ;;  %v3467_v18 = vmul.f32 %v7191_v56, %v7191_v56  ;;  %v3468_v14 = vmul.f32 %v7196_v32, %v7196_v32  ;;  %v3469_v31 = vmul.f32 %v7201_v48, %v7201_v48 }
0x11cc   :  { %v3470_v17 = vmul.f32 %v7206_v54, %v7206_v54  ;;  %v3471_v2 = vmul.f32 %v7211_v63, %v7211_v63  ;;  %v3472_v58 = vmul.f32 %v7216_v3, %v7216_v3  ;;  %v3473_v1 = vmul.f32 %v7221_v7, %v7221_v7 }
0x11cd   :  { %3498 = vmatmul.f32.vlgmr.msrb.gmra.mxu2 %v3466_v38  ;;  %v7226_v0 = vsub.f32 %v7133_v55, %v3449_v43  ;;  %v7231_v61 = vsub.f32 %v7140_v41, %v3449_v43  ;;  %v7236_v23 = vsub.f32 %v7147_v13, %v3449_v43  ;;  %v7241_v55 = vsub.f32 %v7154_v49, %v3449_v43 }
0x11ce   :  { %v7246_v41 = vsub.f32 %v7161_v26, %v3449_v43  ;;  %v7251_v13 = vsub.f32 %v7168_v11, %v3449_v43  ;;  %v7256_v49 = vsub.f32 %v7175_v35, %v3449_v43  ;;  %v7261_v26 = vsub.f32 %v7182_v19, %v3449_v43  ;;  %v3701_v43 = vld [vmem:[%s7268_s9 + $0x48] sm:$0xff] }
0x11cf   :  { %v3474_v4 = vmul.f32 %v7226_v0, %v7226_v0  ;;  %v3475_v37 = vmul.f32 %v7231_v61, %v7231_v61  ;;  %v3476_v30 = vmul.f32 %v7236_v23, %v7236_v23  ;;  %v3477_v10 = vmul.f32 %v7241_v55, %v7241_v55  ;;  %3714 = vmatpush.msrb.mxu3 %v3701_v43 }
0x11d0   :  { %v3478_v46 = vmul.f32 %v7246_v41, %v7246_v41  ;;  %v3479_v62 = vmul.f32 %v7251_v13, %v7251_v13  ;;  %v3480_v27 = vmul.f32 %v7256_v49, %v7256_v49  ;;  %v3481_v36 = vmul.f32 %v7261_v26, %v7261_v26 }
0x11d5   :  { %3501 = vmatmul.f32.gmra.mxu2 %v3467_v18  ;;  %v3700_v18 = vld [vmem:[%s7268_s9 + $0x40] sm:$0xff] }
0x11d6   :  { %3715 = vmatpush.msrb.mxu3 %v3700_v18 }
0x11dd   :  { %3504 = vmatmul.f32.gmra.mxu2 %v3468_v14 }
0x11e5   :  { %3507 = vmatmul.f32.gmra.mxu2 %v3469_v31  ;;  %v3699_v31 = vld [vmem:[%s7268_s9 + $0x38] sm:$0xff] }
0x11e6   :  { %3716 = vmatpush.msrb.mxu3 %v3699_v31 }
0x11ed   :  { %3510 = vmatmul.f32.gmra.mxu2 %v3470_v17 }
0x11f5   :  { %3513 = vmatmul.f32.gmra.mxu2 %v3471_v2  ;;  %v3698_v2 = vld [vmem:[%s7268_s9 + $0x30] sm:$0xff] }
0x11f6   :  { %3717 = vmatpush.msrb.mxu3 %v3698_v2 }
0x11fd   :  { %3516 = vmatmul.f32.gmra.mxu2 %v3472_v58 }
0x1205   :  { %3519 = vmatmul.f32.gmra.mxu2 %v3473_v1 }
0x120d   :  { %3522 = vmatmul.f32.gmra.mxu2 %v3474_v4  ;;  %v3697_v4 = vld [vmem:[%s7268_s9 + $0x28] sm:$0xff] }
0x120e   :  { %3718 = vmatpush.msrb.mxu3 %v3697_v4 }
0x1215   :  { %3525 = vmatmul.f32.gmra.mxu2 %v3475_v37 }
0x121d   :  { %3528 = vmatmul.f32.gmra.mxu2 %v3476_v30  ;;  %v3696_v30 = vld [vmem:[%s7268_s9 + $0x20] sm:$0xff] }
0x121e   :  { %3719 = vmatpush.msrb.mxu3 %v3696_v30 }
0x1225   :  { %3531 = vmatmul.f32.gmra.mxu2 %v3477_v10  ;;  %v3695_v10 = vld [vmem:[%s7268_s9 + $0x18] sm:$0xff] }
0x1226   :  { %3720 = vmatpush.msrb.mxu3 %v3695_v10 }
0x122d   :  { %3534 = vmatmul.f32.gmra.mxu2 %v3478_v46 }
0x1235   :  { %3537 = vmatmul.f32.gmra.mxu2 %v3479_v62  ;;  %v3694_v62 = vld [vmem:[%s7268_s9 + $0x10] sm:$0xff] }
0x1236   :  { %3721 = vmatpush.msrb.mxu3 %v3694_v62 }
0x123d   :  { %3540 = vmatmul.f32.gmra.mxu2 %v3480_v27 }
0x1245   :  { %3543 = vmatmul.f32.gmra.mxu2 %v3481_v36  ;;  %v3693_v36 = vld [vmem:[%s7268_s9 + $0x8] sm:$0xff] }
0x1246   :  { %3722 = vmatpush.msrb.mxu3 %v3693_v36 }
0x1250   :  { %v3499_v11 = vpop.f32.mrf.mxu2 }
0x1258   :  { %v3502_v60 = vpop.f32.mrf.mxu2 }
0x1259   :  { %v3547_v19 = vadd.f32 %v3502_v60, %v3499_v11  ;;  %v3692_v60 = vld [vmem:[%s7268_s9] sm:$0xff] }
0x125a   :  { %3723 = vmatpush.msrb.mxu3 %v3692_v60  ;;  %v5417_v60 = vld [vmem:[%s6717_s19 + $0x10] sm:$0xff] }
0x1260   :  { %v3505_v53 = vpop.f32.mrf.mxu2 }
0x1261   :  { %v3548_v29 = vadd.f32 %v3547_v19, %v3505_v53 }
0x1268   :  { %v3508_v28 = vpop.f32.mrf.mxu2 }
0x1269   :  { %v3549_v8 = vadd.f32 %v3548_v29, %v3508_v28 }
0x1270   :  { %v3511_v51 = vpop.f32.mrf.mxu2 }
0x1271   :  { %v3550_v42 = vadd.f32 %v3549_v8, %v3511_v51  ;;  %v8155_v51 = vld [vmem:[#allocation8_spill] sm:$0xff] }
0x1272   :  { %4000 = vmatpush.msra.mxu3 %v8155_v51  ;;  %v5420_v51 = vld [vmem:[%s6801_s27 + $0x18] sm:$0xff] }
0x1278   :  { %v3514_v59 = vpop.f32.mrf.mxu2 }
0x1279   :  { %v3551_v22 = vadd.f32 %v3550_v42, %v3514_v59  ;;  %v8162_v42 = vld [vmem:[#allocation17_spill] sm:$0xff] }
0x1280   :  { %v3517_v24 = vpop.f32.mrf.mxu2 }
0x1281   :  { %v3552_v21 = vadd.f32 %v3551_v22, %v3517_v24  ;;  %v8156_v24 = vld [vmem:[#allocation9_spill] sm:$0xff]  ;;  %v8163_v22 = vld [vmem:[#allocation18_spill] sm:$0xff] }
0x1282   :  { %4001 = vmatpush.msra.mxu3 %v8156_v24  ;;  %v5422_v24 = vld [vmem:[%s6801_s27 + $0x20] sm:$0xff] }
0x1288   :  { %v3520_v35 = vpop.f32.mrf.mxu2 }
0x1289   :  { %v3553_v12 = vadd.f32 %v3552_v21, %v3520_v35  ;;  %v8164_v21 = vld [vmem:[#allocation19_spill] sm:$0xff] }
0x1290   :  { %v3523_v5 = vpop.f32.mrf.mxu2 }
0x1291   :  { %v3554_v20 = vadd.f32 %v3553_v12, %v3523_v5  ;;  %v8157_v5 = vld [vmem:[#allocation10_spill] sm:$0xff] }
0x1292   :  { %4002 = vmatpush.msra.mxu3 %v8157_v5  ;;  %v5424_v5 = vld [vmem:[%s6801_s27 + $0x28] sm:$0xff] }
0x1298   :  { %v3526_v47 = vpop.f32.mrf.mxu2 }
0x1299   :  { %v3555_v52 = vadd.f32 %v3554_v20, %v3526_v47  ;;  %v8158_v47 = vld [vmem:[#allocation12_spill] sm:$0xff] }
0x129a   :  { %4003 = vmatpush.msra.mxu3 %v8158_v47  ;;  %v5425_v47 = vld [vmem:[%s6717_s19 + $0x30] sm:$0xff] }
0x12a0   :  { %v3529_v57 = vpop.f32.mrf.mxu2 }
0x12a1   :  { %v3556_v40 = vadd.f32 %v3555_v52, %v3529_v57  ;;  %v8159_v57 = vld [vmem:[#allocation13_spill] sm:$0xff] }
0x12a2   :  { %4004 = vmatpush.msra.mxu3 %v8159_v57  ;;  %v5426_v57 = vld [vmem:[%s6801_s27 + $0x30] sm:$0xff] }
0x12a8   :  { %v3532_v16 = vpop.f32.mrf.mxu2 }
0x12a9   :  { %v3557_v38 = vadd.f32 %v3556_v40, %v3532_v16  ;;  %v8160_v16 = vld [vmem:[#allocation14_spill] sm:$0xff] }
0x12aa   :  { %4005 = vmatpush.msra.mxu3 %v8160_v16  ;;  %v5427_v16 = vld [vmem:[%s6717_s19 + $0x38] sm:$0xff] }
0x12b0   :  { %v3535_v15 = vpop.f32.mrf.mxu2 }
0x12b1   :  { %v3558_v14 = vadd.f32 %v3557_v38, %v3535_v15  ;;  %v8161_v15 = vld [vmem:[#allocation15_spill] sm:$0xff]  ;;  %v8168_v38 = vld [vmem:[#allocation25_spill] sm:$0xff] }
0x12b2   :  { %4006 = vmatpush.msra.mxu3 %v8161_v15  ;;  %v5429_v15 = vld [vmem:[%s6717_s19 + $0x40] sm:$0xff] }
0x12b4   :  { %4007 = vmatpush.msra.mxu3 %v8162_v42  ;;  %v3690_v42 = vld [vmem:[%s7370_s13 + $0x70] sm:$0xff] }
0x12b6   :  { %4008 = vmatpush.msra.mxu3 %v8163_v22  ;;  %v3688_v22 = vld [vmem:[%s7370_s13 + $0x60] sm:$0xff] }
0x12b8   :  { %v3538_v34 = vpop.f32.mrf.mxu2  ;;  %4009 = vmatpush.msra.mxu3 %v8164_v21  ;;  %v3687_v21 = vld [vmem:[%s7370_s13 + $0x58] sm:$0xff] }
0x12b9   :  { %v3559_v17 = vadd.f32 %v3558_v14, %v3538_v34  ;;  %v8169_v14 = vld [vmem:[#allocation27_spill] sm:$0xff] }
0x12ba   :  { %4010 = vmatpush.msra.mxu3 %v8165_v50  ;;  %v5431_v50 = vld [vmem:[%s6717_s19 + $0x48] sm:$0xff] }
0x12bc   :  { %4011 = vmatpush.msra.mxu3 %v8166_v33  ;;  %v3686_v33 = vld [vmem:[%s7370_s13 + $0x50] sm:$0xff] }
0x12be   :  { %4012 = vmatpush.msra.mxu3 %v8167_v45  ;;  %v3684_v45 = vld [vmem:[%s7370_s13 + $0x40] sm:$0xff] }
0x12c0   :  { %v3541_v39 = vpop.f32.mrf.mxu2  ;;  %4013 = vmatpush.msra.mxu3 %v8168_v38  ;;  %v3913_v38 = vld [vmem:[%s7379_s17 + $0x50] sm:$0xff] }
0x12c1   :  { %v3560_v58 = vadd.f32 %v3559_v17, %v3541_v39  ;;  %v8170_v17 = vld [vmem:[#allocation28_spill] sm:$0xff] }
0x12c2   :  { %4014 = vmatpush.msra.mxu3 %v8169_v14  ;;  %v3681_v14 = vld [vmem:[%s7370_s13 + $0x28] sm:$0xff] }
0x12c4   :  { %4015 = vmatpush.msra.mxu3 %v8170_v17  ;;  %v3679_v17 = vld [vmem:[%s7370_s13 + $0x18] sm:$0xff] }
0x12c8   :  { %v3544_v1 = vpop.f32.mrf.mxu2 }
0x12c9   :  { %v3561_v37 = vadd.f32 %v3560_v58, %v3544_v1 }
0x12cb   :  { %v3562_v46 = vrot.slane %v3561_v37, 4 }
0x12cd   :  { %v3563_v27 = vadd.f32 %v3562_v46, %v3561_v37 }
0x12cf   :  { %v3564_v11 = vrot.slane %v3563_v27, 2 }
0x12d1   :  { %v3565_v53 = vadd.f32 %v3564_v11, %v3563_v27  ;;  %v5416_v11 = vld [vmem:[%s6801_s27 + $0x8] sm:$0xff] }
0x12d3   :  { %v3566_v28 = vrot.slane %v3565_v53, 1 }
0x12d5   :  { %v3567_v59 = vadd.f32 %v3566_v28, %v3565_v53  ;;  %v5418_v53 = vld [vmem:[%s6801_s27 + $0x10] sm:$0xff]  ;;  %v5419_v28 = vld [vmem:[%s6717_s19 + $0x18] sm:$0xff] }
0x12d7   :  { %v3568_v35 = vadd.f32 1e-05, %v3567_v59  ;;  %v5421_v59 = vld [vmem:[%s6717_s19 + $0x20] sm:$0xff] }
0x12d9   :  { %5265 = vrsqrt.f32 %v3568_v35  ;;  %vm3575_vm1 = vweird.f32 %v3568_v35 }
0x12df   :  { %v5266_v19 = vpop.eup %5265 }
0x12e0   :  { %v3570_v29 = vmul.f32 %v5266_v19, %v3568_v35  ;;  %vm3576_vm15 = vweird.f32 %v5266_v19  ;;  %v5423_v35 = vld [vmem:[%s6717_s19 + $0x28] sm:$0xff] }
0x12e1   :  { %vm3577_vm2 = vmor %vm3575_vm1, %vm3576_vm15 }
0x12e2   :  { %v3571_v8 = vmul.f32 %v5266_v19, %v3570_v29  ;;  %v3691_v29 = vld [vmem:[%s7370_s13 + $0x78] sm:$0xff] }
0x12e3   :  { %3773 = vmatpush.msra.mxu1 %v3691_v29  ;;  %v5460_v29 = vld [vmem:[%s6965_s5] sm:$0xff] }
0x12e4   :  { %v3572_v9 = vmul.f32 0.5, %v3571_v8  ;;  %v5430_v8 = vld [vmem:[%s6801_s27 + $0x40] sm:$0xff] }
0x12e5   :  { %3774 = vmatpush.msra.mxu1 %v3690_v42 }
0x12e6   :  { %v3573_v25 = vsub.f32 1.5, %v3572_v9  ;;  %v3689_v9 = vld [vmem:[%s7370_s13 + $0x68] sm:$0xff] }
0x12e7   :  { %3775 = vmatpush.msra.mxu1 %v3689_v9 }
0x12e8   :  { %v3574_v34 = vmul.f32 %v5266_v19, %v3573_v25  ;;  %v3918_v25 = vld [vmem:[%s7379_s17 + $0x78] sm:$0xff] }
0x12e9   :  { %3776 = vmatpush.msra.mxu1 %v3688_v22 }
0x12ea   :  { %v3578_v12 = vsel %vm3577_vm2, %v5266_v19, %v3574_v34  ;;  %v5428_v19 = vld [vmem:[%s6801_s27 + $0x38] sm:$0xff]  ;;  %v3917_v34 = vld [vmem:[%s7379_s17 + $0x70] sm:$0xff] }
0x12eb   :  { %v3594_v20 = vmul.f32 %v3578_v12, %v7261_v26  ;;  %v3579_v44 = vmul.f32 %v3578_v12, %v7186_v6  ;;  %v3593_v52 = vmul.f32 %v3578_v12, %v7256_v49  ;;  %v3592_v43 = vmul.f32 %v3578_v12, %v7251_v13  ;;  %3777 = vmatpush.msra.mxu1 %v3687_v21 }
0x12ec   :  { %v3591_v6 = vmul.f32 %v3578_v12, %v7246_v41  ;;  %v3590_v26 = vmul.f32 %v3578_v12, %v7241_v55  ;;  %v3580_v13 = vmul.f32 %v3578_v12, %v7191_v56  ;;  %v3589_v41 = vmul.f32 %v3578_v12, %v7236_v23 }
0x12ed   :  { %v7302_v40 = vmax.f32 %v3594_v20, 0.0  ;;  %v7304_v39 = vmax.f32 %v3579_v44, 0.0  ;;  %v7310_v18 = vmax.f32 %v3593_v52, 0.0  ;;  %v7315_v49 = vmax.f32 %v3592_v43, 0.0  ;;  %v3916_v20 = vld [vmem:[%s7379_s17 + $0x68] sm:$0xff]  ;;  %3778 = vmatpush.msra.mxu1 %v3686_v33  ;;  %v3915_v52 = vld [vmem:[%s7379_s17 + $0x60] sm:$0xff] }
0x12ee   :  { %v7322_v31 = vmax.f32 %v3591_v6, 0.0  ;;  %v7328_v2 = vmax.f32 %v3590_v26, 0.0  ;;  %v3596_v55 = vmax.f32 %v3580_v13, 0.0  ;;  %v3588_v56 = vmul.f32 %v3578_v12, %v7231_v61  ;;  %v3685_v44 = vld [vmem:[%s7370_s13 + $0x48] sm:$0xff]  ;;  %v3683_v43 = vld [vmem:[%s7370_s13 + $0x38] sm:$0xff]  ;;  %v5433_v6 = vld [vmem:[%s6717_s19 + $0x50] sm:$0xff] }
0x12ef   :  { %3611 = vmatpush.msrb.mxu0 %v7302_v40  ;;  %3724 = vmatmul.f32.vlgmr.msrb.gmra.mxu3 %v7304_v39  ;;  %v7333_v58 = vmax.f32 %v3589_v41, 0.0  ;;  %v3587_v23 = vmul.f32 %v3578_v12, %v7226_v0  ;;  %v3586_v4 = vmul.f32 %v3578_v12, %v7221_v7  ;;  %v3581_v37 = vmul.f32 %v3578_v12, %v7196_v32  ;;  %v3682_v26 = vld [vmem:[%s7370_s13 + $0x30] sm:$0xff]  ;;  %v3912_v13 = vld [vmem:[%s7379_s17 + $0x48] sm:$0xff]  ;;  %v3680_v41 = vld [vmem:[%s7370_s13 + $0x20] sm:$0xff] }
0x12f0   :  { %3838 = vmatpush.msra.mxu2 %v7302_v40  ;;  %v7338_v1 = vmax.f32 %v3588_v56, 0.0  ;;  %v3585_v30 = vmul.f32 %v3578_v12, %v7216_v3  ;;  %v3584_v46 = vmul.f32 %v3578_v12, %v7211_v63  ;;  %v3583_v32 = vmul.f32 %v3578_v12, %v7206_v54  ;;  %v5414_v54 = vld [vmem:[%s6801_s27] sm:$0xff]  ;;  %v5415_v63 = vld [vmem:[%s6717_s19 + $0x8] sm:$0xff]  ;;  %3779 = vmatpush.msra.mxu1 %v3685_v44  ;;  %v3909_v56 = vld [vmem:[%s7379_s17 + $0x30] sm:$0xff] }
0x12f1   :  { %3612 = vmatpush.msrb.mxu0 %v7310_v18  ;;  %v3603_v61 = vmax.f32 %v3587_v23, 0.0  ;;  %v3602_v0 = vmax.f32 %v3586_v4, 0.0  ;;  %v3597_v10 = vmax.f32 %v3581_v37, 0.0  ;;  %v3582_v27 = vmul.f32 %v3578_v12, %v7201_v48  ;;  %v5413_v48 = vld [vmem:[%s6717_s19] sm:$0xff]  ;;  %v5432_v12 = vld [vmem:[%s6801_s27 + $0x48] sm:$0xff] }
0x12f2   :  { %3839 = vmatpush.msra.mxu2 %v7310_v18  ;;  %v3601_v7 = vmax.f32 %v3585_v30, 0.0  ;;  %v3600_v62 = vmax.f32 %v3584_v46, 0.0  ;;  %v3599_v3 = vmax.f32 %v3583_v32, 0.0  ;;  %3780 = vmatpush.msra.mxu1 %v3684_v45  ;;  %v3677_v23 = vld [vmem:[%s7370_s13 + $0x8] sm:$0xff]  ;;  %v3676_v4 = vld [vmem:[%s7370_s13] sm:$0xff]  ;;  %v3906_v30 = vld [vmem:[%s7379_s17 + $0x18] sm:$0xff] }
0x12f3   :  { %3613 = vmatpush.msrb.mxu0 %v7315_v49  ;;  %v3598_v36 = vmax.f32 %v3582_v27, 0.0  ;;  %v3907_v37 = vld [vmem:[%s7379_s17 + $0x20] sm:$0xff]  ;;  %v5440_v46 = vld [vmem:[%s6965_s5 + $0x70] sm:$0xff]  ;;  %v5441_v32 = vld [vmem:[%s6965_s5 + $0x68] sm:$0xff] }
0x12f4   :  { %3840 = vmatpush.msra.mxu2 %v7315_v49  ;;  %3781 = vmatpush.msra.mxu1 %v3683_v43  ;;  %v5442_v27 = vld [vmem:[%s6965_s5 + $0x60] sm:$0xff] }
0x12f5   :  { %3614 = vmatpush.msrb.mxu0 %v7322_v31 }
0x12f6   :  { %3841 = vmatpush.msra.mxu2 %v7322_v31  ;;  %3782 = vmatpush.msra.mxu1 %v3682_v26 }
0x12f7   :  { %3615 = vmatpush.msrb.mxu0 %v7328_v2  ;;  %3727 = vmatmul.f32.gmra.mxu3 %v3596_v55 }
0x12f8   :  { %3842 = vmatpush.msra.mxu2 %v7328_v2  ;;  %3783 = vmatpush.msra.mxu1 %v3681_v14 }
0x12f9   :  { %3616 = vmatpush.msrb.mxu0 %v7333_v58 }
0x12fa   :  { %3843 = vmatpush.msra.mxu2 %v7333_v58  ;;  %3784 = vmatpush.msra.mxu1 %v3680_v41 }
0x12fb   :  { %3617 = vmatpush.msrb.mxu0 %v7338_v1 }
0x12fc   :  { %3844 = vmatpush.msra.mxu2 %v7338_v1  ;;  %3785 = vmatpush.msra.mxu1 %v3679_v17 }
0x12fd   :  { %3618 = vmatpush.msrb.mxu0 %v3603_v61 }
0x12fe   :  { %3845 = vmatpush.msra.mxu2 %v3603_v61 }
0x12ff   :  { %3619 = vmatpush.msrb.mxu0 %v3602_v0  ;;  %3730 = vmatmul.f32.gmra.mxu3 %v3597_v10 }
0x1300   :  { %3846 = vmatpush.msra.mxu2 %v3602_v0 }
0x1301   :  { %3620 = vmatpush.msrb.mxu0 %v3601_v7 }
0x1302   :  { %3847 = vmatpush.msra.mxu2 %v3601_v7 }
0x1303   :  { %3621 = vmatpush.msrb.mxu0 %v3600_v62 }
0x1304   :  { %3848 = vmatpush.msra.mxu2 %v3600_v62 }
0x1305   :  { %3622 = vmatpush.msrb.mxu0 %v3599_v3 }
0x1306   :  { %3849 = vmatpush.msra.mxu2 %v3599_v3 }
0x1307   :  { %3623 = vmatpush.msrb.mxu0 %v3598_v36  ;;  %3733 = vmatmul.f32.gmra.mxu3 %v3598_v36 }
0x1308   :  { %3850 = vmatpush.msra.mxu2 %v3598_v36  ;;  %v5444_v36 = vld [vmem:[%s6965_s5 + $0x58] sm:$0xff] }
0x1309   :  { %3624 = vmatpush.msrb.mxu0 %v3597_v10 }
0x130a   :  { %3851 = vmatpush.msra.mxu2 %v3597_v10  ;;  %v3905_v10 = vld [vmem:[%s7379_s17 + $0x10] sm:$0xff] }
0x130b   :  { %3625 = vmatpush.msrb.mxu0 %v3596_v55 }
0x130c   :  { %3852 = vmatpush.msra.mxu2 %v3596_v55  ;;  %v5436_v55 = vld [vmem:[%s6801_s27 + $0x58] sm:$0xff] }
0x130d   :  { %3626 = vmatpush.msrb.mxu0 %v7304_v39 }
0x130e   :  { %3853 = vmatpush.msra.mxu2 %v7304_v39  ;;  %3627 = vmatmul.f32.vlgmr.msrb.gmra.mxu0 %v5413_v48  ;;  %v3914_v39 = vld [vmem:[%s7379_s17 + $0x58] sm:$0xff]  ;;  %v5445_v48 = vld [vmem:[%s6801_s27 + $0x68] sm:$0xff] }
0x130f   :  { %3854 = vmatmul.f32.vlgmr.msra.gmra.mxu2 %v5414_v54  ;;  %3736 = vmatmul.f32.gmra.mxu3 %v3599_v3  ;;  %v5443_v3 = vld [vmem:[%s6717_s19 + $0x68] sm:$0xff]  ;;  %v5446_v54 = vld [vmem:[%s6965_s5 + $0x50] sm:$0xff] }
0x1310   :  { %3919 = vmatpush.msra.mxu0 %v3918_v25 }
0x1312   :  { %3920 = vmatpush.msra.mxu0 %v3917_v34 }
0x1314   :  { %3921 = vmatpush.msra.mxu0 %v3916_v20 }
0x1316   :  { %3630 = vmatmul.f32.gmra.mxu0 %v5415_v63  ;;  %v5447_v63 = vld [vmem:[%s6965_s5 + $0x48] sm:$0xff] }
0x1317   :  { %3857 = vmatmul.f32.gmra.mxu2 %v5416_v11  ;;  %3739 = vmatmul.f32.gmra.mxu3 %v3600_v62  ;;  %v3903_v62 = vld [vmem:[%s7379_s17] sm:$0xff] }
0x1318   :  { %3922 = vmatpush.msra.mxu0 %v3915_v52  ;;  %v5448_v11 = vld [vmem:[%s6965_s5 + $0x40] sm:$0xff] }
0x131a   :  { %3923 = vmatpush.msra.mxu0 %v3914_v39 }
0x131c   :  { %3924 = vmatpush.msra.mxu0 %v3913_v38 }
0x131e   :  { %3633 = vmatmul.f32.gmra.mxu0 %v5417_v60  ;;  %v5449_v60 = vld [vmem:[%s6717_s19 + $0x70] sm:$0xff] }
0x131f   :  { %3860 = vmatmul.f32.gmra.mxu2 %v5418_v53  ;;  %3742 = vmatmul.f32.gmra.mxu3 %v3601_v7  ;;  %v3904_v7 = vld [vmem:[%s7379_s17 + $0x8] sm:$0xff]  ;;  %v5450_v53 = vld [vmem:[%s6965_s5 + $0x38] sm:$0xff] }
0x1320   :  { %3925 = vmatpush.msra.mxu0 %v3912_v13 }
0x1326   :  { %3636 = vmatmul.f32.gmra.mxu0 %v5419_v28  ;;  %v5451_v28 = vld [vmem:[%s6801_s27 + $0x70] sm:$0xff] }
0x1327   :  { %3863 = vmatmul.f32.gmra.mxu2 %v5420_v51  ;;  %3745 = vmatmul.f32.gmra.mxu3 %v3602_v0  ;;  %v5439_v0 = vld [vmem:[%s6801_s27 + $0x60] sm:$0xff]  ;;  %v5452_v51 = vld [vmem:[%s6965_s5 + $0x30] sm:$0xff] }
0x132e   :  { %3639 = vmatmul.f32.gmra.mxu0 %v5421_v59  ;;  %v5453_v59 = vld [vmem:[%s6965_s5 + $0x28] sm:$0xff] }
0x132f   :  { %3866 = vmatmul.f32.gmra.mxu2 %v5422_v24  ;;  %3748 = vmatmul.f32.gmra.mxu3 %v3603_v61  ;;  %v5437_v61 = vld [vmem:[%s6965_s5 + $0x78] sm:$0xff]  ;;  %v5454_v24 = vld [vmem:[%s6965_s5 + $0x20] sm:$0xff] }
0x1336   :  { %3642 = vmatmul.f32.gmra.mxu0 %v5423_v35  ;;  %v5455_v35 = vld [vmem:[%s6717_s19 + $0x78] sm:$0xff] }
0x1337   :  { %3869 = vmatmul.f32.gmra.mxu2 %v5424_v5  ;;  %3751 = vmatmul.f32.gmra.mxu3 %v7338_v1  ;;  %v3908_v1 = vld [vmem:[%s7379_s17 + $0x28] sm:$0xff]  ;;  %v5456_v5 = vld [vmem:[%s6965_s5 + $0x18] sm:$0xff] }
0x133e   :  { %3645 = vmatmul.f32.gmra.mxu0 %v5425_v47  ;;  %v5457_v47 = vld [vmem:[%s6801_s27 + $0x78] sm:$0xff] }
0x133f   :  { %3872 = vmatmul.f32.gmra.mxu2 %v5426_v57  ;;  %3754 = vmatmul.f32.gmra.mxu3 %v7333_v58  ;;  %v3678_v58 = vld [vmem:[%s7370_s13 + $0x10] sm:$0xff] }
0x1340   :  { %3786 = vmatpush.msra.mxu1 %v3678_v58  ;;  %v5458_v57 = vld [vmem:[%s6965_s5 + $0x10] sm:$0xff] }
0x1342   :  { %3787 = vmatpush.msra.mxu1 %v3677_v23 }
0x1344   :  { %3788 = vmatpush.msra.mxu1 %v3676_v4 }
0x1346   :  { %3648 = vmatmul.f32.gmra.mxu0 %v5427_v16  ;;  %4118 = vmatpush.msrb.mxu1 %v5437_v61  ;;  %v5459_v16 = vld [vmem:[%s6965_s5 + $0x8] sm:$0xff] }
0x1347   :  { %3875 = vmatmul.f32.gmra.mxu2 %v5428_v19  ;;  %3757 = vmatmul.f32.gmra.mxu3 %v7328_v2  ;;  %v3910_v2 = vld [vmem:[%s7379_s17 + $0x38] sm:$0xff] }
0x1348   :  { %4119 = vmatpush.msrb.mxu1 %v5440_v46 }
0x134a   :  { %4120 = vmatpush.msrb.mxu1 %v5441_v32 }
0x134c   :  { %4121 = vmatpush.msrb.mxu1 %v5442_v27 }
0x134e   :  { %3651 = vmatmul.f32.gmra.mxu0 %v5429_v15  ;;  %4122 = vmatpush.msrb.mxu1 %v5444_v36 }
0x134f   :  { %3878 = vmatmul.f32.gmra.mxu2 %v5430_v8  ;;  %3760 = vmatmul.f32.gmra.mxu3 %v7322_v31  ;;  %v3911_v31 = vld [vmem:[%s7379_s17 + $0x40] sm:$0xff] }
0x1350   :  { %3926 = vmatpush.msra.mxu0 %v3911_v31  ;;  %4123 = vmatpush.msrb.mxu1 %v5446_v54 }
0x1352   :  { %3927 = vmatpush.msra.mxu0 %v3910_v2  ;;  %4124 = vmatpush.msrb.mxu1 %v5447_v63 }
0x1354   :  { %3928 = vmatpush.msra.mxu0 %v3909_v56  ;;  %4125 = vmatpush.msrb.mxu1 %v5448_v11 }
0x1356   :  { %3654 = vmatmul.f32.gmra.mxu0 %v5431_v50  ;;  %4126 = vmatpush.msrb.mxu1 %v5450_v53 }
0x1357   :  { %3881 = vmatmul.f32.gmra.mxu2 %v5432_v12  ;;  %3763 = vmatmul.f32.gmra.mxu3 %v7315_v49  ;;  %v5434_v49 = vld [vmem:[%s6801_s27 + $0x50] sm:$0xff] }
0x1358   :  { %3929 = vmatpush.msra.mxu0 %v3908_v1  ;;  %4127 = vmatpush.msrb.mxu1 %v5452_v51 }
0x135a   :  { %3930 = vmatpush.msra.mxu0 %v3907_v37  ;;  %4128 = vmatpush.msrb.mxu1 %v5453_v59 }
0x135c   :  { %3931 = vmatpush.msra.mxu0 %v3906_v30  ;;  %4129 = vmatpush.msrb.mxu1 %v5454_v24 }
0x135e   :  { %3657 = vmatmul.f32.gmra.mxu0 %v5433_v6  ;;  %4130 = vmatpush.msrb.mxu1 %v5456_v5 }
0x135f   :  { %3884 = vmatmul.f32.gmra.mxu2 %v5434_v49  ;;  %3766 = vmatmul.f32.gmra.mxu3 %v7310_v18  ;;  %v5435_v18 = vld [vmem:[%s6717_s19 + $0x58] sm:$0xff] }
0x1360   :  { %3932 = vmatpush.msra.mxu0 %v3905_v10  ;;  %4131 = vmatpush.msrb.mxu1 %v5458_v57 }
0x1362   :  { %3933 = vmatpush.msra.mxu0 %v3904_v7  ;;  %4132 = vmatpush.msrb.mxu1 %v5459_v16 }
0x1364   :  { %3934 = vmatpush.msra.mxu0 %v3903_v62  ;;  %4133 = vmatpush.msrb.mxu1 %v5460_v29 }
0x1366   :  { %3660 = vmatmul.f32.gmra.mxu0 %v5435_v18 }
0x1367   :  { %3887 = vmatmul.f32.gmra.mxu2 %v5436_v55  ;;  %3769 = vmatmul.f32.gmra.mxu3 %v7302_v40  ;;  %v5438_v40 = vld [vmem:[%s6717_s19 + $0x60] sm:$0xff] }
0x136e   :  { %3663 = vmatmul.f32.gmra.mxu0 %v5438_v40 }
0x136f   :  { %3890 = vmatmul.f32.gmra.mxu2 %v5439_v0 }
0x1372   :  { %v3725_v41 = vpop.f32.mrf.mxu3 }
0x1376   :  { %3666 = vmatmul.f32.gmra.mxu0 %v5443_v3 }
0x1377   :  { %3893 = vmatmul.f32.gmra.mxu2 %v5445_v48 }
0x137a   :  { %v3728_v18 = vpop.f32.mrf.mxu3 }
0x137e   :  { %3669 = vmatmul.f32.gmra.mxu0 %v5449_v60 }
0x137f   :  { %3896 = vmatmul.f32.gmra.mxu2 %v5451_v28 }
0x1382   :  { %v3731_v1 = vpop.f32.mrf.mxu3 }
0x1386   :  { %3672 = vmatmul.f32.gmra.mxu0 %v5455_v35 }
0x1387   :  { %3899 = vmatmul.f32.gmra.mxu2 %v5457_v47 }
0x138a   :  { %v3734_v61 = vpop.f32.mrf.mxu3 }
0x138b   :  { %v3628_v19 = vpop.f32.mrf.mxu0 }
0x138c   :  { %3789 = vmatmul.f32.vlgmr.msra.gmra.mxu1 %v3628_v19 }
0x1392   :  { %v3855_v15 = vpop.f32.mrf.mxu2  ;;  %v3737_v7 = vpop.f32.mrf.mxu3 }
0x1393   :  { %3935 = vmatmul.f32.vlgmr.msra.gmra.mxu0 %v3855_v15  ;;  %v3631_v8 = vpop.f32.mrf.mxu0 }
0x1394   :  { %3792 = vmatmul.f32.gmra.mxu1 %v3631_v8 }
0x139a   :  { %v3858_v42 = vpop.f32.mrf.mxu2  ;;  %v3740_v63 = vpop.f32.mrf.mxu3 }
0x139b   :  { %3938 = vmatmul.f32.gmra.mxu0 %v3858_v42  ;;  %v3634_v9 = vpop.f32.mrf.mxu0 }
0x139c   :  { %3795 = vmatmul.f32.gmra.mxu1 %v3634_v9 }
0x13a2   :  { %v3861_v22 = vpop.f32.mrf.mxu2  ;;  %v3743_v51 = vpop.f32.mrf.mxu3 }
0x13a3   :  { %3941 = vmatmul.f32.gmra.mxu0 %v3861_v22  ;;  %v3637_v25 = vpop.f32.mrf.mxu0 }
0x13a4   :  { %3798 = vmatmul.f32.gmra.mxu1 %v3637_v25 }
0x13aa   :  { %v3864_v21 = vpop.f32.mrf.mxu2  ;;  %v3746_v47 = vpop.f32.mrf.mxu3 }
0x13ab   :  { %3944 = vmatmul.f32.gmra.mxu0 %v3864_v21  ;;  %v3640_v34 = vpop.f32.mrf.mxu0 }
0x13ac   :  { %3801 = vmatmul.f32.gmra.mxu1 %v3640_v34 }
0x13b2   :  { %v3867_v50 = vpop.f32.mrf.mxu2  ;;  %v3749_v8 = vpop.f32.mrf.mxu3 }
0x13b3   :  { %3947 = vmatmul.f32.gmra.mxu0 %v3867_v50  ;;  %v3643_v12 = vpop.f32.mrf.mxu0 }
0x13b4   :  { %3804 = vmatmul.f32.gmra.mxu1 %v3643_v12 }
0x13ba   :  { %v3870_v33 = vpop.f32.mrf.mxu2  ;;  %v3752_v12 = vpop.f32.mrf.mxu3 }
0x13bb   :  { %3950 = vmatmul.f32.gmra.mxu0 %v3870_v33  ;;  %v3646_v20 = vpop.f32.mrf.mxu0 }
0x13bc   :  { %3807 = vmatmul.f32.gmra.mxu1 %v3646_v20 }
0x13c2   :  { %v3873_v44 = vpop.f32.mrf.mxu2 }
0x13c3   :  { %3953 = vmatmul.f32.gmra.mxu0 %v3873_v44  ;;  %v3649_v52 = vpop.f32.mrf.mxu0 }
0x13c4   :  { %3810 = vmatmul.f32.gmra.mxu1 %v3649_v52 }
0x13ca   :  { %v3876_v45 = vpop.f32.mrf.mxu2 }
0x13cb   :  { %3956 = vmatmul.f32.gmra.mxu0 %v3876_v45  ;;  %v3652_v39 = vpop.f32.mrf.mxu0  ;;  %v3755_v45 = vpop.f32.mrf.mxu3 }
0x13cc   :  { %3813 = vmatmul.f32.gmra.mxu1 %v3652_v39 }
0x13d2   :  { %v3879_v43 = vpop.f32.mrf.mxu2 }
0x13d3   :  { %3959 = vmatmul.f32.gmra.mxu0 %v3879_v43  ;;  %v3655_v38 = vpop.f32.mrf.mxu0 }
0x13d4   :  { %3816 = vmatmul.f32.gmra.mxu1 %v3655_v38 }
0x13da   :  { %v3882_v6 = vpop.f32.mrf.mxu2 }
0x13db   :  { %3962 = vmatmul.f32.gmra.mxu0 %v3882_v6  ;;  %v3658_v49 = vpop.f32.mrf.mxu0 }
0x13dc   :  { %3819 = vmatmul.f32.gmra.mxu1 %v3658_v49  ;;  %v3758_v49 = vpop.f32.mrf.mxu3 }
0x13e2   :  { %v3885_v26 = vpop.f32.mrf.mxu2 }
0x13e3   :  { %3965 = vmatmul.f32.gmra.mxu0 %v3885_v26  ;;  %v3661_v13 = vpop.f32.mrf.mxu0 }
0x13e4   :  { %3822 = vmatmul.f32.gmra.mxu1 %v3661_v13 }
0x13ea   :  { %v3888_v14 = vpop.f32.mrf.mxu2 }
0x13eb   :  { %3968 = vmatmul.f32.gmra.mxu0 %v3888_v14  ;;  %v3664_v31 = vpop.f32.mrf.mxu0 }
0x13ec   :  { %3825 = vmatmul.f32.gmra.mxu1 %v3664_v31 }
0x13f2   :  { %v3891_v17 = vpop.f32.mrf.mxu2 }
0x13f3   :  { %3971 = vmatmul.f32.gmra.mxu0 %v3891_v17  ;;  %v3667_v2 = vpop.f32.mrf.mxu0  ;;  %v3761_v17 = vpop.f32.mrf.mxu3 }
0x13f4   :  { %3828 = vmatmul.f32.gmra.mxu1 %v3667_v2 }
0x13fa   :  { %v3894_v55 = vpop.f32.mrf.mxu2 }
0x13fb   :  { %3974 = vmatmul.f32.gmra.mxu0 %v3894_v55  ;;  %v3670_v56 = vpop.f32.mrf.mxu0 }
0x13fc   :  { %3831 = vmatmul.f32.gmra.mxu1 %v3670_v56 }
0x1402   :  { %v3897_v58 = vpop.f32.mrf.mxu2 }
0x1403   :  { %3977 = vmatmul.f32.gmra.mxu0 %v3897_v58  ;;  %v3673_v23 = vpop.f32.mrf.mxu0 }
0x1404   :  { %3834 = vmatmul.f32.gmra.mxu1 %v3673_v23 }
0x1409   :  { %v3790_v4 = vpop.f32.mrf.mxu1 }
0x140a   :  { %v3900_v37 = vpop.f32.mrf.mxu2  ;;  %v3791_v40 = vadd.f32 %v3790_v4, %v3725_v41  ;;  %v3764_v4 = vpop.f32.mrf.mxu3 }
0x140b   :  { %3980 = vmatmul.f32.gmra.mxu0 %v3900_v37 }
0x1410   :  { %v3936_v30 = vpop.f32.mrf.mxu0 }
0x1411   :  { %v7448_v0 = vadd.f32 %v3936_v30, %v3791_v40  ;;  %v3793_v10 = vpop.f32.mrf.mxu1 }
0x1412   :  { %v3794_v46 = vadd.f32 %v3793_v10, %v3728_v18  ;;  %v3767_v10 = vpop.f32.mrf.mxu3 }
0x1413   :  { %4016 = vmatmul.f32.vlgmr.msra.gmra.mxu3 %v7448_v0 }
0x1418   :  { %v3939_v32 = vpop.f32.mrf.mxu0 }
0x1419   :  { %v7451_v62 = vadd.f32 %v3939_v32, %v3794_v46  ;;  %v3796_v27 = vpop.f32.mrf.mxu1 }
0x141a   :  { %v3797_v3 = vadd.f32 %v3796_v27, %v3731_v1 }
0x141b   :  { %4019 = vmatmul.f32.gmra.mxu3 %v7451_v62 }
0x1420   :  { %v3942_v36 = vpop.f32.mrf.mxu0 }
0x1421   :  { %v7454_v48 = vadd.f32 %v3942_v36, %v3797_v3  ;;  %v3799_v54 = vpop.f32.mrf.mxu1  ;;  %v3770_v3 = vpop.f32.mrf.mxu3 }
0x1422   :  { %v3800_v11 = vadd.f32 %v3799_v54, %v3734_v61 }
0x1423   :  { %4022 = vmatmul.f32.gmra.mxu3 %v7454_v48 }
0x1428   :  { %v3945_v60 = vpop.f32.mrf.mxu0 }
0x1429   :  { %v7457_v53 = vadd.f32 %v3945_v60, %v3800_v11  ;;  %v3802_v28 = vpop.f32.mrf.mxu1 }
0x142a   :  { %v3803_v59 = vadd.f32 %v3802_v28, %v3737_v7 }
0x142b   :  { %4025 = vmatmul.f32.gmra.mxu3 %v7457_v53 }
0x1430   :  { %v3948_v24 = vpop.f32.mrf.mxu0 }
0x1431   :  { %v7460_v35 = vadd.f32 %v3948_v24, %v3803_v59  ;;  %v3805_v5 = vpop.f32.mrf.mxu1 }
0x1432   :  { %v3806_v57 = vadd.f32 %v3805_v5, %v3740_v63 }
0x1433   :  { %4028 = vmatmul.f32.gmra.mxu3 %v7460_v35 }
0x1438   :  { %v3951_v16 = vpop.f32.mrf.mxu0 }
0x1439   :  { %v7463_v19 = vadd.f32 %v3951_v16, %v3806_v57  ;;  %v3808_v29 = vpop.f32.mrf.mxu1 }
0x143a   :  { %v3809_v15 = vadd.f32 %v3808_v29, %v3743_v51 }
0x143b   :  { %4031 = vmatmul.f32.gmra.mxu3 %v7463_v19 }
0x1440   :  { %v3954_v42 = vpop.f32.mrf.mxu0 }
0x1441   :  { %v7466_v9 = vadd.f32 %v3954_v42, %v3809_v15  ;;  %v3811_v22 = vpop.f32.mrf.mxu1 }
0x1442   :  { %v3812_v25 = vadd.f32 %v3811_v22, %v3746_v47 }
0x1443   :  { %4034 = vmatmul.f32.gmra.mxu3 %v7466_v9 }
0x1448   :  { %v3957_v21 = vpop.f32.mrf.mxu0 }
0x1449   :  { %v7469_v34 = vadd.f32 %v3957_v21, %v3812_v25  ;;  %v3814_v50 = vpop.f32.mrf.mxu1 }
0x144a   :  { %v3815_v33 = vadd.f32 %v3814_v50, %v3749_v8 }
0x144b   :  { %4037 = vmatmul.f32.gmra.mxu3 %v7469_v34 }
0x1450   :  { %v3960_v20 = vpop.f32.mrf.mxu0 }
0x1451   :  { %v7472_v44 = vadd.f32 %v3960_v20, %v3815_v33  ;;  %v3817_v52 = vpop.f32.mrf.mxu1 }
0x1452   :  { %v3818_v39 = vadd.f32 %v3817_v52, %v3752_v12 }
0x1453   :  { %4040 = vmatmul.f32.gmra.mxu3 %v7472_v44 }
0x1458   :  { %v3963_v43 = vpop.f32.mrf.mxu0 }
0x1459   :  { %v7475_v38 = vadd.f32 %v3963_v43, %v3818_v39  ;;  %v3820_v6 = vpop.f32.mrf.mxu1 }
0x145a   :  { %v3821_v26 = vadd.f32 %v3820_v6, %v3755_v45 }
0x145b   :  { %4043 = vmatmul.f32.gmra.mxu3 %v7475_v38 }
0x1460   :  { %v3966_v13 = vpop.f32.mrf.mxu0 }
0x1461   :  { %v7478_v14 = vadd.f32 %v3966_v13, %v3821_v26  ;;  %v3823_v31 = vpop.f32.mrf.mxu1 }
0x1462   :  { %v3824_v41 = vadd.f32 %v3823_v31, %v3758_v49 }
0x1463   :  { %4046 = vmatmul.f32.gmra.mxu3 %v7478_v14 }
0x1468   :  { %v3969_v2 = vpop.f32.mrf.mxu0 }
0x1469   :  { %v7481_v18 = vadd.f32 %v3969_v2, %v3824_v41  ;;  %v3826_v55 = vpop.f32.mrf.mxu1 }
0x146a   :  { %v3827_v56 = vadd.f32 %v3826_v55, %v3761_v17 }
0x146b   :  { %4049 = vmatmul.f32.gmra.mxu3 %v7481_v18 }
0x1470   :  { %v3972_v58 = vpop.f32.mrf.mxu0 }
0x1471   :  { %v7484_v23 = vadd.f32 %v3972_v58, %v3827_v56  ;;  %v3829_v1 = vpop.f32.mrf.mxu1 }
0x1472   :  { %v3830_v37 = vadd.f32 %v3829_v1, %v3764_v4 }
0x1473   :  { %4052 = vmatmul.f32.gmra.mxu3 %v7484_v23 }
0x1478   :  { %v3975_v61 = vpop.f32.mrf.mxu0 }
0x1479   :  { %v7487_v40 = vadd.f32 %v3975_v61, %v3830_v37  ;;  %v3832_v30 = vpop.f32.mrf.mxu1 }
0x147a   :  { %v3833_v46 = vadd.f32 %v3832_v30, %v3767_v10 }
0x147b   :  { %4055 = vmatmul.f32.gmra.mxu3 %v7487_v40 }
0x1480   :  { %v3978_v7 = vpop.f32.mrf.mxu0 }
0x1481   :  { %v7490_v32 = vadd.f32 %v3978_v7, %v3833_v46  ;;  %v3835_v27 = vpop.f32.mrf.mxu1 }
0x1482   :  { %v3836_v36 = vadd.f32 %v3835_v27, %v3770_v3 }
0x1483   :  { %4058 = vmatmul.f32.gmra.mxu3 %v7490_v32 }
0x1488   :  { %v3981_v54 = vpop.f32.mrf.mxu0 }
0x1489   :  { %v7493_v63 = vadd.f32 %v3981_v54, %v3836_v36 }
0x148b   :  { %4061 = vmatmul.f32.gmra.mxu3 %v7493_v63 }
0x1496   :  { %v4017_v11 = vpop.f32.mrf.mxu3 }
0x149e   :  { %v4020_v60 = vpop.f32.mrf.mxu3 }
0x149f   :  { %v4065_v28 = vadd.f32 %v4020_v60, %v4017_v11 }
0x14a6   :  { %v4023_v51 = vpop.f32.mrf.mxu3 }
0x14a7   :  { %v4066_v59 = vadd.f32 %v4065_v28, %v4023_v51 }
0x14ae   :  { %v4026_v24 = vpop.f32.mrf.mxu3 }
0x14af   :  { %v4067_v5 = vadd.f32 %v4066_v59, %v4026_v24 }
0x14b6   :  { %v4029_v47 = vpop.f32.mrf.mxu3 }
0x14b7   :  { %v4068_v57 = vadd.f32 %v4067_v5, %v4029_v47 }
0x14be   :  { %v4032_v16 = vpop.f32.mrf.mxu3 }
0x14bf   :  { %v4069_v50 = vadd.f32 %v4068_v57, %v4032_v16 }
0x14c6   :  { %v4035_v29 = vpop.f32.mrf.mxu3 }
0x14c7   :  { %v4070_v12 = vadd.f32 %v4069_v50, %v4035_v29 }
0x14ce   :  { %v4038_v15 = vpop.f32.mrf.mxu3 }
0x14cf   :  { %v4071_v20 = vadd.f32 %v4070_v12, %v4038_v15 }
0x14d6   :  { %v4041_v8 = vpop.f32.mrf.mxu3 }
0x14d7   :  { %v4072_v52 = vadd.f32 %v4071_v20, %v4041_v8 }
0x14de   :  { %v4044_v42 = vpop.f32.mrf.mxu3 }
0x14df   :  { %v4073_v45 = vadd.f32 %v4072_v52, %v4044_v42 }
0x14e6   :  { %v4047_v22 = vpop.f32.mrf.mxu3 }
0x14e7   :  { %v4074_v39 = vadd.f32 %v4073_v45, %v4047_v22  ;;  %v4277_v45 = vld [vmem:[%s7579_s21 + $0xf0] sm:$0xff] }
0x14e8   :  { %4285 = vmatpush.msrb.mxu2 %v4277_v45  ;;  %v4248_v45 = vld [vmem:[%s7579_s21 + $0x8] sm:$0xff] }
0x14ee   :  { %v4050_v25 = vpop.f32.mrf.mxu3 }
0x14ef   :  { %v4075_v6 = vadd.f32 %v4074_v39, %v4050_v25  ;;  %v4278_v39 = vld [vmem:[%s7579_s21 + $0xf8] sm:$0xff] }
0x14f0   :  { %4350 = vmatpush.msrb.mxu0 %v4278_v39 }
0x14f6   :  { %v4053_v21 = vpop.f32.mrf.mxu3 }
0x14f7   :  { %v4076_v49 = vadd.f32 %v4075_v6, %v4053_v21  ;;  %v4275_v6 = vld [vmem:[%s7579_s21 + $0xe0] sm:$0xff] }
0x14f8   :  { %4286 = vmatpush.msrb.mxu2 %v4275_v6 }
0x14fe   :  { %v4056_v33 = vpop.f32.mrf.mxu3 }
0x14ff   :  { %v4077_v26 = vadd.f32 %v4076_v49, %v4056_v33  ;;  %v4276_v49 = vld [vmem:[%s7579_s21 + $0xe8] sm:$0xff] }
0x1500   :  { %4351 = vmatpush.msrb.mxu0 %v4276_v49 }
0x1506   :  { %v4059_v43 = vpop.f32.mrf.mxu3 }
0x1507   :  { %v4078_v13 = vadd.f32 %v4077_v26, %v4059_v43 }
0x150e   :  { %v4062_v31 = vpop.f32.mrf.mxu3 }
0x150f   :  { %v4079_v41 = vadd.f32 %v4078_v13, %v4062_v31  ;;  %v4273_v31 = vld [vmem:[%s7579_s21 + $0xd0] sm:$0xff] }
0x1510   :  { %4287 = vmatpush.msrb.mxu2 %v4273_v31 }
0x1511   :  { %v4080_v17 = vrot.slane %v4079_v41, 4 }
0x1513   :  { %v4081_v2 = vadd.f32 %v4080_v17, %v4079_v41  ;;  %v4274_v41 = vld [vmem:[%s7579_s21 + $0xd8] sm:$0xff] }
0x1514   :  { %4352 = vmatpush.msrb.mxu0 %v4274_v41 }
0x1515   :  { %v4082_v55 = vrot.slane %v4081_v2, 2 }
0x1517   :  { %v4083_v56 = vadd.f32 %v4082_v55, %v4081_v2  ;;  %v4271_v2 = vld [vmem:[%s7579_s21 + $0xc0] sm:$0xff]  ;;  %v4272_v55 = vld [vmem:[%s7579_s21 + $0xc8] sm:$0xff] }
0x1518   :  { %4288 = vmatpush.msrb.mxu2 %v4271_v2  ;;  %4353 = vmatpush.msrb.mxu0 %v4272_v55 }
0x1519   :  { %v4084_v58 = vrot.slane %v4083_v56, 1 }
0x151b   :  { %v4085_v1 = vadd.f32 %v4084_v58, %v4083_v56  ;;  %v4269_v58 = vld [vmem:[%s7579_s21 + $0xb0] sm:$0xff] }
0x151c   :  { %4289 = vmatpush.msrb.mxu2 %v4269_v58 }
0x151d   :  { %v7497_v4 = vsub.f32 %v7448_v0, %v4085_v1  ;;  %v7502_v61 = vsub.f32 %v7451_v62, %v4085_v1  ;;  %v7507_v10 = vsub.f32 %v7454_v48, %v4085_v1  ;;  %v7512_v0 = vsub.f32 %v7457_v53, %v4085_v1 }
0x151e   :  { %v7517_v62 = vsub.f32 %v7460_v35, %v4085_v1  ;;  %v7522_v48 = vsub.f32 %v7463_v19, %v4085_v1  ;;  %v7527_v53 = vsub.f32 %v7466_v9, %v4085_v1  ;;  %v7532_v35 = vsub.f32 %v7469_v34, %v4085_v1 }
0x151f   :  { %v4102_v37 = vmul.f32 %v7497_v4, %v7497_v4  ;;  %v4103_v30 = vmul.f32 %v7502_v61, %v7502_v61  ;;  %v4104_v46 = vmul.f32 %v7507_v10, %v7507_v10  ;;  %v4105_v7 = vmul.f32 %v7512_v0, %v7512_v0 }
0x1520   :  { %v4106_v27 = vmul.f32 %v7517_v62, %v7517_v62  ;;  %v4107_v3 = vmul.f32 %v7522_v48, %v7522_v48  ;;  %v4108_v36 = vmul.f32 %v7527_v53, %v7527_v53  ;;  %v4109_v54 = vmul.f32 %v7532_v35, %v7532_v35 }
0x1521   :  { %4134 = vmatmul.f32.vlgmr.msrb.gmra.mxu1 %v4102_v37  ;;  %v7537_v19 = vsub.f32 %v7472_v44, %v4085_v1  ;;  %v7542_v9 = vsub.f32 %v7475_v38, %v4085_v1  ;;  %v7547_v34 = vsub.f32 %v7478_v14, %v4085_v1  ;;  %v7552_v44 = vsub.f32 %v7481_v18, %v4085_v1 }
0x1522   :  { %v7557_v38 = vsub.f32 %v7484_v23, %v4085_v1  ;;  %v7562_v14 = vsub.f32 %v7487_v40, %v4085_v1  ;;  %v7567_v18 = vsub.f32 %v7490_v32, %v4085_v1  ;;  %v7572_v23 = vsub.f32 %v7493_v63, %v4085_v1  ;;  %v4270_v1 = vld [vmem:[%s7579_s21 + $0xb8] sm:$0xff] }
0x1523   :  { %v4110_v11 = vmul.f32 %v7537_v19, %v7537_v19  ;;  %v4111_v60 = vmul.f32 %v7542_v9, %v7542_v9  ;;  %v4112_v28 = vmul.f32 %v7547_v34, %v7547_v34  ;;  %v4113_v51 = vmul.f32 %v7552_v44, %v7552_v44  ;;  %4354 = vmatpush.msrb.mxu0 %v4270_v1 }
0x1524   :  { %v4114_v59 = vmul.f32 %v7557_v38, %v7557_v38  ;;  %v4115_v24 = vmul.f32 %v7562_v14, %v7562_v14  ;;  %v4116_v5 = vmul.f32 %v7567_v18, %v7567_v18  ;;  %v4117_v47 = vmul.f32 %v7572_v23, %v7572_v23 }
0x1529   :  { %4137 = vmatmul.f32.gmra.mxu1 %v4103_v30  ;;  %v4267_v30 = vld [vmem:[%s7579_s21 + $0xa0] sm:$0xff] }
0x152a   :  { %4290 = vmatpush.msrb.mxu2 %v4267_v30 }
0x1531   :  { %4140 = vmatmul.f32.gmra.mxu1 %v4104_v46  ;;  %v4268_v46 = vld [vmem:[%s7579_s21 + $0xa8] sm:$0xff] }
0x1532   :  { %4355 = vmatpush.msrb.mxu0 %v4268_v46 }
0x1539   :  { %4143 = vmatmul.f32.gmra.mxu1 %v4105_v7 }
0x1541   :  { %4146 = vmatmul.f32.gmra.mxu1 %v4106_v27 }
0x1549   :  { %4149 = vmatmul.f32.gmra.mxu1 %v4107_v3  ;;  %v4265_v3 = vld [vmem:[%s7579_s21 + $0x90] sm:$0xff] }
0x154a   :  { %4291 = vmatpush.msrb.mxu2 %v4265_v3 }
0x1551   :  { %4152 = vmatmul.f32.gmra.mxu1 %v4108_v36  ;;  %v4266_v36 = vld [vmem:[%s7579_s21 + $0x98] sm:$0xff] }
0x1552   :  { %4356 = vmatpush.msrb.mxu0 %v4266_v36 }
0x1559   :  { %4155 = vmatmul.f32.gmra.mxu1 %v4109_v54 }
0x1561   :  { %4158 = vmatmul.f32.gmra.mxu1 %v4110_v11  ;;  %v4263_v11 = vld [vmem:[%s7579_s21 + $0x80] sm:$0xff] }
0x1562   :  { %4292 = vmatpush.msrb.mxu2 %v4263_v11 }
0x1569   :  { %4161 = vmatmul.f32.gmra.mxu1 %v4111_v60  ;;  %v4264_v60 = vld [vmem:[%s7579_s21 + $0x88] sm:$0xff] }
0x156a   :  { %4357 = vmatpush.msrb.mxu0 %v4264_v60 }
0x1571   :  { %4164 = vmatmul.f32.gmra.mxu1 %v4112_v28 }
0x1579   :  { %4167 = vmatmul.f32.gmra.mxu1 %v4113_v51  ;;  %v4261_v51 = vld [vmem:[%s7579_s21 + $0x70] sm:$0xff] }
0x157a   :  { %4293 = vmatpush.msrb.mxu2 %v4261_v51 }
0x1581   :  { %4170 = vmatmul.f32.gmra.mxu1 %v4114_v59  ;;  %v4262_v59 = vld [vmem:[%s7579_s21 + $0x78] sm:$0xff] }
0x1582   :  { %4358 = vmatpush.msrb.mxu0 %v4262_v59 }
0x1589   :  { %4173 = vmatmul.f32.gmra.mxu1 %v4115_v24 }
0x1591   :  { %4176 = vmatmul.f32.gmra.mxu1 %v4116_v5  ;;  %v4259_v5 = vld [vmem:[%s7579_s21 + $0x60] sm:$0xff] }
0x1592   :  { %4294 = vmatpush.msrb.mxu2 %v4259_v5 }
0x1599   :  { %4179 = vmatmul.f32.gmra.mxu1 %v4117_v47  ;;  %v4260_v47 = vld [vmem:[%s7579_s21 + $0x68] sm:$0xff] }
0x159a   :  { %4359 = vmatpush.msrb.mxu0 %v4260_v47 }
0x159e   :  { %v4135_v40 = vpop.f32.mrf.mxu1 }
0x15a6   :  { %v4138_v57 = vpop.f32.mrf.mxu1 }
0x15a7   :  { %v4183_v16 = vadd.f32 %v4138_v57, %v4135_v40 }
0x15ae   :  { %v4141_v29 = vpop.f32.mrf.mxu1 }
0x15af   :  { %v4184_v15 = vadd.f32 %v4183_v16, %v4141_v29  ;;  %v4257_v16 = vld [vmem:[%s7579_s21 + $0x50] sm:$0xff]  ;;  %v4258_v29 = vld [vmem:[%s7579_s21 + $0x58] sm:$0xff] }
0x15b0   :  { %4295 = vmatpush.msrb.mxu2 %v4257_v16  ;;  %4360 = vmatpush.msrb.mxu0 %v4258_v29 }
0x15b6   :  { %v4144_v8 = vpop.f32.mrf.mxu1 }
0x15b7   :  { %v4185_v42 = vadd.f32 %v4184_v15, %v4144_v8  ;;  %v4255_v8 = vld [vmem:[%s7579_s21 + $0x40] sm:$0xff] }
0x15b8   :  { %4296 = vmatpush.msrb.mxu2 %v4255_v8 }
0x15be   :  { %v4147_v32 = vpop.f32.mrf.mxu1 }
0x15bf   :  { %v4186_v22 = vadd.f32 %v4185_v42, %v4147_v32  ;;  %v4256_v42 = vld [vmem:[%s7579_s21 + $0x48] sm:$0xff]  ;;  %v4253_v32 = vld [vmem:[%s7579_s21 + $0x30] sm:$0xff] }
0x15c0   :  { %4361 = vmatpush.msrb.mxu0 %v4256_v42  ;;  %4297 = vmatpush.msrb.mxu2 %v4253_v32 }
0x15c6   :  { %v4150_v25 = vpop.f32.mrf.mxu1 }
0x15c7   :  { %v4187_v43 = vadd.f32 %v4186_v22, %v4150_v25  ;;  %v4254_v25 = vld [vmem:[%s7579_s21 + $0x38] sm:$0xff] }
0x15c8   :  { %4362 = vmatpush.msrb.mxu0 %v4254_v25 }
0x15ce   :  { %v4153_v21 = vpop.f32.mrf.mxu1 }
0x15cf   :  { %v4188_v26 = vadd.f32 %v4187_v43, %v4153_v21  ;;  %v4251_v21 = vld [vmem:[%s7579_s21 + $0x20] sm:$0xff] }
0x15d0   :  { %4298 = vmatpush.msrb.mxu2 %v4251_v21 }
0x15d6   :  { %v4156_v50 = vpop.f32.mrf.mxu1 }
0x15d7   :  { %v4189_v17 = vadd.f32 %v4188_v26, %v4156_v50  ;;  %v4252_v50 = vld [vmem:[%s7579_s21 + $0x28] sm:$0xff] }
0x15d8   :  { %4363 = vmatpush.msrb.mxu0 %v4252_v50 }
0x15de   :  { %v4159_v12 = vpop.f32.mrf.mxu1 }
0x15df   :  { %v4190_v56 = vadd.f32 %v4189_v17, %v4159_v12 }
0x15e6   :  { %v4162_v33 = vpop.f32.mrf.mxu1 }
0x15e7   :  { %v4191_v37 = vadd.f32 %v4190_v56, %v4162_v33  ;;  %v4249_v33 = vld [vmem:[%s7579_s21 + $0x10] sm:$0xff] }
0x15e8   :  { %4299 = vmatpush.msrb.mxu2 %v4249_v33 }
0x15ee   :  { %v4165_v63 = vpop.f32.mrf.mxu1 }
0x15ef   :  { %v4192_v7 = vadd.f32 %v4191_v37, %v4165_v63  ;;  %v4250_v63 = vld [vmem:[%s7579_s21 + $0x18] sm:$0xff] }
0x15f0   :  { %4364 = vmatpush.msrb.mxu0 %v4250_v63 }
0x15f2   :  { %4365 = vmatpush.msrb.mxu0 %v4248_v45 }
0x15f6   :  { %v4168_v20 = vpop.f32.mrf.mxu1 }
0x15f7   :  { %v4193_v54 = vadd.f32 %v4192_v7, %v4168_v20 }
0x15fe   :  { %v4171_v52 = vpop.f32.mrf.mxu1 }
0x15ff   :  { %v4194_v28 = vadd.f32 %v4193_v54, %v4171_v52  ;;  %v4247_v52 = vld [vmem:[%s7579_s21] sm:$0xff] }
0x1600   :  { %4300 = vmatpush.msrb.mxu2 %v4247_v52 }
0x1606   :  { %v4174_v13 = vpop.f32.mrf.mxu1 }
0x1607   :  { %v4195_v24 = vadd.f32 %v4194_v28, %v4174_v13 }
0x160e   :  { %v4177_v27 = vpop.f32.mrf.mxu1 }
0x160f   :  { %v4196_v40 = vadd.f32 %v4195_v24, %v4177_v27 }
0x1616   :  { %v4180_v57 = vpop.f32.mrf.mxu1 }
0x1617   :  { %v4197_v15 = vadd.f32 %v4196_v40, %v4180_v57  ;;  %v4279_v40 = vld [vmem:[%s5093_s25] sm:$0x3] }
0x1618   :  { %v7653_v29 = vperm.slane %v4279_v40, 0 }
0x1619   :  { %v4198_v22 = vrot.slane %v4197_v15, 4 }
0x161b   :  { %v4199_v12 = vadd.f32 %v4198_v22, %v4197_v15 }
0x161d   :  { %v4200_v20 = vrot.slane %v4199_v12, 2 }
0x161f   :  { %v4201_v39 = vadd.f32 %v4200_v20, %v4199_v12 }
0x1621   :  { %v4202_v43 = vrot.slane %v4201_v39, 1 }
0x1623   :  { %v4203_v6 = vadd.f32 %v4202_v43, %v4201_v39 }
0x1625   :  { %v4204_v49 = vadd.f32 1e-05, %v4203_v6 }
0x1627   :  { %5267 = vrsqrt.f32 %v4204_v49  ;;  %vm4211_vm4 = vweird.f32 %v4204_v49 }
0x162d   :  { %v5268_v26 = vpop.eup %5267 }
0x162e   :  { %v4206_v13 = vmul.f32 %v5268_v26, %v4204_v49  ;;  %vm4212_vm3 = vweird.f32 %v5268_v26 }
0x162f   :  { %vm4213_vm5 = vmor %vm4211_vm4, %vm4212_vm3 }
0x1630   :  { %v4207_v31 = vmul.f32 %v5268_v26, %v4206_v13 }
0x1632   :  { %v4208_v41 = vmul.f32 0.5, %v4207_v31 }
0x1634   :  { %v4209_v17 = vsub.f32 1.5, %v4208_v41 }
0x1636   :  { %v4210_v2 = vmul.f32 %v5268_v26, %v4209_v17 }
0x1638   :  { %v7613_v55 = vsel %vm4213_vm5, %v5268_v26, %v4210_v2 }
0x1639   :  { %v4215_v56 = vmul.f32 %v7613_v55, %v7497_v4  ;;  %v4216_v1 = vmul.f32 %v7613_v55, %v7502_v61  ;;  %v4217_v30 = vmul.f32 %v7613_v55, %v7507_v10  ;;  %v4218_v7 = vmul.f32 %v7613_v55, %v7512_v0 }
0x163a   :  { %v4219_v4 = vmul.f32 %v7613_v55, %v7517_v62  ;;  %v4220_v61 = vmul.f32 %v7613_v55, %v7522_v48  ;;  %v4221_v10 = vmul.f32 %v7613_v55, %v7527_v53  ;;  %v4222_v0 = vmul.f32 %v7613_v55, %v7532_v35 }
0x163b   :  { %v4231_v58 = vmax.f32 %v4215_v56, 0.0  ;;  %v4232_v37 = vmax.f32 %v4216_v1, 0.0  ;;  %v4233_v46 = vmax.f32 %v4217_v30, 0.0  ;;  %v4234_v27 = vmax.f32 %v4218_v7, 0.0 }
0x163c   :  { %v4235_v3 = vmax.f32 %v4219_v4, 0.0  ;;  %v4236_v36 = vmax.f32 %v4220_v61, 0.0  ;;  %v4237_v54 = vmax.f32 %v4221_v10, 0.0  ;;  %v4238_v11 = vmax.f32 %v4222_v0, 0.0 }
0x163d   :  { %4301 = vmatmul.f32.vlgmr.msrb.gmra.mxu2 %v4231_v58  ;;  %4366 = vmatmul.f32.vlgmr.msrb.gmra.mxu0 %v4231_v58  ;;  %v4223_v62 = vmul.f32 %v7613_v55, %v7537_v19  ;;  %v4224_v48 = vmul.f32 %v7613_v55, %v7542_v9  ;;  %v4225_v53 = vmul.f32 %v7613_v55, %v7547_v34 }
0x163e   :  { %v4226_v35 = vmul.f32 %v7613_v55, %v7552_v44  ;;  %v4227_v19 = vmul.f32 %v7613_v55, %v7557_v38  ;;  %v4228_v9 = vmul.f32 %v7613_v55, %v7562_v14  ;;  %v4229_v34 = vmul.f32 %v7613_v55, %v7567_v18 }
0x163f   :  { %v4239_v60 = vmax.f32 %v4223_v62, 0.0  ;;  %v4240_v28 = vmax.f32 %v4224_v48, 0.0  ;;  %v4241_v51 = vmax.f32 %v4225_v53, 0.0  ;;  %v4230_v44 = vmul.f32 %v7613_v55, %v7572_v23 }
0x1640   :  { %v4242_v59 = vmax.f32 %v4226_v35, 0.0  ;;  %v4243_v24 = vmax.f32 %v4227_v19, 0.0  ;;  %v4244_v5 = vmax.f32 %v4228_v9, 0.0  ;;  %v4245_v47 = vmax.f32 %v4229_v34, 0.0 }
0x1641   :  { %v4246_v38 = vmax.f32 %v4230_v44, 0.0  ;;  %v7650_v14 = vperm.slane %v4279_v40, 1 }
0x1645   :  { %4304 = vmatmul.f32.gmra.mxu2 %v4232_v37  ;;  %4369 = vmatmul.f32.gmra.mxu0 %v4232_v37 }
0x164d   :  { %4307 = vmatmul.f32.gmra.mxu2 %v4233_v46  ;;  %4372 = vmatmul.f32.gmra.mxu0 %v4233_v46 }
0x1655   :  { %4310 = vmatmul.f32.gmra.mxu2 %v4234_v27  ;;  %4375 = vmatmul.f32.gmra.mxu0 %v4234_v27 }
0x165d   :  { %4313 = vmatmul.f32.gmra.mxu2 %v4235_v3  ;;  %4378 = vmatmul.f32.gmra.mxu0 %v4235_v3 }
0x1665   :  { %4316 = vmatmul.f32.gmra.mxu2 %v4236_v36  ;;  %4381 = vmatmul.f32.gmra.mxu0 %v4236_v36 }
0x166d   :  { %4319 = vmatmul.f32.gmra.mxu2 %v4237_v54  ;;  %4384 = vmatmul.f32.gmra.mxu0 %v4237_v54 }
0x1675   :  { %4322 = vmatmul.f32.gmra.mxu2 %v4238_v11  ;;  %4387 = vmatmul.f32.gmra.mxu0 %v4238_v11 }
0x167d   :  { %4325 = vmatmul.f32.gmra.mxu2 %v4239_v60  ;;  %4390 = vmatmul.f32.gmra.mxu0 %v4239_v60 }
0x1685   :  { %4328 = vmatmul.f32.gmra.mxu2 %v4240_v28  ;;  %4393 = vmatmul.f32.gmra.mxu0 %v4240_v28 }
0x168d   :  { %4331 = vmatmul.f32.gmra.mxu2 %v4241_v51  ;;  %4396 = vmatmul.f32.gmra.mxu0 %v4241_v51 }
0x1695   :  { %4334 = vmatmul.f32.gmra.mxu2 %v4242_v59  ;;  %4399 = vmatmul.f32.gmra.mxu0 %v4242_v59 }
0x169d   :  { %4337 = vmatmul.f32.gmra.mxu2 %v4243_v24  ;;  %4402 = vmatmul.f32.gmra.mxu0 %v4243_v24 }
0x16a5   :  { %4340 = vmatmul.f32.gmra.mxu2 %v4244_v5  ;;  %4405 = vmatmul.f32.gmra.mxu0 %v4244_v5 }
0x16ad   :  { %4343 = vmatmul.f32.gmra.mxu2 %v4245_v47  ;;  %4408 = vmatmul.f32.gmra.mxu0 %v4245_v47 }
0x16b5   :  { %4346 = vmatmul.f32.gmra.mxu2 %v4246_v38  ;;  %4411 = vmatmul.f32.gmra.mxu0 %v4246_v38 }
0x16ba   :  { %v4367_v57 = vpop.f32.mrf.mxu0 }
0x16bb   :  { %v4368_v18 = vadd.f32 %v4367_v57, %v7650_v14 }
0x16bd   :  { %v4416_v16 = vsub.f32 0.0, %v4368_v18 }
0x16bf   :  { %v4449_v15 = vmul.f32 1.442695, %v4416_v16 }
0x16c0   :  { %v4302_v8 = vpop.f32.mrf.mxu2 }
0x16c1   :  { %5269 = vpow2.f32 %v4449_v15  ;;  %v4303_v42 = vadd.f32 %v4302_v8, %v7653_v29 }
0x16c2   :  { %v4370_v32 = vpop.f32.mrf.mxu0 }
0x16c3   :  { %v4415_v22 = vsub.f32 0.0, %v4303_v42  ;;  %v4371_v23 = vadd.f32 %v4370_v32, %v7650_v14 }
0x16c5   :  { %v4447_v25 = vmul.f32 1.442695, %v4415_v22  ;;  %v4418_v21 = vsub.f32 0.0, %v4371_v23 }
0x16c7   :  { %v5270_v50 = vpop.eup %5269  ;;  %5271 = vpow2.f32 %v4447_v25  ;;  %v4453_v12 = vmul.f32 1.442695, %v4418_v21 }
0x16c8   :  { %v4512_v33 = vadd.f32 1.0, %v5270_v50  ;;  %v4305_v63 = vpop.f32.mrf.mxu2 }
0x16c9   :  { %5273 = vpow2.f32 %v4453_v12  ;;  %v4306_v20 = vadd.f32 %v4305_v63, %v7653_v29 }
0x16ca   :  { %5275 = vrcp.f32 %v4512_v33  ;;  %v4373_v52 = vpop.f32.mrf.mxu0  ;;  %v4567_v56 = vand.u32 2147483647, %v4512_v33  ;;  %v4569_v30 = vand.u32 2147483648, %v4512_v33  ;;  %vm4563_vm7 = vweird.f32 %v4512_v33 }
0x16cb   :  { %v4417_v45 = vsub.f32 0.0, %v4306_v20  ;;  %v4374_v39 = vadd.f32 %v4373_v52, %v7650_v14 }
0x16cc   :  { %vm7672_vm8 = vcmp.eq.f32.partialorder %v4567_v56, 8.507059e+37  ;;  %v4570_v11 = vor.u32 1.1754944e-38, %v4569_v30 }
0x16cd   :  { %v5272_v43 = vpop.eup %5271  ;;  %v4451_v6 = vmul.f32 1.442695, %v4417_v45  ;;  %v4420_v49 = vsub.f32 0.0, %v4374_v39 }
0x16ce   :  { %v7659_v26 = vadd.f32 1.0, %v5272_v43 }
0x16cf   :  { %v5274_v13 = vpop.eup %5273  ;;  %5277 = vpow2.f32 %v4451_v6  ;;  %v4457_v31 = vmul.f32 1.442695, %v4420_v49 }
0x16d0   :  { %v5276_v41 = vpop.eup %5275  ;;  %5279 = vrcp.f32 %v7659_v26  ;;  %v4308_v17 = vpop.f32.mrf.mxu2  ;;  %v7662_v55 = vadd.f32 1.0, %v5274_v13  ;;  %v4552_v60 = vand.u32 2147483647, %v7659_v26  ;;  %v4554_v48 = vand.u32 2147483648, %v7659_v26 }
0x16d1   :  { %v4559_v2 = vmul.f32 %v5276_v41, %v4512_v33  ;;  %5281 = vpow2.f32 %v4457_v31  ;;  %v4309_v58 = vadd.f32 %v4308_v17, %v7653_v29  ;;  %vm4564_vm6 = vweird.f32 %v5276_v41 }
0x16d2   :  { %v4376_v1 = vpop.f32.mrf.mxu0  ;;  %5283 = vrcp.f32 %v7662_v55  ;;  %vm4565_vm9 = vmor %vm4563_vm7, %vm4564_vm6  ;;  %v4597_v28 = vand.u32 2147483647, %v7662_v55  ;;  %vm4548_vm10 = vweird.f32 %v7659_v26  ;;  %v4599_v34 = vand.u32 2147483648, %v7662_v55 }
0x16d3   :  { %v4560_v37 = vsub.f32 1.0, %v4559_v2  ;;  %v4419_v46 = vsub.f32 0.0, %v4309_v58  ;;  %v4377_v7 = vadd.f32 %v4376_v1, %v7650_v14  ;;  %vm7692_vm12 = vcmp.eq.f32.partialorder %v4552_v60, 8.507059e+37 }
0x16d4   :  { %v4555_v40 = vor.u32 1.1754944e-38, %v4554_v48  ;;  %vm4593_vm13 = vweird.f32 %v7662_v55  ;;  %vm7698_vm14 = vcmp.eq.f32.partialorder %v4597_v28, 8.507059e+37  ;;  %v4600_v23 = vor.u32 1.1754944e-38, %v4599_v34 }
0x16d5   :  { %v5278_v27 = vpop.eup %5277  ;;  %v4561_v4 = vmul.f32 %v5276_v41, %v4560_v37  ;;  %v4455_v10 = vmul.f32 1.442695, %v4419_v46  ;;  %v4422_v53 = vsub.f32 0.0, %v4377_v7 }
0x16d6   :  { %v5280_v3 = vpop.eup %5279  ;;  %v7676_v36 = vadd.f32 1.0, %v5278_v27 }
0x16d7   :  { %v5282_v54 = vpop.eup %5281  ;;  %v4562_v0 = vadd.f32 %v5276_v41, %v4561_v4  ;;  %v4544_v62 = vmul.f32 %v5280_v3, %v7659_v26  ;;  %vm4549_vm11 = vweird.f32 %v5280_v3  ;;  %v4461_v18 = vmul.f32 1.442695, %v4422_v53 }
0x16d8   :  { %5285 = vrcp.f32 %v7676_v36  ;;  %v4311_v51 = vpop.f32.mrf.mxu2  ;;  %v5284_v35 = vpop.eup %5283  ;;  %v7683_v24 = vadd.f32 1.0, %v5282_v54  ;;  %vm4550_vm15 = vmor %vm4548_vm10, %vm4549_vm11  ;;  %v4584_v12 = vand.u32 2147483648, %v7676_v36  ;;  %vm4578_vm3 = vweird.f32 %v7676_v36 }
0x16d9   :  { %v4566_v59 = vsel %vm4565_vm9, %v5276_v41, %v4562_v0  ;;  %v4545_v19 = vsub.f32 1.0, %v4544_v62  ;;  %5287 = vpow2.f32 %v4455_v10  ;;  %v4589_v5 = vmul.f32 %v5284_v35, %v7662_v55 }
0x16da   :  { %v4571_v9 = vsel %vm7672_vm8, %v4570_v11, %v4566_v59  ;;  %v4379_v47 = vpop.f32.mrf.mxu0  ;;  %5289 = vrcp.f32 %v7683_v24  ;;  %v4312_v8 = vadd.f32 %v4311_v51, %v7653_v29  ;;  %vm4594_vm1 = vweird.f32 %v5284_v35 }
0x16db   :  { %5024 = vst.msk [vmem:[%s7668_s29 + $0x8] sm:$0xff] %vm164_vm0, %v4571_v9  ;;  %v4546_v44 = vmul.f32 %v5280_v3, %v4545_v19  ;;  %v4590_v57 = vsub.f32 1.0, %v4589_v5  ;;  %v4380_v42 = vadd.f32 %v4379_v47, %v7650_v14  ;;  %5291 = vpow2.f32 %v4461_v18  ;;  %vm4595_vm2 = vmor %vm4593_vm13, %vm4594_vm1 }
0x16dc   :  { %v4421_v33 = vsub.f32 0.0, %v4312_v8  ;;  %v4582_v31 = vand.u32 2147483647, %v7676_v36  ;;  %v4585_v56 = vor.u32 1.1754944e-38, %v4584_v12  ;;  %v4627_v37 = vand.u32 2147483647, %v7683_v24 }
0x16dd   :  { %v4547_v16 = vadd.f32 %v5280_v3, %v4546_v44  ;;  %v4591_v22 = vmul.f32 %v5284_v35, %v4590_v57  ;;  %v4424_v45 = vsub.f32 0.0, %v4380_v42  ;;  %v4629_v7 = vand.u32 2147483648, %v7683_v24 }
0x16de   :  { %v5286_v32 = vpop.eup %5285  ;;  %v4459_v49 = vmul.f32 1.442695, %v4421_v33  ;;  %vm4583_vm7 = vcmp.eq.f32.partialorder %v4582_v31, 8.507059e+37  ;;  %vm4623_vm8 = vweird.f32 %v7683_v24  ;;  %vm4628_vm10 = vcmp.eq.f32.partialorder %v4627_v37, 8.507059e+37 }
0x16df   :  { %v5288_v25 = vpop.eup %5287  ;;  %v4551_v21 = vsel %vm4550_vm15, %v5280_v3, %v4547_v16  ;;  %v4574_v50 = vmul.f32 %v5286_v32, %v7676_v36  ;;  %v4592_v20 = vadd.f32 %v5284_v35, %v4591_v22  ;;  %vm4579_vm4 = vweird.f32 %v5286_v32 }
0x16e0   :  { %v4556_v63 = vsel %vm7692_vm12, %v4555_v40, %v4551_v21  ;;  %v7710_v52 = vadd.f32 1.0, %v5288_v25  ;;  %v4314_v39 = vpop.f32.mrf.mxu2  ;;  %v5290_v43 = vpop.eup %5289  ;;  %v4465_v30 = vmul.f32 1.442695, %v4424_v45  ;;  %vm4580_vm5 = vmor %vm4578_vm3, %vm4579_vm4  ;;  %v4630_v36 = vor.u32 1.1754944e-38, %v4629_v7 }
0x16e1   :  { %5023 = vst [vmem:[%s7668_s29] sm:$0xff] %v4556_v63  ;;  %v4575_v6 = vsub.f32 1.0, %v4574_v50  ;;  %v4315_v26 = vadd.f32 %v4314_v39, %v7653_v29  ;;  %v4596_v13 = vsel %vm4595_vm2, %v5284_v35, %v4592_v20  ;;  %v4619_v41 = vmul.f32 %v5290_v43, %v7683_v24  ;;  %v5292_v58 = vpop.eup %5291 }
0x16e2   :  { %5293 = vrcp.f32 %v7710_v52  ;;  %v4382_v17 = vpop.f32.mrf.mxu0  ;;  %v4601_v2 = vsel %vm7698_vm14, %v4600_v23, %v4596_v13  ;;  %v7727_v27 = vadd.f32 1.0, %v5292_v58  ;;  %vm4624_vm6 = vweird.f32 %v5290_v43 }
0x16e3   :  { %v4576_v55 = vmul.f32 %v5286_v32, %v4575_v6  ;;  %5026 = vst.msk [vmem:[%s7668_s29 + $0x18] sm:$0xff] %vm164_vm0, %v4601_v2  ;;  %v4620_v1 = vsub.f32 1.0, %v4619_v41  ;;  %5295 = vpow2.f32 %v4459_v49  ;;  %v4423_v4 = vsub.f32 0.0, %v4315_v26  ;;  %vm4625_vm9 = vmor %vm4623_vm8, %vm4624_vm6 }
0x16e4   :  { %5297 = vpow2.f32 %v4465_v30  ;;  %v4383_v61 = vadd.f32 %v4382_v17, %v7650_v14  ;;  %v4612_v28 = vand.u32 2147483647, %v7710_v52  ;;  %vm4608_vm11 = vweird.f32 %v7710_v52 }
0x16e5   :  { %v4577_v46 = vadd.f32 %v5286_v32, %v4576_v55  ;;  %v4621_v3 = vmul.f32 %v5290_v43, %v4620_v1  ;;  %5299 = vrcp.f32 %v7727_v27  ;;  %v4463_v62 = vmul.f32 1.442695, %v4423_v4 }
0x16e6   :  { %v4426_v53 = vsub.f32 0.0, %v4383_v61  ;;  %v4614_v44 = vand.u32 2147483648, %v7710_v52  ;;  %vm7744_vm13 = vcmp.eq.f32.partialorder %v4612_v28, 8.507059e+37  ;;  %v4657_v15 = vand.u32 2147483647, %v7727_v27 }
0x16e7   :  { %v4581_v10 = vsel %vm4580_vm5, %v5286_v32, %v4577_v46  ;;  %v4622_v11 = vadd.f32 %v5290_v43, %v4621_v3  ;;  %5301 = vpow2.f32 %v4463_v62  ;;  %v4659_v22 = vand.u32 2147483648, %v7727_v27 }
0x16e8   :  { %v5294_v54 = vpop.eup %5293  ;;  %v4586_v0 = vsel %vm4583_vm7, %v4585_v56, %v4581_v10  ;;  %v4317_v60 = vpop.f32.mrf.mxu2  ;;  %v4469_v34 = vmul.f32 1.442695, %v4426_v53  ;;  %v4615_v21 = vor.u32 1.1754944e-38, %v4614_v44  ;;  %vm4653_vm1 = vweird.f32 %v7727_v27 }
0x16e9   :  { %5025 = vst [vmem:[%s7668_s29 + $0x10] sm:$0xff] %v4586_v0  ;;  %v4604_v48 = vmul.f32 %v5294_v54, %v7710_v52  ;;  %v5296_v51 = vpop.eup %5295  ;;  %v4626_v35 = vsel %vm4625_vm9, %v5290_v43, %v4622_v11  ;;  %v4318_v59 = vadd.f32 %v4317_v60, %v7653_v29  ;;  %vm4609_vm12 = vweird.f32 %v5294_v54 }
0x16ea   :  { %v4385_v19 = vpop.f32.mrf.mxu0  ;;  %v4631_v9 = vsel %vm4628_vm10, %v4630_v36, %v4626_v35  ;;  %v7738_v5 = vadd.f32 1.0, %v5296_v51  ;;  %v5298_v47 = vpop.eup %5297  ;;  %vm4610_vm14 = vmor %vm4608_vm11, %vm4609_vm12  ;;  %vm7766_vm2 = vcmp.eq.f32.partialorder %v4657_v15, 8.507059e+37  ;;  %v4660_v13 = vor.u32 1.1754944e-38, %v4659_v22 }
0x16eb   :  { %v4605_v24 = vsub.f32 1.0, %v4604_v48  ;;  %5028 = vst.msk [vmem:[%s7668_s29 + $0x28] sm:$0xff] %vm164_vm0, %v4631_v9  ;;  %v4425_v38 = vsub.f32 0.0, %v4318_v59  ;;  %v5300_v40 = vpop.eup %5299  ;;  %v7751_v8 = vadd.f32 1.0, %v5298_v47  ;;  %v4386_v42 = vadd.f32 %v4385_v19, %v7650_v14 }
0x16ec   :  { %5303 = vrcp.f32 %v7738_v5  ;;  %v4649_v16 = vmul.f32 %v5300_v40, %v7727_v27  ;;  %v4642_v12 = vand.u32 2147483647, %v7738_v5  ;;  %vm4654_vm15 = vweird.f32 %v5300_v40 }
0x16ed   :  { %v4606_v57 = vmul.f32 %v5294_v54, %v4605_v24  ;;  %5305 = vpow2.f32 %v4469_v34  ;;  %v4467_v23 = vmul.f32 1.442695, %v4425_v38  ;;  %v5302_v25 = vpop.eup %5301  ;;  %v4644_v20 = vand.u32 2147483648, %v7738_v5  ;;  %vm4655_vm5 = vmor %vm4653_vm1, %vm4654_vm15 }
0x16ee   :  { %v4650_v50 = vsub.f32 1.0, %v4649_v16  ;;  %5307 = vrcp.f32 %v7751_v8  ;;  %v7760_v45 = vadd.f32 1.0, %v5302_v25  ;;  %v4428_v52 = vsub.f32 0.0, %v4386_v42 }
0x16ef   :  { %v4607_v32 = vadd.f32 %v5294_v54, %v4606_v57  ;;  %5309 = vpow2.f32 %v4467_v23  ;;  %vm4638_vm3 = vweird.f32 %v7738_v5  ;;  %vm7773_vm4 = vcmp.eq.f32.partialorder %v4642_v12, 8.507059e+37 }
0x16f0   :  { %v4320_v33 = vpop.f32.mrf.mxu2  ;;  %v4651_v43 = vmul.f32 %v5300_v40, %v4650_v50  ;;  %5311 = vrcp.f32 %v7760_v45  ;;  %v4645_v55 = vor.u32 1.1754944e-38, %v4644_v20  ;;  %vm4683_vm6 = vweird.f32 %v7751_v8 }
0x16f1   :  { %v4611_v63 = vsel %vm4610_vm14, %v5294_v54, %v4607_v32  ;;  %v4687_v56 = vand.u32 2147483647, %v7751_v8  ;;  %v4473_v58 = vmul.f32 1.442695, %v4428_v52  ;;  %v4689_v46 = vand.u32 2147483648, %v7751_v8 }
0x16f2   :  { %v4616_v39 = vsel %vm7744_vm13, %v4615_v21, %v4611_v63  ;;  %v4388_v6 = vpop.f32.mrf.mxu0  ;;  %v5304_v49 = vpop.eup %5303  ;;  %v4652_v31 = vadd.f32 %v5300_v40, %v4651_v43  ;;  %v4672_v3 = vand.u32 2147483647, %v7760_v45  ;;  %v4674_v54 = vand.u32 2147483648, %v7760_v45 }
0x16f3   :  { %5027 = vst [vmem:[%s7668_s29 + $0x20] sm:$0xff] %v4616_v39  ;;  %v4634_v41 = vmul.f32 %v5304_v49, %v7738_v5  ;;  %v5306_v2 = vpop.eup %5305  ;;  %vm4639_vm7 = vweird.f32 %v5304_v49  ;;  %v4321_v0 = vadd.f32 %v4320_v33, %v7653_v29  ;;  %v4389_v48 = vadd.f32 %v4388_v6, %v7650_v14 }
0x16f4   :  { %v5308_v1 = vpop.eup %5307  ;;  %v4656_v37 = vsel %vm4655_vm5, %v5300_v40, %v4652_v31  ;;  %v7781_v7 = vadd.f32 1.0, %v5306_v2  ;;  %vm7795_vm8 = vcmp.eq.f32.partialorder %v4687_v56, 8.507059e+37  ;;  %v4690_v51 = vor.u32 1.1754944e-38, %v4689_v46  ;;  %vm4640_vm9 = vmor %vm4638_vm3, %vm4639_vm7 }
0x16f5   :  { %v4635_v30 = vsub.f32 1.0, %v4634_v41  ;;  %v4661_v27 = vsel %vm7766_vm2, %v4660_v13, %v4656_v37  ;;  %v4679_v4 = vmul.f32 %v5308_v1, %v7751_v8  ;;  %v5310_v61 = vpop.eup %5309  ;;  %vm4684_vm10 = vweird.f32 %v5308_v1 }
0x16f6   :  { %5030 = vst.msk [vmem:[%s7668_s29 + $0x38] sm:$0xff] %vm164_vm0, %v4661_v27  ;;  %5313 = vrcp.f32 %v7781_v7  ;;  %v5312_v62 = vpop.eup %5311  ;;  %v7792_v36 = vadd.f32 1.0, %v5310_v61  ;;  %vm4668_vm11 = vweird.f32 %v7760_v45  ;;  %vm7805_vm12 = vcmp.eq.f32.partialorder %v4672_v3, 8.507059e+37  ;;  %vm4685_vm14 = vmor %vm4683_vm6, %vm4684_vm10 }
0x16f7   :  { %v4636_v10 = vmul.f32 %v5304_v49, %v4635_v30  ;;  %v4680_v60 = vsub.f32 1.0, %v4679_v4  ;;  %5315 = vpow2.f32 %v4473_v58  ;;  %v4664_v35 = vmul.f32 %v5312_v62, %v7760_v45 }
0x16f8   :  { %v4323_v11 = vpop.f32.mrf.mxu2  ;;  %5317 = vrcp.f32 %v7792_v36  ;;  %v4675_v47 = vor.u32 1.1754944e-38, %v4674_v54  ;;  %vm4713_vm13 = vweird.f32 %v7781_v7  ;;  %v4427_v5 = vsub.f32 0.0, %v4321_v0 }
0x16f9   :  { %v4637_v28 = vadd.f32 %v5304_v49, %v4636_v10  ;;  %v4681_v19 = vmul.f32 %v5308_v1, %v4680_v60  ;;  %v4665_v24 = vsub.f32 1.0, %v4664_v35  ;;  %v4430_v40 = vsub.f32 0.0, %v4389_v48 }
0x16fa   :  { %v4391_v59 = vpop.f32.mrf.mxu0  ;;  %vm4669_vm15 = vweird.f32 %v5312_v62  ;;  %v4717_v16 = vand.u32 2147483647, %v7781_v7  ;;  %v4324_v15 = vadd.f32 %v4323_v11, %v7653_v29  ;;  %v4719_v23 = vand.u32 2147483648, %v7781_v7 }
0x16fb   :  { %v4641_v9 = vsel %vm4640_vm9, %v5304_v49, %v4637_v28  ;;  %v4682_v38 = vadd.f32 %v5308_v1, %v4681_v19  ;;  %v4666_v18 = vmul.f32 %v5312_v62, %v4665_v24  ;;  %v4471_v25 = vmul.f32 1.442695, %v4427_v5  ;;  %vm4670_vm1 = vmor %vm4668_vm11, %vm4669_vm15 }
0x16fc   :  { %v4646_v44 = vsel %vm7773_vm4, %v4645_v55, %v4641_v9  ;;  %v5314_v57 = vpop.eup %5313  ;;  %v4477_v12 = vmul.f32 1.442695, %v4430_v40  ;;  %v4429_v39 = vsub.f32 0.0, %v4324_v15  ;;  %v4392_v43 = vadd.f32 %v4391_v59, %v7650_v14 }
0x16fd   :  { %5029 = vst [vmem:[%s7668_s29 + $0x30] sm:$0xff] %v4646_v44  ;;  %v5316_v42 = vpop.eup %5315  ;;  %v4686_v32 = vsel %vm4685_vm14, %v5308_v1, %v4682_v38  ;;  %v4709_v22 = vmul.f32 %v5314_v57, %v7781_v7  ;;  %v4667_v50 = vadd.f32 %v5312_v62, %v4666_v18  ;;  %5319 = vpow2.f32 %v4471_v25 }
0x16fe   :  { %v4691_v21 = vsel %vm7795_vm8, %v4690_v51, %v4686_v32  ;;  %v7821_v8 = vadd.f32 1.0, %v5316_v42  ;;  %v5318_v63 = vpop.eup %5317  ;;  %vm7829_vm2 = vcmp.eq.f32.partialorder %v4717_v16, 8.507059e+37  ;;  %vm4714_vm3 = vweird.f32 %v5314_v57 }
0x16ff   :  { %5032 = vst.msk [vmem:[%s7668_s29 + $0x48] sm:$0xff] %vm164_vm0, %v4691_v21  ;;  %v4710_v20 = vsub.f32 1.0, %v4709_v22  ;;  %v4671_v52 = vsel %vm4670_vm1, %v5312_v62, %v4667_v50  ;;  %v4694_v49 = vmul.f32 %v5318_v63, %v7792_v36  ;;  %v4720_v31 = vor.u32 1.1754944e-38, %v4719_v23  ;;  %vm4715_vm4 = vmor %vm4713_vm13, %vm4714_vm3 }
0x1700   :  { %v4326_v33 = vpop.f32.mrf.mxu2  ;;  %5321 = vrcp.f32 %v7821_v8  ;;  %v4676_v13 = vsel %vm7805_vm12, %v4675_v47, %v4671_v52  ;;  %v4702_v17 = vand.u32 2147483647, %v7792_v36  ;;  %v4475_v2 = vmul.f32 1.442695, %v4429_v39 }
0x1701   :  { %v4711_v45 = vmul.f32 %v5314_v57, %v4710_v20  ;;  %5031 = vst [vmem:[%s7668_s29 + $0x40] sm:$0xff] %v4676_v13  ;;  %v4695_v41 = vsub.f32 1.0, %v4694_v49  ;;  %5323 = vpow2.f32 %v4477_v12  ;;  %v4704_v56 = vand.u32 2147483648, %v7792_v36 }
0x1702   :  { %v4394_v26 = vpop.f32.mrf.mxu0  ;;  %v4432_v58 = vsub.f32 0.0, %v4392_v43  ;;  %v4327_v1 = vadd.f32 %v4326_v33, %v7653_v29  ;;  %vm4699_vm5 = vweird.f32 %v5318_v63  ;;  %5325 = vpow2.f32 %v4475_v2 }
0x1703   :  { %v4712_v55 = vadd.f32 %v5314_v57, %v4711_v45  ;;  %v4696_v37 = vmul.f32 %v5318_v63, %v4695_v41  ;;  %v4395_v30 = vadd.f32 %v4394_v26, %v7650_v14  ;;  %v5320_v46 = vpop.eup %5319  ;;  %vm4698_vm6 = vweird.f32 %v7792_v36 }
0x1704   :  { %v4481_v4 = vmul.f32 1.442695, %v4432_v58  ;;  %v4431_v3 = vsub.f32 0.0, %v4327_v1  ;;  %v7847_v0 = vadd.f32 1.0, %v5320_v46  ;;  %vm4700_vm7 = vmor %vm4698_vm6, %vm4699_vm5  ;;  %v4705_v62 = vor.u32 1.1754944e-38, %v4704_v56 }
0x1705   :  { %v4716_v27 = vsel %vm4715_vm4, %v5314_v57, %v4712_v55  ;;  %v4697_v54 = vadd.f32 %v5318_v63, %v4696_v37  ;;  %v4434_v7 = vsub.f32 0.0, %v4395_v30  ;;  %vm4703_vm8 = vcmp.eq.f32.partialorder %v4702_v17, 8.507059e+37 }
0x1706   :  { %v5322_v61 = vpop.eup %5321  ;;  %v4721_v10 = vsel %vm7829_vm2, %v4720_v31, %v4716_v27  ;;  %5327 = vpow2.f32 %v4481_v4  ;;  %v4479_v36 = vmul.f32 1.442695, %v4431_v3  ;;  %v4747_v59 = vand.u32 2147483647, %v7821_v8 }
0x1707   :  { %5034 = vst.msk [vmem:[%s7668_s29 + $0x58] sm:$0xff] %vm164_vm0, %v4721_v10  ;;  %v4739_v60 = vmul.f32 %v5322_v61, %v7821_v8  ;;  %v5324_v48 = vpop.eup %5323  ;;  %v4701_v28 = vsel %vm4700_vm7, %v5318_v63, %v4697_v54  ;;  %5329 = vrcp.f32 %v7847_v0  ;;  %vm4744_vm9 = vweird.f32 %v5322_v61 }
0x1708   :  { %v4329_v11 = vpop.f32.mrf.mxu2  ;;  %v4706_v51 = vsel %vm4703_vm8, %v4705_v62, %v4701_v28  ;;  %v7855_v19 = vadd.f32 1.0, %v5324_v48  ;;  %v5326_v9 = vpop.eup %5325  ;;  %v4749_v24 = vand.u32 2147483648, %v7821_v8  ;;  %5331 = vpow2.f32 %v4479_v36 }
0x1709   :  { %v4740_v35 = vsub.f32 1.0, %v4739_v60  ;;  %5033 = vst [vmem:[%s7668_s29 + $0x50] sm:$0xff] %v4706_v51  ;;  %v4485_v34 = vmul.f32 1.442695, %v4434_v7  ;;  %v4732_v44 = vand.u32 2147483647, %v7847_v0  ;;  %v4330_v38 = vadd.f32 %v4329_v11, %v7653_v29 }
0x170a   :  { %v4397_v53 = vpop.f32.mrf.mxu0  ;;  %5333 = vrcp.f32 %v7855_v19  ;;  %v7862_v5 = vadd.f32 1.0, %v5326_v9  ;;  %vm4743_vm10 = vweird.f32 %v7821_v8  ;;  %v4734_v18 = vand.u32 2147483648, %v7847_v0 }
0x170b   :  { %v4741_v47 = vmul.f32 %v5322_v61, %v4740_v35  ;;  %5335 = vpow2.f32 %v4485_v34  ;;  %vm4745_vm11 = vmor %vm4743_vm10, %vm4744_vm9  ;;  %vm4748_vm12 = vcmp.eq.f32.partialorder %v4747_v59, 8.507059e+37  ;;  %v4750_v15 = vor.u32 1.1754944e-38, %v4749_v24 }
0x170c   :  { %v5328_v40 = vpop.eup %5327  ;;  %vm4728_vm13 = vweird.f32 %v7847_v0  ;;  %5337 = vrcp.f32 %v7862_v5  ;;  %vm7872_vm14 = vcmp.eq.f32.partialorder %v4732_v44, 8.507059e+37  ;;  %v4777_v25 = vand.u32 2147483647, %v7855_v19 }
0x170d   :  { %v4742_v57 = vadd.f32 %v5322_v61, %v4741_v47  ;;  %v5330_v16 = vpop.eup %5329  ;;  %v4433_v21 = vsub.f32 0.0, %v4330_v38  ;;  %v4779_v12 = vand.u32 2147483648, %v7855_v19  ;;  %v7878_v33 = vadd.f32 1.0, %v5328_v40 }
0x170e   :  { %v4724_v22 = vmul.f32 %v5330_v16, %v7847_v0  ;;  %v5332_v50 = vpop.eup %5331  ;;  %v4398_v63 = vadd.f32 %v4397_v53, %v7650_v14  ;;  %v4735_v43 = vor.u32 1.1754944e-38, %v4734_v18  ;;  %v4762_v52 = vand.u32 2147483647, %v7862_v5 }
0x170f   :  { %v4746_v32 = vsel %vm4745_vm11, %v5322_v61, %v4742_v57  ;;  %v7884_v6 = vadd.f32 1.0, %v5332_v50  ;;  %vm4773_vm15 = vweird.f32 %v7855_v19  ;;  %v4764_v26 = vand.u32 2147483648, %v7862_v5 }
0x1710   :  { %v7869_v42 = vpop.f32.mrf.mxu2  ;;  %v4751_v8 = vsel %vm4748_vm12, %v4750_v15, %v4746_v32  ;;  %v5334_v20 = vpop.eup %5333  ;;  %v4725_v39 = vsub.f32 1.0, %v4724_v22  ;;  %5339 = vrcp.f32 %v7878_v33  ;;  %vm4729_vm1 = vweird.f32 %v5330_v16 }
0x1711   :  { %5036 = vst.msk [vmem:[%s7668_s29 + $0x68] sm:$0xff] %vm164_vm0, %v4751_v8  ;;  %v4769_v49 = vmul.f32 %v5334_v20, %v7855_v19  ;;  %v5336_v45 = vpop.eup %5335  ;;  %vm7890_vm2 = vcmp.eq.f32.partialorder %v4777_v25, 8.507059e+37  ;;  %v4483_v17 = vmul.f32 1.442695, %v4433_v21  ;;  %v4780_v56 = vor.u32 1.1754944e-38, %v4779_v12  ;;  %vm4730_vm5 = vmor %vm4728_vm13, %vm4729_vm1 }
0x1712   :  { %v4400_v13 = vpop.f32.mrf.mxu0  ;;  %v4726_v31 = vmul.f32 %v5330_v16, %v4725_v39  ;;  %v5338_v2 = vpop.eup %5337  ;;  %5341 = vrcp.f32 %v7884_v6  ;;  %v4436_v58 = vsub.f32 0.0, %v4398_v63  ;;  %vm4758_vm3 = vweird.f32 %v7862_v5 }
0x1713   :  { %v4770_v55 = vsub.f32 1.0, %v4769_v49  ;;  %v4754_v37 = vmul.f32 %v5338_v2, %v7862_v5  ;;  %vm7897_vm4 = vcmp.eq.f32.partialorder %v4762_v52, 8.507059e+37  ;;  %vm4774_vm6 = vweird.f32 %v5334_v20 }
0x1714   :  { %v4727_v1 = vadd.f32 %v5330_v16, %v4726_v31  ;;  %v4765_v27 = vor.u32 1.1754944e-38, %v4764_v26  ;;  %v4807_v4 = vand.u32 2147483647, %v7878_v33  ;;  %vm4803_vm7 = vweird.f32 %v7878_v33  ;;  %vm4775_vm8 = vmor %vm4773_vm15, %vm4774_vm6 }
0x1715   :  { %v4771_v46 = vmul.f32 %v5334_v20, %v4770_v55  ;;  %v4755_v10 = vsub.f32 1.0, %v4754_v37  ;;  %v7905_v54 = vadd.f32 1.0, %v5336_v45  ;;  %5343 = vpow2.f32 %v4483_v17 }
0x1716   :  { %v4731_v61 = vsel %vm4730_vm5, %v5330_v16, %v4727_v1  ;;  %v5340_v7 = vpop.eup %5339  ;;  %v4809_v62 = vand.u32 2147483648, %v7878_v33  ;;  %v4489_v60 = vmul.f32 1.442695, %v4436_v58  ;;  %vm4759_vm9 = vweird.f32 %v5338_v2 }
0x1717   :  { %v4736_v11 = vsel %vm7872_vm14, %v4735_v43, %v4731_v61  ;;  %v4772_v0 = vadd.f32 %v5334_v20, %v4771_v46  ;;  %v4756_v36 = vmul.f32 %v5338_v2, %v4755_v10  ;;  %v4799_v48 = vmul.f32 %v5340_v7, %v7878_v33  ;;  %vm4760_vm12 = vmor %vm4758_vm3, %vm4759_vm9 }
0x1718   :  { %v4335_v3 = vpop.f32.mrf.mxu2  ;;  %5035 = vst [vmem:[%s7668_s29 + $0x60] sm:$0xff] %v4736_v11  ;;  %5345 = vrcp.f32 %v7905_v54  ;;  %v5342_v28 = vpop.eup %5341  ;;  %vm7916_vm10 = vcmp.eq.f32.partialorder %v4807_v4, 8.507059e+37  ;;  %vm4788_vm11 = vweird.f32 %v7884_v6  ;;  %v4792_v35 = vand.u32 2147483647, %v7884_v6 }
0x1719   :  { %v4776_v53 = vsel %vm4775_vm8, %v5334_v20, %v4772_v0  ;;  %v4757_v19 = vadd.f32 %v5338_v2, %v4756_v36  ;;  %v4800_v9 = vsub.f32 1.0, %v4799_v48  ;;  %v4784_v24 = vmul.f32 %v5342_v28, %v7884_v6 }
0x171a   :  { %v4781_v59 = vsel %vm7890_vm2, %v4780_v56, %v4776_v53  ;;  %vm4804_vm13 = vweird.f32 %v5340_v7  ;;  %v4810_v34 = vor.u32 1.1754944e-38, %v4809_v62  ;;  %v4794_v47 = vand.u32 2147483648, %v7884_v6  ;;  %v4403_v44 = vpop.f32.mrf.mxu0 }
0x171b   :  { %5038 = vst.msk [vmem:[%s7668_s29 + $0x78] sm:$0xff] %vm164_vm0, %v4781_v59  ;;  %5347 = vpow2.f32 %v4489_v60  ;;  %v5344_v38 = vpop.eup %5343  ;;  %v4761_v40 = vsel %vm4760_vm12, %v5338_v2, %v4757_v19  ;;  %v4801_v57 = vmul.f32 %v5340_v7, %v4800_v9  ;;  %v4785_v18 = vsub.f32 1.0, %v4784_v24  ;;  %vm4805_vm1 = vmor %vm4803_vm7, %vm4804_vm13 }
0x171c   :  { %v4333_v16 = vadd.f32 %v7869_v42, %v7653_v29  ;;  %v4766_v15 = vsel %vm7897_vm4, %v4765_v27, %v4761_v40  ;;  %vm7934_vm14 = vcmp.eq.f32.partialorder %v4792_v35, 8.507059e+37  ;;  %v7938_v32 = vadd.f32 1.0, %v5344_v38 }
0x171d   :  { %v4401_v22 = vadd.f32 %v4400_v13, %v7650_v14  ;;  %5037 = vst [vmem:[%s7668_s29 + $0x70] sm:$0xff] %v4766_v15  ;;  %v4802_v25 = vadd.f32 %v5340_v7, %v4801_v57  ;;  %v4786_v21 = vmul.f32 %v5342_v28, %v4785_v18  ;;  %vm4789_vm15 = vweird.f32 %v5342_v28 }
0x171e   :  { %v5346_v23 = vpop.eup %5345  ;;  %v4435_v50 = vsub.f32 0.0, %v4333_v16  ;;  %v4795_v42 = vor.u32 1.1754944e-38, %v4794_v47  ;;  %v4837_v63 = vand.u32 2147483647, %v7905_v54  ;;  %5349 = vrcp.f32 %v7938_v32  ;;  %vm4790_vm2 = vmor %vm4788_vm11, %vm4789_vm15 }
0x171f   :  { %v4829_v12 = vmul.f32 %v5346_v23, %v7905_v54  ;;  %v4806_v20 = vsel %vm4805_vm1, %v5340_v7, %v4802_v25  ;;  %v4787_v39 = vadd.f32 %v5342_v28, %v4786_v21  ;;  %v4336_v43 = vadd.f32 %v4335_v3, %v7653_v29 }
0x1720   :  { %v4338_v8 = vpop.f32.mrf.mxu2  ;;  %v4404_v52 = vadd.f32 %v4403_v44, %v7650_v14  ;;  %v4811_v33 = vsel %vm7916_vm10, %v4810_v34, %v4806_v20  ;;  %v4487_v13 = vmul.f32 1.442695, %v4435_v50  ;;  %v4438_v45 = vsub.f32 0.0, %v4401_v22 }
0x1721   :  { %v5348_v49 = vpop.eup %5347  ;;  %v4830_v26 = vsub.f32 1.0, %v4829_v12  ;;  %5040 = vst.msk [vmem:[%s7668_s29 + $0x88] sm:$0xff] %vm164_vm0, %v4811_v33  ;;  %v4791_v31 = vsel %vm4790_vm2, %v5342_v28, %v4787_v39  ;;  %vm4834_vm3 = vweird.f32 %v5346_v23  ;;  %v4839_v41 = vand.u32 2147483648, %v7905_v54 }
0x1722   :  { %v7957_v17 = vadd.f32 1.0, %v5348_v49  ;;  %v4796_v2 = vsel %vm7934_vm14, %v4795_v42, %v4791_v31  ;;  %5351 = vpow2.f32 %v4487_v13  ;;  %v4493_v56 = vmul.f32 1.442695, %v4438_v45  ;;  %v4406_v30 = vpop.f32.mrf.mxu0 }
0x1723   :  { %v4831_v55 = vmul.f32 %v5346_v23, %v4830_v26  ;;  %5039 = vst [vmem:[%s7668_s29 + $0x80] sm:$0xff] %v4796_v2  ;;  %vm4833_vm4 = vweird.f32 %v7905_v54  ;;  %v4437_v1 = vsub.f32 0.0, %v4336_v43  ;;  %v4440_v37 = vsub.f32 0.0, %v4404_v52 }
0x1724   :  { %5353 = vrcp.f32 %v7957_v17  ;;  %v5350_v6 = vpop.eup %5349  ;;  %vm4835_vm5 = vmor %vm4833_vm4, %vm4834_vm3  ;;  %vm4838_vm6 = vcmp.eq.f32.partialorder %v4837_v63, 8.507059e+37  ;;  %v4840_v46 = vor.u32 1.1754944e-38, %v4839_v41  ;;  %v4822_v4 = vand.u32 2147483647, %v7938_v32 }
0x1725   :  { %v4832_v58 = vadd.f32 %v5346_v23, %v4831_v55  ;;  %5355 = vpow2.f32 %v4493_v56  ;;  %v4814_v27 = vmul.f32 %v5350_v6, %v7938_v32  ;;  %v4491_v61 = vmul.f32 1.442695, %v4437_v1 }
0x1726   :  { %v4497_v10 = vmul.f32 1.442695, %v4440_v37  ;;  %v4339_v54 = vadd.f32 %v4338_v8, %v7653_v29  ;;  %v4824_v0 = vand.u32 2147483648, %v7938_v32  ;;  %v4407_v62 = vadd.f32 %v4406_v30, %v7650_v14 }
0x1727   :  { %v4836_v3 = vsel %vm4835_vm5, %v5346_v23, %v4832_v58  ;;  %v4815_v11 = vsub.f32 1.0, %v4814_v27  ;;  %vm4819_vm7 = vweird.f32 %v5350_v6  ;;  %5357 = vpow2.f32 %v4491_v61 }
0x1728   :  { %v4841_v7 = vsel %vm4838_vm6, %v4840_v46, %v4836_v3  ;;  %v4341_v60 = vpop.f32.mrf.mxu2  ;;  %v5352_v36 = vpop.eup %5351  ;;  %v4439_v48 = vsub.f32 0.0, %v4339_v54  ;;  %5359 = vpow2.f32 %v4497_v10  ;;  %v4442_v35 = vsub.f32 0.0, %v4407_v62 }
0x1729   :  { %5042 = vst.msk [vmem:[%s7668_s29 + $0x98] sm:$0xff] %vm164_vm0, %v4841_v7  ;;  %v4816_v53 = vmul.f32 %v5350_v6, %v4815_v11  ;;  %v7972_v51 = vadd.f32 1.0, %v5352_v36  ;;  %vm4818_vm8 = vweird.f32 %v7938_v32  ;;  %v4342_v24 = vadd.f32 %v4341_v60, %v7653_v29 }
0x172a   :  { %v5354_v28 = vpop.eup %5353  ;;  %v4495_v9 = vmul.f32 1.442695, %v4439_v48  ;;  %vm4823_vm9 = vcmp.eq.f32.partialorder %v4822_v4, 8.507059e+37  ;;  %v4825_v47 = vor.u32 1.1754944e-38, %v4824_v0  ;;  %vm4820_vm10 = vmor %vm4818_vm8, %vm4819_vm7  ;;  %v4867_v38 = vand.u32 2147483647, %v7957_v17  ;;  %v4409_v23 = vpop.f32.mrf.mxu0 }
0x172b   :  { %v5356_v59 = vpop.eup %5355  ;;  %v4859_v19 = vmul.f32 %v5354_v28, %v7957_v17  ;;  %v4817_v34 = vadd.f32 %v5350_v6, %v4816_v53  ;;  %5361 = vrcp.f32 %v7972_v51  ;;  %vm4864_vm11 = vweird.f32 %v5354_v28 }
0x172c   :  { %v7980_v40 = vadd.f32 1.0, %v5356_v59  ;;  %5363 = vpow2.f32 %v4495_v9  ;;  %v4869_v18 = vand.u32 2147483648, %v7957_v17  ;;  %v4501_v16 = vmul.f32 1.442695, %v4442_v35 }
0x172d   :  { %v4860_v44 = vsub.f32 1.0, %v4859_v19  ;;  %v4821_v57 = vsel %vm4820_vm10, %v5350_v6, %v4817_v34  ;;  %v5358_v15 = vpop.eup %5357  ;;  %v4441_v22 = vsub.f32 0.0, %v4342_v24  ;;  %vm4863_vm12 = vweird.f32 %v7957_v17 }
0x172e   :  { %v4826_v5 = vsel %vm4823_vm9, %v4825_v47, %v4821_v57  ;;  %5365 = vrcp.f32 %v7980_v40  ;;  %v5360_v25 = vpop.eup %5359  ;;  %v4852_v21 = vand.u32 2147483647, %v7972_v51  ;;  %v7987_v50 = vadd.f32 1.0, %v5358_v15  ;;  %vm4865_vm13 = vmor %vm4863_vm12, %vm4864_vm11 }
0x172f   :  { %v4861_v32 = vmul.f32 %v5354_v28, %v4860_v44  ;;  %5041 = vst [vmem:[%s7668_s29 + $0x90] sm:$0xff] %v4826_v5  ;;  %v4854_v42 = vand.u32 2147483648, %v7972_v51  ;;  %v7990_v12 = vadd.f32 1.0, %v5360_v25  ;;  %5367 = vpow2.f32 %v4501_v16 }
0x1730   :  { %v4870_v20 = vor.u32 1.1754944e-38, %v4869_v18  ;;  %v4897_v39 = vand.u32 2147483647, %v7980_v40  ;;  %5369 = vrcp.f32 %v7987_v50  ;;  %v4410_v43 = vadd.f32 %v4409_v23, %v7650_v14  ;;  %v4344_v54 = vpop.f32.mrf.mxu2 }
0x1731   :  { %v4862_v8 = vadd.f32 %v5354_v28, %v4861_v32  ;;  %v5362_v63 = vpop.eup %5361  ;;  %vm4868_vm14 = vcmp.eq.f32.partialorder %v4867_v38, 8.507059e+37  ;;  %v4499_v26 = vmul.f32 1.442695, %v4441_v22  ;;  %vm4848_vm15 = vweird.f32 %v7972_v51 }
0x1732   :  { %v5364_v52 = vpop.eup %5363  ;;  %v4844_v33 = vmul.f32 %v5362_v63, %v7972_v51  ;;  %v4899_v45 = vand.u32 2147483648, %v7980_v40  ;;  %5371 = vrcp.f32 %v7990_v12  ;;  %vm8002_vm1 = vcmp.eq.f32.partialorder %v4852_v21, 8.507059e+37 }
0x1733   :  { %v4866_v49 = vsel %vm4865_vm13, %v5354_v28, %v4862_v8  ;;  %v4855_v2 = vor.u32 1.1754944e-38, %v4854_v42  ;;  %vm4893_vm2 = vweird.f32 %v7980_v40  ;;  %vm8008_vm3 = vcmp.eq.f32.partialorder %v4897_v39, 8.507059e+37 }
0x1734   :  { %v4871_v13 = vsel %vm4868_vm14, %v4870_v20, %v4866_v49  ;;  %v5366_v31 = vpop.eup %5365  ;;  %v4845_v41 = vsub.f32 1.0, %v4844_v33  ;;  %v8012_v6 = vadd.f32 1.0, %v5364_v52  ;;  %v4444_v58 = vsub.f32 0.0, %v4410_v43  ;;  %v4412_v43 = vpop.f32.mrf.mxu0 }
0x1735   :  { %5044 = vst.msk [vmem:[%s7668_s29 + $0xa8] sm:$0xff] %vm164_vm0, %v4871_v13  ;;  %v4889_v55 = vmul.f32 %v5366_v31, %v7980_v40  ;;  %v5368_v1 = vpop.eup %5367  ;;  %vm4849_vm4 = vweird.f32 %v5362_v63  ;;  %v4882_v30 = vand.u32 2147483647, %v7987_v50  ;;  %5373 = vpow2.f32 %v4499_v26 }
0x1736   :  { %v4846_v37 = vmul.f32 %v5362_v63, %v4845_v41  ;;  %v5370_v46 = vpop.eup %5369  ;;  %v4900_v4 = vor.u32 1.1754944e-38, %v4899_v45  ;;  %vm4878_vm5 = vweird.f32 %v7987_v50  ;;  %5375 = vrcp.f32 %v8012_v6  ;;  %vm4850_vm7 = vmor %vm4848_vm15, %vm4849_vm4 }
0x1737   :  { %v4890_v27 = vsub.f32 1.0, %v4889_v55  ;;  %v4874_v61 = vmul.f32 %v5370_v46, %v7987_v50  ;;  %v4884_v10 = vand.u32 2147483648, %v7987_v50  ;;  %vm4923_vm6 = vweird.f32 %v7990_v12 }
0x1738   :  { %v4847_v3 = vadd.f32 %v5362_v63, %v4846_v37  ;;  %v5372_v7 = vpop.eup %5371  ;;  %vm4894_vm8 = vweird.f32 %v5366_v31  ;;  %v8022_v0 = vadd.f32 1.0, %v5368_v1  ;;  %v4505_v62 = vmul.f32 1.442695, %v4444_v58  ;;  %v4347_v52 = vpop.f32.mrf.mxu2 }
0x1739   :  { %v4891_v11 = vmul.f32 %v5366_v31, %v4890_v27  ;;  %v4875_v36 = vsub.f32 1.0, %v4874_v61  ;;  %vm8024_vm9 = vcmp.eq.f32.partialorder %v4882_v30, 8.507059e+37  ;;  %v4919_v28 = vmul.f32 %v5372_v7, %v7990_v12  ;;  %vm4895_vm10 = vmor %vm4893_vm2, %vm4894_vm8 }
0x173a   :  { %v4851_v60 = vsel %vm4850_vm7, %v5362_v63, %v4847_v3  ;;  %v4927_v51 = vand.u32 2147483647, %v7990_v12  ;;  %5377 = vrcp.f32 %v8022_v0  ;;  %vm4879_vm11 = vweird.f32 %v5370_v46 }
0x173b   :  { %v4856_v53 = vsel %vm8002_vm1, %v4855_v2, %v4851_v60  ;;  %v4892_v35 = vadd.f32 %v5366_v31, %v4891_v11  ;;  %v5374_v59 = vpop.eup %5373  ;;  %v4876_v19 = vmul.f32 %v5370_v46, %v4875_v36  ;;  %v4920_v9 = vsub.f32 1.0, %v4919_v28  ;;  %vm4880_vm13 = vmor %vm4878_vm5, %vm4879_vm11 }
0x173c   :  { %5043 = vst [vmem:[%s7668_s29 + $0xa0] sm:$0xff] %v4856_v53  ;;  %v4929_v24 = vand.u32 2147483648, %v7990_v12  ;;  %v5376_v34 = vpop.eup %5375  ;;  %vm4924_vm12 = vweird.f32 %v5372_v7  ;;  %v8037_v44 = vadd.f32 1.0, %v5374_v59  ;;  %5379 = vpow2.f32 %v4505_v62 }
0x173d   :  { %v4896_v47 = vsel %vm4895_vm10, %v5366_v31, %v4892_v35  ;;  %v4877_v57 = vadd.f32 %v5370_v46, %v4876_v19  ;;  %v4921_v18 = vmul.f32 %v5372_v7, %v4920_v9  ;;  %v4904_v16 = vmul.f32 %v5376_v34, %v8012_v6  ;;  %vm4925_vm15 = vmor %vm4923_vm6, %vm4924_vm12 }
0x173e   :  { %v4901_v38 = vsel %vm8008_vm3, %v4900_v4, %v4896_v47  ;;  %v4885_v40 = vor.u32 1.1754944e-38, %v4884_v10  ;;  %v4912_v15 = vand.u32 2147483647, %v8012_v6  ;;  %v4914_v5 = vand.u32 2147483648, %v8012_v6 }
0x173f   :  { %5046 = vst.msk [vmem:[%s7668_s29 + $0xb8] sm:$0xff] %vm164_vm0, %v4901_v38  ;;  %5381 = vrcp.f32 %v8037_v44  ;;  %v4881_v32 = vsel %vm4880_vm13, %v5370_v46, %v4877_v57  ;;  %v4922_v22 = vadd.f32 %v5372_v7, %v4921_v18  ;;  %vm8049_vm14 = vcmp.eq.f32.partialorder %v4927_v51, 8.507059e+37 }
0x1740   :  { %v4905_v25 = vsub.f32 1.0, %v4904_v16  ;;  %v5378_v21 = vpop.eup %5377  ;;  %v4886_v50 = vsel %vm8024_vm9, %v4885_v40, %v4881_v32  ;;  %v4930_v8 = vor.u32 1.1754944e-38, %v4929_v24  ;;  %vm4908_vm1 = vweird.f32 %v8012_v6 }
0x1741   :  { %v4345_v42 = vadd.f32 %v4344_v54, %v7653_v29  ;;  %5045 = vst [vmem:[%s7668_s29 + $0xb0] sm:$0xff] %v4886_v50  ;;  %v4926_v63 = vsel %vm4925_vm15, %v5372_v7, %v4922_v22  ;;  %vm4909_vm2 = vweird.f32 %v5376_v34  ;;  %v4949_v39 = vmul.f32 %v5378_v21, %v8022_v0 }
0x1742   :  { %v4906_v20 = vmul.f32 %v5376_v34, %v4905_v25  ;;  %v5380_v49 = vpop.eup %5379  ;;  %v4931_v33 = vsel %vm8049_vm14, %v4930_v8, %v4926_v63  ;;  %vm8064_vm3 = vcmp.eq.f32.partialorder %v4912_v15, 8.507059e+37  ;;  %v4915_v26 = vor.u32 1.1754944e-38, %v4914_v5  ;;  %vm4910_vm4 = vmor %vm4908_vm1, %vm4909_vm2 }
0x1743   :  { %v4443_v13 = vsub.f32 0.0, %v4345_v42  ;;  %5048 = vst.msk [vmem:[%s7668_s29 + $0xc8] sm:$0xff] %vm164_vm0, %v4931_v33  ;;  %v4950_v31 = vsub.f32 1.0, %v4949_v39  ;;  %v4957_v41 = vand.u32 2147483647, %v8022_v0  ;;  %v4540_v17 = vadd.f32 1.0, %v5380_v49 }
0x1744   :  { %v4907_v45 = vadd.f32 %v5376_v34, %v4906_v20  ;;  %v4959_v55 = vand.u32 2147483648, %v8022_v0  ;;  %v4413_v58 = vadd.f32 %v4412_v43, %v7650_v14  ;;  %v4348_v1 = vadd.f32 %v4347_v52, %v7653_v29 }
0x1745   :  { %v5382_v2 = vpop.eup %5381  ;;  %v4503_v56 = vmul.f32 1.442695, %v4443_v13  ;;  %v4951_v30 = vmul.f32 %v5378_v21, %v4950_v31  ;;  %vm4954_vm5 = vweird.f32 %v5378_v21  ;;  %vm4953_vm6 = vweird.f32 %v8022_v0 }
0x1746   :  { %v4911_v37 = vsel %vm4910_vm4, %v5376_v34, %v4907_v45  ;;  %v4934_v46 = vmul.f32 %v5382_v2, %v8037_v44  ;;  %5383 = vrcp.f32 %v4540_v17  ;;  %vm4958_vm7 = vcmp.eq.f32.partialorder %v4957_v41, 8.507059e+37  ;;  %vm4955_vm8 = vmor %vm4953_vm6, %vm4954_vm5 }
0x1747   :  { %v4916_v27 = vsel %vm8064_vm3, %v4915_v26, %v4911_v37  ;;  %v4952_v6 = vadd.f32 %v5378_v21, %v4951_v30  ;;  %5385 = vpow2.f32 %v4503_v56  ;;  %v4960_v14 = vor.u32 1.1754944e-38, %v4959_v55 }
0x1748   :  { %5047 = vst [vmem:[%s7668_s29 + $0xc0] sm:$0xff] %v4916_v27  ;;  %v4935_v4 = vsub.f32 1.0, %v4934_v46  ;;  %v4944_v29 = vand.u32 2147483648, %v8037_v44  ;;  %v4446_v3 = vsub.f32 0.0, %v4413_v58  ;;  %v4445_v61 = vsub.f32 0.0, %v4348_v1 }
0x1749   :  { %v4956_v10 = vsel %vm4955_vm8, %v5378_v21, %v4952_v6  ;;  %vm4939_vm9 = vweird.f32 %v5382_v2  ;;  %v4942_v7 = vand.u32 2147483647, %v8037_v44  ;;  %vm4938_vm10 = vweird.f32 %v8037_v44 }
0x174a   :  { %v4936_v54 = vmul.f32 %v5382_v2, %v4935_v4  ;;  %v4961_v11 = vsel %vm4958_vm7, %v4960_v14, %v4956_v10  ;;  %v4509_v0 = vmul.f32 1.442695, %v4446_v3  ;;  %v4507_v62 = vmul.f32 1.442695, %v4445_v61  ;;  %vm4940_vm11 = vmor %vm4938_vm10, %vm4939_vm9 }
0x174b   :  { %5050 = vst.msk [vmem:[%s7668_s29 + $0xd8] sm:$0xff] %vm164_vm0, %v4961_v11  ;;  %v4945_v48 = vor.u32 1.1754944e-38, %v4944_v29  ;;  %vm4943_vm12 = vcmp.eq.f32.partialorder %v4942_v7, 8.507059e+37  ;;  %v4989_v9 = vand.u32 2147483648, %v4540_v17  ;;  %v4987_v34 = vand.u32 2147483647, %v4540_v17 }
0x174c   :  { %v4937_v60 = vadd.f32 %v5382_v2, %v4936_v54  ;;  %v5384_v36 = vpop.eup %5383  ;;  %5387 = vpow2.f32 %v4509_v0  ;;  %vm4983_vm14 = vweird.f32 %v4540_v17 }
0x174d   :  { %v5386_v28 = vpop.eup %5385  ;;  %v4979_v35 = vmul.f32 %v5384_v36, %v4540_v17  ;;  %5389 = vpow2.f32 %v4507_v62  ;;  %vm4984_vm13 = vweird.f32 %v5384_v36  ;;  %v4990_v18 = vor.u32 1.1754944e-38, %v4989_v9 }
0x174e   :  { %v4941_v53 = vsel %vm4940_vm11, %v5382_v2, %v4937_v60  ;;  %v4539_v59 = vadd.f32 1.0, %v5386_v28  ;;  %vm4985_vm15 = vmor %vm4983_vm14, %vm4984_vm13  ;;  %vm4988_vm1 = vcmp.eq.f32.partialorder %v4987_v34, 8.507059e+37 }
0x174f   :  { %v4946_v51 = vsel %vm4943_vm12, %v4945_v48, %v4941_v53  ;;  %v4980_v19 = vsub.f32 1.0, %v4979_v35 }
0x1750   :  { %5049 = vst [vmem:[%s7668_s29 + $0xd0] sm:$0xff] %v4946_v51  ;;  %5391 = vrcp.f32 %v4539_v59  ;;  %v4972_v23 = vand.u32 2147483647, %v4539_v59  ;;  %v4974_v25 = vand.u32 2147483648, %v4539_v59  ;;  %vm4968_vm3 = vweird.f32 %v4539_v59 }
0x1751   :  { %v4981_v24 = vmul.f32 %v5384_v36, %v4980_v19 }
0x1752   :  { %v5388_v47 = vpop.eup %5387  ;;  %vm4973_vm5 = vcmp.eq.f32.partialorder %v4972_v23, 8.507059e+37  ;;  %v4975_v39 = vor.u32 1.1754944e-38, %v4974_v25 }
0x1753   :  { %v5390_v44 = vpop.eup %5389  ;;  %v4982_v38 = vadd.f32 %v5384_v36, %v4981_v24  ;;  %v4542_v57 = vadd.f32 1.0, %v5388_v47 }
0x1754   :  { %v4541_v16 = vadd.f32 1.0, %v5390_v44 }
0x1755   :  { %v4986_v40 = vsel %vm4985_vm15, %v5384_v36, %v4982_v38  ;;  %5393 = vrcp.f32 %v4542_v57  ;;  %v5017_v49 = vand.u32 2147483647, %v4542_v57  ;;  %v5019_v33 = vand.u32 2147483648, %v4542_v57 }
0x1756   :  { %v5392_v15 = vpop.eup %5391  ;;  %v4991_v5 = vsel %vm4988_vm1, %v4990_v18, %v4986_v40  ;;  %5395 = vrcp.f32 %v4541_v16  ;;  %v5004_v45 = vand.u32 2147483648, %v4541_v16  ;;  %v5002_v41 = vand.u32 2147483647, %v4541_v16 }
0x1757   :  { %5052 = vst.msk [vmem:[%s7668_s29 + $0xe8] sm:$0xff] %vm164_vm0, %v4991_v5  ;;  %v4964_v32 = vmul.f32 %v5392_v15, %v4539_v59  ;;  %vm4969_vm2 = vweird.f32 %v5392_v15  ;;  %vm5013_vm8 = vweird.f32 %v4542_v57  ;;  %v5020_v2 = vor.u32 1.1754944e-38, %v5019_v33 }
0x1758   :  { %vm4970_vm4 = vmor %vm4968_vm3, %vm4969_vm2  ;;  %vm4998_vm10 = vweird.f32 %v4541_v16  ;;  %vm5018_vm11 = vcmp.eq.f32.partialorder %v5017_v49, 8.507059e+37  ;;  %v5005_v58 = vor.u32 1.1754944e-38, %v5004_v45  ;;  %vm5003_vm13 = vcmp.eq.f32.partialorder %v5002_v41, 8.507059e+37 }
0x1759   :  { %v4965_v22 = vsub.f32 1.0, %v4964_v32 }
0x175b   :  { %v5394_v21 = vpop.eup %5393  ;;  %v4966_v50 = vmul.f32 %v5392_v15, %v4965_v22 }
0x175c   :  { %v5396_v8 = vpop.eup %5395  ;;  %v5009_v42 = vmul.f32 %v5394_v21, %v4542_v57  ;;  %vm5014_vm6 = vweird.f32 %v5394_v21 }
0x175d   :  { %v4967_v63 = vadd.f32 %v5392_v15, %v4966_v50  ;;  %v4994_v20 = vmul.f32 %v5396_v8, %v4541_v16  ;;  %vm4999_vm7 = vweird.f32 %v5396_v8  ;;  %vm5015_vm9 = vmor %vm5013_vm8, %vm5014_vm6 }
0x175e   :  { %v5010_v43 = vsub.f32 1.0, %v5009_v42  ;;  %vm5000_vm12 = vmor %vm4998_vm10, %vm4999_vm7 }
0x175f   :  { %v4971_v52 = vsel %vm4970_vm4, %v5392_v15, %v4967_v63  ;;  %v4995_v12 = vsub.f32 1.0, %v4994_v20 }
0x1760   :  { %v4976_v26 = vsel %vm4973_vm5, %v4975_v39, %v4971_v52  ;;  %v5011_v13 = vmul.f32 %v5394_v21, %v5010_v43 }
0x1761   :  { %5051 = vst [vmem:[%s7668_s29 + $0xe0] sm:$0xff] %v4976_v26  ;;  %v4996_v31 = vmul.f32 %v5396_v8, %v4995_v12 }
0x1762   :  { %v5012_v17 = vadd.f32 %v5394_v21, %v5011_v13 }
0x1763   :  { %v4997_v55 = vadd.f32 %v5396_v8, %v4996_v31 }
0x1764   :  { %v5016_v56 = vsel %vm5015_vm9, %v5394_v21, %v5012_v17 }
0x1765   :  { %v5021_v1 = vsel %vm5018_vm11, %v5020_v2, %v5016_v56  ;;  %v5001_v37 = vsel %vm5000_vm12, %v5396_v8, %v4997_v55 }
0x1766   :  { %5054 = vst.msk [vmem:[%s7668_s29 + $0xf8] sm:$0xff] %vm164_vm0, %v5021_v1  ;;  %v5006_v30 = vsel %vm5003_vm13, %v5005_v58, %v5001_v37 }
0x1767   :  { %5053 = vst [vmem:[%s7668_s29 + $0xf0] sm:$0xff] %v5006_v30 }

</bundles_post_ra>
